<compile_context>
chip_gen: v7x
topology: tpu7x:2x2x1
jax: 0.10.0
libtpu: 0.0.40
codegen_flags: <defaults>
</compile_context>

<pallas_src>
import jax
import jax.numpy as jnp
from jax.experimental import pallas as pl
from jax.experimental.pallas import tpu as pltpu  # noqa: F401  (TPU backend)

# ----------------------------- model sizes ---------------------------------
B, T, C, DG = 2, 4, 1, 16          # batch, time, voxel channels, grid edge
G = DG ** 3                        # flattened voxel count (4096)
K = 8                              # number of keypoints
HID = 32                           # dynamics hidden size
DIN = K * 4                        # flattened keypoint dim (xyz + intensity)
TAU = 0.5                          # affinity temperature
TCOND = 2                          # matches options.Tcond (unused in forward)


def _softmax_dtype():
    """bf16 EUP path exists on v6e / v7x; keep f32 on v5e and older chips."""
    try:
        kind = jax.devices()[0].device_kind.lower()
    except Exception:
        return jnp.float32
    if ("v6" in kind) or ("v7" in kind) or ("7x" in kind):
        return jnp.bfloat16
    return jnp.float32


# --------------------------- fused forward kernel ---------------------------
def _fused_kernel(vox_ref, w_ref, b_ref, coords_ref, wx_ref, wh_ref, brnn_ref,
                  kp_ref, aff_ref, dyna_ref):
    """Single-invocation kernel: detector + affinity + aggregation + RNN."""
    BT, Gv = vox_ref.shape
    Kk = w_ref.shape[0]
    Bv, Tv = kp_ref.shape[0], kp_ref.shape[1]
    HIDv = wh_ref.shape[0]

    # ---------------- detector: heatmaps for all (frame, keypoint) rows ----
    vox = vox_ref[...]                                    # (BT, G) f32
    w2 = w_ref[...]                                       # (K, 1)
    b2 = b_ref[...]                                       # (K, 1)
    # One (BT*K, G) tile, bt-major rows.  C == 1, so the 1x1x1 "conv" is a
    # VPU broadcast multiply-add instead of a degenerate MXU contraction.
    pieces = [w2 * vox[i:i + 1, :] + b2 for i in range(BT)]   # each (K, G)
    heat = jnp.concatenate(pieces, axis=0)                # (BT*K, G)

    # Spatial softmax over the voxel grid: one reduce + one exp for all rows.
    m = jnp.max(heat, axis=-1, keepdims=True)             # (BT*K, 1) f32
    # exp in coords dtype: bf16 on v6e/v7x (faster EUP path), f32 on v5e.
    e = jnp.exp((heat - m).astype(coords_ref.dtype))      # (BT*K, G)

    # coords_ref column 3 is ones -> the same MXU pass yields both the
    # unnormalized expected coords and the softmax denominator.
    res = jnp.dot(e, coords_ref[...],
                  preferred_element_type=jnp.float32)     # (BT*K, 8)
    xyz = res[:, 0:3] / res[:, 3:4]                       # (BT*K, 3)
    inten = 1.0 / (1.0 + jnp.exp(-m))                     # sigmoid of max heat
    kp_rows = jnp.concatenate([xyz, inten], axis=-1)      # (BT*K, 4)
    kp4 = kp_rows.reshape(Bv, Tv, Kk, 4)                  # (B, T, K, 4)
    kp_ref[...] = kp4

    # ---------------- affinity from first-frame keypoints ------------------
    p0 = kp4[:, 0, :, 0:3]                                # (B, K, 3)
    gram = jnp.einsum('bid,bjd->bij', p0, p0,
                      preferred_element_type=jnp.float32)
    sqj = jnp.einsum('bid,bjd->bij', jnp.ones_like(p0), p0 * p0,
                     preferred_element_type=jnp.float32)
    # softmax_j(-||p_i - p_j||^2 / tau); the ||p_i||^2 term cancels inside the
    # row-wise softmax, so it is dropped (valid ONLY because of row softmax).
    logits = (2.0 * gram - sqj) * (1.0 / TAU)
    ml = jnp.max(logits, axis=-1, keepdims=True)
    el = jnp.exp(logits - ml)
    aff = el / jnp.sum(el, axis=-1, keepdims=True)        # (B, K, K)
    aff_ref[...] = aff

    # ---------------- dynamics encoder: aggregated keypoints -> tanh RNN ---
    wx = wx_ref[...]                                      # (K*4, HID)
    wh = wh_ref[...]                                      # (HID, HID)
    br = brnn_ref[...]                                    # (1, HID)
    h = jnp.zeros((Bv, HIDv), jnp.float32)
    outs = []
    for t in range(Tv):                                   # statically unrolled
        kpt = kp4[:, t]                                   # (B, K, 4)
        xat = jnp.einsum('bij,bjd->bid', aff, kpt,
                         preferred_element_type=jnp.float32)  # (B, K, 4)
        # Flatten (K, 4) -> 32 lanes via lane concat of per-keypoint slices
        # (avoids an in-kernel sublane/lane merge reshape).
        x = jnp.concatenate([xat[:, k, :] for k in range(Kk)], axis=-1)  # (B, DIN)
        pre = (jnp.dot(x, wx, preferred_element_type=jnp.float32)
               + jnp.dot(h, wh, preferred_element_type=jnp.float32)
               + br)
        h = jnp.tanh(pre)
        outs.append(h)
    dyna_ref[...] = jnp.stack(outs, axis=0)               # (T, B, HID), 1 store


@jax.jit
def _fused_forward(vox_seq, w_det, b_det, coords_pad, wx, wh, b_rnn):
    """vox_seq: (B, T, C, D, H, W) -> keypoints, affinity, dyna_states."""
    b, t = vox_seq.shape[0], vox_seq.shape[1]
    assert vox_seq.shape[2] == 1, "synthetic detector assumes C == 1"
    g = vox_seq.shape[-3] * vox_seq.shape[-2] * vox_seq.shape[-1]
    vox2 = vox_seq.reshape(b * t, g)                      # (B*T, G)
    kp4, aff, states_tb = pl.pallas_call(
        _fused_kernel,
        out_shape=(
            jax.ShapeDtypeStruct((b, t, K, 4), jnp.float32),
            jax.ShapeDtypeStruct((b, K, K), jnp.float32),
            jax.ShapeDtypeStruct((t, b, HID), jnp.float32),
        ),
    )(vox2, w_det, b_det, coords_pad, wx, wh, b_rnn)
    return kp4, aff, jnp.transpose(states_tb, (1, 0, 2))  # dyna -> (B, T, HID)


# --------------------------- wrapper (forward) -------------------------------
class NeuralMarionettePallas:
    """JAX/Pallas port of NeuralMarionette.forward (fully fused)."""

    def __init__(self, key):
        k1, k2, k3, k4 = jax.random.split(key, 4)
        # KyptDetector params (1x1x1 voxel conv -> K heatmaps), C == 1
        self.w_det = jax.random.normal(k1, (K, C), jnp.float32) * 0.5   # (K, 1)
        self.b_det = jax.random.normal(k2, (K, 1), jnp.float32) * 0.1
        # HSVRNNBVH (dynamics encoder) params
        self.wx = jax.random.normal(k3, (DIN, HID), jnp.float32) / jnp.sqrt(DIN)
        self.wh = jax.random.normal(k4, (HID, HID), jnp.float32) / jnp.sqrt(HID)
        self.b_rnn = jnp.zeros((1, HID), jnp.float32)
        # Normalized voxel-grid coordinates, row-major (d, h, w) flatten.
        lin = jnp.linspace(-1.0, 1.0, DG, dtype=jnp.float32)
        zz, yy, xx = jnp.meshgrid(lin, lin, lin, indexing='ij')
        coords = jnp.stack([zz.ravel(), yy.ravel(), xx.ravel()], axis=-1)  # (G,3)
        # Column 3 is ones so the e @ coords matmul also yields the softmax
        # denominator; columns 4..7 are zero padding for an 8-wide MXU result.
        self.coords_pad = jnp.concatenate(
            [coords,
             jnp.ones((G, 1), jnp.float32),
             jnp.zeros((G, 4), jnp.float32)], axis=-1).astype(_softmax_dtype())
        self.Tcond = TCOND
        self.current_actives = {'detector': True, 'learner': True}

    def forward(self, vox_seq, module_actives=None):
        if module_actives is None:
            module_actives = self.current_actives
        log = {}
        if not (module_actives['detector'] or module_actives['learner']):
            return log
        # Detector + affinity + dynamics run fused in one kernel.  The RNN
        # stage is negligible (~nothing), so it is always computed and simply
        # dropped from the log when the learner is inactive; .detach() is a
        # no-op in a pure forward evaluation.
        kp, aff, states = _fused_forward(
            vox_seq, self.w_det, self.b_det, self.coords_pad,
            self.wx, self.wh, self.b_rnn)
        log.update(dict(keypoints=kp, affinity=aff, first_feature=kp[:, 0]))
        if module_actives['learner']:
            log['dyna_states'] = states
        return log

    # TODO(synk): generate()/anneal()/control_active() are training/generation
    # control flow with no kernel content and are not reproduced here.


# ------------------------------- main ----------------------------------------
if __name__ == "__main__":
    key = jax.random.PRNGKey(0)
    k_param, k_data = jax.random.split(key)

    model = NeuralMarionettePallas(k_param)

    # vox_seq: (B, T, C, D, H, W), PyTorch NCDHW per frame
    vox_seq = jax.random.uniform(
        k_data, (B, T, C, DG, DG, DG), dtype=jnp.float32)

    module_actives = {'detector': True, 'learner': True}
    log = model.forward(vox_seq, module_actives=module_actives)

    jax.block_until_ready(log['keypoints'])
    jax.block_until_ready(log['affinity'])
    jax.block_until_ready(log['dyna_states'])

    assert log['keypoints'].shape == (B, T, K, 4)
    assert log['affinity'].shape == (B, K, K)
    assert log['first_feature'].shape == (B, K, 4)
    assert log['dyna_states'].shape == (B, T, HID)
    assert bool(jnp.all(jnp.isfinite(log['keypoints'])))
    assert bool(jnp.all(jnp.isfinite(log['affinity'])))
    assert bool(jnp.all(jnp.isfinite(log['dyna_states'])))

    print("KERNEL_OK")
</pallas_src>

<mosaic_0001>
module attributes {stable_mosaic.version = 11 : i64} {
  func.func @_fused_kernel(%arg0: memref<8x4096xf32, #tpu.memory_space<vmem>>, %arg1: memref<8x1xf32, #tpu.memory_space<vmem>>, %arg2: memref<8x1xf32, #tpu.memory_space<vmem>>, %arg3: memref<4096x8xf32, #tpu.memory_space<vmem>>, %arg4: memref<32x32xf32, #tpu.memory_space<vmem>>, %arg5: memref<32x32xf32, #tpu.memory_space<vmem>>, %arg6: memref<1x32xf32, #tpu.memory_space<vmem>>, %arg7: memref<2x4x8x4xf32, #tpu.memory_space<vmem>>, %arg8: memref<2x8x8xf32, #tpu.memory_space<vmem>>, %arg9: memref<4x2x32xf32, #tpu.memory_space<vmem>>) attributes {dimension_semantics = [], scalar_prefetch = 0 : i64, scratch_operands = 0 : i64, tpu.core_type = #tpu.core_type<tc>} {
    %c0 = arith.constant 0 : index
    %c0_0 = arith.constant 0 : index
    %0 = vector.load %arg0[%c0, %c0_0] : memref<8x4096xf32, #tpu.memory_space<vmem>>, vector<8x4096xf32>
    %c0_1 = arith.constant 0 : index
    %c0_2 = arith.constant 0 : index
    %1 = vector.load %arg1[%c0_1, %c0_2] : memref<8x1xf32, #tpu.memory_space<vmem>>, vector<8x1xf32>
    %c0_3 = arith.constant 0 : index
    %c0_4 = arith.constant 0 : index
    %2 = vector.load %arg2[%c0_3, %c0_4] : memref<8x1xf32, #tpu.memory_space<vmem>>, vector<8x1xf32>
    %3 = vector.extract_strided_slice %0 {offsets = [0, 0], sizes = [1, 4096], strides = [1, 1]} : vector<8x4096xf32> to vector<1x4096xf32>
    %4 = vector.broadcast %1 : vector<8x1xf32> to vector<8x4096xf32>
    %5 = vector.broadcast %3 : vector<1x4096xf32> to vector<8x4096xf32>
    %6 = arith.mulf %4, %5 : vector<8x4096xf32>
    %7 = vector.broadcast %2 : vector<8x1xf32> to vector<8x4096xf32>
    %8 = arith.addf %6, %7 : vector<8x4096xf32>
    %9 = vector.extract_strided_slice %0 {offsets = [1, 0], sizes = [1, 4096], strides = [1, 1]} : vector<8x4096xf32> to vector<1x4096xf32>
    %10 = vector.broadcast %1 : vector<8x1xf32> to vector<8x4096xf32>
    %11 = vector.broadcast %9 : vector<1x4096xf32> to vector<8x4096xf32>
    %12 = arith.mulf %10, %11 : vector<8x4096xf32>
    %13 = vector.broadcast %2 : vector<8x1xf32> to vector<8x4096xf32>
    %14 = arith.addf %12, %13 : vector<8x4096xf32>
    %15 = vector.extract_strided_slice %0 {offsets = [2, 0], sizes = [1, 4096], strides = [1, 1]} : vector<8x4096xf32> to vector<1x4096xf32>
    %16 = vector.broadcast %1 : vector<8x1xf32> to vector<8x4096xf32>
    %17 = vector.broadcast %15 : vector<1x4096xf32> to vector<8x4096xf32>
    %18 = arith.mulf %16, %17 : vector<8x4096xf32>
    %19 = vector.broadcast %2 : vector<8x1xf32> to vector<8x4096xf32>
    %20 = arith.addf %18, %19 : vector<8x4096xf32>
    %21 = vector.extract_strided_slice %0 {offsets = [3, 0], sizes = [1, 4096], strides = [1, 1]} : vector<8x4096xf32> to vector<1x4096xf32>
    %22 = vector.broadcast %1 : vector<8x1xf32> to vector<8x4096xf32>
    %23 = vector.broadcast %21 : vector<1x4096xf32> to vector<8x4096xf32>
    %24 = arith.mulf %22, %23 : vector<8x4096xf32>
    %25 = vector.broadcast %2 : vector<8x1xf32> to vector<8x4096xf32>
    %26 = arith.addf %24, %25 : vector<8x4096xf32>
    %27 = vector.extract_strided_slice %0 {offsets = [4, 0], sizes = [1, 4096], strides = [1, 1]} : vector<8x4096xf32> to vector<1x4096xf32>
    %28 = vector.broadcast %1 : vector<8x1xf32> to vector<8x4096xf32>
    %29 = vector.broadcast %27 : vector<1x4096xf32> to vector<8x4096xf32>
    %30 = arith.mulf %28, %29 : vector<8x4096xf32>
    %31 = vector.broadcast %2 : vector<8x1xf32> to vector<8x4096xf32>
    %32 = arith.addf %30, %31 : vector<8x4096xf32>
    %33 = vector.extract_strided_slice %0 {offsets = [5, 0], sizes = [1, 4096], strides = [1, 1]} : vector<8x4096xf32> to vector<1x4096xf32>
    %34 = vector.broadcast %1 : vector<8x1xf32> to vector<8x4096xf32>
    %35 = vector.broadcast %33 : vector<1x4096xf32> to vector<8x4096xf32>
    %36 = arith.mulf %34, %35 : vector<8x4096xf32>
    %37 = vector.broadcast %2 : vector<8x1xf32> to vector<8x4096xf32>
    %38 = arith.addf %36, %37 : vector<8x4096xf32>
    %39 = vector.extract_strided_slice %0 {offsets = [6, 0], sizes = [1, 4096], strides = [1, 1]} : vector<8x4096xf32> to vector<1x4096xf32>
    %40 = vector.broadcast %1 : vector<8x1xf32> to vector<8x4096xf32>
    %41 = vector.broadcast %39 : vector<1x4096xf32> to vector<8x4096xf32>
    %42 = arith.mulf %40, %41 : vector<8x4096xf32>
    %43 = vector.broadcast %2 : vector<8x1xf32> to vector<8x4096xf32>
    %44 = arith.addf %42, %43 : vector<8x4096xf32>
    %45 = vector.extract_strided_slice %0 {offsets = [7, 0], sizes = [1, 4096], strides = [1, 1]} : vector<8x4096xf32> to vector<1x4096xf32>
    %46 = vector.broadcast %1 : vector<8x1xf32> to vector<8x4096xf32>
    %47 = vector.broadcast %45 : vector<1x4096xf32> to vector<8x4096xf32>
    %48 = arith.mulf %46, %47 : vector<8x4096xf32>
    %49 = vector.broadcast %2 : vector<8x1xf32> to vector<8x4096xf32>
    %50 = arith.addf %48, %49 : vector<8x4096xf32>
    %51 = tpu.concatenate %8, %14, %20, %26, %32, %38, %44, %50 in 0 : vector<8x4096xf32>, vector<8x4096xf32>, vector<8x4096xf32>, vector<8x4096xf32>, vector<8x4096xf32>, vector<8x4096xf32>, vector<8x4096xf32>, vector<8x4096xf32> -> vector<64x4096xf32>
    %cst = arith.constant dense<0xFF800000> : vector<64xf32>
    %52 = vector.multi_reduction <maximumf>, %51, %cst [1] : vector<64x4096xf32> to vector<64xf32>
    %53 = vector.shape_cast %52 : vector<64xf32> to vector<64x1xf32>
    %54 = vector.broadcast %53 : vector<64x1xf32> to vector<64x4096xf32>
    %55 = arith.subf %51, %54 : vector<64x4096xf32>
    %56 = math.exp %55 : vector<64x4096xf32>
    %c0_5 = arith.constant 0 : index
    %c0_6 = arith.constant 0 : index
    %57 = vector.load %arg3[%c0_5, %c0_6] : memref<4096x8xf32, #tpu.memory_space<vmem>>, vector<4096x8xf32>
    %cst_7 = arith.constant dense<0.000000e+00> : vector<64x8xf32>
    %58 = tpu.matmul %56, %57, %cst_7 {dimension_numbers = #tpu.dot_dimension_numbers<[1], [0], [0], [1], [0, 0, 1, 1], [], []>} : vector<64x4096xf32>, vector<4096x8xf32>, vector<64x8xf32> -> vector<64x8xf32>
    %59 = vector.extract_strided_slice %58 {offsets = [0, 0], sizes = [64, 3], strides = [1, 1]} : vector<64x8xf32> to vector<64x3xf32>
    %60 = vector.extract_strided_slice %58 {offsets = [0, 3], sizes = [64, 1], strides = [1, 1]} : vector<64x8xf32> to vector<64x1xf32>
    %61 = vector.broadcast %60 : vector<64x1xf32> to vector<64x3xf32>
    %62 = arith.divf %59, %61 : vector<64x3xf32>
    %cst_8 = arith.constant 0.000000e+00 : f32
    %63 = vector.broadcast %cst_8 : f32 to vector<64x1xf32>
    %64 = arith.subf %63, %53 : vector<64x1xf32>
    %65 = math.exp %64 : vector<64x1xf32>
    %cst_9 = arith.constant 1.000000e+00 : f32
    %66 = vector.broadcast %cst_9 : f32 to vector<64x1xf32>
    %67 = arith.addf %66, %65 : vector<64x1xf32>
    %cst_10 = arith.constant 1.000000e+00 : f32
    %68 = vector.broadcast %cst_10 : f32 to vector<64x1xf32>
    %69 = arith.divf %68, %67 : vector<64x1xf32>
    %70 = tpu.concatenate %62, %69 in 1 : vector<64x3xf32>, vector<64x1xf32> -> vector<64x4xf32>
    %71 = vector.shape_cast %70 : vector<64x4xf32> to vector<2x4x8x4xf32>
    %c0_11 = arith.constant 0 : index
    %c0_12 = arith.constant 0 : index
    %c0_13 = arith.constant 0 : index
    %c0_14 = arith.constant 0 : index
    %72 = vector.load %arg7[%c0_11, %c0_12, %c0_13, %c0_14] : memref<2x4x8x4xf32, #tpu.memory_space<vmem>>, vector<2x4x8x4xf32>
    tpu.vector_store %arg7[%c0_11, %c0_12, %c0_13, %c0_14], %71 {strides = array<i32>} : memref<2x4x8x4xf32, #tpu.memory_space<vmem>>, vector<2x4x8x4xf32>,
    %73 = vector.extract_strided_slice %71 {offsets = [0, 0, 0, 0], sizes = [2, 1, 8, 3], strides = [1, 1, 1, 1]} : vector<2x4x8x4xf32> to vector<2x1x8x3xf32>
    %74 = vector.shape_cast %73 : vector<2x1x8x3xf32> to vector<2x8x3xf32>
    "tpu.trace_start"() <{level = 10 : i32, message = "bid,bjd->bij"}> : () -> ()
    %cst_15 = arith.constant dense<0.000000e+00> : vector<2x8x8xf32>
    %75 = tpu.matmul %74, %74, %cst_15 {dimension_numbers = #tpu.dot_dimension_numbers<[2], [2], [1], [1], [0, 0, 0, 1, 1, 1], [0], [0]>} : vector<2x8x3xf32>, vector<2x8x3xf32>, vector<2x8x8xf32> -> vector<2x8x8xf32>
    %cst_16 = arith.constant 1.000000e+00 : f32
    "tpu.trace_stop"() : () -> ()
    %76 = vector.broadcast %cst_16 : f32 to vector<2x8x3xf32>
    %77 = arith.mulf %74, %74 : vector<2x8x3xf32>
    "tpu.trace_start"() <{level = 10 : i32, message = "bid,bjd->bij"}> : () -> ()
    %cst_17 = arith.constant dense<0.000000e+00> : vector<2x8x8xf32>
    %78 = tpu.matmul %76, %77, %cst_17 {dimension_numbers = #tpu.dot_dimension_numbers<[2], [2], [1], [1], [0, 0, 0, 1, 1, 1], [0], [0]>} : vector<2x8x3xf32>, vector<2x8x3xf32>, vector<2x8x8xf32> -> vector<2x8x8xf32>
    "tpu.trace_stop"() : () -> ()
    %cst_18 = arith.constant 2.000000e+00 : f32
    %79 = vector.broadcast %cst_18 : f32 to vector<2x8x8xf32>
    %80 = arith.mulf %79, %75 : vector<2x8x8xf32>
    %81 = arith.subf %80, %78 : vector<2x8x8xf32>
    %cst_19 = arith.constant 2.000000e+00 : f32
    %82 = vector.broadcast %cst_19 : f32 to vector<2x8x8xf32>
    %83 = arith.mulf %81, %82 : vector<2x8x8xf32>
    %cst_20 = arith.constant dense<0xFF800000> : vector<2x8xf32>
    %84 = vector.multi_reduction <maximumf>, %83, %cst_20 [2] : vector<2x8x8xf32> to vector<2x8xf32>
    %85 = vector.shape_cast %84 : vector<2x8xf32> to vector<2x8x1xf32>
    %86 = vector.broadcast %85 : vector<2x8x1xf32> to vector<2x8x8xf32>
    %87 = arith.subf %83, %86 : vector<2x8x8xf32>
    %88 = math.exp %87 : vector<2x8x8xf32>
    %cst_21 = arith.constant dense<0.000000e+00> : vector<2x8xf32>
    %89 = vector.multi_reduction <add>, %88, %cst_21 [2] : vector<2x8x8xf32> to vector<2x8xf32>
    %90 = vector.shape_cast %89 : vector<2x8xf32> to vector<2x8x1xf32>
    %91 = vector.broadcast %90 : vector<2x8x1xf32> to vector<2x8x8xf32>
    %92 = arith.divf %88, %91 : vector<2x8x8xf32>
    %c0_22 = arith.constant 0 : index
    %c0_23 = arith.constant 0 : index
    %c0_24 = arith.constant 0 : index
    %93 = vector.load %arg8[%c0_22, %c0_23, %c0_24] : memref<2x8x8xf32, #tpu.memory_space<vmem>>, vector<2x8x8xf32>
    tpu.vector_store %arg8[%c0_22, %c0_23, %c0_24], %92 {strides = array<i32>} : memref<2x8x8xf32, #tpu.memory_space<vmem>>, vector<2x8x8xf32>,
    %c0_25 = arith.constant 0 : index
    %c0_26 = arith.constant 0 : index
    %94 = vector.load %arg4[%c0_25, %c0_26] : memref<32x32xf32, #tpu.memory_space<vmem>>, vector<32x32xf32>
    %c0_27 = arith.constant 0 : index
    %c0_28 = arith.constant 0 : index
    %95 = vector.load %arg5[%c0_27, %c0_28] : memref<32x32xf32, #tpu.memory_space<vmem>>, vector<32x32xf32>
    %c0_29 = arith.constant 0 : index
    %c0_30 = arith.constant 0 : index
    %96 = vector.load %arg6[%c0_29, %c0_30] : memref<1x32xf32, #tpu.memory_space<vmem>>, vector<1x32xf32>
    %cst_31 = arith.constant 0.000000e+00 : f32
    %97 = vector.broadcast %cst_31 : f32 to vector<2x32xf32>
    %98 = vector.extract_strided_slice %71 {offsets = [0, 0, 0, 0], sizes = [2, 1, 8, 4], strides = [1, 1, 1, 1]} : vector<2x4x8x4xf32> to vector<2x1x8x4xf32>
    %99 = vector.shape_cast %98 : vector<2x1x8x4xf32> to vector<2x8x4xf32>
    "tpu.trace_start"() <{level = 10 : i32, message = "bij,bjd->bid"}> : () -> ()
    %cst_32 = arith.constant dense<0.000000e+00> : vector<2x8x4xf32>
    %100 = tpu.matmul %92, %99, %cst_32 {dimension_numbers = #tpu.dot_dimension_numbers<[2], [1], [1], [2], [0, 0, 0, 1, 1, 2], [0], [0]>} : vector<2x8x8xf32>, vector<2x8x4xf32>, vector<2x8x4xf32> -> vector<2x8x4xf32>
    "tpu.trace_stop"() : () -> ()
    %101 = vector.extract_strided_slice %100 {offsets = [0, 0, 0], sizes = [2, 1, 4], strides = [1, 1, 1]} : vector<2x8x4xf32> to vector<2x1x4xf32>
    %102 = vector.shape_cast %101 : vector<2x1x4xf32> to vector<2x4xf32>
    %103 = vector.extract_strided_slice %100 {offsets = [0, 1, 0], sizes = [2, 1, 4], strides = [1, 1, 1]} : vector<2x8x4xf32> to vector<2x1x4xf32>
    %104 = vector.shape_cast %103 : vector<2x1x4xf32> to vector<2x4xf32>
    %105 = vector.extract_strided_slice %100 {offsets = [0, 2, 0], sizes = [2, 1, 4], strides = [1, 1, 1]} : vector<2x8x4xf32> to vector<2x1x4xf32>
    %106 = vector.shape_cast %105 : vector<2x1x4xf32> to vector<2x4xf32>
    %107 = vector.extract_strided_slice %100 {offsets = [0, 3, 0], sizes = [2, 1, 4], strides = [1, 1, 1]} : vector<2x8x4xf32> to vector<2x1x4xf32>
    %108 = vector.shape_cast %107 : vector<2x1x4xf32> to vector<2x4xf32>
    %109 = vector.extract_strided_slice %100 {offsets = [0, 4, 0], sizes = [2, 1, 4], strides = [1, 1, 1]} : vector<2x8x4xf32> to vector<2x1x4xf32>
    %110 = vector.shape_cast %109 : vector<2x1x4xf32> to vector<2x4xf32>
    %111 = vector.extract_strided_slice %100 {offsets = [0, 5, 0], sizes = [2, 1, 4], strides = [1, 1, 1]} : vector<2x8x4xf32> to vector<2x1x4xf32>
    %112 = vector.shape_cast %111 : vector<2x1x4xf32> to vector<2x4xf32>
    %113 = vector.extract_strided_slice %100 {offsets = [0, 6, 0], sizes = [2, 1, 4], strides = [1, 1, 1]} : vector<2x8x4xf32> to vector<2x1x4xf32>
    %114 = vector.shape_cast %113 : vector<2x1x4xf32> to vector<2x4xf32>
    %115 = vector.extract_strided_slice %100 {offsets = [0, 7, 0], sizes = [2, 1, 4], strides = [1, 1, 1]} : vector<2x8x4xf32> to vector<2x1x4xf32>
    %116 = vector.shape_cast %115 : vector<2x1x4xf32> to vector<2x4xf32>
    %117 = tpu.concatenate %102, %104, %106, %108, %110, %112, %114, %116 in 1 : vector<2x4xf32>, vector<2x4xf32>, vector<2x4xf32>, vector<2x4xf32>, vector<2x4xf32>, vector<2x4xf32>, vector<2x4xf32>, vector<2x4xf32> -> vector<2x32xf32>
    %cst_33 = arith.constant dense<0.000000e+00> : vector<2x32xf32>
    %118 = tpu.matmul %117, %94, %cst_33 {dimension_numbers = #tpu.dot_dimension_numbers<[1], [0], [0], [1], [0, 0, 1, 1], [], []>} : vector<2x32xf32>, vector<32x32xf32>, vector<2x32xf32> -> vector<2x32xf32>
    %cst_34 = arith.constant dense<0.000000e+00> : vector<2x32xf32>
    %119 = tpu.matmul %97, %95, %cst_34 {dimension_numbers = #tpu.dot_dimension_numbers<[1], [0], [0], [1], [0, 0, 1, 1], [], []>} : vector<2x32xf32>, vector<32x32xf32>, vector<2x32xf32> -> vector<2x32xf32>
    %120 = arith.addf %118, %119 : vector<2x32xf32>
    %121 = vector.broadcast %96 : vector<1x32xf32> to vector<2x32xf32>
    %122 = arith.addf %120, %121 : vector<2x32xf32>
    %123 = math.tanh %122 : vector<2x32xf32>
    %124 = vector.extract_strided_slice %71 {offsets = [0, 1, 0, 0], sizes = [2, 1, 8, 4], strides = [1, 1, 1, 1]} : vector<2x4x8x4xf32> to vector<2x1x8x4xf32>
    %125 = vector.shape_cast %124 : vector<2x1x8x4xf32> to vector<2x8x4xf32>
    "tpu.trace_start"() <{level = 10 : i32, message = "bij,bjd->bid"}> : () -> ()
    %cst_35 = arith.constant dense<0.000000e+00> : vector<2x8x4xf32>
    %126 = tpu.matmul %92, %125, %cst_35 {dimension_numbers = #tpu.dot_dimension_numbers<[2], [1], [1], [2], [0, 0, 0, 1, 1, 2], [0], [0]>} : vector<2x8x8xf32>, vector<2x8x4xf32>, vector<2x8x4xf32> -> vector<2x8x4xf32>
    "tpu.trace_stop"() : () -> ()
    %127 = vector.extract_strided_slice %126 {offsets = [0, 0, 0], sizes = [2, 1, 4], strides = [1, 1, 1]} : vector<2x8x4xf32> to vector<2x1x4xf32>
    %128 = vector.shape_cast %127 : vector<2x1x4xf32> to vector<2x4xf32>
    %129 = vector.extract_strided_slice %126 {offsets = [0, 1, 0], sizes = [2, 1, 4], strides = [1, 1, 1]} : vector<2x8x4xf32> to vector<2x1x4xf32>
    %130 = vector.shape_cast %129 : vector<2x1x4xf32> to vector<2x4xf32>
    %131 = vector.extract_strided_slice %126 {offsets = [0, 2, 0], sizes = [2, 1, 4], strides = [1, 1, 1]} : vector<2x8x4xf32> to vector<2x1x4xf32>
    %132 = vector.shape_cast %131 : vector<2x1x4xf32> to vector<2x4xf32>
    %133 = vector.extract_strided_slice %126 {offsets = [0, 3, 0], sizes = [2, 1, 4], strides = [1, 1, 1]} : vector<2x8x4xf32> to vector<2x1x4xf32>
    %134 = vector.shape_cast %133 : vector<2x1x4xf32> to vector<2x4xf32>
    %135 = vector.extract_strided_slice %126 {offsets = [0, 4, 0], sizes = [2, 1, 4], strides = [1, 1, 1]} : vector<2x8x4xf32> to vector<2x1x4xf32>
    %136 = vector.shape_cast %135 : vector<2x1x4xf32> to vector<2x4xf32>
    %137 = vector.extract_strided_slice %126 {offsets = [0, 5, 0], sizes = [2, 1, 4], strides = [1, 1, 1]} : vector<2x8x4xf32> to vector<2x1x4xf32>
    %138 = vector.shape_cast %137 : vector<2x1x4xf32> to vector<2x4xf32>
    %139 = vector.extract_strided_slice %126 {offsets = [0, 6, 0], sizes = [2, 1, 4], strides = [1, 1, 1]} : vector<2x8x4xf32> to vector<2x1x4xf32>
    %140 = vector.shape_cast %139 : vector<2x1x4xf32> to vector<2x4xf32>
    %141 = vector.extract_strided_slice %126 {offsets = [0, 7, 0], sizes = [2, 1, 4], strides = [1, 1, 1]} : vector<2x8x4xf32> to vector<2x1x4xf32>
    %142 = vector.shape_cast %141 : vector<2x1x4xf32> to vector<2x4xf32>
    %143 = tpu.concatenate %128, %130, %132, %134, %136, %138, %140, %142 in 1 : vector<2x4xf32>, vector<2x4xf32>, vector<2x4xf32>, vector<2x4xf32>, vector<2x4xf32>, vector<2x4xf32>, vector<2x4xf32>, vector<2x4xf32> -> vector<2x32xf32>
    %cst_36 = arith.constant dense<0.000000e+00> : vector<2x32xf32>
    %144 = tpu.matmul %143, %94, %cst_36 {dimension_numbers = #tpu.dot_dimension_numbers<[1], [0], [0], [1], [0, 0, 1, 1], [], []>} : vector<2x32xf32>, vector<32x32xf32>, vector<2x32xf32> -> vector<2x32xf32>
    %cst_37 = arith.constant dense<0.000000e+00> : vector<2x32xf32>
    %145 = tpu.matmul %123, %95, %cst_37 {dimension_numbers = #tpu.dot_dimension_numbers<[1], [0], [0], [1], [0, 0, 1, 1], [], []>} : vector<2x32xf32>, vector<32x32xf32>, vector<2x32xf32> -> vector<2x32xf32>
    %146 = arith.addf %144, %145 : vector<2x32xf32>
    %147 = vector.broadcast %96 : vector<1x32xf32> to vector<2x32xf32>
    %148 = arith.addf %146, %147 : vector<2x32xf32>
    %149 = math.tanh %148 : vector<2x32xf32>
    %150 = vector.extract_strided_slice %71 {offsets = [0, 2, 0, 0], sizes = [2, 1, 8, 4], strides = [1, 1, 1, 1]} : vector<2x4x8x4xf32> to vector<2x1x8x4xf32>
    %151 = vector.shape_cast %150 : vector<2x1x8x4xf32> to vector<2x8x4xf32>
    "tpu.trace_start"() <{level = 10 : i32, message = "bij,bjd->bid"}> : () -> ()
    %cst_38 = arith.constant dense<0.000000e+00> : vector<2x8x4xf32>
    %152 = tpu.matmul %92, %151, %cst_38 {dimension_numbers = #tpu.dot_dimension_numbers<[2], [1], [1], [2], [0, 0, 0, 1, 1, 2], [0], [0]>} : vector<2x8x8xf32>, vector<2x8x4xf32>, vector<2x8x4xf32> -> vector<2x8x4xf32>
    "tpu.trace_stop"() : () -> ()
    %153 = vector.extract_strided_slice %152 {offsets = [0, 0, 0], sizes = [2, 1, 4], strides = [1, 1, 1]} : vector<2x8x4xf32> to vector<2x1x4xf32>
    %154 = vector.shape_cast %153 : vector<2x1x4xf32> to vector<2x4xf32>
    %155 = vector.extract_strided_slice %152 {offsets = [0, 1, 0], sizes = [2, 1, 4], strides = [1, 1, 1]} : vector<2x8x4xf32> to vector<2x1x4xf32>
    %156 = vector.shape_cast %155 : vector<2x1x4xf32> to vector<2x4xf32>
    %157 = vector.extract_strided_slice %152 {offsets = [0, 2, 0], sizes = [2, 1, 4], strides = [1, 1, 1]} : vector<2x8x4xf32> to vector<2x1x4xf32>
    %158 = vector.shape_cast %157 : vector<2x1x4xf32> to vector<2x4xf32>
    %159 = vector.extract_strided_slice %152 {offsets = [0, 3, 0], sizes = [2, 1, 4], strides = [1, 1, 1]} : vector<2x8x4xf32> to vector<2x1x4xf32>
    %160 = vector.shape_cast %159 : vector<2x1x4xf32> to vector<2x4xf32>
    %161 = vector.extract_strided_slice %152 {offsets = [0, 4, 0], sizes = [2, 1, 4], strides = [1, 1, 1]} : vector<2x8x4xf32> to vector<2x1x4xf32>
    %162 = vector.shape_cast %161 : vector<2x1x4xf32> to vector<2x4xf32>
    %163 = vector.extract_strided_slice %152 {offsets = [0, 5, 0], sizes = [2, 1, 4], strides = [1, 1, 1]} : vector<2x8x4xf32> to vector<2x1x4xf32>
    %164 = vector.shape_cast %163 : vector<2x1x4xf32> to vector<2x4xf32>
    %165 = vector.extract_strided_slice %152 {offsets = [0, 6, 0], sizes = [2, 1, 4], strides = [1, 1, 1]} : vector<2x8x4xf32> to vector<2x1x4xf32>
    %166 = vector.shape_cast %165 : vector<2x1x4xf32> to vector<2x4xf32>
    %167 = vector.extract_strided_slice %152 {offsets = [0, 7, 0], sizes = [2, 1, 4], strides = [1, 1, 1]} : vector<2x8x4xf32> to vector<2x1x4xf32>
    %168 = vector.shape_cast %167 : vector<2x1x4xf32> to vector<2x4xf32>
    %169 = tpu.concatenate %154, %156, %158, %160, %162, %164, %166, %168 in 1 : vector<2x4xf32>, vector<2x4xf32>, vector<2x4xf32>, vector<2x4xf32>, vector<2x4xf32>, vector<2x4xf32>, vector<2x4xf32>, vector<2x4xf32> -> vector<2x32xf32>
    %cst_39 = arith.constant dense<0.000000e+00> : vector<2x32xf32>
    %170 = tpu.matmul %169, %94, %cst_39 {dimension_numbers = #tpu.dot_dimension_numbers<[1], [0], [0], [1], [0, 0, 1, 1], [], []>} : vector<2x32xf32>, vector<32x32xf32>, vector<2x32xf32> -> vector<2x32xf32>
    %cst_40 = arith.constant dense<0.000000e+00> : vector<2x32xf32>
    %171 = tpu.matmul %149, %95, %cst_40 {dimension_numbers = #tpu.dot_dimension_numbers<[1], [0], [0], [1], [0, 0, 1, 1], [], []>} : vector<2x32xf32>, vector<32x32xf32>, vector<2x32xf32> -> vector<2x32xf32>
    %172 = arith.addf %170, %171 : vector<2x32xf32>
    %173 = vector.broadcast %96 : vector<1x32xf32> to vector<2x32xf32>
    %174 = arith.addf %172, %173 : vector<2x32xf32>
    %175 = math.tanh %174 : vector<2x32xf32>
    %176 = vector.extract_strided_slice %71 {offsets = [0, 3, 0, 0], sizes = [2, 1, 8, 4], strides = [1, 1, 1, 1]} : vector<2x4x8x4xf32> to vector<2x1x8x4xf32>
    %177 = vector.shape_cast %176 : vector<2x1x8x4xf32> to vector<2x8x4xf32>
    "tpu.trace_start"() <{level = 10 : i32, message = "bij,bjd->bid"}> : () -> ()
    %cst_41 = arith.constant dense<0.000000e+00> : vector<2x8x4xf32>
    %178 = tpu.matmul %92, %177, %cst_41 {dimension_numbers = #tpu.dot_dimension_numbers<[2], [1], [1], [2], [0, 0, 0, 1, 1, 2], [0], [0]>} : vector<2x8x8xf32>, vector<2x8x4xf32>, vector<2x8x4xf32> -> vector<2x8x4xf32>
    "tpu.trace_stop"() : () -> ()
    %179 = vector.extract_strided_slice %178 {offsets = [0, 0, 0], sizes = [2, 1, 4], strides = [1, 1, 1]} : vector<2x8x4xf32> to vector<2x1x4xf32>
    %180 = vector.shape_cast %179 : vector<2x1x4xf32> to vector<2x4xf32>
    %181 = vector.extract_strided_slice %178 {offsets = [0, 1, 0], sizes = [2, 1, 4], strides = [1, 1, 1]} : vector<2x8x4xf32> to vector<2x1x4xf32>
    %182 = vector.shape_cast %181 : vector<2x1x4xf32> to vector<2x4xf32>
    %183 = vector.extract_strided_slice %178 {offsets = [0, 2, 0], sizes = [2, 1, 4], strides = [1, 1, 1]} : vector<2x8x4xf32> to vector<2x1x4xf32>
    %184 = vector.shape_cast %183 : vector<2x1x4xf32> to vector<2x4xf32>
    %185 = vector.extract_strided_slice %178 {offsets = [0, 3, 0], sizes = [2, 1, 4], strides = [1, 1, 1]} : vector<2x8x4xf32> to vector<2x1x4xf32>
    %186 = vector.shape_cast %185 : vector<2x1x4xf32> to vector<2x4xf32>
    %187 = vector.extract_strided_slice %178 {offsets = [0, 4, 0], sizes = [2, 1, 4], strides = [1, 1, 1]} : vector<2x8x4xf32> to vector<2x1x4xf32>
    %188 = vector.shape_cast %187 : vector<2x1x4xf32> to vector<2x4xf32>
    %189 = vector.extract_strided_slice %178 {offsets = [0, 5, 0], sizes = [2, 1, 4], strides = [1, 1, 1]} : vector<2x8x4xf32> to vector<2x1x4xf32>
    %190 = vector.shape_cast %189 : vector<2x1x4xf32> to vector<2x4xf32>
    %191 = vector.extract_strided_slice %178 {offsets = [0, 6, 0], sizes = [2, 1, 4], strides = [1, 1, 1]} : vector<2x8x4xf32> to vector<2x1x4xf32>
    %192 = vector.shape_cast %191 : vector<2x1x4xf32> to vector<2x4xf32>
    %193 = vector.extract_strided_slice %178 {offsets = [0, 7, 0], sizes = [2, 1, 4], strides = [1, 1, 1]} : vector<2x8x4xf32> to vector<2x1x4xf32>
    %194 = vector.shape_cast %193 : vector<2x1x4xf32> to vector<2x4xf32>
    %195 = tpu.concatenate %180, %182, %184, %186, %188, %190, %192, %194 in 1 : vector<2x4xf32>, vector<2x4xf32>, vector<2x4xf32>, vector<2x4xf32>, vector<2x4xf32>, vector<2x4xf32>, vector<2x4xf32>, vector<2x4xf32> -> vector<2x32xf32>
    %cst_42 = arith.constant dense<0.000000e+00> : vector<2x32xf32>
    %196 = tpu.matmul %195, %94, %cst_42 {dimension_numbers = #tpu.dot_dimension_numbers<[1], [0], [0], [1], [0, 0, 1, 1], [], []>} : vector<2x32xf32>, vector<32x32xf32>, vector<2x32xf32> -> vector<2x32xf32>
    %cst_43 = arith.constant dense<0.000000e+00> : vector<2x32xf32>
    %197 = tpu.matmul %175, %95, %cst_43 {dimension_numbers = #tpu.dot_dimension_numbers<[1], [0], [0], [1], [0, 0, 1, 1], [], []>} : vector<2x32xf32>, vector<32x32xf32>, vector<2x32xf32> -> vector<2x32xf32>
    %198 = arith.addf %196, %197 : vector<2x32xf32>
    %199 = vector.broadcast %96 : vector<1x32xf32> to vector<2x32xf32>
    %200 = arith.addf %198, %199 : vector<2x32xf32>
    %201 = math.tanh %200 : vector<2x32xf32>
    %202 = vector.shape_cast %123 : vector<2x32xf32> to vector<1x2x32xf32>
    %203 = vector.shape_cast %149 : vector<2x32xf32> to vector<1x2x32xf32>
    %204 = vector.shape_cast %175 : vector<2x32xf32> to vector<1x2x32xf32>
    %205 = vector.shape_cast %201 : vector<2x32xf32> to vector<1x2x32xf32>
    %206 = tpu.concatenate %202, %203, %204, %205 in 0 : vector<1x2x32xf32>, vector<1x2x32xf32>, vector<1x2x32xf32>, vector<1x2x32xf32> -> vector<4x2x32xf32>
    %c0_44 = arith.constant 0 : index
    %c0_45 = arith.constant 0 : index
    %c0_46 = arith.constant 0 : index
    %207 = vector.load %arg9[%c0_44, %c0_45, %c0_46] : memref<4x2x32xf32, #tpu.memory_space<vmem>>, vector<4x2x32xf32>
    tpu.vector_store %arg9[%c0_44, %c0_45, %c0_46], %206 {strides = array<i32>} : memref<4x2x32xf32, #tpu.memory_space<vmem>>, vector<4x2x32xf32>,
    return
  }
}

</mosaic_0001>

<bundles_post_ra>
// kernel: _fused_forward.1
= control target key start
LH: loop header
LB: loop body
LE: loop exit
PB: predicated region body
PF: predicated region fallthrough
CT: control target
= control target key end

     0   :  { %v9047_v1 = vmov 0   ;;  %s15106_s0 = inlined_call_operand.vmem [shape: f32[8,4096], index: 0, kind: input, shape index: {}]   ;;  %s15107_s1 = inlined_call_operand.vmem [shape: f32[8,1], index: 1, kind: input, shape index: {}]   ;;  %s15108_s2 = inlined_call_operand.vmem [shape: f32[8,1], index: 2, kind: input, shape index: {}]   ;;  %s15109_s3 = inlined_call_operand.vmem [shape: f32[4096,8], index: 3, kind: input, shape index: {}]   ;;  %s15110_s4 = inlined_call_operand.vmem [shape: f32[32,32], index: 4, kind: input, shape index: {}]   ;;  %s15111_s5 = inlined_call_operand.vmem [shape: f32[32,32], index: 5, kind: input, shape index: {}]   ;;  %s15112_s6 = inlined_call_operand.vmem [shape: f32[1,32], index: 6, kind: input, shape index: {}]   ;;  %s15113_s7 = inlined_call_operand.vmem [shape: f32[2,4,8,4], index: 7, kind: output, shape index: {0}]   ;;  %s15114_s8 = inlined_call_operand.hbm [shape: f32[2,8,8], index: 8, kind: output, shape index: {1}]   ;;  %s15115_s9 = inlined_call_operand.vmem [shape: f32[4,2,32], index: 9, kind: output, shape index: {2}]  }
   0x1   :  { %v62_v0 = vld [vmem:[%s15107_s1] sm:$0xff]  ;;  %8412 = vset.pattern.permute.xlu0 %v9047_v1 }
   0x2   :  { %66 = vperm.xlu0 %8412, %v62_v0   ;;  %v63_v2 = vld [vmem:[%s15108_s2] sm:$0xff] }
   0x6   :  { %231 = vperm.xlu0 %8412, %v63_v2  }
   0x7   :  { %15 = vsyncpa [#allocation3], 0  ;;  %v69_v3 = vlaneseq  ;;  %v9123_v5 = vld [vmem:[%s15106_s0] sm:$0xff]  ;;  %v9128_v6 = vld [vmem:[%s15106_s0 + $0x8] sm:$0xff]  ;;  %vm9050_vm0 = vmmov 0   ;;  %vm4938_vm1 = vcmask 23552  }
   0x8   :  { %15414 = vst [vmem:[#allocation6_spill] sm:$0xff] %v9123_v5  ;;  %15415 = vst [vmem:[#allocation7_spill] sm:$0xff] %v9128_v6  ;;  %v9133_v7 = vld [vmem:[%s15106_s0 + $0x10] sm:$0xff]  ;;  %v9138_v8 = vld [vmem:[%s15106_s0 + $0x18] sm:$0xff]  ;;  %vm4947_vm2 = vcmask 31744   ;;  %vm5259_vm3 = vcmask 64512  }
   0x9   :  { %v9118_v4 = vshrl.u32 %v69_v3, 7  ;;  %15416 = vst [vmem:[#allocation8_spill] sm:$0xff] %v9133_v7  ;;  %15417 = vst [vmem:[#allocation9_spill] sm:$0xff] %v9138_v8  ;;  %v9143_v9 = vld [vmem:[%s15106_s0 + $0x20] sm:$0xff]  ;;  %v9148_v10 = vld [vmem:[%s15106_s0 + $0x28] sm:$0xff]  ;;  %vm5442_vm4 = vcmask 1041409  }
   0xa   :  { %15418 = vst [vmem:[#allocation10_spill] sm:$0xff] %v9143_v9  ;;  %v9156_v12 = vld [vmem:[%s15106_s0 + $0x30] sm:$0xff]  ;;  %v9161_v13 = vld [vmem:[%s15106_s0 + $0x38] sm:$0xff]  ;;  %v9166_v14 = vld [vmem:[%s15106_s0 + $0x40] sm:$0xff]  ;;  %s9053_s17 = smov 4   ;;  %s9054_s2 = smov 8  }
   0xb   :  { %15413 = vst [vmem:[#allocation5_spill] sm:$0xff] %v9118_v4  ;;  %v9151_v11 = vsub.s32 2, %v9118_v4  ;;  %v9171_v15 = vld [vmem:[%s15106_s0 + $0x48] sm:$0xff]  ;;  %v9176_v16 = vld [vmem:[%s15106_s0 + $0x50] sm:$0xff]  ;;  %v9181_v17 = vld [vmem:[%s15106_s0 + $0x58] sm:$0xff]  ;;  %v9310_v54 = vsub.s32 0, %v9118_v4 }
   0xc   :  { %v9186_v18 = vld [vmem:[%s15106_s0 + $0x60] sm:$0xff]  ;;  %v9191_v19 = vld [vmem:[%s15106_s0 + $0x68] sm:$0xff]  ;;  %v9196_v20 = vld [vmem:[%s15106_s0 + $0x70] sm:$0xff]  ;;  %v9385_v3 = vsub.s32 1, %v9118_v4  ;;  %v9458_v61 = vsub.s32 3, %v9118_v4  ;;  %v9523_v59 = vsub.s32 4, %v9118_v4 }
   0xd   :  { %v9201_v21 = vld [vmem:[%s15106_s0 + $0x78] sm:$0xff]  ;;  %v9206_v22 = vld [vmem:[%s15106_s0 + $0x80] sm:$0xff]  ;;  %v9211_v23 = vld [vmem:[%s15106_s0 + $0x88] sm:$0xff]  ;;  %v461_v24 = vrot.slane %v9123_v5, %v9151_v11  ;;  %v465_v25 = vrot.slane %v9128_v6, %v9151_v11  ;;  %v469_v26 = vrot.slane %v9133_v7, %v9151_v11  ;;  %v473_v30 = vrot.slane %v9138_v8, %v9151_v11  ;;  %s9058_s22 = smov 24   ;;  %s9059_s23 = smov 28  }
   0xe   :  { %v9222_v27 = vld [vmem:[%s15106_s0 + $0x90] sm:$0xff]  ;;  %v9227_v28 = vld [vmem:[%s15106_s0 + $0x98] sm:$0xff]  ;;  %v9232_v29 = vld [vmem:[%s15106_s0 + $0xa0] sm:$0xff]  ;;  %v477_v31 = vrot.slane %v9143_v9, %v9151_v11  ;;  %v481_v32 = vrot.slane %v9148_v10, %v9151_v11  ;;  %v485_v33 = vrot.slane %v9156_v12, %v9151_v11  ;;  %v489_v37 = vrot.slane %v9161_v13, %v9151_v11  ;;  %15432 = vst [vmem:[#allocation24_spill] sm:$0xff] %v9458_v61  ;;  %s9060_s16 = smov [#allocation2]  }
   0xf   :  { %15419 = vst [vmem:[#allocation11_spill] sm:$0xff] %v9222_v27  ;;  %15420 = vst [vmem:[#allocation12_spill] sm:$0xff] %v9227_v28  ;;  %v9245_v34 = vld [vmem:[%s15106_s0 + $0xa8] sm:$0xff]  ;;  %v9250_v35 = vld [vmem:[%s15106_s0 + $0xb0] sm:$0xff]  ;;  %v493_v38 = vrot.slane %v9166_v14, %v9151_v11  ;;  %v497_v39 = vrot.slane %v9171_v15, %v9151_v11  ;;  %v501_v40 = vrot.slane %v9176_v16, %v9151_v11  ;;  %v9588_v62 = vsub.s32 5, %v9118_v4  ;;  %s6688_s1 = sshll.u32 %s9060_s16, 4  ;;  %s6689_s1 = int_to_ptr.vmem [resolvable:$true] %s6688_s1 }
  0x10   :  { %15421 = vst [vmem:[#allocation13_spill] sm:$0xff] %v9232_v29  ;;  %15422 = vst [vmem:[#allocation14_spill] sm:$0xff] %v9245_v34  ;;  %v9255_v36 = vld [vmem:[%s15106_s0 + $0xb8] sm:$0xff]  ;;  %v9268_v41 = vld [vmem:[%s15106_s0 + $0xc0] sm:$0xff]  ;;  %v505_v44 = vrot.slane %v9181_v17, %v9151_v11  ;;  %v509_v45 = vrot.slane %v9186_v18, %v9151_v11  ;;  %v513_v46 = vrot.slane %v9191_v19, %v9151_v11  ;;  %v9677_v60 = vsub.s32 6, %v9118_v4  ;;  %p9028_p1 = scmp.lt.s32.totalorder %s6689_s1, %s6689_s1 }
  0x11   :  { %15423 = vst [vmem:[#allocation15_spill] sm:$0xff] %v9250_v35  ;;  %15424 = vst [vmem:[#allocation16_spill] sm:$0xff] %v9255_v36  ;;  %v9273_v42 = vld [vmem:[%s15106_s0 + $0xc8] sm:$0xff]  ;;  %v9278_v43 = vld [vmem:[%s15106_s0 + $0xd0] sm:$0xff]  ;;  %v15445_v51 = vrot.slane %v9201_v21, %v9151_v11  ;;  %vm5488_vm5 = vcmask 97280   ;;  %vm5490_vm6 = vcmask 130048  }
  0x12   :  { %15425 = vst [vmem:[#allocation17_spill] sm:$0xff] %v9268_v41  ;;  %15426 = vst [vmem:[#allocation18_spill] sm:$0xff] %v9273_v42  ;;  %v9291_v48 = vld [vmem:[%s15106_s0 + $0xd8] sm:$0xff]  ;;  %v9296_v49 = vld [vmem:[%s15106_s0 + $0xe0] sm:$0xff]  ;;  %vm5492_vm7 = vcmask 162816   ;;  %vm5494_vm8 = vcmask 195584  }
  0x13   :  { %15427 = vst [vmem:[#allocation19_spill] sm:$0xff] %v9278_v43  ;;  %15428 = vst [vmem:[#allocation20_spill] sm:$0xff] %v9291_v48  ;;  %v9301_v50 = vld [vmem:[%s15106_s0 + $0xe8] sm:$0xff]  ;;  %v9315_v55 = vld [vmem:[%s15106_s0 + $0xf0] sm:$0xff]  ;;  %vm5496_vm9 = vcmask 228352   ;;  %vm5498_vm10 = vcmask 261120  }
  0x14   :  { %15429 = vst [vmem:[#allocation21_spill] sm:$0xff] %v9296_v49  ;;  %15430 = vst [vmem:[#allocation22_spill] sm:$0xff] %v9301_v50  ;;  %v9320_v56 = vld [vmem:[%s15106_s0 + $0xf8] sm:$0xff]  ;;  %vm6676_vm11 = vcmask 254976  }
  0x15   :  { %15431 = vst [vmem:[#allocation23_spill] sm:$0xff] %v9315_v55  ;;  %15433 = vst [vmem:[#allocation25_spill] sm:$0xff] %v9523_v59 }
  0x16   :  { %15434 = vst [vmem:[#allocation26_spill] sm:$0xff] %v9588_v62  ;;  %15435 = vst [vmem:[#allocation27_spill] sm:$0xff] %v9677_v60 }
  0x81   :  { %v9598_v57 = vpop.permute.xlu0 %66 }
  0x82   :  { %v586_v58 = vmul.f32 %v461_v24, %v9598_v57  ;;  %v587_v63 = vmul.f32 %v465_v25, %v9598_v57  ;;  %v589_v1 = vmul.f32 %v473_v30, %v9598_v57 }
  0x85   :  { %v9648_v52 = vpop.permute.xlu0 %231 }
  0x86   :  { %v9680_v25 = vadd.f32 %v586_v58, %v9648_v52  ;;  %v9683_v0 = vadd.f32 %v587_v63, %v9648_v52  ;;  %v588_v63 = vmul.f32 %v469_v26, %v9598_v57  ;;  %v9739_v47 = vadd.f32 %v589_v1, %v9648_v52 }
  0x87   :  { %v591_v1 = vmul.f32 %v481_v32, %v9598_v57 }
  0x88   :  { %15436 = vst [vmem:[#allocation28_spill] sm:$0xff] %v9680_v25  ;;  %15437 = vst [vmem:[#allocation29_spill] sm:$0xff] %v9683_v0  ;;  %v9720_v53 = vadd.f32 %v588_v63, %v9648_v52  ;;  %v1676_v24 = vmax.f32 %v9680_v25, %v9683_v0  ;;  %v590_v63 = vmul.f32 %v477_v31, %v9598_v57 }
  0x89   :  { %15439 = vst [vmem:[#allocation31_spill] sm:$0xff] %v9739_v47  ;;  %v15451_v25 = vrot.slane %v9128_v6, %v9310_v54  ;;  %v15455_v0 = vrot.slane %v9250_v35, %v9151_v11 }
  0x8a   :  { %15438 = vst [vmem:[#allocation30_spill] sm:$0xff] %v9720_v53  ;;  %v1677_v58 = vmax.f32 %v1676_v24, %v9720_v53  ;;  %v9757_v24 = vadd.f32 %v590_v63, %v9648_v52  ;;  %v9775_v63 = vadd.f32 %v591_v1, %v9648_v52  ;;  %v594_v1 = vmul.f32 %v493_v38, %v9598_v57 }
  0x8b   :  { %v597_v38 = vmul.f32 %v505_v44, %v9598_v57  ;;  %v15450_v53 = vrot.slane %v9123_v5, %v9310_v54 }
  0x8c   :  { %15440 = vst [vmem:[#allocation32_spill] sm:$0xff] %v9757_v24  ;;  %v1678_v2 = vmax.f32 %v1677_v58, %v9739_v47  ;;  %v592_v58 = vmul.f32 %v485_v33, %v9598_v57  ;;  %15441 = vst [vmem:[#allocation33_spill] sm:$0xff] %v9775_v63  ;;  %v595_v33 = vmul.f32 %v497_v39, %v9598_v57 }
  0x8d   :  { %v599_v39 = vmul.f32 %v513_v46, %v9598_v57  ;;  %v15452_v47 = vrot.slane %v9227_v28, %v9151_v11 }
  0x8e   :  { %v1679_v26 = vmax.f32 %v1678_v2, %v9757_v24  ;;  %v593_v2 = vmul.f32 %v489_v37, %v9598_v57  ;;  %v9797_v30 = vadd.f32 %v592_v58, %v9648_v52  ;;  %v596_v37 = vmul.f32 %v501_v40, %v9598_v57 }
  0x8f   :  { %v15443_v58 = vrot.slane %v9196_v20, %v9151_v11  ;;  %v15446_v24 = vrot.slane %v9206_v22, %v9151_v11  ;;  %v9873_v4 = vadd.f32 %v595_v33, %v9648_v52  ;;  %v15461_v33 = vrot.slane %v9273_v42, %v9151_v11 }
  0x90   :  { %15442 = vst [vmem:[#allocation34_spill] sm:$0xff] %v9797_v30  ;;  %v1680_v31 = vmax.f32 %v1679_v26, %v9775_v63  ;;  %v598_v26 = vmul.f32 %v509_v45, %v9598_v57  ;;  %v9825_v32 = vadd.f32 %v593_v2, %v9648_v52  ;;  %v601_v45 = vmul.f32 %v15445_v51, %v9598_v57 }
  0x91   :  { %v600_v40 = vmul.f32 %v15443_v58, %v9598_v57  ;;  %v602_v46 = vmul.f32 %v15446_v24, %v9598_v57  ;;  %v15447_v63 = vrot.slane %v9211_v23, %v9151_v11  ;;  %v15448_v2 = vrot.slane %v9222_v27, %v9151_v11  ;;  %15456 = vst [vmem:[#allocation37_spill] sm:$0xff] %v9873_v4 }
  0x92   :  { %15444 = vst [vmem:[#allocation35_spill] sm:$0xff] %v9825_v32  ;;  %v1681_v44 = vmax.f32 %v1680_v31, %v9797_v30  ;;  %v9845_v30 = vadd.f32 %v594_v1, %v9648_v52  ;;  %v197_v24 = vmul.f32 %v15450_v53, %v9598_v57  ;;  %v15453_v1 = vrot.slane %v9232_v29, %v9151_v11 }
  0x93   :  { %v603_v58 = vmul.f32 %v15447_v63, %v9598_v57  ;;  %v604_v31 = vmul.f32 %v15448_v2, %v9598_v57  ;;  %v198_v63 = vmul.f32 %v15451_v25, %v9598_v57  ;;  %v605_v2 = vmul.f32 %v15452_v47, %v9598_v57 }
  0x94   :  { %15449 = vst [vmem:[#allocation36_spill] sm:$0xff] %v9845_v30  ;;  %v1682_v51 = vmax.f32 %v1681_v44, %v9825_v32  ;;  %v606_v44 = vmul.f32 %v15453_v1, %v9598_v57  ;;  %v15454_v32 = vrot.slane %v9245_v34, %v9151_v11  ;;  %v608_v25 = vmul.f32 %v15455_v0, %v9598_v57 }
  0x95   :  { %v9877_v60 = vadd.f32 %v9648_v52, %v197_v24  ;;  %v9880_v1 = vadd.f32 %v9648_v52, %v198_v63  ;;  %v15460_v0 = vrot.slane %v9268_v41, %v9151_v11  ;;  %v15462_v24 = vrot.slane %v9278_v43, %v9151_v11 }
  0x96   :  { %v607_v53 = vmul.f32 %v15454_v32, %v9598_v57  ;;  %v1683_v47 = vmax.f32 %v1682_v51, %v9845_v30  ;;  %v15459_v32 = vrot.slane %v9255_v36, %v9151_v11  ;;  %v611_v51 = vmul.f32 %v15461_v33, %v9598_v57 }
  0x97   :  { %15457 = vst [vmem:[#allocation38_spill] sm:$0xff] %v9877_v60  ;;  %15458 = vst [vmem:[#allocation39_spill] sm:$0xff] %v9880_v1  ;;  %v610_v59 = vmul.f32 %v15460_v0, %v9598_v57  ;;  %v612_v63 = vmul.f32 %v15462_v24, %v9598_v57  ;;  %v15463_v30 = vrot.slane %v9291_v48, %v9151_v11 }
  0x98   :  { %v609_v62 = vmul.f32 %v15459_v32, %v9598_v57  ;;  %v9903_v61 = vadd.f32 %v596_v37, %v9648_v52  ;;  %v1684_v0 = vmax.f32 %v1683_v47, %v9873_v4  ;;  %v15465_v42 = vrot.slane %v9133_v7, %v9310_v54 }
  0x99   :  { %v613_v32 = vmul.f32 %v15463_v30, %v9598_v57  ;;  %v15466_v43 = vrot.slane %v9296_v49, %v9151_v11  ;;  %v15467_v48 = vrot.slane %v9301_v50, %v9151_v11  ;;  %v15468_v37 = vrot.slane %v9315_v55, %v9151_v11 }
  0x9a   :  { %15464 = vst [vmem:[#allocation40_spill] sm:$0xff] %v9903_v61  ;;  %v199_v33 = vmul.f32 %v15465_v42, %v9598_v57  ;;  %v9923_v4 = vadd.f32 %v597_v38, %v9648_v52  ;;  %v1685_v42 = vmax.f32 %v1684_v0, %v9903_v61  ;;  %v15470_v49 = vrot.slane %v9138_v8, %v9310_v54 }
  0x9b   :  { %v614_v24 = vmul.f32 %v15466_v43, %v9598_v57  ;;  %v615_v30 = vmul.f32 %v15467_v48, %v9598_v57  ;;  %v616_v47 = vmul.f32 %v15468_v37, %v9598_v57  ;;  %v1610_v48 = vmax.f32 %v9877_v60, %v9880_v1 }
  0x9c   :  { %15469 = vst [vmem:[#allocation41_spill] sm:$0xff] %v9923_v4  ;;  %v200_v43 = vmul.f32 %v15470_v49, %v9598_v57  ;;  %v9931_v7 = vadd.f32 %v9648_v52, %v199_v33  ;;  %v15472_v37 = vrot.slane %v9320_v56, %v9151_v11  ;;  %v9940_v38 = vadd.f32 %v598_v26, %v9648_v52 }
  0x9d   :  { %v9943_v0 = vadd.f32 %v599_v39, %v9648_v52  ;;  %v9946_v61 = vadd.f32 %v600_v40, %v9648_v52  ;;  %v1686_v49 = vmax.f32 %v1685_v42, %v9923_v4  ;;  %v15476_v33 = vrot.slane %v9143_v9, %v9310_v54 }
  0x9e   :  { %15471 = vst [vmem:[#allocation42_spill] sm:$0xff] %v9931_v7  ;;  %v617_v55 = vmul.f32 %v15472_v37, %v9598_v57  ;;  %15473 = vst [vmem:[#allocation43_spill] sm:$0xff] %v9940_v38  ;;  %v9954_v1 = vadd.f32 %v9648_v52, %v200_v43  ;;  %v1611_v11 = vmax.f32 %v1610_v48, %v9931_v7 }
  0x9f   :  { %15474 = vst [vmem:[#allocation44_spill] sm:$0xff] %v9943_v0  ;;  %15475 = vst [vmem:[#allocation45_spill] sm:$0xff] %v9946_v61  ;;  %v201_v60 = vmul.f32 %v15476_v33, %v9598_v57  ;;  %v9958_v26 = vadd.f32 %v601_v45, %v9648_v52  ;;  %v9961_v39 = vadd.f32 %v602_v46, %v9648_v52 }
  0xa0   :  { %15477 = vst [vmem:[#allocation46_spill] sm:$0xff] %v9954_v1  ;;  %v9964_v40 = vadd.f32 %v603_v58, %v9648_v52  ;;  %v9967_v42 = vadd.f32 %v604_v31, %v9648_v52  ;;  %v1687_v37 = vmax.f32 %v1686_v49, %v9940_v38  ;;  %v15482_v43 = vrot.slane %v9148_v10, %v9310_v54 }
  0xa1   :  { %15478 = vst [vmem:[#allocation47_spill] sm:$0xff] %v9958_v26  ;;  %15479 = vst [vmem:[#allocation48_spill] sm:$0xff] %v9961_v39  ;;  %v9975_v48 = vadd.f32 %v9648_v52, %v201_v60  ;;  %v1612_v45 = vmax.f32 %v1611_v11, %v9954_v1  ;;  %v9979_v46 = vadd.f32 %v605_v2, %v9648_v52 }
  0xa2   :  { %15480 = vst [vmem:[#allocation49_spill] sm:$0xff] %v9964_v40  ;;  %15481 = vst [vmem:[#allocation50_spill] sm:$0xff] %v9967_v42  ;;  %v202_v33 = vmul.f32 %v15482_v43, %v9598_v57  ;;  %v9982_v58 = vadd.f32 %v606_v44, %v9648_v52  ;;  %v9985_v31 = vadd.f32 %v607_v53, %v9648_v52 }
  0xa3   :  { %15483 = vst [vmem:[#allocation51_spill] sm:$0xff] %v9975_v48  ;;  %15484 = vst [vmem:[#allocation52_spill] sm:$0xff] %v9979_v46  ;;  %v9988_v49 = vadd.f32 %v608_v25, %v9648_v52  ;;  %v1688_v38 = vmax.f32 %v1687_v37, %v9943_v0  ;;  %v15488_v60 = vrot.slane %v9156_v12, %v9310_v54 }
  0xa4   :  { %15485 = vst [vmem:[#allocation53_spill] sm:$0xff] %v9982_v58  ;;  %15486 = vst [vmem:[#allocation54_spill] sm:$0xff] %v9985_v31  ;;  %v9996_v11 = vadd.f32 %v9648_v52, %v202_v33  ;;  %v1613_v2 = vmax.f32 %v1612_v45, %v9975_v48  ;;  %v10000_v44 = vadd.f32 %v609_v62, %v9648_v52 }
  0xa5   :  { %15487 = vst [vmem:[#allocation55_spill] sm:$0xff] %v9988_v49  ;;  %v203_v43 = vmul.f32 %v15488_v60, %v9598_v57  ;;  %v10003_v53 = vadd.f32 %v610_v59, %v9648_v52  ;;  %v10006_v25 = vadd.f32 %v611_v51, %v9648_v52  ;;  %v10009_v37 = vadd.f32 %v612_v63, %v9648_v52 }
  0xa6   :  { %15489 = vst [vmem:[#allocation56_spill] sm:$0xff] %v9996_v11  ;;  %15490 = vst [vmem:[#allocation57_spill] sm:$0xff] %v10000_v44  ;;  %v1689_v0 = vmax.f32 %v1688_v38, %v9946_v61  ;;  %v15494_v33 = vrot.slane %v9161_v13, %v9310_v54  ;;  %v1614_v62 = vmax.f32 %v1613_v2, %v9996_v11 }
  0xa7   :  { %15491 = vst [vmem:[#allocation58_spill] sm:$0xff] %v10003_v53  ;;  %15492 = vst [vmem:[#allocation59_spill] sm:$0xff] %v10006_v25  ;;  %v10017_v45 = vadd.f32 %v9648_v52, %v203_v43  ;;  %v10021_v59 = vadd.f32 %v613_v32, %v9648_v52  ;;  %v10024_v51 = vadd.f32 %v614_v24, %v9648_v52 }
  0xa8   :  { %15493 = vst [vmem:[#allocation60_spill] sm:$0xff] %v10009_v37  ;;  %v204_v60 = vmul.f32 %v15494_v33, %v9598_v57  ;;  %v10027_v63 = vadd.f32 %v615_v30, %v9648_v52  ;;  %v10030_v38 = vadd.f32 %v616_v47, %v9648_v52  ;;  %v1690_v61 = vmax.f32 %v1689_v0, %v9958_v26 }
  0xa9   :  { %15495 = vst [vmem:[#allocation61_spill] sm:$0xff] %v10017_v45  ;;  %15496 = vst [vmem:[#allocation62_spill] sm:$0xff] %v10021_v59  ;;  %v15500_v43 = vrot.slane %v9166_v14, %v9310_v54  ;;  %v1615_v32 = vmax.f32 %v1614_v62, %v10017_v45  ;;  %v10042_v24 = vadd.f32 %v617_v55, %v9648_v52 }
  0xaa   :  { %15497 = vst [vmem:[#allocation63_spill] sm:$0xff] %v10024_v51  ;;  %15498 = vst [vmem:[#allocation64_spill] sm:$0xff] %v10027_v63  ;;  %v10038_v2 = vadd.f32 %v9648_v52, %v204_v60  ;;  %v15503_v30 = vrot.slane %v9171_v15, %v9310_v54  ;;  %v15504_v0 = vrot.slane %v9176_v16, %v9310_v54 }
  0xab   :  { %15499 = vst [vmem:[#allocation65_spill] sm:$0xff] %v10030_v38  ;;  %v205_v33 = vmul.f32 %v15500_v43, %v9598_v57  ;;  %15502 = vst [vmem:[#allocation67_spill] sm:$0xff] %v10042_v24  ;;  %v15505_v60 = vrot.slane %v9181_v17, %v9310_v54  ;;  %v1691_v62 = vmax.f32 %v1690_v61, %v9961_v39 }
  0xac   :  { %15501 = vst [vmem:[#allocation66_spill] sm:$0xff] %v10038_v2  ;;  %v206_v47 = vmul.f32 %v15503_v30, %v9598_v57  ;;  %v207_v26 = vmul.f32 %v15504_v0, %v9598_v57  ;;  %v15506_v55 = vrot.slane %v9186_v18, %v9310_v54  ;;  %v1616_v30 = vmax.f32 %v1615_v32, %v10038_v2 }
  0xad   :  { %v208_v43 = vmul.f32 %v15505_v60, %v9598_v57  ;;  %v10062_v45 = vadd.f32 %v9648_v52, %v205_v33  ;;  %v15508_v0 = vrot.slane %v9191_v19, %v9310_v54  ;;  %v15509_v60 = vrot.slane %v9196_v20, %v9310_v54 }
  0xae   :  { %v209_v4 = vmul.f32 %v15506_v55, %v9598_v57  ;;  %v15510_v39 = vrot.slane %v9201_v21, %v9310_v54  ;;  %v15511_v33 = vrot.slane %v9206_v22, %v9310_v54  ;;  %v1692_v2 = vmax.f32 %v1691_v62, %v9964_v40 }
  0xaf   :  { %15507 = vst [vmem:[#allocation68_spill] sm:$0xff] %v10062_v45  ;;  %v210_v48 = vmul.f32 %v15508_v0, %v9598_v57  ;;  %v211_v61 = vmul.f32 %v15509_v60, %v9598_v57  ;;  %v15512_v0 = vrot.slane %v9211_v23, %v9310_v54  ;;  %v10087_v7 = vadd.f32 %v9648_v52, %v206_v47 }
  0xb0   :  { %v212_v55 = vmul.f32 %v15510_v39, %v9598_v57  ;;  %v213_v32 = vmul.f32 %v15511_v33, %v9598_v57  ;;  %v1617_v60 = vmax.f32 %v1616_v30, %v10062_v45  ;;  %v15514_v39 = vrot.slane %v9222_v27, %v9310_v54 }
  0xb1   :  { %v214_v11 = vmul.f32 %v15512_v0, %v9598_v57  ;;  %15513 = vst [vmem:[#allocation69_spill] sm:$0xff] %v10087_v7  ;;  %v15515_v33 = vrot.slane %v9227_v28, %v9310_v54  ;;  %v15516_v40 = vrot.slane %v9123_v5, %v9385_v3  ;;  %v15517_v47 = vrot.slane %v9128_v6, %v9385_v3 }
  0xb2   :  { %v215_v1 = vmul.f32 %v15514_v39, %v9598_v57  ;;  %v1693_v45 = vmax.f32 %v1692_v2, %v9967_v42  ;;  %v15518_v39 = vrot.slane %v9232_v29, %v9310_v54  ;;  %v10112_v28 = vadd.f32 %v9648_v52, %v207_v26 }
  0xb3   :  { %v216_v62 = vmul.f32 %v15515_v33, %v9598_v57  ;;  %v394_v0 = vmul.f32 %v15516_v40, %v9598_v57  ;;  %v395_v30 = vmul.f32 %v15517_v47, %v9598_v57  ;;  %v1618_v33 = vmax.f32 %v1617_v60, %v10087_v7 }
  0xb4   :  { %v217_v24 = vmul.f32 %v15518_v39, %v9598_v57  ;;  %15519 = vst [vmem:[#allocation70_spill] sm:$0xff] %v10112_v28  ;;  %v15520_v40 = vrot.slane %v9245_v34, %v9310_v54  ;;  %v15521_v47 = vrot.slane %v9250_v35, %v9310_v54  ;;  %v1694_v26 = vmax.f32 %v1693_v45, %v9979_v46  ;;  %v15529_v46 = vld [vmem:[#allocation19_spill] sm:$0xff] }
  0xb5   :  { %v10124_v42 = vadd.f32 %v394_v0, %v9648_v52  ;;  %v10127_v39 = vadd.f32 %v395_v30, %v9648_v52  ;;  %v15524_v60 = vrot.slane %v9255_v36, %v9310_v54  ;;  %v1619_v34 = vmax.f32 %v1618_v33, %v10112_v28  ;;  %v15527_v30 = vld [vmem:[#allocation18_spill] sm:$0xff] }
  0xb6   :  { %v218_v5 = vmul.f32 %v15520_v40, %v9598_v57  ;;  %v219_v2 = vmul.f32 %v15521_v47, %v9598_v57  ;;  %v10135_v40 = vadd.f32 %v9648_v52, %v208_v43  ;;  %v15526_v0 = vrot.slane %v9268_v41, %v9310_v54  ;;  %v15531_v43 = vld [vmem:[#allocation8_spill] sm:$0xff] }
  0xb7   :  { %15522 = vst [vmem:[#allocation71_spill] sm:$0xff] %v10124_v42  ;;  %15523 = vst [vmem:[#allocation72_spill] sm:$0xff] %v10127_v39  ;;  %v220_v7 = vmul.f32 %v15524_v60, %v9598_v57  ;;  %v15528_v35 = vrot.slane %v15527_v30, %v9310_v54  ;;  %v15530_v36 = vrot.slane %v15529_v46, %v9310_v54  ;;  %v15533_v41 = vld [vmem:[#allocation20_spill] sm:$0xff]  ;;  %v15536_v46 = vld [vmem:[#allocation21_spill] sm:$0xff] }
  0xb8   :  { %15525 = vst [vmem:[#allocation73_spill] sm:$0xff] %v10135_v40  ;;  %v221_v47 = vmul.f32 %v15526_v0, %v9598_v57  ;;  %v15532_v29 = vrot.slane %v15531_v43, %v9385_v3  ;;  %v1695_v28 = vmax.f32 %v1694_v26, %v9982_v58  ;;  %v15534_v0 = vrot.slane %v15533_v41, %v9310_v54 }
  0xb9   :  { %v222_v45 = vmul.f32 %v15528_v35, %v9598_v57  ;;  %v223_v60 = vmul.f32 %v15530_v36, %v9598_v57  ;;  %v10160_v30 = vadd.f32 %v9648_v52, %v209_v4  ;;  %v1620_v35 = vmax.f32 %v1619_v34, %v10135_v40 }
  0xba   :  { %v396_v33 = vmul.f32 %v15532_v29, %v9598_v57  ;;  %v224_v6 = vmul.f32 %v15534_v0, %v9598_v57  ;;  %v15537_v36 = vrot.slane %v15536_v46, %v9310_v54  ;;  %v15538_v29 = vrot.slane %v9138_v8, %v9385_v3 }
  0xbb   :  { %15535 = vst [vmem:[#allocation74_spill] sm:$0xff] %v10160_v30  ;;  %v1643_v0 = vmax.f32 %v10124_v42, %v10127_v39  ;;  %v1696_v4 = vmax.f32 %v1695_v28, %v9985_v31  ;;  %v15540_v34 = vrot.slane %v9301_v50, %v9310_v54  ;;  %v1621_v46 = vmax.f32 %v1620_v35, %v10160_v30 }
  0xbc   :  { %v225_v27 = vmul.f32 %v15537_v36, %v9598_v57  ;;  %v397_v26 = vmul.f32 %v15538_v29, %v9598_v57  ;;  %v10172_v58 = vadd.f32 %v396_v33, %v9648_v52  ;;  %v10182_v36 = vadd.f32 %v9648_v52, %v210_v48  ;;  %v15542_v29 = vld [vmem:[#allocation23_spill] sm:$0xff] }
  0xbd   :  { %v226_v40 = vmul.f32 %v15540_v34, %v9598_v57  ;;  %v15543_v33 = vrot.slane %v15542_v29, %v9310_v54  ;;  %v15544_v42 = vrot.slane %v9143_v9, %v9385_v3  ;;  %v1697_v48 = vmax.f32 %v1696_v4, %v9988_v49 }
  0xbe   :  { %15539 = vst [vmem:[#allocation75_spill] sm:$0xff] %v10172_v58  ;;  %15541 = vst [vmem:[#allocation76_spill] sm:$0xff] %v10182_v36  ;;  %v10194_v31 = vadd.f32 %v397_v26, %v9648_v52  ;;  %v1644_v34 = vmax.f32 %v1643_v0, %v10172_v58  ;;  %v15546_v35 = vrot.slane %v9320_v56, %v9310_v54 }
  0xbf   :  { %v227_v8 = vmul.f32 %v15543_v33, %v9598_v57  ;;  %v398_v28 = vmul.f32 %v15544_v42, %v9598_v57  ;;  %v10203_v39 = vadd.f32 %v9648_v52, %v211_v61  ;;  %v1622_v33 = vmax.f32 %v1621_v46, %v10182_v36 }
  0xc0   :  { %15545 = vst [vmem:[#allocation77_spill] sm:$0xff] %v10194_v31  ;;  %v228_v30 = vmul.f32 %v15546_v35, %v9598_v57  ;;  %v10207_v29 = vadd.f32 %v9648_v52, %v212_v55  ;;  %v15549_v42 = vrot.slane %v9148_v10, %v9385_v3  ;;  %v1645_v4 = vmax.f32 %v1644_v34, %v10194_v31 }
  0xc1   :  { %15547 = vst [vmem:[#allocation78_spill] sm:$0xff] %v10203_v39  ;;  %v10214_v0 = vadd.f32 %v398_v28, %v9648_v52  ;;  %v1698_v54 = vmax.f32 %v1697_v48, %v10000_v44  ;;  %v10219_v61 = vadd.f32 %v9648_v52, %v213_v32  ;;  %v10222_v46 = vadd.f32 %v9648_v52, %v214_v11 }
  0xc2   :  { %15548 = vst [vmem:[#allocation79_spill] sm:$0xff] %v10207_v29  ;;  %v399_v26 = vmul.f32 %v15549_v42, %v9598_v57  ;;  %v1623_v55 = vmax.f32 %v1622_v33, %v10203_v39  ;;  %v10226_v35 = vadd.f32 %v9648_v52, %v215_v1  ;;  %v15554_v28 = vrot.slane %v9156_v12, %v9385_v3 }
  0xc3   :  { %15550 = vst [vmem:[#allocation80_spill] sm:$0xff] %v10214_v0  ;;  %15551 = vst [vmem:[#allocation81_spill] sm:$0xff] %v10219_v61  ;;  %v1646_v48 = vmax.f32 %v1645_v4, %v10214_v0  ;;  %v1699_v32 = vmax.f32 %v1698_v54, %v10003_v53  ;;  %v10238_v11 = vadd.f32 %v9648_v52, %v216_v62 }
  0xc4   :  { %15552 = vst [vmem:[#allocation82_spill] sm:$0xff] %v10222_v46  ;;  %15553 = vst [vmem:[#allocation83_spill] sm:$0xff] %v10226_v35  ;;  %v400_v42 = vmul.f32 %v15554_v28, %v9598_v57  ;;  %v10233_v34 = vadd.f32 %v399_v26, %v9648_v52  ;;  %v10241_v33 = vadd.f32 %v9648_v52, %v217_v24 }
  0xc5   :  { %15556 = vst [vmem:[#allocation85_spill] sm:$0xff] %v10238_v11  ;;  %v1624_v1 = vmax.f32 %v1623_v55, %v10207_v29  ;;  %v10245_v49 = vadd.f32 %v9648_v52, %v218_v5  ;;  %v15559_v26 = vrot.slane %v9161_v13, %v9385_v3  ;;  %v1700_v62 = vmax.f32 %v1699_v32, %v10006_v25 }
  0xc6   :  { %15555 = vst [vmem:[#allocation84_spill] sm:$0xff] %v10233_v34  ;;  %15557 = vst [vmem:[#allocation86_spill] sm:$0xff] %v10241_v33  ;;  %v10252_v4 = vadd.f32 %v400_v42, %v9648_v52  ;;  %v1647_v54 = vmax.f32 %v1646_v48, %v10233_v34  ;;  %v10257_v24 = vadd.f32 %v9648_v52, %v219_v2 }
  0xc7   :  { %15558 = vst [vmem:[#allocation87_spill] sm:$0xff] %v10245_v49  ;;  %v401_v28 = vmul.f32 %v15559_v26, %v9598_v57  ;;  %v10260_v55 = vadd.f32 %v9648_v52, %v220_v7  ;;  %v1625_v5 = vmax.f32 %v1624_v1, %v10219_v61  ;;  %v10264_v53 = vadd.f32 %v9648_v52, %v221_v47 }
  0xc8   :  { %15560 = vst [vmem:[#allocation88_spill] sm:$0xff] %v10252_v4  ;;  %15561 = vst [vmem:[#allocation89_spill] sm:$0xff] %v10257_v24  ;;  %v15564_v42 = vrot.slane %v9166_v14, %v9385_v3  ;;  %v1648_v32 = vmax.f32 %v1647_v54, %v10252_v4  ;;  %v1701_v2 = vmax.f32 %v1700_v62, %v10009_v37 }
  0xc9   :  { %15562 = vst [vmem:[#allocation90_spill] sm:$0xff] %v10260_v55  ;;  %15563 = vst [vmem:[#allocation91_spill] sm:$0xff] %v10264_v53  ;;  %v10271_v48 = vadd.f32 %v401_v28, %v9648_v52  ;;  %v10276_v7 = vadd.f32 %v9648_v52, %v222_v45  ;;  %v10279_v1 = vadd.f32 %v9648_v52, %v223_v60 }
  0xca   :  { %v402_v26 = vmul.f32 %v15564_v42, %v9598_v57  ;;  %v1626_v47 = vmax.f32 %v1625_v5, %v10222_v46  ;;  %v10283_v25 = vadd.f32 %v9648_v52, %v224_v6  ;;  %v15569_v28 = vrot.slane %v9171_v15, %v9385_v3 }
  0xcb   :  { %15565 = vst [vmem:[#allocation92_spill] sm:$0xff] %v10271_v48  ;;  %15566 = vst [vmem:[#allocation93_spill] sm:$0xff] %v10276_v7  ;;  %v1649_v62 = vmax.f32 %v1648_v32, %v10271_v48  ;;  %v1702_v45 = vmax.f32 %v1701_v2, %v10021_v59  ;;  %v10295_v60 = vadd.f32 %v9648_v52, %v225_v27 }
  0xcc   :  { %15567 = vst [vmem:[#allocation94_spill] sm:$0xff] %v10279_v1  ;;  %15568 = vst [vmem:[#allocation95_spill] sm:$0xff] %v10283_v25  ;;  %v403_v42 = vmul.f32 %v15569_v28, %v9598_v57  ;;  %v10290_v54 = vadd.f32 %v402_v26, %v9648_v52  ;;  %v10298_v5 = vadd.f32 %v9648_v52, %v226_v40 }
  0xcd   :  { %15571 = vst [vmem:[#allocation97_spill] sm:$0xff] %v10295_v60  ;;  %v1627_v6 = vmax.f32 %v1626_v47, %v10226_v35  ;;  %v10302_v37 = vadd.f32 %v9648_v52, %v227_v8  ;;  %v15574_v26 = vrot.slane %v9176_v16, %v9385_v3  ;;  %v1703_v27 = vmax.f32 %v1702_v45, %v10024_v51 }
  0xce   :  { %15570 = vst [vmem:[#allocation96_spill] sm:$0xff] %v10290_v54  ;;  %15572 = vst [vmem:[#allocation98_spill] sm:$0xff] %v10298_v5  ;;  %v10309_v32 = vadd.f32 %v403_v42, %v9648_v52  ;;  %v1650_v2 = vmax.f32 %v1649_v62, %v10290_v54  ;;  %v10314_v40 = vadd.f32 %v9648_v52, %v228_v30 }
  0xcf   :  { %15573 = vst [vmem:[#allocation99_spill] sm:$0xff] %v10302_v37  ;;  %v404_v28 = vmul.f32 %v15574_v26, %v9598_v57  ;;  %v1628_v47 = vmax.f32 %v1627_v6, %v10238_v11  ;;  %v15577_v8 = vrot.slane %v9181_v17, %v9385_v3  ;;  %v15578_v26 = vrot.slane %v9186_v18, %v9385_v3 }
  0xd0   :  { %15575 = vst [vmem:[#allocation100_spill] sm:$0xff] %v10309_v32  ;;  %15576 = vst [vmem:[#allocation101_spill] sm:$0xff] %v10314_v40  ;;  %v15579_v62 = vrot.slane %v9191_v19, %v9385_v3  ;;  %v1651_v6 = vmax.f32 %v1650_v2, %v10309_v32  ;;  %v1704_v51 = vmax.f32 %v1703_v27, %v10027_v63 }
  0xd1   :  { %v405_v59 = vmul.f32 %v15577_v8, %v9598_v57  ;;  %v406_v42 = vmul.f32 %v15578_v26, %v9598_v57  ;;  %v10330_v30 = vadd.f32 %v404_v28, %v9648_v52  ;;  %v1629_v44 = vmax.f32 %v1628_v47, %v10241_v33 }
  0xd2   :  { %v407_v45 = vmul.f32 %v15579_v62, %v9598_v57  ;;  %v15581_v8 = vrot.slane %v9196_v20, %v9385_v3  ;;  %v15582_v26 = vrot.slane %v9201_v21, %v9385_v3  ;;  %v15583_v28 = vrot.slane %v9206_v22, %v9385_v3 }
  0xd3   :  { %15580 = vst [vmem:[#allocation102_spill] sm:$0xff] %v10330_v30  ;;  %v15584_v2 = vrot.slane %v9211_v23, %v9385_v3  ;;  %v10352_v47 = vadd.f32 %v405_v59, %v9648_v52  ;;  %v1705_v63 = vmax.f32 %v1704_v51, %v10030_v38  ;;  %v1630_v33 = vmax.f32 %v1629_v44, %v10245_v49  ;;  %v15592_v51 = vld [vmem:[#allocation24_spill] sm:$0xff]  ;;  %v15594_v49 = vld [vmem:[#allocation7_spill] sm:$0xff] }
  0xd4   :  { %v408_v35 = vmul.f32 %v15581_v8, %v9598_v57  ;;  %v409_v61 = vmul.f32 %v15582_v26, %v9598_v57  ;;  %v410_v62 = vmul.f32 %v15583_v28, %v9598_v57  ;;  %v1652_v8 = vmax.f32 %v1651_v6, %v10330_v30  ;;  %v15586_v26 = vld [vmem:[#allocation11_spill] sm:$0xff]  ;;  %v15588_v28 = vld [vmem:[#allocation12_spill] sm:$0xff]  ;;  %v15591_v6 = vld [vmem:[#allocation6_spill] sm:$0xff] }
  0xd5   :  { %v411_v27 = vmul.f32 %v15584_v2, %v9598_v57  ;;  %15585 = vst [vmem:[#allocation103_spill] sm:$0xff] %v10352_v47  ;;  %v15587_v11 = vrot.slane %v15586_v26, %v9385_v3  ;;  %v15589_v39 = vrot.slane %v15588_v28, %v9385_v3  ;;  %v10366_v2 = vadd.f32 %v406_v42, %v9648_v52  ;;  %v15596_v30 = vld [vmem:[#allocation67_spill] sm:$0xff] }
  0xd6   :  { %v1653_v59 = vmax.f32 %v1652_v8, %v10352_v47  ;;  %v15593_v38 = vrot.slane %v15591_v6, %v15592_v51  ;;  %v15595_v36 = vrot.slane %v15594_v49, %v15592_v51  ;;  %v1706_v54 = vmax.f32 %v1705_v63, %v15596_v30  ;;  %v15599_v8 = vld [vmem:[#allocation14_spill] sm:$0xff] }
  0xd7   :  { %v412_v46 = vmul.f32 %v15587_v11, %v9598_v57  ;;  %v413_v29 = vmul.f32 %v15589_v39, %v9598_v57  ;;  %15590 = vst [vmem:[#allocation104_spill] sm:$0xff] %v10366_v2  ;;  %v1631_v32 = vmax.f32 %v1630_v33, %v10257_v24  ;;  %v15597_v39 = vld [vmem:[#allocation13_spill] sm:$0xff]  ;;  %v15600_v47 = vrot.slane %v15599_v8, %v9385_v3 }
  0xd8   :  { %v778_v44 = vmul.f32 %v15593_v38, %v9598_v57  ;;  %v779_v11 = vmul.f32 %v15595_v36, %v9598_v57  ;;  %v15598_v42 = vrot.slane %v15597_v39, %v9385_v3  ;;  %v10388_v38 = vadd.f32 %v407_v45, %v9648_v52  ;;  %1707 = vmax.xlane.f32.xlu0 %v1706_v54 }
  0xd9   :  { %v415_v0 = vmul.f32 %v15600_v47, %v9598_v57  ;;  %v1654_v48 = vmax.f32 %v1653_v59, %v10366_v2  ;;  %v1632_v33 = vmax.f32 %v1631_v32, %v10260_v55  ;;  %v15606_v47 = vld [vmem:[#allocation16_spill] sm:$0xff]  ;;  %v15608_v59 = vld [vmem:[#allocation17_spill] sm:$0xff]  ;;  %v10415_v55 = vadd.f32 %v408_v35, %v9648_v52 }
  0xda   :  { %v414_v4 = vmul.f32 %v15598_v42, %v9598_v57  ;;  %15601 = vst [vmem:[#allocation24_spill] sm:$0xff] %v10388_v38  ;;  %v10392_v36 = vadd.f32 %v778_v44, %v9648_v52  ;;  %v10395_v63 = vadd.f32 %v779_v11, %v9648_v52  ;;  %v15604_v42 = vld [vmem:[#allocation15_spill] sm:$0xff]  ;;  %v15607_v45 = vrot.slane %v15606_v47, %v9385_v3  ;;  %v15610_v11 = vld [vmem:[#allocation18_spill] sm:$0xff] }
  0xdb   :  { %v15605_v30 = vrot.slane %v15604_v42, %v9385_v3  ;;  %v15609_v44 = vrot.slane %v15608_v59, %v9385_v3  ;;  %v15611_v54 = vrot.slane %v15610_v11, %v9385_v3  ;;  %15612 = vst [vmem:[#allocation107_spill] sm:$0xff] %v10415_v55  ;;  %v15613_v58 = vrot.slane %v15531_v43, %v15592_v51  ;;  %v15614_v59 = vld [vmem:[#allocation19_spill] sm:$0xff] }
  0xdc   :  { %15602 = vst [vmem:[#allocation105_spill] sm:$0xff] %v10392_v36  ;;  %15603 = vst [vmem:[#allocation106_spill] sm:$0xff] %v10395_v63  ;;  %v417_v34 = vmul.f32 %v15607_v45, %v9598_v57  ;;  %v1633_v31 = vmax.f32 %v1632_v33, %v10264_v53  ;;  %v10432_v11 = vadd.f32 %v409_v61, %v9648_v52 }
  0xdd   :  { %v416_v24 = vmul.f32 %v15605_v30, %v9598_v57  ;;  %v418_v2 = vmul.f32 %v15609_v44, %v9598_v57  ;;  %v419_v32 = vmul.f32 %v15611_v54, %v9598_v57  ;;  %v1655_v30 = vmax.f32 %v1654_v48, %v10388_v38  ;;  %v15618_v38 = vld [vmem:[#allocation9_spill] sm:$0xff] }
  0xde   :  { %v780_v45 = vmul.f32 %v15613_v58, %v9598_v57  ;;  %v15615_v44 = vrot.slane %v15614_v59, %v9385_v3  ;;  %v15616_v54 = vrot.slane %v15533_v41, %v9385_v3  ;;  %15617 = vst [vmem:[#allocation108_spill] sm:$0xff] %v10432_v11  ;;  %v15619_v58 = vrot.slane %v15618_v38, %v15592_v51 }
  0xdf   :  { %v1656_v48 = vmax.f32 %v1655_v30, %v10415_v55  ;;  %v1634_v59 = vmax.f32 %v1633_v31, %v10276_v7  ;;  %v15623_v30 = vrot.slane %v9301_v50, %v9385_v3  ;;  %v15627_v50 = vld [vmem:[#allocation23_spill] sm:$0xff] }
  0xe0   :  { %v420_v47 = vmul.f32 %v15615_v44, %v9598_v57  ;;  %v421_v35 = vmul.f32 %v15616_v54, %v9598_v57  ;;  %v781_v33 = vmul.f32 %v15619_v58, %v9598_v57  ;;  %v10440_v53 = vadd.f32 %v780_v45, %v9648_v52  ;;  %v15621_v54 = vld [vmem:[#allocation21_spill] sm:$0xff] }
  0xe1   :  { %v1709_v44 = vmax.f32 %v10392_v36, %v10395_v63  ;;  %v15622_v61 = vrot.slane %v15621_v54, %v9385_v3  ;;  %v423_v55 = vmul.f32 %v15623_v30, %v9598_v57  ;;  %v10454_v58 = vadd.f32 %v410_v62, %v9648_v52 }
  0xe2   :  { %15620 = vst [vmem:[#allocation109_spill] sm:$0xff] %v10440_v53  ;;  %v1657_v45 = vmax.f32 %v1656_v48, %v10432_v11  ;;  %v15625_v36 = vrot.slane %v9143_v9, %v15592_v51  ;;  %v10462_v7 = vadd.f32 %v781_v33, %v9648_v52  ;;  %v1635_v63 = vmax.f32 %v1634_v59, %v10279_v1 }
  0xe3   :  { %v422_v41 = vmul.f32 %v15622_v61, %v9598_v57  ;;  %15624 = vst [vmem:[#allocation21_spill] sm:$0xff] %v10454_v58  ;;  %v1710_v61 = vmax.f32 %v1709_v44, %v10440_v53  ;;  %v15628_v30 = vrot.slane %v15627_v50, %v9385_v3  ;;  %v15629_v48 = vrot.slane %v9320_v56, %v9385_v3 }
  0xe4   :  { %v782_v31 = vmul.f32 %v15625_v36, %v9598_v57  ;;  %15626 = vst [vmem:[#allocation110_spill] sm:$0xff] %v10462_v7  ;;  %v10475_v9 = vadd.f32 %v411_v27, %v9648_v52  ;;  %v1658_v36 = vmax.f32 %v1657_v45, %v10454_v58  ;;  %v15631_v33 = vrot.slane %v9148_v10, %v15592_v51 }
  0xe5   :  { %v424_v62 = vmul.f32 %v15628_v30, %v9598_v57  ;;  %v425_v11 = vmul.f32 %v15629_v48, %v9598_v57  ;;  %v1711_v30 = vmax.f32 %v1710_v61, %v10462_v7  ;;  %v1636_v1 = vmax.f32 %v1635_v63, %v10283_v25  ;;  %v15684_v7 = vld [vmem:[#allocation19_spill] sm:$0xff] }
  0xe6   :  { %15630 = vst [vmem:[#allocation23_spill] sm:$0xff] %v10475_v9  ;;  %v783_v59 = vmul.f32 %v15631_v33, %v9598_v57  ;;  %v10483_v44 = vadd.f32 %v782_v31, %v9648_v52  ;;  %v10488_v3 = vadd.f32 %v412_v46, %v9648_v52  ;;  %v10491_v27 = vadd.f32 %v413_v29, %v9648_v52 }
  0xe7   :  { %v10494_v45 = vadd.f32 %v414_v4, %v9648_v52  ;;  %v1659_v48 = vmax.f32 %v1658_v36, %v10475_v9  ;;  %v15636_v31 = vrot.slane %v9156_v12, %v15592_v51  ;;  %v1637_v46 = vmax.f32 %v1636_v1, %v10295_v60 }
  0xe8   :  { %15632 = vst [vmem:[#allocation111_spill] sm:$0xff] %v10483_v44  ;;  %15633 = vst [vmem:[#allocation112_spill] sm:$0xff] %v10488_v3  ;;  %v10502_v61 = vadd.f32 %v783_v59, %v9648_v52  ;;  %v1712_v63 = vmax.f32 %v1711_v30, %v10483_v44  ;;  %v10507_v29 = vadd.f32 %v415_v0, %v9648_v52 }
  0xe9   :  { %15634 = vst [vmem:[#allocation113_spill] sm:$0xff] %v10491_v27  ;;  %15635 = vst [vmem:[#allocation114_spill] sm:$0xff] %v10494_v45  ;;  %v784_v33 = vmul.f32 %v15636_v31, %v9598_v57  ;;  %v10510_v4 = vadd.f32 %v416_v24, %v9648_v52  ;;  %v10513_v36 = vadd.f32 %v417_v34, %v9648_v52 }
  0xea   :  { %15637 = vst [vmem:[#allocation115_spill] sm:$0xff] %v10502_v61  ;;  %15638 = vst [vmem:[#allocation116_spill] sm:$0xff] %v10507_v29  ;;  %v1660_v25 = vmax.f32 %v1659_v48, %v10488_v3  ;;  %v15641_v59 = vrot.slane %v9161_v13, %v15592_v51  ;;  %v1713_v1 = vmax.f32 %v1712_v63, %v10502_v61 }
  0xeb   :  { %15639 = vst [vmem:[#allocation117_spill] sm:$0xff] %v10510_v4  ;;  %15640 = vst [vmem:[#allocation118_spill] sm:$0xff] %v10513_v36  ;;  %v10521_v30 = vadd.f32 %v784_v33, %v9648_v52  ;;  %v1638_v0 = vmax.f32 %v1637_v46, %v10298_v5  ;;  %v10526_v24 = vadd.f32 %v418_v2, %v9648_v52 }
  0xec   :  { %v785_v31 = vmul.f32 %v15641_v59, %v9598_v57  ;;  %v10529_v34 = vadd.f32 %v419_v32, %v9648_v52  ;;  %v10532_v48 = vadd.f32 %v420_v47, %v9648_v52  ;;  %v1661_v60 = vmax.f32 %v1660_v25, %v10491_v27 }
  0xed   :  { %15642 = vst [vmem:[#allocation119_spill] sm:$0xff] %v10521_v30  ;;  %15643 = vst [vmem:[#allocation120_spill] sm:$0xff] %v10526_v24  ;;  %v15646_v33 = vrot.slane %v9166_v14, %v15592_v51  ;;  %v1714_v46 = vmax.f32 %v1713_v1, %v10521_v30  ;;  %v1639_v2 = vmax.f32 %v1638_v0, %v10302_v37 }
  0xee   :  { %15644 = vst [vmem:[#allocation121_spill] sm:$0xff] %v10529_v34  ;;  %15645 = vst [vmem:[#allocation122_spill] sm:$0xff] %v10532_v48  ;;  %v10540_v63 = vadd.f32 %v785_v31, %v9648_v52  ;;  %v10545_v32 = vadd.f32 %v421_v35, %v9648_v52  ;;  %v10548_v47 = vadd.f32 %v422_v41, %v9648_v52 }
  0xef   :  { %v786_v59 = vmul.f32 %v15646_v33, %v9598_v57  ;;  %v10551_v25 = vadd.f32 %v423_v55, %v9648_v52  ;;  %v1662_v5 = vmax.f32 %v1661_v60, %v10494_v45  ;;  %v15651_v31 = vrot.slane %v9171_v15, %v15592_v51 }
  0xf0   :  { %15647 = vst [vmem:[#allocation123_spill] sm:$0xff] %v10540_v63  ;;  %15648 = vst [vmem:[#allocation124_spill] sm:$0xff] %v10545_v32  ;;  %v1715_v0 = vmax.f32 %v1714_v46, %v10540_v63  ;;  %v1640_v35 = vmax.f32 %v1639_v2, %v10314_v40  ;;  %v10564_v41 = vadd.f32 %v424_v62, %v9648_v52 }
  0xf1   :  { %15649 = vst [vmem:[#allocation125_spill] sm:$0xff] %v10548_v47  ;;  %15650 = vst [vmem:[#allocation126_spill] sm:$0xff] %v10551_v25  ;;  %v787_v33 = vmul.f32 %v15651_v31, %v9598_v57  ;;  %v10559_v1 = vadd.f32 %v786_v59, %v9648_v52  ;;  %v10567_v55 = vadd.f32 %v425_v11, %v9648_v52 }
  0xf2   :  { %15653 = vst [vmem:[#allocation128_spill] sm:$0xff] %v10564_v41  ;;  %v15655_v60 = vrot.slane %v9176_v16, %v15592_v51  ;;  %v1663_v31 = vmax.f32 %v1662_v5, %v10507_v29  ;;  %v15656_v59 = vrot.slane %v9181_v17, %v15592_v51  ;;  %1641 = vmax.xlane.f32.xlu1 %v1640_v35 }
  0xf3   :  { %15652 = vst [vmem:[#allocation127_spill] sm:$0xff] %v10559_v1  ;;  %15654 = vst [vmem:[#allocation129_spill] sm:$0xff] %v10567_v55  ;;  %v10579_v2 = vadd.f32 %v787_v33, %v9648_v52  ;;  %v1716_v62 = vmax.f32 %v1715_v0, %v10559_v1  ;;  %v15658_v11 = vrot.slane %v9186_v18, %v15592_v51 }
  0xf4   :  { %v788_v37 = vmul.f32 %v15655_v60, %v9598_v57  ;;  %v789_v46 = vmul.f32 %v15656_v59, %v9598_v57  ;;  %v15659_v5 = vrot.slane %v9191_v19, %v15592_v51  ;;  %v15660_v59 = vrot.slane %v9196_v20, %v15592_v51 }
  0xf5   :  { %15657 = vst [vmem:[#allocation130_spill] sm:$0xff] %v10579_v2  ;;  %v790_v40 = vmul.f32 %v15658_v11, %v9598_v57  ;;  %v15661_v33 = vrot.slane %v9201_v21, %v15592_v51  ;;  %v1664_v35 = vmax.f32 %v1663_v31, %v10510_v4  ;;  %v15662_v11 = vrot.slane %v9206_v22, %v15592_v51  ;;  %v15666_v4 = vld [vmem:[#allocation25_spill] sm:$0xff] }
  0xf6   :  { %v791_v60 = vmul.f32 %v15659_v5, %v9598_v57  ;;  %v792_v45 = vmul.f32 %v15660_v59, %v9598_v57  ;;  %v10604_v3 = vadd.f32 %v788_v37, %v9648_v52  ;;  %v1717_v5 = vmax.f32 %v1716_v62, %v10579_v2 }
  0xf7   :  { %v793_v0 = vmul.f32 %v15661_v33, %v9598_v57  ;;  %v794_v29 = vmul.f32 %v15662_v11, %v9598_v57  ;;  %v15664_v59 = vrot.slane %v9211_v23, %v15592_v51  ;;  %v15665_v33 = vrot.slane %v15586_v26, %v15592_v51 }
  0xf8   :  { %15663 = vst [vmem:[#allocation131_spill] sm:$0xff] %v10604_v3  ;;  %v15667_v27 = vrot.slane %v15591_v6, %v15666_v4  ;;  %v15668_v37 = vrot.slane %v15594_v49, %v15666_v4  ;;  %v1665_v9 = vmax.f32 %v1664_v35, %v10513_v36  ;;  %v10629_v2 = vadd.f32 %v789_v46, %v9648_v52 }
  0xf9   :  { %v795_v58 = vmul.f32 %v15664_v59, %v9598_v57  ;;  %v796_v31 = vmul.f32 %v15665_v33, %v9598_v57  ;;  %v15669_v59 = vrot.slane %v15588_v28, %v15592_v51  ;;  %v1718_v33 = vmax.f32 %v1717_v5, %v10604_v3 }
  0xfa   :  { %v970_v11 = vmul.f32 %v15667_v27, %v9598_v57  ;;  %v971_v62 = vmul.f32 %v15668_v37, %v9598_v57  ;;  %15670 = vst [vmem:[#allocation25_spill] sm:$0xff] %v10629_v2  ;;  %v15671_v27 = vrot.slane %v15597_v39, %v15592_v51  ;;  %v15672_v37 = vrot.slane %v15599_v8, %v15592_v51 }
  0xfb   :  { %v797_v1 = vmul.f32 %v15669_v59, %v9598_v57  ;;  %v1666_v46 = vmax.f32 %v1665_v9, %v10526_v24  ;;  %v15675_v5 = vrot.slane %v15604_v42, %v15592_v51  ;;  %v1719_v44 = vmax.f32 %v1718_v33, %v10629_v2  ;;  %v15681_v24 = vld [vmem:[#allocation18_spill] sm:$0xff] }
  0xfc   :  { %v798_v30 = vmul.f32 %v15671_v27, %v9598_v57  ;;  %v799_v35 = vmul.f32 %v15672_v37, %v9598_v57  ;;  %v10641_v36 = vadd.f32 %v970_v11, %v9648_v52  ;;  %v10644_v59 = vadd.f32 %v971_v62, %v9648_v52  ;;  %v15677_v37 = vld [vmem:[#allocation16_spill] sm:$0xff]  ;;  %v15679_v62 = vld [vmem:[#allocation17_spill] sm:$0xff] }
  0xfd   :  { %v800_v3 = vmul.f32 %v15675_v5, %v9598_v57  ;;  %v10652_v27 = vadd.f32 %v790_v40, %v9648_v52  ;;  %v15678_v11 = vrot.slane %v15677_v37, %v15592_v51  ;;  %v15680_v61 = vrot.slane %v15679_v62, %v15592_v51 }
  0xfe   :  { %15673 = vst [vmem:[#allocation132_spill] sm:$0xff] %v10641_v36  ;;  %15674 = vst [vmem:[#allocation133_spill] sm:$0xff] %v10644_v59  ;;  %v15682_v53 = vrot.slane %v15681_v24, %v15592_v51  ;;  %v15683_v40 = vrot.slane %v15531_v43, %v15666_v4  ;;  %v1667_v2 = vmax.f32 %v1666_v46, %v10529_v34  ;;  %v15687_v24 = vld [vmem:[#allocation20_spill] sm:$0xff] }
  0xff   :  { %15676 = vst [vmem:[#allocation134_spill] sm:$0xff] %v10652_v27  ;;  %v801_v63 = vmul.f32 %v15678_v11, %v9598_v57  ;;  %v802_v9 = vmul.f32 %v15680_v61, %v9598_v57  ;;  %v15685_v11 = vrot.slane %v15684_v7, %v15592_v51  ;;  %v10677_v62 = vadd.f32 %v791_v60, %v9648_v52  ;;  %v15695_v7 = vld [vmem:[#allocation10_spill] sm:$0xff] }
 0x100   :  { %v803_v5 = vmul.f32 %v15682_v53, %v9598_v57  ;;  %v972_v33 = vmul.f32 %v15683_v40, %v9598_v57  ;;  %v1720_v61 = vmax.f32 %v1719_v44, %v10652_v27  ;;  %v15688_v53 = vrot.slane %v15687_v24, %v15592_v51 }
 0x101   :  { %v804_v37 = vmul.f32 %v15685_v11, %v9598_v57  ;;  %15686 = vst [vmem:[#allocation135_spill] sm:$0xff] %v10677_v62  ;;  %v15689_v40 = vrot.slane %v15618_v38, %v15666_v4  ;;  %v1742_v11 = vmax.f32 %v10641_v36, %v10644_v59  ;;  %v1668_v60 = vmax.f32 %v1667_v2, %v10532_v48 }
 0x102   :  { %v805_v42 = vmul.f32 %v15688_v53, %v9598_v57  ;;  %v10689_v34 = vadd.f32 %v972_v33, %v9648_v52  ;;  %v15691_v44 = vrot.slane %v15621_v54, %v15592_v51  ;;  %v10699_v53 = vadd.f32 %v792_v45, %v9648_v52 }
 0x103   :  { %v973_v46 = vmul.f32 %v15689_v40, %v9598_v57  ;;  %v1721_v24 = vmax.f32 %v1720_v61, %v10677_v62  ;;  %v15693_v40 = vld [vmem:[#allocation22_spill] sm:$0xff]  ;;  %v15696_v36 = vrot.slane %v15695_v7, %v15666_v4  ;;  %v1669_v45 = vmax.f32 %v1668_v60, %v10545_v32 }
 0x104   :  { %15690 = vst [vmem:[#allocation136_spill] sm:$0xff] %v10689_v34  ;;  %v806_v27 = vmul.f32 %v15691_v44, %v9598_v57  ;;  %15692 = vst [vmem:[#allocation137_spill] sm:$0xff] %v10699_v53  ;;  %v15694_v33 = vrot.slane %v15693_v40, %v15592_v51  ;;  %v1743_v44 = vmax.f32 %v1742_v11, %v10689_v34 }
 0x105   :  { %v974_v2 = vmul.f32 %v15696_v36, %v9598_v57  ;;  %v10711_v48 = vadd.f32 %v973_v46, %v9648_v52  ;;  %v15698_v61 = vrot.slane %v15627_v50, %v15592_v51  ;;  %v10720_v59 = vadd.f32 %v793_v0, %v9648_v52 }
 0x106   :  { %v807_v38 = vmul.f32 %v15694_v33, %v9598_v57  ;;  %v1722_v33 = vmax.f32 %v1721_v24, %v10699_v53  ;;  %v15700_v36 = vrot.slane %v9320_v56, %v15592_v51  ;;  %v15701_v11 = vrot.slane %v9148_v10, %v15666_v4 }
 0x107   :  { %15697 = vst [vmem:[#allocation22_spill] sm:$0xff] %v10711_v48  ;;  %v808_v62 = vmul.f32 %v15698_v61, %v9598_v57  ;;  %15699 = vst [vmem:[#allocation138_spill] sm:$0xff] %v10720_v59  ;;  %v10732_v32 = vadd.f32 %v974_v2, %v9648_v52  ;;  %v1744_v61 = vmax.f32 %v1743_v44, %v10711_v48 }
 0x108   :  { %v809_v46 = vmul.f32 %v15700_v36, %v9598_v57  ;;  %v975_v60 = vmul.f32 %v15701_v11, %v9598_v57  ;;  %v1670_v0 = vmax.f32 %v1669_v45, %v10548_v47  ;;  %v10737_v34 = vadd.f32 %v794_v29, %v9648_v52 }
 0x109   :  { %15702 = vst [vmem:[#allocation139_spill] sm:$0xff] %v10732_v32  ;;  %v10740_v24 = vadd.f32 %v795_v58, %v9648_v52  ;;  %v1723_v51 = vmax.f32 %v1722_v33, %v10720_v59  ;;  %v10744_v36 = vadd.f32 %v796_v31, %v9648_v52  ;;  %v15706_v2 = vrot.slane %v9156_v12, %v15666_v4 }
 0x10a   :  { %15703 = vst [vmem:[#allocation140_spill] sm:$0xff] %v10737_v34  ;;  %v10751_v44 = vadd.f32 %v975_v60, %v9648_v52  ;;  %v1745_v45 = vmax.f32 %v1744_v61, %v10732_v32  ;;  %v1671_v29 = vmax.f32 %v1670_v0, %v10551_v25  ;;  %v10756_v58 = vadd.f32 %v797_v1, %v9648_v52 }
 0x10b   :  { %15704 = vst [vmem:[#allocation141_spill] sm:$0xff] %v10740_v24  ;;  %15705 = vst [vmem:[#allocation142_spill] sm:$0xff] %v10744_v36  ;;  %v976_v11 = vmul.f32 %v15706_v2, %v9598_v57  ;;  %v10759_v33 = vadd.f32 %v798_v30, %v9648_v52  ;;  %v1724_v31 = vmax.f32 %v1723_v51, %v10737_v34 }
 0x10c   :  { %15707 = vst [vmem:[#allocation143_spill] sm:$0xff] %v10751_v44  ;;  %15708 = vst [vmem:[#allocation144_spill] sm:$0xff] %v10756_v58  ;;  %v10763_v47 = vadd.f32 %v799_v35, %v9648_v52  ;;  %v15711_v60 = vrot.slane %v9161_v13, %v15666_v4  ;;  %v1746_v0 = vmax.f32 %v1745_v45, %v10751_v44 }
 0x10d   :  { %15709 = vst [vmem:[#allocation145_spill] sm:$0xff] %v10759_v33  ;;  %v10770_v61 = vadd.f32 %v976_v11, %v9648_v52  ;;  %v1672_v1 = vmax.f32 %v1671_v29, %v10564_v41  ;;  %v10775_v30 = vadd.f32 %v800_v3, %v9648_v52  ;;  %v10778_v51 = vadd.f32 %v801_v63, %v9648_v52 }
 0x10e   :  { %15710 = vst [vmem:[#allocation146_spill] sm:$0xff] %v10763_v47  ;;  %v977_v2 = vmul.f32 %v15711_v60, %v9598_v57  ;;  %v1725_v35 = vmax.f32 %v1724_v31, %v10740_v24  ;;  %v10782_v25 = vadd.f32 %v802_v9, %v9648_v52  ;;  %v15716_v11 = vrot.slane %v9166_v14, %v15666_v4 }
 0x10f   :  { %15712 = vst [vmem:[#allocation147_spill] sm:$0xff] %v10770_v61  ;;  %15713 = vst [vmem:[#allocation148_spill] sm:$0xff] %v10775_v30  ;;  %v1747_v29 = vmax.f32 %v1746_v0, %v10770_v61  ;;  %v1673_v3 = vmax.f32 %v1672_v1, %v10567_v55  ;;  %v10794_v63 = vadd.f32 %v803_v5, %v9648_v52 }
 0x110   :  { %15714 = vst [vmem:[#allocation149_spill] sm:$0xff] %v10778_v51  ;;  %15715 = vst [vmem:[#allocation150_spill] sm:$0xff] %v10782_v25  ;;  %v978_v60 = vmul.f32 %v15716_v11, %v9598_v57  ;;  %v10789_v45 = vadd.f32 %v977_v2, %v9648_v52  ;;  %v10797_v31 = vadd.f32 %v804_v37, %v9648_v52 }
 0x111   :  { %15718 = vst [vmem:[#allocation152_spill] sm:$0xff] %v10794_v63  ;;  %v1726_v9 = vmax.f32 %v1725_v35, %v10744_v36  ;;  %v10801_v41 = vadd.f32 %v805_v42, %v9648_v52  ;;  %v15721_v2 = vrot.slane %v9171_v15, %v15666_v4  ;;  %1674 = vmax.xlane.f32.xlu1 %v1673_v3 }
 0x112   :  { %15717 = vst [vmem:[#allocation151_spill] sm:$0xff] %v10789_v45  ;;  %15719 = vst [vmem:[#allocation153_spill] sm:$0xff] %v10797_v31  ;;  %v10808_v0 = vadd.f32 %v978_v60, %v9648_v52  ;;  %v1748_v1 = vmax.f32 %v1747_v29, %v10789_v45  ;;  %v10812_v5 = vadd.f32 %v806_v27, %v9648_v52 }
 0x113   :  { %15720 = vst [vmem:[#allocation154_spill] sm:$0xff] %v10801_v41  ;;  %v979_v11 = vmul.f32 %v15721_v2, %v9598_v57  ;;  %v10815_v37 = vadd.f32 %v807_v38, %v9648_v52  ;;  %v10818_v42 = vadd.f32 %v808_v62, %v9648_v52  ;;  %v1727_v35 = vmax.f32 %v1726_v9, %v10756_v58 }
 0x114   :  { %15722 = vst [vmem:[#allocation155_spill] sm:$0xff] %v10808_v0  ;;  %15723 = vst [vmem:[#allocation156_spill] sm:$0xff] %v10812_v5  ;;  %v10822_v55 = vadd.f32 %v809_v46, %v9648_v52  ;;  %v15727_v60 = vrot.slane %v9176_v16, %v15666_v4  ;;  %v1749_v27 = vmax.f32 %v1748_v1, %v10808_v0 }
 0x115   :  { %15724 = vst [vmem:[#allocation157_spill] sm:$0xff] %v10815_v37  ;;  %15725 = vst [vmem:[#allocation158_spill] sm:$0xff] %v10818_v42  ;;  %v10829_v3 = vadd.f32 %v979_v11, %v9648_v52  ;;  %v1728_v38 = vmax.f32 %v1727_v35, %v10759_v33  ;;  %v15729_v62 = vrot.slane %v9181_v17, %v15666_v4 }
 0x116   :  { %15726 = vst [vmem:[#allocation159_spill] sm:$0xff] %v10822_v55  ;;  %v980_v29 = vmul.f32 %v15727_v60, %v9598_v57  ;;  %v15730_v46 = vrot.slane %v9186_v18, %v15666_v4  ;;  %v15731_v60 = vrot.slane %v9191_v19, %v15666_v4  ;;  %v15732_v1 = vrot.slane %v9196_v20, %v15666_v4 }
 0x117   :  { %15728 = vst [vmem:[#allocation160_spill] sm:$0xff] %v10829_v3  ;;  %v981_v9 = vmul.f32 %v15729_v62, %v9598_v57  ;;  %v15733_v33 = vrot.slane %v9201_v21, %v15666_v4  ;;  %v1729_v34 = vmax.f32 %v1728_v38, %v10763_v47  ;;  %v15739_v38 = vld [vmem:[#allocation26_spill] sm:$0xff] }
 0x118   :  { %v982_v2 = vmul.f32 %v15730_v46, %v9598_v57  ;;  %v983_v11 = vmul.f32 %v15731_v60, %v9598_v57  ;;  %v984_v35 = vmul.f32 %v15732_v1, %v9598_v57  ;;  %v10854_v36 = vadd.f32 %v980_v29, %v9648_v52 }
 0x119   :  { %v985_v62 = vmul.f32 %v15733_v33, %v9598_v57  ;;  %v1750_v46 = vmax.f32 %v1749_v27, %v10829_v3  ;;  %v15735_v60 = vrot.slane %v9206_v22, %v15666_v4  ;;  %v15736_v1 = vrot.slane %v9211_v23, %v15666_v4 }
 0x11a   :  { %15734 = vst [vmem:[#allocation161_spill] sm:$0xff] %v10854_v36  ;;  %v15737_v33 = vrot.slane %v15586_v26, %v15666_v4  ;;  %v10871_v53 = vadd.f32 %v981_v9, %v9648_v52  ;;  %v15740_v47 = vrot.slane %v15591_v6, %v15739_v38  ;;  %v15741_v59 = vrot.slane %v15594_v49, %v15739_v38 }
 0x11b   :  { %v986_v58 = vmul.f32 %v15735_v60, %v9598_v57  ;;  %v987_v24 = vmul.f32 %v15736_v1, %v9598_v57  ;;  %v1751_v27 = vmax.f32 %v1750_v46, %v10854_v36  ;;  %v1730_v0 = vmax.f32 %v1729_v34, %v10775_v30 }
 0x11c   :  { %v988_v29 = vmul.f32 %v15737_v33, %v9598_v57  ;;  %15738 = vst [vmem:[#allocation162_spill] sm:$0xff] %v10871_v53  ;;  %v1162_v60 = vmul.f32 %v15740_v47, %v9598_v57  ;;  %v1163_v1 = vmul.f32 %v15741_v59, %v9598_v57  ;;  %v15742_v33 = vrot.slane %v15588_v28, %v15666_v4 }
 0x11d   :  { %v15743_v46 = vrot.slane %v15597_v39, %v15666_v4  ;;  %v15744_v47 = vrot.slane %v15599_v8, %v15666_v4  ;;  %v10896_v61 = vadd.f32 %v982_v2, %v9648_v52  ;;  %v1752_v34 = vmax.f32 %v1751_v27, %v10871_v53  ;;  %v15752_v27 = vld [vmem:[#allocation17_spill] sm:$0xff] }
 0x11e   :  { %v989_v9 = vmul.f32 %v15742_v33, %v9598_v57  ;;  %v10900_v59 = vadd.f32 %v1162_v60, %v9648_v52  ;;  %v10903_v33 = vadd.f32 %v1163_v1, %v9648_v52  ;;  %v1731_v30 = vmax.f32 %v1730_v0, %v10778_v51  ;;  %v15754_v1 = vld [vmem:[#allocation18_spill] sm:$0xff] }
 0x11f   :  { %v990_v36 = vmul.f32 %v15743_v46, %v9598_v57  ;;  %v991_v3 = vmul.f32 %v15744_v47, %v9598_v57  ;;  %15745 = vst [vmem:[#allocation26_spill] sm:$0xff] %v10896_v61  ;;  %v15748_v46 = vld [vmem:[#allocation15_spill] sm:$0xff]  ;;  %v15750_v47 = vld [vmem:[#allocation16_spill] sm:$0xff]  ;;  %v15753_v60 = vrot.slane %v15752_v27, %v15666_v4  ;;  %v15755_v48 = vrot.slane %v15754_v1, %v15666_v4 }
 0x120   :  { %15746 = vst [vmem:[#allocation163_spill] sm:$0xff] %v10900_v59  ;;  %15747 = vst [vmem:[#allocation164_spill] sm:$0xff] %v10903_v33  ;;  %v15749_v32 = vrot.slane %v15748_v46, %v15666_v4  ;;  %v15751_v2 = vrot.slane %v15750_v47, %v15666_v4  ;;  %v10923_v51 = vadd.f32 %v983_v11, %v9648_v52  ;;  %v15758_v27 = vld [vmem:[#allocation19_spill] sm:$0xff]  ;;  %v15760_v1 = vld [vmem:[#allocation20_spill] sm:$0xff] }
 0x121   :  { %v994_v53 = vmul.f32 %v15753_v60, %v9598_v57  ;;  %v995_v0 = vmul.f32 %v15755_v48, %v9598_v57  ;;  %v15757_v49 = vrot.slane %v15531_v43, %v15739_v38  ;;  %v1732_v6 = vmax.f32 %v1731_v30, %v10782_v25 }
 0x122   :  { %v992_v45 = vmul.f32 %v15749_v32, %v9598_v57  ;;  %v993_v44 = vmul.f32 %v15751_v2, %v9598_v57  ;;  %15756 = vst [vmem:[#allocation165_spill] sm:$0xff] %v10923_v51  ;;  %v1753_v32 = vmax.f32 %v1752_v34, %v10896_v61  ;;  %v15759_v60 = vrot.slane %v15758_v27, %v15666_v4  ;;  %v15763_v61 = vld [vmem:[#allocation9_spill] sm:$0xff] }
 0x123   :  { %v1164_v2 = vmul.f32 %v15757_v49, %v9598_v57  ;;  %v15761_v48 = vrot.slane %v15760_v1, %v15666_v4  ;;  %v10940_v46 = vadd.f32 %v984_v35, %v9648_v52  ;;  %v15764_v49 = vrot.slane %v15763_v61, %v15739_v38 }
 0x124   :  { %v996_v47 = vmul.f32 %v15759_v60, %v9598_v57  ;;  %v1754_v34 = vmax.f32 %v1753_v32, %v10923_v51  ;;  %v1775_v60 = vmax.f32 %v10900_v59, %v10903_v33  ;;  %v1733_v43 = vmax.f32 %v1732_v6, %v10794_v63 }
 0x125   :  { %v997_v11 = vmul.f32 %v15761_v48, %v9598_v57  ;;  %15762 = vst [vmem:[#allocation19_spill] sm:$0xff] %v10940_v46  ;;  %v1165_v30 = vmul.f32 %v15764_v49, %v9598_v57  ;;  %v10948_v25 = vadd.f32 %v1164_v2, %v9648_v52  ;;  %v15766_v35 = vrot.slane %v15621_v54, %v15666_v4 }
 0x126   :  { %v15767_v32 = vrot.slane %v15693_v40, %v15666_v4  ;;  %v10962_v49 = vadd.f32 %v985_v62, %v9648_v52  ;;  %v1755_v2 = vmax.f32 %v1754_v34, %v10940_v46  ;;  %v15769_v59 = vrot.slane %v15695_v7, %v15739_v38 }
 0x127   :  { %15765 = vst [vmem:[#allocation20_spill] sm:$0xff] %v10948_v25  ;;  %v998_v48 = vmul.f32 %v15766_v35, %v9598_v57  ;;  %v10970_v63 = vadd.f32 %v1165_v30, %v9648_v52  ;;  %v1776_v35 = vmax.f32 %v1775_v60, %v10948_v25  ;;  %v1734_v33 = vmax.f32 %v1733_v43, %v10797_v31 }
 0x128   :  { %v999_v51 = vmul.f32 %v15767_v32, %v9598_v57  ;;  %15768 = vst [vmem:[#allocation9_spill] sm:$0xff] %v10962_v49  ;;  %v1166_v6 = vmul.f32 %v15769_v59, %v9598_v57  ;;  %v15771_v32 = vrot.slane %v15627_v50, %v15666_v4  ;;  %v15772_v34 = vrot.slane %v9320_v56, %v15666_v4 }
 0x129   :  { %15770 = vst [vmem:[#allocation166_spill] sm:$0xff] %v10970_v63  ;;  %v10983_v7 = vadd.f32 %v986_v58, %v9648_v52  ;;  %v1756_v59 = vmax.f32 %v1755_v2, %v10962_v49  ;;  %v15774_v30 = vrot.slane %v9148_v10, %v15739_v38  ;;  %v1735_v31 = vmax.f32 %v1734_v33, %v10801_v41 }
 0x12a   :  { %v1000_v62 = vmul.f32 %v15771_v32, %v9598_v57  ;;  %v1001_v46 = vmul.f32 %v15772_v34, %v9598_v57  ;;  %v10991_v60 = vadd.f32 %v1166_v6, %v9648_v52  ;;  %v1777_v32 = vmax.f32 %v1776_v35, %v10970_v63 }
 0x12b   :  { %15773 = vst [vmem:[#allocation167_spill] sm:$0xff] %v10983_v7  ;;  %v1167_v43 = vmul.f32 %v15774_v30, %v9598_v57  ;;  %v10996_v4 = vadd.f32 %v987_v24, %v9648_v52  ;;  %v10999_v58 = vadd.f32 %v988_v29, %v9648_v52  ;;  %v11002_v2 = vadd.f32 %v989_v9, %v9648_v52 }
 0x12c   :  { %15775 = vst [vmem:[#allocation168_spill] sm:$0xff] %v10991_v60  ;;  %v1757_v34 = vmax.f32 %v1756_v59, %v10983_v7  ;;  %v15779_v6 = vrot.slane %v9156_v12, %v15739_v38  ;;  %v1778_v33 = vmax.f32 %v1777_v32, %v10991_v60  ;;  %v1736_v24 = vmax.f32 %v1735_v31, %v10812_v5 }
 0x12d   :  { %15776 = vst [vmem:[#allocation169_spill] sm:$0xff] %v10996_v4  ;;  %15777 = vst [vmem:[#allocation170_spill] sm:$0xff] %v10999_v58  ;;  %v11010_v35 = vadd.f32 %v1167_v43, %v9648_v52  ;;  %v11015_v29 = vadd.f32 %v990_v36, %v9648_v52  ;;  %v11018_v9 = vadd.f32 %v991_v3, %v9648_v52 }
 0x12e   :  { %15778 = vst [vmem:[#allocation171_spill] sm:$0xff] %v11002_v2  ;;  %v1168_v30 = vmul.f32 %v15779_v6, %v9598_v57  ;;  %v11021_v59 = vadd.f32 %v992_v45, %v9648_v52  ;;  %v1758_v41 = vmax.f32 %v1757_v34, %v10996_v4  ;;  %v15784_v43 = vrot.slane %v9161_v13, %v15739_v38 }
 0x12f   :  { %15780 = vst [vmem:[#allocation172_spill] sm:$0xff] %v11010_v35  ;;  %15781 = vst [vmem:[#allocation173_spill] sm:$0xff] %v11015_v29  ;;  %v1779_v31 = vmax.f32 %v1778_v33, %v11010_v35  ;;  %v1737_v36 = vmax.f32 %v1736_v24, %v10815_v37  ;;  %v11034_v3 = vadd.f32 %v993_v44, %v9648_v52 }
 0x130   :  { %15782 = vst [vmem:[#allocation174_spill] sm:$0xff] %v11018_v9  ;;  %15783 = vst [vmem:[#allocation175_spill] sm:$0xff] %v11021_v59  ;;  %v1169_v6 = vmul.f32 %v15784_v43, %v9598_v57  ;;  %v11029_v32 = vadd.f32 %v1168_v30, %v9648_v52  ;;  %v11037_v45 = vadd.f32 %v994_v53, %v9648_v52 }
 0x131   :  { %15786 = vst [vmem:[#allocation177_spill] sm:$0xff] %v11034_v3  ;;  %v11040_v34 = vadd.f32 %v995_v0, %v9648_v52  ;;  %v1759_v5 = vmax.f32 %v1758_v41, %v10999_v58  ;;  %v15789_v30 = vrot.slane %v9166_v14, %v15739_v38  ;;  %v1738_v44 = vmax.f32 %v1737_v36, %v10818_v42 }
 0x132   :  { %15785 = vst [vmem:[#allocation176_spill] sm:$0xff] %v11029_v32  ;;  %15787 = vst [vmem:[#allocation178_spill] sm:$0xff] %v11037_v45  ;;  %v11048_v33 = vadd.f32 %v1169_v6, %v9648_v52  ;;  %v1780_v24 = vmax.f32 %v1779_v31, %v11029_v32  ;;  %v11053_v53 = vadd.f32 %v996_v47, %v9648_v52 }
 0x133   :  { %15788 = vst [vmem:[#allocation179_spill] sm:$0xff] %v11040_v34  ;;  %v1170_v43 = vmul.f32 %v15789_v30, %v9598_v57  ;;  %v11056_v0 = vadd.f32 %v997_v11, %v9648_v52  ;;  %v11059_v41 = vadd.f32 %v998_v48, %v9648_v52  ;;  %v1760_v37 = vmax.f32 %v1759_v5, %v11002_v2 }
 0x134   :  { %15790 = vst [vmem:[#allocation180_spill] sm:$0xff] %v11048_v33  ;;  %15791 = vst [vmem:[#allocation181_spill] sm:$0xff] %v11053_v53  ;;  %v15794_v6 = vrot.slane %v9171_v15, %v15739_v38  ;;  %v1781_v36 = vmax.f32 %v1780_v24, %v11048_v33  ;;  %v1739_v47 = vmax.f32 %v1738_v44, %v10822_v55  ;;  %v15820_v33 = vld [vmem:[#allocation18_spill] sm:$0xff] }
 0x135   :  { %15792 = vst [vmem:[#allocation182_spill] sm:$0xff] %v11056_v0  ;;  %15793 = vst [vmem:[#allocation183_spill] sm:$0xff] %v11059_v41  ;;  %v11067_v31 = vadd.f32 %v1170_v43, %v9648_v52  ;;  %v11072_v11 = vadd.f32 %v999_v51, %v9648_v52  ;;  %v11075_v48 = vadd.f32 %v1000_v62, %v9648_v52 }
 0x136   :  { %v1171_v30 = vmul.f32 %v15794_v6, %v9598_v57  ;;  %v11078_v5 = vadd.f32 %v1001_v46, %v9648_v52  ;;  %v1761_v42 = vmax.f32 %v1760_v37, %v11015_v29  ;;  %v15799_v43 = vrot.slane %v9176_v16, %v15739_v38  ;;  %1740 = vmax.xlane.f32.xlu1 %v1739_v47 }
 0x137   :  { %15795 = vst [vmem:[#allocation184_spill] sm:$0xff] %v11067_v31  ;;  %15796 = vst [vmem:[#allocation185_spill] sm:$0xff] %v11072_v11  ;;  %v1782_v44 = vmax.f32 %v1781_v36, %v11067_v31  ;;  %v15801_v51 = vrot.slane %v9181_v17, %v15739_v38  ;;  %v15802_v37 = vrot.slane %v9186_v18, %v15739_v38 }
 0x138   :  { %15797 = vst [vmem:[#allocation186_spill] sm:$0xff] %v11075_v48  ;;  %15798 = vst [vmem:[#allocation187_spill] sm:$0xff] %v11078_v5  ;;  %v1172_v6 = vmul.f32 %v15799_v43, %v9598_v57  ;;  %v11086_v24 = vadd.f32 %v1171_v30, %v9648_v52  ;;  %v15803_v43 = vrot.slane %v9191_v19, %v15739_v38 }
 0x139   :  { %v1173_v62 = vmul.f32 %v15801_v51, %v9598_v57  ;;  %v1174_v46 = vmul.f32 %v15802_v37, %v9598_v57  ;;  %v15804_v30 = vrot.slane %v9196_v20, %v15739_v38  ;;  %v1762_v47 = vmax.f32 %v1761_v42, %v11018_v9 }
 0x13a   :  { %15800 = vst [vmem:[#allocation188_spill] sm:$0xff] %v11086_v24  ;;  %v1175_v55 = vmul.f32 %v15803_v43, %v9598_v57  ;;  %v15805_v51 = vrot.slane %v9201_v21, %v15739_v38  ;;  %v11111_v58 = vadd.f32 %v1172_v6, %v9648_v52  ;;  %v1783_v37 = vmax.f32 %v1782_v44, %v11086_v24  ;;  %v15814_v24 = vld [vmem:[#allocation15_spill] sm:$0xff] }
 0x13b   :  { %v1176_v36 = vmul.f32 %v15804_v30, %v9598_v57  ;;  %v15807_v43 = vrot.slane %v9206_v22, %v15739_v38  ;;  %v15808_v30 = vrot.slane %v9211_v23, %v15739_v38  ;;  %v15809_v9 = vrot.slane %v15586_v26, %v15739_v38 }
 0x13c   :  { %v1177_v29 = vmul.f32 %v15805_v51, %v9598_v57  ;;  %15806 = vst [vmem:[#allocation189_spill] sm:$0xff] %v11111_v58  ;;  %v15810_v6 = vrot.slane %v15588_v28, %v15739_v38  ;;  %v1763_v2 = vmax.f32 %v1762_v47, %v11021_v59  ;;  %v11136_v49 = vadd.f32 %v1173_v62, %v9648_v52  ;;  %v15816_v59 = vld [vmem:[#allocation16_spill] sm:$0xff]  ;;  %v15818_v62 = vld [vmem:[#allocation17_spill] sm:$0xff] }
 0x13d   :  { %v1178_v7 = vmul.f32 %v15807_v43, %v9598_v57  ;;  %v1179_v42 = vmul.f32 %v15808_v30, %v9598_v57  ;;  %v1180_v51 = vmul.f32 %v15809_v9, %v9598_v57  ;;  %v15811_v43 = vrot.slane %v15597_v39, %v15739_v38 }
 0x13e   :  { %v1181_v44 = vmul.f32 %v15810_v6, %v9598_v57  ;;  %15812 = vst [vmem:[#allocation190_spill] sm:$0xff] %v11136_v49  ;;  %v1784_v30 = vmax.f32 %v1783_v37, %v11111_v58  ;;  %v15813_v9 = vrot.slane %v15599_v8, %v15739_v38  ;;  %v15815_v6 = vrot.slane %v15814_v24, %v15739_v38 }
 0x13f   :  { %v1182_v4 = vmul.f32 %v15811_v43, %v9598_v57  ;;  %v15817_v32 = vrot.slane %v15816_v59, %v15739_v38  ;;  %v15819_v60 = vrot.slane %v15818_v62, %v15739_v38  ;;  %v1764_v58 = vmax.f32 %v1763_v2, %v11034_v3  ;;  %v15826_v62 = vld [vmem:[#allocation27_spill] sm:$0xff] }
 0x140   :  { %v1183_v31 = vmul.f32 %v15813_v9, %v9598_v57  ;;  %v1184_v47 = vmul.f32 %v15815_v6, %v9598_v57  ;;  %v15821_v9 = vrot.slane %v15820_v33, %v15739_v38  ;;  %v11163_v6 = vadd.f32 %v1174_v46, %v9648_v52  ;;  %v15825_v33 = vld [vmem:[#allocation6_spill] sm:$0xff]  ;;  %v15828_v3 = vld [vmem:[#allocation7_spill] sm:$0xff] }
 0x141   :  { %v1185_v43 = vmul.f32 %v15817_v32, %v9598_v57  ;;  %v1186_v37 = vmul.f32 %v15819_v60, %v9598_v57  ;;  %v1785_v25 = vmax.f32 %v1784_v30, %v11136_v49  ;;  %v15823_v32 = vrot.slane %v15758_v27, %v15739_v38 }
 0x142   :  { %v11160_v35 = vmul.f32 %v15821_v9, %v9598_v57  ;;  %15822 = vst [vmem:[#allocation17_spill] sm:$0xff] %v11163_v6  ;;  %v15824_v60 = vrot.slane %v15760_v1, %v15739_v38  ;;  %v15827_v9 = vrot.slane %v15825_v33, %v15826_v62  ;;  %v15829_v30 = vrot.slane %v15828_v3, %v15826_v62 }
 0x143   :  { %v11170_v63 = vmul.f32 %v15823_v32, %v9598_v57  ;;  %v1765_v27 = vmax.f32 %v1764_v58, %v11037_v45  ;;  %v15830_v32 = vrot.slane %v15621_v54, %v15739_v38  ;;  %v11194_v1 = vadd.f32 %v1175_v55, %v9648_v52 }
 0x144   :  { %v11176_v2 = vmul.f32 %v15824_v60, %v9598_v57  ;;  %v1354_v46 = vmul.f32 %v15827_v9, %v9598_v57  ;;  %v1355_v49 = vmul.f32 %v15829_v30, %v9598_v57  ;;  %v1786_v60 = vmax.f32 %v1785_v25, %v11163_v6  ;;  %v2658_v25 = vld [vmem:[%s15109_s3 + $0x80] sm:$0xff] }
 0x145   :  { %v11191_v59 = vmul.f32 %v15830_v32, %v9598_v57  ;;  %15831 = vst [vmem:[#allocation18_spill] sm:$0xff] %v11194_v1  ;;  %v15832_v33 = vrot.slane %v15693_v40, %v15739_v38  ;;  %v15833_v58 = vrot.slane %v15627_v50, %v15739_v38  ;;  %v2659_v40 = vld [vmem:[%s15109_s3 + $0x88] sm:$0xff]  ;;  %v1766_v30 = vmax.f32 %v1765_v27, %v11040_v34  ;;  %v2642_v27 = vld [vmem:[%s15109_s3] sm:$0xff] }
 0x146   :  { %v11210_v54 = vadd.f32 %v1354_v46, %v9648_v52  ;;  %v11213_v55 = vadd.f32 %v1355_v49, %v9648_v52  ;;  %v15834_v50 = vrot.slane %v9320_v56, %v15739_v38  ;;  %v11227_v46 = vadd.f32 %v1176_v36, %v9648_v52  ;;  %v2643_v34 = vld [vmem:[%s15109_s3 + $0x8] sm:$0xff] }
 0x147   :  { %v11201_v9 = vmul.f32 %v15832_v33, %v9598_v57  ;;  %v11207_v3 = vmul.f32 %v15833_v58, %v9598_v57  ;;  %v1787_v49 = vmax.f32 %v1786_v60, %v11194_v1  ;;  %v2690_v33 = vld [vmem:[%s15109_s3 + $0x180] sm:$0xff]  ;;  %v2691_v58 = vld [vmem:[%s15109_s3 + $0x188] sm:$0xff]  ;;  %v11240_v56 = vadd.f32 %v1177_v29, %v9648_v52 }
 0x148   :  { %v1193_v32 = vmul.f32 %v15834_v50, %v9598_v57  ;;  %15835 = vst [vmem:[#allocation6_spill] sm:$0xff] %v11227_v46  ;;  %v11243_v38 = vadd.f32 %v1178_v7, %v9648_v52  ;;  %v11246_v36 = vadd.f32 %v1179_v42, %v9648_v52  ;;  %v15839_v60 = vld [vmem:[#allocation8_spill] sm:$0xff]  ;;  %v2674_v29 = vld [vmem:[%s15109_s3 + $0x100] sm:$0xff]  ;;  %v1767_v42 = vmax.f32 %v1766_v30, %v11053_v53 }
 0x149   :  { %15836 = vst [vmem:[#allocation27_spill] sm:$0xff] %v11240_v56  ;;  %v15840_v50 = vrot.slane %v15839_v60, %v15826_v62  ;;  %v2675_v7 = vld [vmem:[%s15109_s3 + $0x108] sm:$0xff]  ;;  %v11263_v6 = vadd.f32 %v1180_v51, %v9648_v52  ;;  %v1788_v60 = vmax.f32 %v1787_v49, %v11227_v46  ;;  %v1808_v8 = vmax.f32 %v11210_v54, %v11213_v55 }
 0x14a   :  { %15837 = vst [vmem:[#allocation7_spill] sm:$0xff] %v11243_v38  ;;  %15838 = vst [vmem:[#allocation191_spill] sm:$0xff] %v11246_v36  ;;  %v7837_v39 = vpack.c.bf16 %v2659_v40, %v2658_v25  ;;  %v7869_v28 = vpack.c.bf16 %v2691_v58, %v2690_v33  ;;  %v1768_v30 = vmax.f32 %v1767_v42, %v11056_v0 }
 0x14b   :  { %v1356_v45 = vmul.f32 %v15840_v50, %v9598_v57  ;;  %15841 = vst [vmem:[#allocation8_spill] sm:$0xff] %v11263_v6  ;;  %v15842_v50 = vrot.slane %v15763_v61, %v15826_v62  ;;  %v1789_v51 = vmax.f32 %v1788_v60, %v11240_v56  ;;  %v7839_v53 = vpack.c.bf16 %v2643_v34, %v2642_v27  ;;  %v15844_v61 = vld [vmem:[#allocation10_spill] sm:$0xff]  ;;  %v2695_v56 = vld [vmem:[%s15109_s3 + $0x1a8] sm:$0xff] }
 0x14c   :  { %v7871_v26 = vpack.c.bf16 %v2675_v7, %v2674_v29  ;;  %v11278_v49 = vadd.f32 %v1181_v44, %v9648_v52  ;;  %7838 = vmatprep.subr.bf16.mxu0 %v7837_v39  ;;  %v1769_v40 = vmax.f32 %v1768_v30, %v11059_v41  ;;  %v11290_v33 = vadd.f32 %v1182_v4, %v9648_v52 }
 0x14d   :  { %v1357_v1 = vmul.f32 %v15842_v50, %v9598_v57  ;;  %v11271_v24 = vadd.f32 %v1356_v45, %v9648_v52  ;;  %v15845_v50 = vrot.slane %v15844_v61, %v15826_v62  ;;  %v11293_v34 = vadd.f32 %v1183_v31, %v9648_v52  ;;  %7870 = vmatprep.subr.bf16.mxu1 %v7869_v28 }
 0x14e   :  { %15843 = vst [vmem:[#allocation192_spill] sm:$0xff] %v11278_v49  ;;  %15846 = vst [vmem:[#allocation10_spill] sm:$0xff] %v11290_v33  ;;  %v1790_v44 = vmax.f32 %v1789_v51, %v11243_v38  ;;  %v11297_v58 = vadd.f32 %v1184_v47, %v9648_v52  ;;  %7840 = vmatpush3.bf16.msra.mxu0 %v7839_v53  ;;  %v1770_v31 = vmax.f32 %v1769_v40, %v11072_v11 }
 0x14f   :  { %v1358_v45 = vmul.f32 %v15845_v50, %v9598_v57  ;;  %v11285_v46 = vadd.f32 %v1357_v1, %v9648_v52  ;;  %v1809_v25 = vmax.f32 %v1808_v8, %v11271_v24  ;;  %15847 = vst [vmem:[#allocation193_spill] sm:$0xff] %v11293_v34  ;;  %v15849_v1 = vrot.slane %v9148_v10, %v15826_v62 }
 0x150   :  { %15848 = vst [vmem:[#allocation194_spill] sm:$0xff] %v11297_v58  ;;  %v11309_v27 = vadd.f32 %v1185_v43, %v9648_v52  ;;  %v11312_v28 = vadd.f32 %v1186_v37, %v9648_v52  ;;  %v1791_v47 = vmax.f32 %v1790_v44, %v11246_v36  ;;  %7872 = vmatpush3.bf16.msra.mxu1 %v7871_v26 }
 0x151   :  { %v1359_v8 = vmul.f32 %v15849_v1, %v9598_v57  ;;  %v11304_v39 = vadd.f32 %v1358_v45, %v9648_v52  ;;  %v1810_v4 = vmax.f32 %v1809_v25, %v11285_v46  ;;  %v11317_v10 = vadd.f32 %v11160_v35, %v9648_v52 }
 0x152   :  { %15851 = vst [vmem:[#allocation196_spill] sm:$0xff] %v11309_v27  ;;  %15852 = vst [vmem:[#allocation197_spill] sm:$0xff] %v11312_v28  ;;  %v15854_v29 = vrot.slane %v9156_v12, %v15826_v62  ;;  %v1771_v37 = vmax.f32 %v1770_v31, %v11075_v48  ;;  %v11330_v42 = vadd.f32 %v11170_v63, %v9648_v52  ;;  %v11395_v31 = vld [vmem:[%s15106_s0 + $0xd8] sm:$0xff] }
 0x153   :  { %15850 = vst [vmem:[#allocation195_spill] sm:$0xff] %v11304_v39  ;;  %15853 = vst [vmem:[#allocation198_spill] sm:$0xff] %v11317_v10  ;;  %v11324_v7 = vadd.f32 %v1359_v8, %v9648_v52  ;;  %v1811_v43 = vmax.f32 %v1810_v4, %v11304_v39  ;;  %v11334_v26 = vadd.f32 %v11176_v2, %v9648_v52  ;;  %v11388_v8 = vld [vmem:[%s15106_s0 + $0xd0] sm:$0xff] }
 0x154   :  { %v1360_v53 = vmul.f32 %v15854_v29, %v9598_v57  ;;  %15855 = vst [vmem:[#allocation199_spill] sm:$0xff] %v11330_v42  ;;  %v1792_v35 = vmax.f32 %v1791_v47, %v11263_v6  ;;  %v11339_v12 = vadd.f32 %v11191_v59, %v9648_v52  ;;  %v15858_v60 = vrot.slane %v9161_v13, %v15826_v62 }
 0x155   :  { %15856 = vst [vmem:[#allocation200_spill] sm:$0xff] %v11334_v26  ;;  %v1812_v63 = vmax.f32 %v1811_v43, %v11324_v7  ;;  %v1772_v61 = vmax.f32 %v1771_v37, %v11078_v5  ;;  %v11352_v2 = vadd.f32 %v11201_v9, %v9648_v52  ;;  %v11356_v59 = vadd.f32 %v11207_v3, %v9648_v52  ;;  %v11374_v3 = vld [vmem:[%s15106_s0 + $0xc0] sm:$0xff] }
 0x156   :  { %15857 = vst [vmem:[#allocation201_spill] sm:$0xff] %v11339_v12  ;;  %v1361_v30 = vmul.f32 %v15858_v60, %v9598_v57  ;;  %v11346_v51 = vadd.f32 %v1360_v53, %v9648_v52  ;;  %v1793_v50 = vmax.f32 %v1792_v35, %v11278_v49  ;;  %v11360_v13 = vadd.f32 %v1193_v32, %v9648_v52  ;;  %v11411_v60 = vld [vmem:[%s15106_s0 + $0xe0] sm:$0xff] }
 0x157   :  { %15860 = vst [vmem:[#allocation203_spill] sm:$0xff] %v11352_v2  ;;  %15861 = vst [vmem:[#allocation204_spill] sm:$0xff] %v11356_v59  ;;  %v15863_v45 = vrot.slane %v9166_v14, %v15826_v62  ;;  %1773 = vmax.xlane.f32.xlu1 %v1772_v61  ;;  %v1325_v32 = vrot.slane %v11374_v3, %v15826_v62  ;;  %v11381_v14 = vld [vmem:[%s15106_s0 + $0xc8] sm:$0xff]  ;;  %v1333_v4 = vrot.slane %v11388_v8, %v15826_v62  ;;  %v11425_v61 = vld [vmem:[%s15106_s0 + $0xf0] sm:$0xff] }
 0x158   :  { %15859 = vst [vmem:[#allocation202_spill] sm:$0xff] %v11346_v51  ;;  %15862 = vst [vmem:[#allocation205_spill] sm:$0xff] %v11360_v13  ;;  %v11367_v40 = vadd.f32 %v1361_v30, %v9648_v52  ;;  %v1813_v9 = vmax.f32 %v1812_v63, %v11346_v51  ;;  %v1794_v44 = vmax.f32 %v1793_v50, %v11290_v33 }
 0x159   :  { %v1362_v25 = vmul.f32 %v15863_v45, %v9598_v57  ;;  %v1329_v1 = vrot.slane %v11381_v14, %v15826_v62  ;;  %v1337_v47 = vrot.slane %v11395_v31, %v15826_v62  ;;  %v15864_v29 = vrot.slane %v9171_v15, %v15826_v62  ;;  %v11418_v15 = vld [vmem:[%s15106_s0 + $0xe8] sm:$0xff]  ;;  %v11432_v45 = vld [vmem:[%s15106_s0 + $0xf8] sm:$0xff] }
 0x15a   :  { %v1814_v37 = vmax.f32 %v1813_v9, %v11367_v40  ;;  %v1795_v35 = vmax.f32 %v1794_v44, %v11293_v34  ;;  %v1341_v30 = vrot.slane %v11411_v60, %v15826_v62  ;;  %v1345_v63 = vrot.slane %v11418_v15, %v15826_v62 }
 0x15b   :  { %v1363_v53 = vmul.f32 %v15864_v29, %v9598_v57  ;;  %v11404_v43 = vadd.f32 %v1362_v25, %v9648_v52  ;;  %v1349_v50 = vrot.slane %v11425_v61, %v15826_v62  ;;  %v1353_v25 = vrot.slane %v11432_v45, %v15826_v62 }
 0x15c   :  { %v15866_v9 = vrot.slane %v9176_v16, %v15826_v62  ;;  %v1796_v41 = vmax.f32 %v1795_v35, %v11297_v58  ;;  %v15868_v5 = vrot.slane %v9181_v17, %v15826_v62  ;;  %v15869_v0 = vrot.slane %v9186_v18, %v15826_v62  ;;  %v15878_v58 = vld [vmem:[#allocation12_spill] sm:$0xff] }
 0x15d   :  { %15865 = vst [vmem:[#allocation206_spill] sm:$0xff] %v11404_v43  ;;  %v11441_v29 = vadd.f32 %v1363_v53, %v9648_v52  ;;  %v1815_v48 = vmax.f32 %v1814_v37, %v11404_v43  ;;  %v15870_v16 = vrot.slane %v9191_v19, %v15826_v62  ;;  %v15871_v37 = vrot.slane %v9196_v20, %v15826_v62  ;;  %v2647_v43 = vld [vmem:[%s15109_s3 + $0x28] sm:$0xff] }
 0x15e   :  { %v1364_v44 = vmul.f32 %v15866_v9, %v9598_v57  ;;  %v1365_v11 = vmul.f32 %v15868_v5, %v9598_v57  ;;  %v1366_v33 = vmul.f32 %v15869_v0, %v9598_v57  ;;  %v15872_v17 = vrot.slane %v9201_v21, %v15826_v62  ;;  %v15876_v21 = vld [vmem:[#allocation11_spill] sm:$0xff] }
 0x15f   :  { %15867 = vst [vmem:[#allocation207_spill] sm:$0xff] %v11441_v29  ;;  %v1367_v53 = vmul.f32 %v15870_v16, %v9598_v57  ;;  %v1368_v35 = vmul.f32 %v15871_v37, %v9598_v57  ;;  %v1816_v18 = vmax.f32 %v1815_v48, %v11441_v29  ;;  %v1797_v0 = vmax.f32 %v1796_v41, %v11309_v27  ;;  %v15880_v27 = vld [vmem:[#allocation13_spill] sm:$0xff] }
 0x160   :  { %v1369_v5 = vmul.f32 %v15872_v17, %v9598_v57  ;;  %v11466_v9 = vadd.f32 %v1364_v44, %v9648_v52  ;;  %v15874_v19 = vrot.slane %v9206_v22, %v15826_v62  ;;  %v15875_v20 = vrot.slane %v9211_v23, %v15826_v62 }
 0x161   :  { %v15877_v17 = vrot.slane %v15876_v21, %v15826_v62  ;;  %v15879_v48 = vrot.slane %v15878_v58, %v15826_v62  ;;  %v15881_v22 = vrot.slane %v15880_v27, %v15826_v62  ;;  %v11491_v34 = vadd.f32 %v1365_v11, %v9648_v52  ;;  %v15883_v21 = vld [vmem:[#allocation14_spill] sm:$0xff]  ;;  %v15885_v58 = vld [vmem:[#allocation15_spill] sm:$0xff]  ;;  %v15887_v27 = vld [vmem:[#allocation16_spill] sm:$0xff] }
 0x162   :  { %15873 = vst [vmem:[#allocation208_spill] sm:$0xff] %v11466_v9  ;;  %v1370_v16 = vmul.f32 %v15874_v19, %v9598_v57  ;;  %v1371_v37 = vmul.f32 %v15875_v20, %v9598_v57  ;;  %v1817_v23 = vmax.f32 %v1816_v18, %v11466_v9  ;;  %v1798_v20 = vmax.f32 %v1797_v0, %v11312_v28  ;;  %v2646_v9 = vld [vmem:[%s15109_s3 + $0x20] sm:$0xff] }
 0x163   :  { %v1372_v44 = vmul.f32 %v15877_v17, %v9598_v57  ;;  %v1373_v41 = vmul.f32 %v15879_v48, %v9598_v57  ;;  %v1374_v19 = vmul.f32 %v15881_v22, %v9598_v57  ;;  %15882 = vst [vmem:[#allocation11_spill] sm:$0xff] %v11491_v34  ;;  %v15884_v17 = vrot.slane %v15883_v21, %v15826_v62 }
 0x164   :  { %v15886_v48 = vrot.slane %v15885_v58, %v15826_v62  ;;  %v15888_v22 = vrot.slane %v15887_v27, %v15826_v62  ;;  %v1378_v49 = vmul.f32 %v1325_v32, %v9598_v57  ;;  %v1379_v18 = vmul.f32 %v1329_v1, %v9598_v57 }
 0x165   :  { %v1375_v6 = vmul.f32 %v15884_v17, %v9598_v57  ;;  %v11510_v0 = vadd.f32 %v1366_v33, %v9648_v52  ;;  %v1818_v21 = vmax.f32 %v1817_v23, %v11491_v34  ;;  %v1799_v17 = vmax.f32 %v1798_v20, %v11317_v10  ;;  %v2679_v34 = vld [vmem:[%s15109_s3 + $0x128] sm:$0xff] }
 0x166   :  { %v1376_v38 = vmul.f32 %v15886_v48, %v9598_v57  ;;  %v1377_v11 = vmul.f32 %v15888_v22, %v9598_v57  ;;  %v1380_v28 = vmul.f32 %v1333_v4, %v9598_v57  ;;  %v1381_v58 = vmul.f32 %v1337_v47, %v9598_v57  ;;  %v15890_v48 = vld [vmem:[#allocation5_spill] sm:$0xff] }
 0x167   :  { %15889 = vst [vmem:[#allocation12_spill] sm:$0xff] %v11510_v0  ;;  %v11517_v36 = vsub.s32 7, %v15890_v48  ;;  %v1382_v62 = vmul.f32 %v1341_v30, %v9598_v57  ;;  %v11521_v32 = vmul.f32 %v1345_v63, %v9598_v57  ;;  %v11524_v1 = vadd.f32 %v1367_v53, %v9648_v52 }
 0x168   :  { %v1819_v33 = vmax.f32 %v1818_v21, %v11510_v0  ;;  %v1800_v23 = vmax.f32 %v1799_v17, %v11330_v42  ;;  %v11529_v20 = vmul.f32 %v1349_v50, %v9598_v57  ;;  %v11532_v4 = vmul.f32 %v1353_v25, %v9598_v57  ;;  %v8999_v25 = vld [vmem:[%s15106_s0] sm:$0xff] }
 0x169   :  { %15891 = vst [vmem:[#allocation13_spill] sm:$0xff] %v11524_v1  ;;  %v11535_v47 = vadd.f32 %v1368_v35, %v9648_v52  ;;  %v11538_v30 = vadd.f32 %v1369_v5, %v9648_v52  ;;  %v11541_v63 = vadd.f32 %v1370_v16, %v9648_v52  ;;  %v11544_v53 = vadd.f32 %v1371_v37, %v9648_v52  ;;  %v9000_v5 = vld [vmem:[%s15106_s0 + $0x8] sm:$0xff] }
 0x16a   :  { %v1820_v27 = vmax.f32 %v1819_v33, %v11524_v1  ;;  %v1801_v50 = vmax.f32 %v1800_v23, %v11334_v26  ;;  %v11549_v22 = vadd.f32 %v1372_v44, %v9648_v52  ;;  %v1421_v35 = vrot.slane %v8999_v25, %v11517_v36  ;;  %v2693_v26 = vld [vmem:[%s15109_s3 + $0x198] sm:$0xff]  ;;  %v2663_v1 = vld [vmem:[%s15109_s3 + $0xa8] sm:$0xff] }
 0x16b   :  { %15892 = vst [vmem:[#allocation14_spill] sm:$0xff] %v11535_v47  ;;  %15893 = vst [vmem:[#allocation15_spill] sm:$0xff] %v11538_v30  ;;  %v1425_v16 = vrot.slane %v9000_v5, %v11517_v36  ;;  %v11560_v37 = vadd.f32 %v1373_v41, %v9648_v52  ;;  %v11563_v21 = vadd.f32 %v1374_v19, %v9648_v52 }
 0x16c   :  { %15894 = vst [vmem:[#allocation16_spill] sm:$0xff] %v11541_v63  ;;  %15895 = vst [vmem:[#allocation5_spill] sm:$0xff] %v11544_v53  ;;  %v11566_v44 = vadd.f32 %v1375_v6, %v9648_v52  ;;  %v1821_v17 = vmax.f32 %v1820_v27, %v11535_v47  ;;  %v1802_v48 = vmax.f32 %v1801_v50, %v11339_v12  ;;  %v9001_v6 = vld [vmem:[%s15106_s0 + $0x10] sm:$0xff] }
 0x16d   :  { %15896 = vst [vmem:[#allocation209_spill] sm:$0xff] %v11549_v22  ;;  %15897 = vst [vmem:[#allocation210_spill] sm:$0xff] %v11563_v21  ;;  %v11571_v33 = vadd.f32 %v1376_v38, %v9648_v52  ;;  %v11574_v23 = vadd.f32 %v1377_v11, %v9648_v52  ;;  %v11577_v25 = vadd.f32 %v1378_v49, %v9648_v52  ;;  %v9002_v38 = vld [vmem:[%s15106_s0 + $0x18] sm:$0xff]  ;;  %v2676_v47 = vld [vmem:[%s15109_s3 + $0x110] sm:$0xff] }
 0x16e   :  { %15898 = vst [vmem:[#allocation211_spill] sm:$0xff] %v11566_v44  ;;  %v11580_v41 = vadd.f32 %v1379_v18, %v9648_v52  ;;  %v1822_v19 = vmax.f32 %v1821_v17, %v11538_v30  ;;  %v1429_v27 = vrot.slane %v9001_v6, %v11517_v36  ;;  %v1433_v11 = vrot.slane %v9002_v38, %v11517_v36  ;;  %v9003_v18 = vld [vmem:[%s15106_s0 + $0x20] sm:$0xff]  ;;  %v9004_v38 = vld [vmem:[%s15106_s0 + $0x28] sm:$0xff] }
 0x16f   :  { %15899 = vst [vmem:[#allocation212_spill] sm:$0xff] %v11571_v33  ;;  %15900 = vst [vmem:[#allocation213_spill] sm:$0xff] %v11574_v23  ;;  %v1803_v49 = vmax.f32 %v1802_v48, %v11352_v2  ;;  %v1437_v50 = vrot.slane %v9003_v18, %v11517_v36  ;;  %v1546_v5 = vmul.f32 %v1421_v35, %v9598_v57  ;;  %v9005_v2 = vld [vmem:[%s15106_s0 + $0x30] sm:$0xff]  ;;  %v2662_v30 = vld [vmem:[%s15109_s3 + $0xa0] sm:$0xff] }
 0x170   :  { %15901 = vst [vmem:[#allocation214_spill] sm:$0xff] %v11577_v25  ;;  %15902 = vst [vmem:[#allocation215_spill] sm:$0xff] %v11580_v41  ;;  %v1547_v17 = vmul.f32 %v1425_v16, %v9598_v57  ;;  %v11599_v6 = vadd.f32 %v1380_v28, %v9648_v52  ;;  %v1823_v12 = vmax.f32 %v1822_v19, %v11541_v63  ;;  %v2660_v35 = vld [vmem:[%s15109_s3 + $0x90] sm:$0xff]  ;;  %v2661_v28 = vld [vmem:[%s15109_s3 + $0x98] sm:$0xff] }
 0x171   :  { %v1441_v48 = vrot.slane %v9004_v38, %v11517_v36  ;;  %v1445_v18 = vrot.slane %v9005_v2, %v11517_v36  ;;  %v1804_v16 = vmax.f32 %v1803_v49, %v11356_v59  ;;  %v11618_v19 = vadd.f32 %v1381_v58, %v9648_v52  ;;  %v2692_v2 = vld [vmem:[%s15109_s3 + $0x190] sm:$0xff]  ;;  %v2645_v63 = vld [vmem:[%s15109_s3 + $0x18] sm:$0xff] }
 0x172   :  { %15903 = vst [vmem:[#allocation216_spill] sm:$0xff] %v11599_v6  ;;  %v11621_v38 = vadd.f32 %v1546_v5, %v9648_v52  ;;  %v11624_v42 = vadd.f32 %v1547_v17, %v9648_v52  ;;  %v2644_v49 = vld [vmem:[%s15109_s3 + $0x10] sm:$0xff]  ;;  %v11636_v58 = vadd.f32 %v1382_v62, %v9648_v52  ;;  %v1824_v5 = vmax.f32 %v1823_v12, %v11544_v53  ;;  %v9006_v17 = vld [vmem:[%s15106_s0 + $0x38] sm:$0xff] }
 0x173   :  { %15904 = vst [vmem:[#allocation217_spill] sm:$0xff] %v11618_v19  ;;  %v1449_v59 = vrot.slane %v9006_v17, %v11517_v36  ;;  %v1548_v10 = vmul.f32 %v1429_v27, %v9598_v57  ;;  %v2677_v12 = vld [vmem:[%s15109_s3 + $0x118] sm:$0xff]  ;;  %v1805_v62 = vmax.f32 %v1804_v16, %v11360_v13  ;;  %v9007_v17 = vld [vmem:[%s15106_s0 + $0x40] sm:$0xff]  ;;  %v1549_v53 = vmul.f32 %v1433_v11, %v9598_v57 }
 0x174   :  { %15905 = vst [vmem:[#allocation218_spill] sm:$0xff] %v11636_v58  ;;  %v1453_v27 = vrot.slane %v9007_v17, %v11517_v36  ;;  %v1550_v0 = vmul.f32 %v1437_v50, %v9598_v57  ;;  %v2694_v16 = vld [vmem:[%s15109_s3 + $0x1a0] sm:$0xff]  ;;  %v1825_v13 = vmax.f32 %v1824_v5, %v11549_v22  ;;  %v1551_v17 = vmul.f32 %v1441_v48, %v9598_v57 }
 0x175   :  { %v1552_v11 = vmul.f32 %v1445_v18, %v9598_v57  ;;  %v11673_v50 = vadd.f32 %v1548_v10, %v9648_v52  ;;  %1806 = vmax.xlane.f32.xlu1 %v1805_v62  ;;  %v11685_v48 = vadd.f32 %v1549_v53, %v9648_v52  ;;  %v1841_v10 = vmax.f32 %v11621_v38, %v11624_v42  ;;  %v2678_v22 = vld [vmem:[%s15109_s3 + $0x120] sm:$0xff]  ;;  %v2664_v62 = vld [vmem:[%s15109_s3 + $0xb0] sm:$0xff] }
 0x176   :  { %v7841_v18 = vpack.c.bf16 %v2661_v28, %v2660_v35  ;;  %v7873_v5 = vpack.c.bf16 %v2693_v26, %v2692_v2  ;;  %v1826_v53 = vmax.f32 %v1825_v13, %v11560_v37  ;;  %v7843_v29 = vpack.c.bf16 %v2645_v63, %v2644_v49  ;;  %v2665_v26 = vld [vmem:[%s15109_s3 + $0xb8] sm:$0xff]  ;;  %v2696_v35 = vld [vmem:[%s15109_s3 + $0x1b0] sm:$0xff] }
 0x177   :  { %v7875_v51 = vpack.c.bf16 %v2677_v12, %v2676_v47  ;;  %v7845_v39 = vpack.c.bf16 %v2663_v1, %v2662_v30  ;;  %v2697_v28 = vld [vmem:[%s15109_s3 + $0x1b8] sm:$0xff]  ;;  %v11709_v2 = vadd.f32 %v1550_v0, %v9648_v52  ;;  %v1842_v13 = vmax.f32 %v1841_v10, %v11673_v50  ;;  %v2648_v49 = vld [vmem:[%s15109_s3 + $0x30] sm:$0xff] }
 0x178   :  { %7842 = vmatprep.subr.bf16.mxu0 %v7841_v18  ;;  %7874 = vmatprep.subr.bf16.mxu1 %v7873_v5  ;;  %v7877_v1 = vpack.c.bf16 %v2695_v56, %v2694_v16  ;;  %v1827_v47 = vmax.f32 %v1826_v53, %v11563_v21  ;;  %v7847_v30 = vpack.c.bf16 %v2647_v43, %v2646_v9  ;;  %v2649_v0 = vld [vmem:[%s15109_s3 + $0x38] sm:$0xff]  ;;  %v2666_v43 = vld [vmem:[%s15109_s3 + $0xc0] sm:$0xff]  ;;  %v2667_v5 = vld [vmem:[%s15109_s3 + $0xc8] sm:$0xff] }
 0x179   :  { %7844 = vmatpush3.bf16.msra.mxu0 %v7843_v29  ;;  %7876 = vmatpush3.bf16.msra.mxu1 %v7875_v51  ;;  %v7879_v63 = vpack.c.bf16 %v2679_v34, %v2678_v22  ;;  %v1843_v12 = vmax.f32 %v1842_v13, %v11685_v48  ;;  %v7849_v10 = vpack.c.bf16 %v2665_v26, %v2664_v62  ;;  %v2680_v51 = vld [vmem:[%s15109_s3 + $0x130] sm:$0xff]  ;;  %v2681_v34 = vld [vmem:[%s15109_s3 + $0x138] sm:$0xff]  ;;  %v2698_v62 = vld [vmem:[%s15109_s3 + $0x1c0] sm:$0xff] }
 0x17a   :  { %7846 = vmatprep.subr.bf16.mxu0 %v7845_v39  ;;  %7878 = vmatprep.subr.bf16.mxu1 %v7877_v1  ;;  %v7881_v56 = vpack.c.bf16 %v2697_v28, %v2696_v35  ;;  %v1828_v29 = vmax.f32 %v1827_v47, %v11566_v44  ;;  %v9008_v39 = vld [vmem:[%s15106_s0 + $0x48] sm:$0xff]  ;;  %v9009_v22 = vld [vmem:[%s15106_s0 + $0x50] sm:$0xff]  ;;  %v1553_v18 = vmul.f32 %v1449_v59, %v9598_v57  ;;  %v12467_v21 = vld [vmem:[%s15109_s3 + $0x518] sm:$0xff] }
 0x17b   :  { %v1457_v9 = vrot.slane %v9008_v39, %v11517_v36  ;;  %v1461_v16 = vrot.slane %v9009_v22, %v11517_v36  ;;  %v2699_v53 = vld [vmem:[%s15109_s3 + $0x1c8] sm:$0xff]  ;;  %v1554_v26 = vmul.f32 %v1453_v27, %v9598_v57  ;;  %v11750_v35 = vadd.f32 %v1551_v17, %v9648_v52  ;;  %v2650_v39 = vld [vmem:[%s15109_s3 + $0x40] sm:$0xff]  ;;  %v2700_v22 = vld [vmem:[%s15109_s3 + $0x1d0] sm:$0xff] }
 0x17c   :  { %v11753_v28 = vadd.f32 %v1552_v11, %v9648_v52  ;;  %v1844_v59 = vmax.f32 %v1843_v12, %v11709_v2  ;;  %v1829_v13 = vmax.f32 %v1828_v29, %v11571_v33  ;;  %v7851_v1 = vpack.c.bf16 %v2649_v0, %v2648_v49  ;;  %v2651_v27 = vld [vmem:[%s15109_s3 + $0x48] sm:$0xff]  ;;  %v2668_v49 = vld [vmem:[%s15109_s3 + $0xd0] sm:$0xff]  ;;  %v2669_v29 = vld [vmem:[%s15109_s3 + $0xd8] sm:$0xff] }
 0x17d   :  { %7848 = vmatpush3.bf16.msra.mxu0 %v7847_v30  ;;  %7880 = vmatpush3.bf16.msra.mxu1 %v7879_v63  ;;  %v7883_v47 = vpack.c.bf16 %v2681_v34, %v2680_v51  ;;  %v7853_v11 = vpack.c.bf16 %v2667_v5, %v2666_v43  ;;  %v7885_v12 = vpack.c.bf16 %v2699_v53, %v2698_v62  ;;  %v2682_v30 = vld [vmem:[%s15109_s3 + $0x140] sm:$0xff]  ;;  %v2683_v63 = vld [vmem:[%s15109_s3 + $0x148] sm:$0xff]  ;;  %v2701_v5 = vld [vmem:[%s15109_s3 + $0x1d8] sm:$0xff] }
 0x17e   :  { %v1845_v17 = vmax.f32 %v1844_v59, %v11750_v35  ;;  %7850 = vmatprep.subr.bf16.mxu0 %v7849_v10  ;;  %7882 = vmatprep.subr.bf16.mxu1 %v7881_v56  ;;  %v1830_v0 = vmax.f32 %v1829_v13, %v11574_v23  ;;  %v9010_v10 = vld [vmem:[%s15106_s0 + $0x58] sm:$0xff]  ;;  %v9011_v51 = vld [vmem:[%s15106_s0 + $0x60] sm:$0xff]  ;;  %v1555_v43 = vmul.f32 %v1457_v9, %v9598_v57  ;;  %v2652_v33 = vld [vmem:[%s15109_s3 + $0x50] sm:$0xff] }
 0x17f   :  { %v1465_v56 = vrot.slane %v9010_v10, %v11517_v36  ;;  %v1469_v34 = vrot.slane %v9011_v51, %v11517_v36  ;;  %v1556_v62 = vmul.f32 %v1461_v16, %v9598_v57  ;;  %v11794_v53 = vadd.f32 %v1553_v18, %v9648_v52  ;;  %v2653_v16 = vld [vmem:[%s15109_s3 + $0x58] sm:$0xff] }
 0x180   :  { %v11797_v59 = vadd.f32 %v1554_v26, %v9648_v52  ;;  %v1846_v9 = vmax.f32 %v1845_v17, %v11753_v28  ;;  %v1831_v13 = vmax.f32 %v1830_v0, %v11577_v25  ;;  %v7855_v10 = vpack.c.bf16 %v2651_v27, %v2650_v39  ;;  %v2670_v39 = vld [vmem:[%s15109_s3 + $0xe0] sm:$0xff] }
 0x181   :  { %7852 = vmatpush3.bf16.msra.mxu0 %v7851_v1  ;;  %7884 = vmatpush3.bf16.msra.mxu1 %v7883_v47  ;;  %v7887_v51 = vpack.c.bf16 %v2683_v63, %v2682_v30  ;;  %v7857_v26 = vpack.c.bf16 %v2669_v29, %v2668_v49  ;;  %v7889_v17 = vpack.c.bf16 %v2701_v5, %v2700_v22  ;;  %v2684_v1 = vld [vmem:[%s15109_s3 + $0x150] sm:$0xff]  ;;  %v2685_v47 = vld [vmem:[%s15109_s3 + $0x158] sm:$0xff]  ;;  %v2671_v49 = vld [vmem:[%s15109_s3 + $0xe8] sm:$0xff] }
 0x182   :  { %v1847_v18 = vmax.f32 %v1846_v9, %v11794_v53  ;;  %7854 = vmatprep.subr.bf16.mxu0 %v7853_v11  ;;  %7886 = vmatprep.subr.bf16.mxu1 %v7885_v12  ;;  %v11819_v27 = vadd.f32 %v11521_v32, %v9648_v52  ;;  %v1832_v11 = vmax.f32 %v1831_v13, %v11580_v41  ;;  %v9012_v12 = vld [vmem:[%s15106_s0 + $0x68] sm:$0xff]  ;;  %v2702_v0 = vld [vmem:[%s15109_s3 + $0x1e0] sm:$0xff] }
 0x183   :  { %v1473_v30 = vrot.slane %v9012_v12, %v11517_v36  ;;  %v1557_v63 = vmul.f32 %v1465_v56, %v9598_v57  ;;  %v2703_v32 = vld [vmem:[%s15109_s3 + $0x1e8] sm:$0xff]  ;;  %v1558_v29 = vmul.f32 %v1469_v34, %v9598_v57  ;;  %v11838_v22 = vadd.f32 %v1555_v43, %v9648_v52  ;;  %v2654_v25 = vld [vmem:[%s15109_s3 + $0x60] sm:$0xff] }
 0x184   :  { %15906 = vst [vmem:[#allocation219_spill] sm:$0xff] %v11819_v27  ;;  %v11841_v5 = vadd.f32 %v1556_v62, %v9648_v52  ;;  %v1848_v56 = vmax.f32 %v1847_v18, %v11797_v59  ;;  %v1833_v9 = vmax.f32 %v1832_v11, %v11599_v6  ;;  %v7859_v13 = vpack.c.bf16 %v2653_v16, %v2652_v33  ;;  %v2655_v34 = vld [vmem:[%s15109_s3 + $0x68] sm:$0xff]  ;;  %v2673_v11 = vld [vmem:[%s15109_s3 + $0xf8] sm:$0xff] }
 0x185   :  { %7856 = vmatpush3.bf16.msra.mxu0 %v7855_v10  ;;  %7888 = vmatpush3.bf16.msra.mxu1 %v7887_v51  ;;  %v7891_v12 = vpack.c.bf16 %v2685_v47, %v2684_v1  ;;  %v7861_v62 = vpack.c.bf16 %v2671_v49, %v2670_v39  ;;  %v7893_v18 = vpack.c.bf16 %v2703_v32, %v2702_v0  ;;  %v2686_v10 = vld [vmem:[%s15109_s3 + $0x160] sm:$0xff]  ;;  %v2687_v33 = vld [vmem:[%s15109_s3 + $0x168] sm:$0xff]  ;;  %v2672_v51 = vld [vmem:[%s15109_s3 + $0xf0] sm:$0xff] }
 0x186   :  { %v1849_v43 = vmax.f32 %v1848_v56, %v11838_v22  ;;  %7858 = vmatprep.subr.bf16.mxu0 %v7857_v26  ;;  %7890 = vmatprep.subr.bf16.mxu1 %v7889_v17  ;;  %v11863_v16 = vadd.f32 %v11529_v20, %v9648_v52  ;;  %v1834_v26 = vmax.f32 %v1833_v9, %v11618_v19  ;;  %v9013_v17 = vld [vmem:[%s15106_s0 + $0x70] sm:$0xff]  ;;  %v9014_v47 = vld [vmem:[%s15106_s0 + $0x78] sm:$0xff] }
 0x187   :  { %v1477_v1 = vrot.slane %v9013_v17, %v11517_v36  ;;  %v1481_v39 = vrot.slane %v9014_v47, %v11517_v36  ;;  %v2704_v20 = vld [vmem:[%s15109_s3 + $0x1f0] sm:$0xff]  ;;  %v2705_v49 = vld [vmem:[%s15109_s3 + $0x1f8] sm:$0xff]  ;;  %v1559_v0 = vmul.f32 %v1473_v30, %v9598_v57  ;;  %v11885_v32 = vadd.f32 %v1557_v63, %v9648_v52 }
 0x188   :  { %15907 = vst [vmem:[#allocation220_spill] sm:$0xff] %v11863_v16  ;;  %v11888_v56 = vadd.f32 %v1558_v29, %v9648_v52  ;;  %v1850_v9 = vmax.f32 %v1849_v43, %v11841_v5  ;;  %v1835_v17 = vmax.f32 %v1834_v26, %v11636_v58  ;;  %v7863_v47 = vpack.c.bf16 %v2655_v34, %v2654_v25  ;;  %v2656_v63 = vld [vmem:[%s15109_s3 + $0x70] sm:$0xff]  ;;  %v2657_v29 = vld [vmem:[%s15109_s3 + $0x78] sm:$0xff]  ;;  %v9015_v34 = vld [vmem:[%s15106_s0 + $0x80] sm:$0xff] }
 0x189   :  { %7860 = vmatpush3.bf16.msra.mxu0 %v7859_v13  ;;  %7892 = vmatpush3.bf16.msra.mxu1 %v7891_v12  ;;  %v7895_v6 = vpack.c.bf16 %v2687_v33, %v2686_v10  ;;  %v7865_v41 = vpack.c.bf16 %v2673_v11, %v2672_v51  ;;  %v7897_v30 = vpack.c.bf16 %v2705_v49, %v2704_v20  ;;  %v2688_v13 = vld [vmem:[%s15109_s3 + $0x170] sm:$0xff]  ;;  %v2722_v10 = vld [vmem:[%s15109_s3 + $0x280] sm:$0xff]  ;;  %v9016_v33 = vld [vmem:[%s15106_s0 + $0x88] sm:$0xff] }
 0x18a   :  { %v1851_v19 = vmax.f32 %v1850_v9, %v11885_v32  ;;  %7862 = vmatprep.subr.bf16.mxu0 %v7861_v62  ;;  %7894 = vmatprep.subr.bf16.mxu1 %v7893_v18  ;;  %v11904_v25 = vadd.f32 %v11532_v4, %v9648_v52  ;;  %v1836_v12 = vmax.f32 %v1835_v17, %v11819_v27  ;;  %v2689_v18 = vld [vmem:[%s15109_s3 + $0x178] sm:$0xff]  ;;  %v2723_v4 = vld [vmem:[%s15109_s3 + $0x288] sm:$0xff]  ;;  %v2754_v20 = vld [vmem:[%s15109_s3 + $0x380] sm:$0xff] }
 0x18b   :  { %v1485_v43 = vrot.slane %v9015_v34, %v11517_v36  ;;  %v1560_v62 = vmul.f32 %v1477_v1, %v9598_v57  ;;  %v1489_v51 = vrot.slane %v9016_v33, %v11517_v36  ;;  %v1561_v26 = vmul.f32 %v1481_v39, %v9598_v57  ;;  %v2755_v49 = vld [vmem:[%s15109_s3 + $0x388] sm:$0xff]  ;;  %v9017_v27 = vld [vmem:[%s15106_s0 + $0x90] sm:$0xff] }
 0x18c   :  { %15908 = vst [vmem:[#allocation221_spill] sm:$0xff] %v11904_v25  ;;  %v11927_v1 = vadd.f32 %v1559_v0, %v9648_v52  ;;  %v1852_v11 = vmax.f32 %v1851_v19, %v11888_v56  ;;  %v1837_v9 = vmax.f32 %v1836_v12, %v11863_v16  ;;  %v7867_v39 = vpack.c.bf16 %v2657_v29, %v2656_v63 }
 0x18d   :  { %v11938_v17 = vadd.f32 %v1560_v62, %v9648_v52  ;;  %7864 = vmatpush3.bf16.msra.mxu0 %v7863_v47  ;;  %7896 = vmatpush3.bf16.msra.mxu1 %v7895_v6  ;;  %v7899_v19 = vpack.c.bf16 %v2689_v18, %v2688_v13  ;;  %v7901_v34 = vpack.c.bf16 %v2723_v4, %v2722_v10  ;;  %v9019_v13 = vld [vmem:[%s15106_s0 + $0xa0] sm:$0xff] }
 0x18e   :  { %v1853_v0 = vmax.f32 %v1852_v11, %v11927_v1  ;;  %7866 = vmatprep.subr.bf16.mxu0 %v7865_v41  ;;  %7898 = vmatprep.subr.bf16.mxu1 %v7897_v30  ;;  %v1838_v33 = vmax.f32 %v1837_v9, %v11904_v25  ;;  %v7933_v58 = vpack.c.bf16 %v2755_v49, %v2754_v20  ;;  %v9018_v41 = vld [vmem:[%s15106_s0 + $0x98] sm:$0xff]  ;;  %v9021_v49 = vld [vmem:[%s15106_s0 + $0xb0] sm:$0xff] }
 0x18f   :  { %v1493_v12 = vrot.slane %v9017_v27, %v11517_v36  ;;  %v1562_v62 = vmul.f32 %v1485_v43, %v9598_v57  ;;  %v11948_v6 = vadd.f32 %v1561_v26, %v9648_v52  ;;  %v1497_v30 = vrot.slane %v9018_v41, %v11517_v36 }
 0x190   :  { %v1854_v47 = vmax.f32 %v1853_v0, %v11938_v17  ;;  %1839 = vmax.xlane.f32.xlu1 %v1838_v33  ;;  %v1563_v63 = vmul.f32 %v1489_v51, %v9598_v57  ;;  %v1501_v43 = vrot.slane %v9019_v13, %v11517_v36  ;;  %v9020_v51 = vld [vmem:[%s15106_s0 + $0xa8] sm:$0xff]  ;;  %v1509_v9 = vrot.slane %v9021_v49, %v11517_v36 }
 0x191   :  { %7868 = vmatpush3.bf16.msra.mxu0 %v7867_v39  ;;  %v11957_v29 = vadd.f32 %v1562_v62, %v9648_v52  ;;  %7900 = vmatpush3.bf16.msra.mxu1 %v7899_v19  ;;  %v1564_v18 = vmul.f32 %v1493_v12, %v9598_v57  ;;  %v1505_v26 = vrot.slane %v9020_v51, %v11517_v36 }
 0x192   :  { %v1855_v27 = vmax.f32 %v1854_v47, %v11948_v6  ;;  %7902 = vmatprep.subr.bf16.mxu0 %v7901_v34  ;;  %7934 = vmatprep.subr.bf16.mxu1 %v7933_v58  ;;  %v11966_v10 = vadd.f32 %v1563_v63, %v9648_v52  ;;  %v1565_v58 = vmul.f32 %v1497_v30, %v9598_v57  ;;  %v9022_v34 = vld [vmem:[%s15106_s0 + $0xb8] sm:$0xff]  ;;  %s9056_s0 = smov 16  }
 0x193   :  { %15909 = vst [vmem:[#allocation222_spill] sm:$0xff] %v11957_v29  ;;  %v11975_v11 = vadd.f32 %v1564_v18, %v9648_v52  ;;  %v1566_v39 = vmul.f32 %v1501_v43, %v9598_v57  ;;  %v1513_v33 = vrot.slane %v9022_v34, %v11517_v36  ;;  %v1567_v12 = vmul.f32 %v1505_v26, %v9598_v57 }
 0x194   :  { %v1856_v4 = vmax.f32 %v1855_v27, %v11957_v29  ;;  %v11984_v0 = vadd.f32 %v1565_v58, %v9648_v52  ;;  %v1517_v41 = vrot.slane %v11374_v3, %v11517_v36  ;;  %v1568_v30 = vmul.f32 %v1509_v9, %v9598_v57 }
 0x195   :  { %15910 = vst [vmem:[#allocation223_spill] sm:$0xff] %v11975_v11  ;;  %v11993_v62 = vadd.f32 %v1566_v39, %v9648_v52  ;;  %v12000_v63 = vadd.f32 %v1567_v12, %v9648_v52  ;;  %v1521_v13 = vrot.slane %v11381_v14, %v11517_v36  ;;  %v1569_v43 = vmul.f32 %v1513_v33, %v9598_v57 }
 0x196   :  { %v1857_v20 = vmax.f32 %v1856_v4, %v11966_v10  ;;  %v12007_v18 = vadd.f32 %v1568_v30, %v9648_v52  ;;  %v1525_v3 = vrot.slane %v11388_v8, %v11517_v36  ;;  %v1570_v51 = vmul.f32 %v1517_v41, %v9598_v57 }
 0x197   :  { %15911 = vst [vmem:[#allocation224_spill] sm:$0xff] %v11993_v62  ;;  %15912 = vst [vmem:[#allocation225_spill] sm:$0xff] %v12000_v63  ;;  %v12014_v26 = vadd.f32 %v1569_v43, %v9648_v52  ;;  %v1529_v14 = vrot.slane %v11395_v31, %v11517_v36  ;;  %v1533_v8 = vrot.slane %v11411_v60, %v11517_v36  ;;  %v15918_v60 = vld [vmem:[#allocation39_spill] sm:$0xff]  ;;  %v15920_v43 = vld [vmem:[#allocation38_spill] sm:$0xff] }
 0x198   :  { %v1858_v19 = vmax.f32 %v1857_v20, %v11975_v11  ;;  %15913 = vst [vmem:[#allocation226_spill] sm:$0xff] %v12007_v18  ;;  %v1571_v20 = vmul.f32 %v1521_v13, %v9598_v57  ;;  %v12021_v49 = vadd.f32 %v1570_v51, %v9648_v52  ;;  %v1572_v39 = vmul.f32 %v1525_v3, %v9598_v57  ;;  %v15979_v11 = vld [vmem:[#allocation168_spill] sm:$0xff] }
 0x199   :  { %15914 = vst [vmem:[#allocation227_spill] sm:$0xff] %v12014_v26  ;;  %v1537_v31 = vrot.slane %v11418_v15, %v11517_v36  ;;  %v1573_v33 = vmul.f32 %v1529_v14, %v9598_v57  ;;  %v1541_v15 = vrot.slane %v11425_v61, %v11517_v36  ;;  %v1574_v3 = vmul.f32 %v1533_v8, %v9598_v57 }
 0x19a   :  { %v1859_v47 = vmax.f32 %v1858_v19, %v11984_v0  ;;  %15915 = vst [vmem:[#allocation228_spill] sm:$0xff] %v12021_v49  ;;  %v12028_v19 = vadd.f32 %v1571_v20, %v9648_v52  ;;  %v12035_v12 = vadd.f32 %v1572_v39, %v9648_v52 }
 0x19b   :  { %v12050_v51 = vadd.f32 %v1573_v33, %v9648_v52  ;;  %v12059_v61 = vadd.f32 %v1574_v3, %v9648_v52  ;;  %v1576_v33 = vmul.f32 %v1541_v15, %v9598_v57  ;;  %v2706_v15 = vld [vmem:[%s15109_s3 + $0x200] sm:$0xff]  ;;  %v2707_v3 = vld [vmem:[%s15109_s3 + $0x208] sm:$0xff] }
 0x19c   :  { %v1860_v27 = vmax.f32 %v1859_v47, %v11993_v62  ;;  %15916 = vst [vmem:[#allocation229_spill] sm:$0xff] %v12028_v19  ;;  %15917 = vst [vmem:[#allocation230_spill] sm:$0xff] %v12035_v12  ;;  %v12037_v47 = vpop.xlane.xlu1 %1641 }
 0x19d   :  { %v1875_v30 = vsub.f32 %v15918_v60, %v12037_v47  ;;  %15921 = vst [vmem:[#allocation39_spill] sm:$0xff] %v12050_v51  ;;  %v1545_v60 = vrot.slane %v11432_v45, %v11517_v36  ;;  %v12069_v45 = vadd.f32 %v1576_v33, %v9648_v52 }
 0x19e   :  { %v1861_v4 = vmax.f32 %v1860_v27, %v12000_v63  ;;  %v15919_v27 = vld [vmem:[#allocation46_spill] sm:$0xff]  ;;  %v12462_v63 = vld [vmem:[%s15109_s3 + $0x510] sm:$0xff] }
 0x19f   :  { %v1877_v13 = vsub.f32 %v15919_v27, %v12037_v47  ;;  %15923 = vst [vmem:[#allocation46_spill] sm:$0xff] %v12059_v61  ;;  %v1577_v36 = vmul.f32 %v1545_v60, %v9598_v57 }
 0x1a0   :  { %v1862_v58 = vmax.f32 %v1861_v4, %v12007_v18  ;;  %v1874_v4 = vsub.f32 %v15920_v43, %v12037_v47  ;;  %v1575_v43 = vmul.f32 %v1537_v31, %v9598_v57  ;;  %v2738_v57 = vld [vmem:[%s15109_s3 + $0x300] sm:$0xff] }
 0x1a1   :  { %v2136_v39 = vmul.f32 1.442695, %v1877_v13  ;;  %v12073_v13 = vadd.f32 %v1577_v36, %v9648_v52 }
 0x1a2   :  { %v1863_v9 = vmax.f32 %v1862_v58, %v12014_v26  ;;  %v15922_v58 = vld [vmem:[#allocation42_spill] sm:$0xff] }
 0x1a3   :  { %v1876_v14 = vsub.f32 %v15922_v58, %v12037_v47  ;;  %15925 = vst [vmem:[#allocation42_spill] sm:$0xff] %v12069_v45  ;;  %15926 = vst [vmem:[#allocation231_spill] sm:$0xff] %v12073_v13 }
 0x1a4   :  { %v1864_v34 = vmax.f32 %v1863_v9, %v12021_v49  ;;  %v2132_v9 = vmul.f32 1.442695, %v1875_v30 }
 0x1a5   :  { %v2134_v27 = vmul.f32 1.442695, %v1876_v14  ;;  %v12086_v14 = vpop.xlane.xlu0 %1707 }
 0x1a6   :  { %v1865_v41 = vmax.f32 %v1864_v34, %v12028_v19  ;;  %v2130_v34 = vmul.f32 1.442695, %v1874_v4  ;;  %8415 = vpow2.f32 %v2132_v9  ;;  %v2725_v9 = vld [vmem:[%s15109_s3 + $0x298] sm:$0xff] }
 0x1a7   :  { %8417 = vpow2.f32 %v2136_v39  ;;  %v2756_v39 = vld [vmem:[%s15109_s3 + $0x390] sm:$0xff]  ;;  %v15972_v19 = vld [vmem:[#allocation102_spill] sm:$0xff] }
 0x1a8   :  { %v1866_v20 = vmax.f32 %v1865_v41, %v12035_v12  ;;  %v12064_v41 = vadd.f32 %v1575_v43, %v9648_v52  ;;  %8419 = vpow2.f32 %v2130_v34  ;;  %v2739_v52 = vld [vmem:[%s15109_s3 + $0x308] sm:$0xff]  ;;  %v2757_v34 = vld [vmem:[%s15109_s3 + $0x398] sm:$0xff] }
 0x1a9   :  { %8421 = vpow2.f32 %v2134_v27  ;;  %v7903_v27 = vpack.c.bf16 %v2707_v3, %v2706_v15  ;;  %v15928_v15 = vld [vmem:[#allocation31_spill] sm:$0xff] }
 0x1aa   :  { %v1867_v8 = vmax.f32 %v1866_v20, %v12050_v51  ;;  %15924 = vst [vmem:[#allocation38_spill] sm:$0xff] %v12064_v41  ;;  %v2724_v20 = vld [vmem:[%s15109_s3 + $0x290] sm:$0xff]  ;;  %v1941_v3 = vsub.f32 %v15928_v15, %v12086_v14 }
 0x1ab   :  { %v7905_v33 = vpack.c.bf16 %v2725_v9, %v2724_v20  ;;  %v15930_v15 = vld [vmem:[#allocation77_spill] sm:$0xff] }
 0x1ac   :  { %v1868_v30 = vmax.f32 %v1867_v8, %v12059_v61  ;;  %v7935_v8 = vpack.c.bf16 %v2739_v52, %v2738_v57  ;;  %v7937_v61 = vpack.c.bf16 %v2757_v34, %v2756_v39  ;;  %v2740_v57 = vld [vmem:[%s15109_s3 + $0x310] sm:$0xff]  ;;  %v12119_v34 = vpop.xlane.xlu1 %1674 }
 0x1ae   :  { %v1869_v31 = vmax.f32 %v1868_v30, %v12064_v41  ;;  %v15927_v30 = vld [vmem:[#allocation29_spill] sm:$0xff]  ;;  %v15931_v41 = vld [vmem:[#allocation71_spill] sm:$0xff] }
 0x1af   :  { %v1939_v36 = vsub.f32 %v15927_v30, %v12086_v14 }
 0x1b0   :  { %v1870_v4 = vmax.f32 %v1869_v31, %v12069_v45  ;;  %v8416_v60 = vpop.eup %8415  ;;  %v2708_v31 = vld [vmem:[%s15109_s3 + $0x210] sm:$0xff] }
 0x1b1   :  { %v8418_v43 = vpop.eup %8417  ;;  %3218 = vmatprep.mubr.f32.mxu0 %v8416_v60  ;;  %v2260_v9 = vmul.f32 1.442695, %v1939_v36  ;;  %v2264_v60 = vmul.f32 1.442695, %v1941_v3 }
 0x1b2   :  { %v1871_v58 = vmax.f32 %v1870_v4, %v12073_v13  ;;  %v2709_v4 = vld [vmem:[%s15109_s3 + $0x218] sm:$0xff]  ;;  %v8420_v45 = vpop.eup %8419  ;;  %3323 = vmatprep.mubr.f32.mxu1 %v8418_v43  ;;  %v15929_v43 = vld [vmem:[#allocation72_spill] sm:$0xff]  ;;  %v1909_v13 = vsub.f32 %v15930_v15, %v12119_v34 }
 0x1b3   :  { %v8422_v52 = vpop.eup %8421  ;;  %3219 = vmatmul.mubr.f32.vlgmr.msra.gmra.mrb[0].mxu0 %v8420_v45  ;;  %v7907_v20 = vpack.c.bf16 %v2709_v4, %v2708_v31  ;;  %v1907_v30 = vsub.f32 %v15929_v43, %v12119_v34  ;;  %v1906_v45 = vsub.f32 %v15931_v41, %v12119_v34  ;;  %8423 = vpow2.f32 %v2260_v9  ;;  %v15933_v4 = vld [vmem:[#allocation28_spill] sm:$0xff] }
 0x1b4   :  { %1872 = vmax.xlane.f32.xlu1 %v1871_v58  ;;  %v2741_v58 = vld [vmem:[%s15109_s3 + $0x318] sm:$0xff]  ;;  %3324 = vmatmul.mubr.f32.vlgmr.msra.gmra.mrb[0].mxu1 %v8422_v52  ;;  %8425 = vpow2.f32 %v2264_v60  ;;  %v1938_v3 = vsub.f32 %v15933_v4, %v12086_v14  ;;  %v2758_v52 = vld [vmem:[%s15109_s3 + $0x3a0] sm:$0xff]  ;;  %v2759_v9 = vld [vmem:[%s15109_s3 + $0x3a8] sm:$0xff] }
 0x1b5   :  { %7904 = vmatpush3.bf16.msra.mxu0 %v7903_v27  ;;  %7936 = vmatpush3.bf16.msra.mxu1 %v7935_v8  ;;  %v7939_v39 = vpack.c.bf16 %v2741_v58, %v2740_v57  ;;  %v15932_v27 = vld [vmem:[#allocation75_spill] sm:$0xff]  ;;  %v2196_v8 = vmul.f32 1.442695, %v1907_v30  ;;  %v2194_v36 = vmul.f32 1.442695, %v1906_v45  ;;  %v15934_v57 = vld [vmem:[#allocation30_spill] sm:$0xff]  ;;  %v7941_v15 = vpack.c.bf16 %v2759_v9, %v2758_v52 }
 0x1b6   :  { %7906 = vmatprep.subr.bf16.mxu0 %v7905_v33  ;;  %7938 = vmatprep.subr.bf16.mxu1 %v7937_v61  ;;  %v1908_v31 = vsub.f32 %v15932_v27, %v12119_v34  ;;  %v2200_v33 = vmul.f32 1.442695, %v1909_v13  ;;  %v1940_v41 = vsub.f32 %v15934_v57, %v12086_v14  ;;  %v2726_v58 = vld [vmem:[%s15109_s3 + $0x2a0] sm:$0xff]  ;;  %v2727_v13 = vld [vmem:[%s15109_s3 + $0x2a8] sm:$0xff]  ;;  %v2258_v43 = vmul.f32 1.442695, %v1938_v3 }
 0x1b7   :  { %8427 = vpow2.f32 %v2196_v8  ;;  %v2711_v60 = vld [vmem:[%s15109_s3 + $0x228] sm:$0xff]  ;;  %v2742_v27 = vld [vmem:[%s15109_s3 + $0x320] sm:$0xff]  ;;  %v2761_v3 = vld [vmem:[%s15109_s3 + $0x3b8] sm:$0xff] }
 0x1b8   :  { %v2198_v61 = vmul.f32 1.442695, %v1908_v31  ;;  %8429 = vpow2.f32 %v2200_v33  ;;  %v2262_v30 = vmul.f32 1.442695, %v1940_v41  ;;  %v2743_v31 = vld [vmem:[%s15109_s3 + $0x328] sm:$0xff]  ;;  %v2728_v33 = vld [vmem:[%s15109_s3 + $0x2b0] sm:$0xff] }
 0x1b9   :  { %7908 = vmatpush3.bf16.msra.mxu0 %v7907_v20  ;;  %7940 = vmatpush3.bf16.msra.mxu1 %v7939_v39  ;;  %8431 = vpow2.f32 %v2194_v36  ;;  %v7909_v20 = vpack.c.bf16 %v2727_v13, %v2726_v58  ;;  %v2710_v39 = vld [vmem:[%s15109_s3 + $0x220] sm:$0xff]  ;;  %v7943_v8 = vpack.c.bf16 %v2743_v31, %v2742_v27  ;;  %v2729_v36 = vld [vmem:[%s15109_s3 + $0x2b8] sm:$0xff]  ;;  %v2712_v57 = vld [vmem:[%s15109_s3 + $0x230] sm:$0xff] }
 0x1ba   :  { %8433 = vpow2.f32 %v2198_v61  ;;  %v7911_v45 = vpack.c.bf16 %v2711_v60, %v2710_v39  ;;  %v2760_v61 = vld [vmem:[%s15109_s3 + $0x3b0] sm:$0xff]  ;;  %7942 = vmatprep.subr.bf16.mxu1 %v7941_v15  ;;  %v7913_v4 = vpack.c.bf16 %v2729_v36, %v2728_v33  ;;  %v2713_v41 = vld [vmem:[%s15109_s3 + $0x238] sm:$0xff]  ;;  %v2730_v9 = vld [vmem:[%s15109_s3 + $0x2c0] sm:$0xff] }
 0x1bb   :  { %7910 = vmatprep.subr.bf16.mxu0 %v7909_v20  ;;  %8435 = vpow2.f32 %v2258_v43  ;;  %v7945_v58 = vpack.c.bf16 %v2761_v3, %v2760_v61  ;;  %v7915_v13 = vpack.c.bf16 %v2713_v41, %v2712_v57  ;;  %v2744_v52 = vld [vmem:[%s15109_s3 + $0x330] sm:$0xff]  ;;  %v2745_v20 = vld [vmem:[%s15109_s3 + $0x338] sm:$0xff]  ;;  %v2731_v43 = vld [vmem:[%s15109_s3 + $0x2c8] sm:$0xff] }
 0x1bc   :  { %8437 = vpow2.f32 %v2262_v30  ;;  %v7947_v60 = vpack.c.bf16 %v2745_v20, %v2744_v52  ;;  %v2762_v30 = vld [vmem:[%s15109_s3 + $0x3c0] sm:$0xff]  ;;  %v2763_v15 = vld [vmem:[%s15109_s3 + $0x3c8] sm:$0xff]  ;;  %v7917_v27 = vpack.c.bf16 %v2731_v43, %v2730_v9  ;;  %v2732_v3 = vld [vmem:[%s15109_s3 + $0x2d0] sm:$0xff] }
 0x1bd   :  { %7912 = vmatpush3.bf16.msra.mxu0 %v7911_v45  ;;  %7944 = vmatpush3.bf16.msra.mxu1 %v7943_v8  ;;  %v8424_v39 = vpop.eup %8423  ;;  %v7949_v31 = vpack.c.bf16 %v2763_v15, %v2762_v30  ;;  %v2714_v8 = vld [vmem:[%s15109_s3 + $0x240] sm:$0xff]  ;;  %v2715_v33 = vld [vmem:[%s15109_s3 + $0x248] sm:$0xff]  ;;  %v2733_v57 = vld [vmem:[%s15109_s3 + $0x2d8] sm:$0xff] }
 0x1be   :  { %7914 = vmatprep.subr.bf16.mxu0 %v7913_v4  ;;  %v8426_v45 = vpop.eup %8425  ;;  %7946 = vmatprep.subr.bf16.mxu1 %v7945_v58  ;;  %v2746_v36 = vld [vmem:[%s15109_s3 + $0x340] sm:$0xff]  ;;  %v2747_v4 = vld [vmem:[%s15109_s3 + $0x348] sm:$0xff]  ;;  %v7919_v58 = vpack.c.bf16 %v2715_v33, %v2714_v8  ;;  %v2765_v52 = vld [vmem:[%s15109_s3 + $0x3d8] sm:$0xff]  ;;  %v7921_v43 = vpack.c.bf16 %v2733_v57, %v2732_v3 }
 0x1bf   :  { %v7951_v9 = vpack.c.bf16 %v2747_v4, %v2746_v36  ;;  %v2716_v30 = vld [vmem:[%s15109_s3 + $0x250] sm:$0xff]  ;;  %v2734_v36 = vld [vmem:[%s15109_s3 + $0x2e0] sm:$0xff] }
 0x1c0   :  { %v2748_v15 = vld [vmem:[%s15109_s3 + $0x350] sm:$0xff]  ;;  %v2766_v4 = vld [vmem:[%s15109_s3 + $0x3e0] sm:$0xff] }
 0x1c1   :  { %v8428_v61 = vpop.eup %8427  ;;  %7916 = vmatpush3.bf16.msra.mxu0 %v7915_v13  ;;  %7948 = vmatpush3.bf16.msra.mxu1 %v7947_v60  ;;  %v2764_v13 = vld [vmem:[%s15109_s3 + $0x3d0] sm:$0xff]  ;;  %v2717_v60 = vld [vmem:[%s15109_s3 + $0x258] sm:$0xff] }
 0x1c2   :  { %v8430_v41 = vpop.eup %8429  ;;  %3223 = vmatprep.mubr.f32.mxu0 %v8428_v61  ;;  %7918 = vmatprep.subr.bf16.mxu0 %v7917_v27  ;;  %v7953_v33 = vpack.c.bf16 %v2765_v52, %v2764_v13  ;;  %v2749_v27 = vld [vmem:[%s15109_s3 + $0x358] sm:$0xff]  ;;  %v2735_v61 = vld [vmem:[%s15109_s3 + $0x2e8] sm:$0xff]  ;;  %v7923_v3 = vpack.c.bf16 %v2717_v60, %v2716_v30 }
 0x1c3   :  { %v8432_v20 = vpop.eup %8431  ;;  %3328 = vmatprep.mubr.f32.mxu1 %v8430_v41  ;;  %7950 = vmatprep.subr.bf16.mxu1 %v7949_v31  ;;  %v2767_v31 = vld [vmem:[%s15109_s3 + $0x3e8] sm:$0xff]  ;;  %v7955_v41 = vpack.c.bf16 %v2749_v27, %v2748_v15  ;;  %v7925_v13 = vpack.c.bf16 %v2735_v61, %v2734_v36  ;;  %v12253_v30 = vpop.xlane.xlu1 %1740  ;;  %v2736_v15 = vld [vmem:[%s15109_s3 + $0x2f0] sm:$0xff]  ;;  %v15935_v27 = vld [vmem:[#allocation106_spill] sm:$0xff] }
 0x1c4   :  { %v8434_v8 = vpop.eup %8433  ;;  %3224 = vmatmul.mubr.f32.gmra.mrb[2].mxu0 %v8432_v20  ;;  %v2718_v20 = vld [vmem:[%s15109_s3 + $0x260] sm:$0xff]  ;;  %v1971_v36 = vsub.f32 %v15935_v27, %v12253_v30  ;;  %v15936_v61 = vld [vmem:[#allocation110_spill] sm:$0xff] }
 0x1c5   :  { %3329 = vmatmul.mubr.f32.gmra.mrb[2].mxu1 %v8434_v8  ;;  %3228 = vmatprep.mubr.f32.mxu0 %v8424_v39  ;;  %v8436_v57 = vpop.eup %8435  ;;  %v7957_v39 = vpack.c.bf16 %v2767_v31, %v2766_v4  ;;  %v2737_v8 = vld [vmem:[%s15109_s3 + $0x2f8] sm:$0xff]  ;;  %v1973_v4 = vsub.f32 %v15936_v61, %v12253_v30  ;;  %v15937_v31 = vld [vmem:[#allocation105_spill] sm:$0xff] }
 0x1c6   :  { %3333 = vmatprep.mubr.f32.mxu1 %v8426_v45  ;;  %7920 = vmatpush3.bf16.msra.mxu0 %v7919_v58  ;;  %v8438_v52 = vpop.eup %8437  ;;  %v2719_v45 = vld [vmem:[%s15109_s3 + $0x268] sm:$0xff]  ;;  %v2750_v58 = vld [vmem:[%s15109_s3 + $0x360] sm:$0xff]  ;;  %v2753_v27 = vld [vmem:[%s15109_s3 + $0x378] sm:$0xff]  ;;  %v2324_v61 = vmul.f32 1.442695, %v1971_v36 }
 0x1c7   :  { %7952 = vmatpush3.bf16.msra.mxu1 %v7951_v9  ;;  %7922 = vmatprep.subr.bf16.mxu0 %v7921_v43  ;;  %v7927_v9 = vpack.c.bf16 %v2719_v45, %v2718_v20  ;;  %v2751_v43 = vld [vmem:[%s15109_s3 + $0x368] sm:$0xff]  ;;  %v7929_v20 = vpack.c.bf16 %v2737_v8, %v2736_v15  ;;  %v2818_v8 = vld [vmem:[%s15109_s3 + $0x580] sm:$0xff] }
 0x1c8   :  { %3229 = vmatmul.mubr.f32.gmra.mrb[4].mxu0 %v8436_v57  ;;  %7954 = vmatprep.subr.bf16.mxu1 %v7953_v33  ;;  %v7959_v60 = vpack.c.bf16 %v2751_v43, %v2750_v58  ;;  %v2768_v33 = vld [vmem:[%s15109_s3 + $0x3f0] sm:$0xff]  ;;  %v2787_v15 = vld [vmem:[%s15109_s3 + $0x488] sm:$0xff]  ;;  %8439 = vpow2.f32 %v2324_v61 }
 0x1c9   :  { %3334 = vmatmul.mubr.f32.gmra.mrb[4].mxu1 %v8438_v52  ;;  %v15938_v57 = vld [vmem:[#allocation109_spill] sm:$0xff] }
 0x1ca   :  { %7924 = vmatpush3.bf16.msra.mxu0 %v7923_v3  ;;  %v1970_v3 = vsub.f32 %v15937_v31, %v12253_v30  ;;  %v2720_v52 = vld [vmem:[%s15109_s3 + $0x270] sm:$0xff]  ;;  %v2328_v31 = vmul.f32 1.442695, %v1973_v4 }
 0x1cb   :  { %7956 = vmatpush3.bf16.msra.mxu1 %v7955_v41  ;;  %7926 = vmatprep.subr.bf16.mxu0 %v7925_v13  ;;  %v1972_v41 = vsub.f32 %v15938_v57, %v12253_v30  ;;  %v2769_v13 = vld [vmem:[%s15109_s3 + $0x3f8] sm:$0xff]  ;;  %v2752_v43 = vld [vmem:[%s15109_s3 + $0x370] sm:$0xff] }
 0x1cc   :  { %7958 = vmatprep.subr.bf16.mxu1 %v7957_v39  ;;  %v2721_v39 = vld [vmem:[%s15109_s3 + $0x278] sm:$0xff]  ;;  %v7961_v45 = vpack.c.bf16 %v2769_v13, %v2768_v33  ;;  %v2322_v57 = vmul.f32 1.442695, %v1970_v3  ;;  %v7963_v16 = vpack.c.bf16 %v2753_v27, %v2752_v43  ;;  %8441 = vpow2.f32 %v2328_v31  ;;  %v15942_v43 = vld [vmem:[#allocation136_spill] sm:$0xff] }
 0x1cd   :  { %v7931_v58 = vpack.c.bf16 %v2721_v39, %v2720_v52  ;;  %v2326_v25 = vmul.f32 1.442695, %v1972_v41  ;;  %v15939_v39 = vld [vmem:[#allocation133_spill] sm:$0xff] }
 0x1ce   :  { %7928 = vmatpush3.bf16.msra.mxu0 %v7927_v9  ;;  %v2786_v9 = vld [vmem:[%s15109_s3 + $0x480] sm:$0xff]  ;;  %8443 = vpow2.f32 %v2322_v57 }
 0x1cf   :  { %7960 = vmatpush3.bf16.msra.mxu1 %v7959_v60  ;;  %7930 = vmatprep.subr.bf16.mxu0 %v7929_v20  ;;  %v7965_v33 = vpack.c.bf16 %v2787_v15, %v2786_v9  ;;  %v2819_v60 = vld [vmem:[%s15109_s3 + $0x588] sm:$0xff]  ;;  %8445 = vpow2.f32 %v2326_v25 }
 0x1d0   :  { %7962 = vmatprep.subr.bf16.mxu1 %v7961_v45  ;;  %v7997_v36 = vpack.c.bf16 %v2819_v60, %v2818_v8  ;;  %v15940_v45 = vld [vmem:[#allocation22_spill] sm:$0xff] }
 0x1d2   :  { %7932 = vmatpush3.bf16.msra.mxu0 %v7931_v58  ;;  %v8440_v4 = vpop.eup %8439 }
 0x1d3   :  { %7964 = vmatpush3.bf16.msra.mxu1 %v7963_v16  ;;  %7966 = vmatprep.subr.bf16.mxu0 %v7965_v33  ;;  %v15941_v16 = vld [vmem:[#allocation132_spill] sm:$0xff] }
 0x1d4   :  { %7998 = vmatprep.subr.bf16.mxu1 %v7997_v36  ;;  %3233 = vmatprep.mubr.f32.mxu0 %v8440_v4  ;;  %v15943_v4 = vld [vmem:[#allocation164_spill] sm:$0xff] }
 0x1d6   :  { %v8442_v3 = vpop.eup %8441 }
 0x1d7   :  { %3338 = vmatprep.mubr.f32.mxu1 %v8442_v3 }
 0x1d8   :  { %v8444_v41 = vpop.eup %8443 }
 0x1d9   :  { %v8446_v13 = vpop.eup %8445  ;;  %3234 = vmatmul.mubr.f32.gmra.mrb[6].mxu0 %v8444_v41  ;;  %v15944_v41 = vld [vmem:[#allocation166_spill] sm:$0xff] }
 0x1da   :  { %3339 = vmatmul.mubr.f32.gmra.mrb[6].mxu1 %v8446_v13 }
 0x1e4   :  { %v12299_v52 = vpop.xlane.xlu1 %1773 }
 0x1e5   :  { %v2003_v20 = vsub.f32 %v15939_v39, %v12299_v52  ;;  %v2005_v58 = vsub.f32 %v15940_v45, %v12299_v52  ;;  %v2002_v25 = vsub.f32 %v15941_v16, %v12299_v52  ;;  %v2004_v27 = vsub.f32 %v15942_v43, %v12299_v52  ;;  %v15945_v39 = vld [vmem:[#allocation163_spill] sm:$0xff]  ;;  %v15946_v45 = vld [vmem:[#allocation20_spill] sm:$0xff] }
 0x1e7   :  { %v2388_v61 = vmul.f32 1.442695, %v2003_v20  ;;  %v2392_v31 = vmul.f32 1.442695, %v2005_v58  ;;  %v2386_v57 = vmul.f32 1.442695, %v2002_v25 }
 0x1e8   :  { %v2390_v9 = vmul.f32 1.442695, %v2004_v27 }
 0x1e9   :  { %8447 = vpow2.f32 %v2388_v61 }
 0x1ea   :  { %8449 = vpow2.f32 %v2392_v31 }
 0x1eb   :  { %8451 = vpow2.f32 %v2386_v57 }
 0x1ec   :  { %8453 = vpow2.f32 %v2390_v9 }
 0x1f3   :  { %v8448_v15 = vpop.eup %8447 }
 0x1f4   :  { %v8450_v8 = vpop.eup %8449  ;;  %3238 = vmatprep.mubr.f32.mxu0 %v8448_v15 }
 0x1f5   :  { %v8452_v33 = vpop.eup %8451  ;;  %3343 = vmatprep.mubr.f32.mxu1 %v8450_v8 }
 0x1f6   :  { %v8454_v60 = vpop.eup %8453  ;;  %3239 = vmatmul.mubr.f32.gmra.mrb[8].mxu0 %v8452_v33 }
 0x1f7   :  { %3344 = vmatmul.mubr.f32.gmra.mrb[8].mxu1 %v8454_v60 }
 0x202   :  { %v12309_v36 = vpop.xlane.xlu1 %1806 }
 0x203   :  { %v2035_v3 = vsub.f32 %v15943_v4, %v12309_v36  ;;  %v2037_v13 = vsub.f32 %v15944_v41, %v12309_v36  ;;  %v2034_v20 = vsub.f32 %v15945_v39, %v12309_v36  ;;  %v2036_v58 = vsub.f32 %v15946_v45, %v12309_v36 }
 0x205   :  { %v2452_v16 = vmul.f32 1.442695, %v2035_v3  ;;  %v2456_v25 = vmul.f32 1.442695, %v2037_v13  ;;  %v2450_v43 = vmul.f32 1.442695, %v2034_v20 }
 0x206   :  { %v2454_v27 = vmul.f32 1.442695, %v2036_v58 }
 0x207   :  { %8455 = vpow2.f32 %v2452_v16 }
 0x208   :  { %8457 = vpow2.f32 %v2456_v25  ;;  %v15949_v25 = vld [vmem:[#allocation51_spill] sm:$0xff] }
 0x209   :  { %8459 = vpow2.f32 %v2450_v43  ;;  %v1878_v43 = vsub.f32 %v15949_v25, %v12037_v47  ;;  %v15955_v25 = vld [vmem:[#allocation33_spill] sm:$0xff] }
 0x20a   :  { %8461 = vpow2.f32 %v2454_v27 }
 0x211   :  { %v8456_v61 = vpop.eup %8455 }
 0x212   :  { %v8458_v31 = vpop.eup %8457  ;;  %3243 = vmatprep.mubr.f32.mxu0 %v8456_v61 }
 0x213   :  { %v8460_v57 = vpop.eup %8459  ;;  %3348 = vmatprep.mubr.f32.mxu1 %v8458_v31  ;;  %v15950_v31 = vld [vmem:[#allocation61_spill] sm:$0xff] }
 0x214   :  { %v8462_v9 = vpop.eup %8461  ;;  %3244 = vmatmul.mubr.f32.gmra.mrb[10].mxu0 %v8460_v57  ;;  %v1880_v57 = vsub.f32 %v15950_v31, %v12037_v47 }
 0x215   :  { %3349 = vmatmul.mubr.f32.gmra.mrb[10].mxu1 %v8462_v9  ;;  %v2138_v9 = vmul.f32 1.442695, %v1878_v43 }
 0x21d   :  { %v12319_v15 = vpop.xlane.xlu1 %1839 }
 0x21e   :  { %v2067_v8 = vsub.f32 %v11213_v55, %v12319_v15  ;;  %v2069_v33 = vsub.f32 %v11285_v46, %v12319_v15  ;;  %v2066_v60 = vsub.f32 %v11210_v54, %v12319_v15  ;;  %v2068_v4 = vsub.f32 %v11271_v24, %v12319_v15  ;;  %v15947_v54 = vld [vmem:[#allocation56_spill] sm:$0xff]  ;;  %v15948_v24 = vld [vmem:[#allocation66_spill] sm:$0xff] }
 0x21f   :  { %v1879_v58 = vsub.f32 %v15947_v54, %v12037_v47  ;;  %v1881_v16 = vsub.f32 %v15948_v24, %v12037_v47 }
 0x220   :  { %v2516_v3 = vmul.f32 1.442695, %v2067_v8  ;;  %v2520_v41 = vmul.f32 1.442695, %v2069_v33  ;;  %v2514_v13 = vmul.f32 1.442695, %v2066_v60 }
 0x221   :  { %v2518_v39 = vmul.f32 1.442695, %v2068_v4  ;;  %v2140_v27 = vmul.f32 1.442695, %v1879_v58  ;;  %v2144_v61 = vmul.f32 1.442695, %v1881_v16 }
 0x222   :  { %8463 = vpow2.f32 %v2516_v3  ;;  %v2142_v33 = vmul.f32 1.442695, %v1880_v57  ;;  %v15951_v60 = vld [vmem:[#allocation84_spill] sm:$0xff] }
 0x223   :  { %8465 = vpow2.f32 %v2520_v41  ;;  %v1911_v4 = vsub.f32 %v15951_v60, %v12119_v34  ;;  %v15953_v58 = vld [vmem:[#allocation80_spill] sm:$0xff]  ;;  %v15958_v60 = vld [vmem:[#allocation34_spill] sm:$0xff] }
 0x224   :  { %8467 = vpow2.f32 %v2514_v13  ;;  %v1910_v24 = vsub.f32 %v15953_v58, %v12119_v34  ;;  %v15957_v57 = vld [vmem:[#allocation32_spill] sm:$0xff] }
 0x225   :  { %8469 = vpow2.f32 %v2518_v39 }
 0x226   :  { %8471 = vpow2.f32 %v2140_v27  ;;  %v15956_v27 = vld [vmem:[#allocation35_spill] sm:$0xff]  ;;  %v2202_v31 = vmul.f32 1.442695, %v1910_v24  ;;  %v15962_v24 = vld [vmem:[#allocation73_spill] sm:$0xff] }
 0x227   :  { %8473 = vpow2.f32 %v2144_v61  ;;  %v1945_v61 = vsub.f32 %v15956_v27, %v12086_v14 }
 0x228   :  { %8475 = vpow2.f32 %v2138_v9  ;;  %v1942_v9 = vsub.f32 %v15957_v57, %v12086_v14 }
 0x229   :  { %8477 = vpow2.f32 %v2142_v33 }
 0x22c   :  { %v8464_v20 = vpop.eup %8463 }
 0x22d   :  { %v8466_v45 = vpop.eup %8465  ;;  %3248 = vmatprep.mubr.f32.mxu0 %v8464_v20  ;;  %v15952_v20 = vld [vmem:[#allocation92_spill] sm:$0xff] }
 0x22e   :  { %v8468_v55 = vpop.eup %8467  ;;  %3353 = vmatprep.mubr.f32.mxu1 %v8466_v45  ;;  %v1913_v45 = vsub.f32 %v15952_v20, %v12119_v34  ;;  %v15960_v20 = vld [vmem:[#allocation69_spill] sm:$0xff] }
 0x22f   :  { %v8470_v46 = vpop.eup %8469  ;;  %3249 = vmatmul.mubr.f32.gmra.mrb[12].mxu0 %v8468_v55 }
 0x230   :  { %3354 = vmatmul.mubr.f32.gmra.mrb[12].mxu1 %v8470_v46  ;;  %v2208_v43 = vmul.f32 1.442695, %v1913_v45  ;;  %v1883_v45 = vsub.f32 %v15960_v20, %v12037_v47 }
 0x241   :  { %v12337_v8 = vpop.xlane.xlu1 %1872 }
 0x242   :  { %v2099_v3 = vsub.f32 %v11624_v42, %v12337_v8  ;;  %v2101_v41 = vsub.f32 %v11685_v48, %v12337_v8  ;;  %v2098_v13 = vsub.f32 %v11621_v38, %v12337_v8  ;;  %v2100_v39 = vsub.f32 %v11673_v50, %v12337_v8  ;;  %v15954_v48 = vld [vmem:[#allocation88_spill] sm:$0xff] }
 0x243   :  { %v1912_v16 = vsub.f32 %v15954_v48, %v12119_v34  ;;  %v2204_v38 = vmul.f32 1.442695, %v1911_v4  ;;  %v1943_v50 = vsub.f32 %v15955_v25, %v12086_v14  ;;  %v2266_v48 = vmul.f32 1.442695, %v1942_v9  ;;  %v15964_v25 = vld [vmem:[#allocation68_spill] sm:$0xff] }
 0x244   :  { %v2580_v55 = vmul.f32 1.442695, %v2099_v3  ;;  %v2584_v46 = vmul.f32 1.442695, %v2101_v41  ;;  %v2578_v54 = vmul.f32 1.442695, %v2098_v13  ;;  %v1944_v3 = vsub.f32 %v15958_v60, %v12086_v14  ;;  %v8472_v41 = vpop.eup %8471 }
 0x245   :  { %v2582_v42 = vmul.f32 1.442695, %v2100_v39  ;;  %v2206_v33 = vmul.f32 1.442695, %v1912_v16  ;;  %v2268_v4 = vmul.f32 1.442695, %v1943_v50  ;;  %v1882_v50 = vsub.f32 %v15964_v25, %v12037_v47 }
 0x246   :  { %8479 = vpow2.f32 %v2580_v55  ;;  %v15959_v13 = vld [vmem:[#allocation115_spill] sm:$0xff]  ;;  %v8474_v55 = vpop.eup %8473  ;;  %v2270_v57 = vmul.f32 1.442695, %v1944_v3  ;;  %v15966_v60 = vld [vmem:[#allocation70_spill] sm:$0xff]  ;;  %v15967_v9 = vld [vmem:[#allocation100_spill] sm:$0xff] }
 0x247   :  { %8481 = vpow2.f32 %v2584_v46  ;;  %v1975_v39 = vsub.f32 %v15959_v13, %v12253_v30  ;;  %v2272_v46 = vmul.f32 1.442695, %v1945_v61  ;;  %v15963_v16 = vld [vmem:[#allocation111_spill] sm:$0xff]  ;;  %v12375_v27 = vpop.eup %8475  ;;  %v1884_v13 = vsub.f32 %v15966_v60, %v12037_v47 }
 0x248   :  { %8483 = vpow2.f32 %v2578_v54  ;;  %v15961_v54 = vld [vmem:[#allocation123_spill] sm:$0xff] }
 0x249   :  { %8485 = vpow2.f32 %v2582_v42  ;;  %v1977_v58 = vsub.f32 %v15961_v54, %v12253_v30  ;;  %v1885_v42 = vsub.f32 %v15962_v24, %v12037_v47  ;;  %v2332_v20 = vmul.f32 1.442695, %v1975_v39  ;;  %v12383_v24 = vpop.eup %8477  ;;  %v12404_v60 = vld [vmem:[%s15109_s3 + $0x500] sm:$0xff] }
 0x24a   :  { %8487 = vpow2.f32 %v2204_v38  ;;  %v1974_v38 = vsub.f32 %v15963_v16, %v12253_v30  ;;  %v1915_v54 = vsub.f32 %v15967_v9, %v12119_v34  ;;  %v12409_v9 = vld [vmem:[%s15109_s3 + $0x508] sm:$0xff] }
 0x24b   :  { %8489 = vpow2.f32 %v2208_v43  ;;  %v15965_v43 = vld [vmem:[#allocation119_spill] sm:$0xff]  ;;  %v2336_v16 = vmul.f32 1.442695, %v1977_v58  ;;  %v2152_v25 = vmul.f32 1.442695, %v1885_v42 }
 0x24c   :  { %8491 = vpow2.f32 %v2202_v31  ;;  %v1976_v61 = vsub.f32 %v15965_v43, %v12253_v30  ;;  %v2148_v31 = vmul.f32 1.442695, %v1883_v45  ;;  %v12390_v43 = vld [vmem:[%s15109_s3 + $0x400] sm:$0xff]  ;;  %v2330_v39 = vmul.f32 1.442695, %v1974_v38 }
 0x24d   :  { %8493 = vpow2.f32 %v2206_v33  ;;  %v15968_v33 = vld [vmem:[#allocation103_spill] sm:$0xff]  ;;  %v12397_v45 = vmul.f32 1.442695, %v1882_v50  ;;  %v12417_v51 = vmul.f32 1.442695, %v1915_v54 }
 0x24e   :  { %8495 = vpow2.f32 %v2268_v4  ;;  %v1917_v3 = vsub.f32 %v15968_v33, %v12119_v34  ;;  %v12395_v4 = vld [vmem:[%s15109_s3 + $0x408] sm:$0xff]  ;;  %v15970_v38 = vld [vmem:[#allocation143_spill] sm:$0xff]  ;;  %v12413_v33 = vmul.f32 1.442695, %v1884_v13  ;;  %v2789_v13 = vld [vmem:[%s15109_s3 + $0x498] sm:$0xff] }
 0x24f   :  { %8497 = vpow2.f32 %v2272_v46  ;;  %v15969_v46 = vld [vmem:[#allocation96_spill] sm:$0xff]  ;;  %v2007_v50 = vsub.f32 %v15970_v38, %v12299_v52 }
 0x250   :  { %v8480_v12 = vpop.eup %8479  ;;  %8499 = vpow2.f32 %v2266_v48  ;;  %v2334_v48 = vmul.f32 1.442695, %v1976_v61  ;;  %v2788_v61 = vld [vmem:[%s15109_s3 + $0x490] sm:$0xff]  ;;  %v12443_v18 = vmul.f32 1.442695, %v1917_v3 }
 0x251   :  { %v8482_v42 = vpop.eup %8481  ;;  %3253 = vmatprep.mubr.f32.mxu0 %v8480_v12  ;;  %8501 = vpow2.f32 %v2270_v57  ;;  %v15971_v12 = vld [vmem:[#allocation151_spill] sm:$0xff]  ;;  %v7967_v57 = vpack.c.bf16 %v12395_v4, %v12390_v43  ;;  %v7999_v43 = vpack.c.bf16 %v12409_v9, %v12404_v60  ;;  %v2820_v4 = vld [vmem:[%s15109_s3 + $0x590] sm:$0xff]  ;;  %v2396_v60 = vmul.f32 1.442695, %v2007_v50  ;;  %v15978_v50 = vld [vmem:[#allocation180_spill] sm:$0xff] }
 0x252   :  { %v8484_v58 = vpop.eup %8483  ;;  %3358 = vmatprep.mubr.f32.mxu1 %v8482_v42  ;;  %8503 = vpow2.f32 %v2332_v20  ;;  %v2009_v49 = vsub.f32 %v15971_v12, %v12299_v52  ;;  %v15973_v20 = vld [vmem:[#allocation139_spill] sm:$0xff]  ;;  %v15974_v42 = vld [vmem:[#allocation37_spill] sm:$0xff]  ;;  %v2041_v23 = vsub.f32 %v15978_v50, %v12309_v36 }
 0x253   :  { %v8486_v62 = vpop.eup %8485  ;;  %3254 = vmatmul.mubr.f32.gmra.mrb[14].mxu0 %v8484_v58  ;;  %8505 = vpow2.f32 %v2336_v16  ;;  %v2006_v54 = vsub.f32 %v15973_v20, %v12299_v52  ;;  %v2821_v16 = vld [vmem:[%s15109_s3 + $0x598] sm:$0xff]  ;;  %v15975_v58 = vld [vmem:[#allocation147_spill] sm:$0xff]  ;;  %v15977_v3 = vld [vmem:[#allocation41_spill] sm:$0xff] }
 0x254   :  { %v8488_v12 = vpop.eup %8487  ;;  %3359 = vmatmul.mubr.f32.gmra.mrb[14].mxu1 %v8486_v62  ;;  %3428 = vmatprep.mubr.f32.mxu0 %v8472_v41  ;;  %8507 = vpow2.f32 %v2330_v39  ;;  %v2008_v20 = vsub.f32 %v15975_v58, %v12299_v52  ;;  %v12448_v62 = vld [vmem:[%s15109_s3 + $0x410] sm:$0xff]  ;;  %v12453_v41 = vld [vmem:[%s15109_s3 + $0x418] sm:$0xff]  ;;  %v15976_v39 = vld [vmem:[#allocation172_spill] sm:$0xff]  ;;  %v8001_v58 = vpack.c.bf16 %v2821_v16, %v2820_v4 }
 0x255   :  { %v8490_v38 = vpop.eup %8489  ;;  %3533 = vmatprep.mubr.f32.mxu1 %v8474_v55  ;;  %8509 = vpow2.f32 %v2334_v48  ;;  %v2039_v9 = vsub.f32 %v15976_v39, %v12309_v36  ;;  %v7969_v55 = vpack.c.bf16 %v2789_v13, %v2788_v61  ;;  %v2400_v48 = vmul.f32 1.442695, %v2009_v49  ;;  %v2790_v61 = vld [vmem:[%s15109_s3 + $0x4a0] sm:$0xff]  ;;  %v2791_v13 = vld [vmem:[%s15109_s3 + $0x4a8] sm:$0xff] }
 0x256   :  { %v8492_v26 = vpop.eup %8491  ;;  %8511 = vpow2.f32 %v2148_v31  ;;  %v2394_v44 = vmul.f32 1.442695, %v2006_v54  ;;  %v2038_v49 = vsub.f32 %v15979_v11, %v12309_v36  ;;  %v2822_v31 = vld [vmem:[%s15109_s3 + $0x5a0] sm:$0xff]  ;;  %v2823_v4 = vld [vmem:[%s15109_s3 + $0x5a8] sm:$0xff]  ;;  %v2398_v54 = vmul.f32 1.442695, %v2008_v20 }
 0x257   :  { %v8494_v39 = vpop.eup %8493  ;;  %3429 = vmatmul.mubr.f32.vlgmr.msra.gmra.mrb[16].mxu0 %v12375_v27  ;;  %8513 = vpow2.f32 %v2152_v25  ;;  %v7971_v27 = vpack.c.bf16 %v12453_v41, %v12448_v62  ;;  %v15980_v16 = vld [vmem:[#allocation176_spill] sm:$0xff]  ;;  %v2460_v62 = vmul.f32 1.442695, %v2039_v9  ;;  %v2464_v41 = vmul.f32 1.442695, %v2041_v23  ;;  %v2792_v9 = vld [vmem:[%s15109_s3 + $0x4b0] sm:$0xff] }
 0x258   :  { %v8496_v29 = vpop.eup %8495  ;;  %3534 = vmatmul.mubr.f32.vlgmr.msra.gmra.mrb[16].mxu1 %v12383_v24  ;;  %3433 = vmatprep.mubr.f32.mxu0 %v8488_v12  ;;  %v2040_v11 = vsub.f32 %v15980_v16, %v12309_v36  ;;  %8515 = vpow2.f32 %v12397_v45  ;;  %v8003_v24 = vpack.c.bf16 %v12467_v21, %v12462_v63  ;;  %v12497_v12 = vld [vmem:[%s15109_s3 + $0x420] sm:$0xff]  ;;  %v12502_v20 = vld [vmem:[%s15109_s3 + $0x428] sm:$0xff]  ;;  %v2071_v45 = vsub.f32 %v11324_v7, %v12319_v15 }
 0x259   :  { %v8498_v25 = vpop.eup %8497  ;;  %3538 = vmatprep.mubr.f32.mxu1 %v8490_v38  ;;  %7968 = vmatpush3.bf16.msra.mxu0 %v7967_v57  ;;  %8517 = vpow2.f32 %v2396_v60  ;;  %v7973_v57 = vpack.c.bf16 %v2791_v13, %v2790_v61  ;;  %v12509_v21 = vld [vmem:[%s15109_s3 + $0x520] sm:$0xff]  ;;  %v12514_v63 = vld [vmem:[%s15109_s3 + $0x528] sm:$0xff]  ;;  %v2073_v60 = vsub.f32 %v11367_v40, %v12319_v15  ;;  %v2458_v50 = vmul.f32 1.442695, %v2038_v49  ;;  %v15982_v13 = vld [vmem:[#allocation202_spill] sm:$0xff] }
 0x25a   :  { %v8500_v38 = vpop.eup %8499  ;;  %8000 = vmatpush3.bf16.msra.mxu1 %v7999_v43  ;;  %7970 = vmatprep.subr.bf16.mxu0 %v7969_v55  ;;  %8519 = vpow2.f32 %v2400_v48  ;;  %v8005_v43 = vpack.c.bf16 %v2823_v4, %v2822_v31  ;;  %v2793_v55 = vld [vmem:[%s15109_s3 + $0x4b8] sm:$0xff]  ;;  %v15981_v48 = vld [vmem:[#allocation195_spill] sm:$0xff]  ;;  %v7975_v40 = vpack.c.bf16 %v12502_v20, %v12497_v12  ;;  %v2072_v49 = vsub.f32 %v15982_v13, %v12319_v15 }
 0x25b   :  { %v8502_v7 = vpop.eup %8501  ;;  %3434 = vmatmul.mubr.f32.gmra.mrb[18].mxu0 %v8492_v26  ;;  %8002 = vmatprep.subr.bf16.mxu1 %v8001_v58  ;;  %8521 = vpow2.f32 %v2394_v44  ;;  %v2070_v23 = vsub.f32 %v15981_v48, %v12319_v15  ;;  %v2824_v26 = vld [vmem:[%s15109_s3 + $0x5b0] sm:$0xff]  ;;  %v2825_v58 = vld [vmem:[%s15109_s3 + $0x5b8] sm:$0xff]  ;;  %v2462_v44 = vmul.f32 1.442695, %v2040_v11  ;;  %v2103_v4 = vsub.f32 %v11750_v35, %v12337_v8 }
 0x25c   :  { %v8504_v61 = vpop.eup %8503  ;;  %3539 = vmatmul.mubr.f32.gmra.mrb[18].mxu1 %v8494_v39  ;;  %3438 = vmatprep.mubr.f32.mxu0 %v8496_v29  ;;  %8523 = vpow2.f32 %v2398_v54  ;;  %v8007_v29 = vpack.c.bf16 %v12514_v63, %v12509_v21  ;;  %v2524_v39 = vmul.f32 1.442695, %v2071_v45  ;;  %v7977_v12 = vpack.c.bf16 %v2793_v55, %v2792_v9  ;;  %v12543_v54 = vld [vmem:[%s15109_s3 + $0x430] sm:$0xff]  ;;  %v2794_v45 = vld [vmem:[%s15109_s3 + $0x4c0] sm:$0xff] }
 0x25d   :  { %v8506_v31 = vpop.eup %8505  ;;  %3543 = vmatprep.mubr.f32.mxu1 %v8498_v25  ;;  %7972 = vmatpush3.bf16.msra.mxu0 %v7971_v27  ;;  %8525 = vpow2.f32 %v2460_v62  ;;  %v2777_v27 = vld [vmem:[%s15109_s3 + $0x438] sm:$0xff]  ;;  %v12551_v11 = vld [vmem:[%s15109_s3 + $0x530] sm:$0xff]  ;;  %v2528_v35 = vmul.f32 1.442695, %v2073_v60  ;;  %v2105_v25 = vsub.f32 %v11794_v53, %v12337_v8  ;;  %v8009_v20 = vpack.c.bf16 %v2825_v58, %v2824_v26  ;;  %v15983_v53 = vld [vmem:[#allocation36_spill] sm:$0xff] }
 0x25e   :  { %v8508_v16 = vpop.eup %8507  ;;  %8004 = vmatpush3.bf16.msra.mxu1 %v8003_v24  ;;  %7974 = vmatprep.subr.bf16.mxu0 %v7973_v57  ;;  %8527 = vpow2.f32 %v2464_v41  ;;  %v2809_v62 = vld [vmem:[%s15109_s3 + $0x538] sm:$0xff]  ;;  %v2795_v57 = vld [vmem:[%s15109_s3 + $0x4c8] sm:$0xff]  ;;  %v2522_v21 = vmul.f32 1.442695, %v2070_v23  ;;  %v1946_v63 = vsub.f32 %v15983_v53, %v12086_v14  ;;  %v2826_v41 = vld [vmem:[%s15109_s3 + $0x5c0] sm:$0xff]  ;;  %v2102_v9 = vsub.f32 %v11709_v2, %v12337_v8 }
 0x25f   :  { %v8510_v24 = vpop.eup %8509  ;;  %3439 = vmatmul.mubr.f32.gmra.mrb[20].mxu0 %v8500_v38  ;;  %8006 = vmatprep.subr.bf16.mxu1 %v8005_v43  ;;  %8529 = vpow2.f32 %v2458_v50  ;;  %v2827_v60 = vld [vmem:[%s15109_s3 + $0x5c8] sm:$0xff]  ;;  %v2526_v43 = vmul.f32 1.442695, %v2072_v49  ;;  %v15984_v55 = vsub.f32 %v15969_v46, %v12119_v34  ;;  %v7979_v48 = vpack.c.bf16 %v2777_v27, %v12543_v54  ;;  %v2778_v58 = vld [vmem:[%s15109_s3 + $0x440] sm:$0xff] }
 0x260   :  { %v12566_v38 = vpop.eup %8511  ;;  %3544 = vmatmul.mubr.f32.gmra.mrb[20].mxu1 %v8502_v7  ;;  %3443 = vmatprep.mubr.f32.mxu0 %v8504_v61  ;;  %8531 = vpow2.f32 %v2462_v44  ;;  %v2588_v23 = vmul.f32 1.442695, %v2103_v4  ;;  %v2104_v61 = vsub.f32 %v11753_v28, %v12337_v8  ;;  %v8011_v2 = vpack.c.bf16 %v2809_v62, %v12551_v11  ;;  %v12598_v44 = vld [vmem:[%s15109_s3 + $0x540] sm:$0xff]  ;;  %v2828_v11 = vld [vmem:[%s15109_s3 + $0x5d0] sm:$0xff]  ;;  %v15988_v62 = vld [vmem:[#allocation130_spill] sm:$0xff] }
 0x261   :  { %v12579_v50 = vmul.f32 1.442695, %v15984_v55  ;;  %v12581_v7 = vpop.eup %8513  ;;  %3548 = vmatprep.mubr.f32.mxu1 %v8506_v31  ;;  %7976 = vmatpush3.bf16.msra.mxu0 %v7975_v40  ;;  %8533 = vpow2.f32 %v2524_v39  ;;  %v7981_v46 = vpack.c.bf16 %v2795_v57, %v2794_v45  ;;  %v2779_v40 = vld [vmem:[%s15109_s3 + $0x448] sm:$0xff]  ;;  %v2592_v28 = vmul.f32 1.442695, %v2105_v25  ;;  %v2797_v39 = vld [vmem:[%s15109_s3 + $0x4d8] sm:$0xff] }
 0x262   :  { %v12586_v26 = vpop.eup %8515  ;;  %8008 = vmatpush3.bf16.msra.mxu1 %v8007_v29  ;;  %7978 = vmatprep.subr.bf16.mxu0 %v7977_v12  ;;  %8535 = vpow2.f32 %v2528_v35  ;;  %v8013_v49 = vpack.c.bf16 %v2827_v60, %v2826_v41  ;;  %v2811_v31 = vld [vmem:[%s15109_s3 + $0x548] sm:$0xff]  ;;  %v2796_v29 = vld [vmem:[%s15109_s3 + $0x4d0] sm:$0xff]  ;;  %v15985_v4 = vsub.f32 %v15972_v19, %v12119_v34  ;;  %v2829_v35 = vld [vmem:[%s15109_s3 + $0x5d8] sm:$0xff]  ;;  %v2586_v25 = vmul.f32 1.442695, %v2102_v9 }
 0x263   :  { %v8518_v13 = vpop.eup %8517  ;;  %3444 = vmatmul.mubr.f32.gmra.mrb[22].mxu0 %v8508_v16  ;;  %8010 = vmatprep.subr.bf16.mxu1 %v8009_v20  ;;  %8537 = vpow2.f32 %v2522_v21  ;;  %v15986_v16 = vld [vmem:[#allocation40_spill] sm:$0xff]  ;;  %v15987_v19 = vsub.f32 %v15974_v42, %v12086_v14  ;;  %v1979_v45 = vsub.f32 %v15988_v62, %v12253_v30  ;;  %v7983_v57 = vpack.c.bf16 %v2779_v40, %v2778_v58  ;;  %v2780_v55 = vld [vmem:[%s15109_s3 + $0x450] sm:$0xff]  ;;  %v2813_v58 = vld [vmem:[%s15109_s3 + $0x558] sm:$0xff] }
 0x264   :  { %v12612_v12 = vmul.f32 1.442695, %v15985_v4  ;;  %v1948_v54 = vsub.f32 %v15986_v16, %v12086_v14  ;;  %v8520_v27 = vpop.eup %8519  ;;  %3549 = vmatmul.mubr.f32.gmra.mrb[22].mxu1 %v8510_v24  ;;  %3448 = vmatprep.mubr.f32.mxu0 %v8518_v13  ;;  %8539 = vpow2.f32 %v2526_v43  ;;  %v2590_v21 = vmul.f32 1.442695, %v2104_v61  ;;  %v2798_v40 = vld [vmem:[%s15109_s3 + $0x4e0] sm:$0xff] }
 0x265   :  { %v12625_v20 = vmul.f32 1.442695, %v15987_v19  ;;  %v8522_v24 = vpop.eup %8521  ;;  %3553 = vmatprep.mubr.f32.mxu1 %v8520_v27  ;;  %7980 = vmatpush3.bf16.msra.mxu0 %v7979_v48  ;;  %8541 = vpow2.f32 %v2588_v23  ;;  %v15989_v41 = vsub.f32 %v15977_v3, %v12086_v14  ;;  %v8015_v42 = vpack.c.bf16 %v2811_v31, %v12598_v44  ;;  %v2781_v48 = vld [vmem:[%s15109_s3 + $0x458] sm:$0xff]  ;;  %v12644_v3 = vld [vmem:[%s15109_s3 + $0x550] sm:$0xff]  ;;  %v2799_v44 = vld [vmem:[%s15109_s3 + $0x4e8] sm:$0xff] }
 0x266   :  { %v8524_v43 = vpop.eup %8523  ;;  %8012 = vmatpush3.bf16.msra.mxu1 %v8011_v2  ;;  %7982 = vmatprep.subr.bf16.mxu0 %v7981_v46  ;;  %v7985_v9 = vpack.c.bf16 %v2797_v39, %v2796_v29  ;;  %8543 = vpow2.f32 %v2592_v28  ;;  %v15990_v23 = vld [vmem:[#allocation25_spill] sm:$0xff]  ;;  %v8017_v46 = vpack.c.bf16 %v2829_v35, %v2828_v11  ;;  %v12661_v28 = vmul.f32 1.442695, %v1946_v63  ;;  %v15991_v13 = vld [vmem:[#allocation127_spill] sm:$0xff]  ;;  %v2831_v39 = vld [vmem:[%s15109_s3 + $0x5e8] sm:$0xff] }
 0x267   :  { %v12632_v60 = vmul.f32 1.442695, %v15989_v41  ;;  %v1981_v61 = vsub.f32 %v15990_v23, %v12253_v30  ;;  %v8526_v2 = vpop.eup %8525  ;;  %3449 = vmatmul.mubr.f32.gmra.mrb[24].mxu0 %v8522_v24  ;;  %8014 = vmatprep.subr.bf16.mxu1 %v8013_v49  ;;  %8545 = vpow2.f32 %v12413_v33  ;;  %v1978_v49 = vsub.f32 %v15991_v13, %v12253_v30  ;;  %v2830_v29 = vld [vmem:[%s15109_s3 + $0x5e0] sm:$0xff]  ;;  %v15993_v11 = vld [vmem:[#allocation76_spill] sm:$0xff] }
 0x268   :  { %v8528_v31 = vpop.eup %8527  ;;  %3554 = vmatmul.mubr.f32.gmra.mrb[24].mxu1 %v8524_v43  ;;  %3453 = vmatprep.mubr.f32.mxu0 %v8526_v2  ;;  %8547 = vpow2.f32 %v2586_v25  ;;  %v12671_v33 = vmul.f32 1.442695, %v1948_v54  ;;  %v12673_v53 = vmul.f32 1.442695, %v1979_v45  ;;  %v15992_v63 = vld [vmem:[#allocation131_spill] sm:$0xff]  ;;  %v7987_v27 = vpack.c.bf16 %v2781_v48, %v2780_v55  ;;  %v2800_v55 = vld [vmem:[%s15109_s3 + $0x4f0] sm:$0xff] }
 0x269   :  { %v1980_v4 = vsub.f32 %v15992_v63, %v12253_v30  ;;  %v8530_v16 = vpop.eup %8529  ;;  %3558 = vmatprep.mubr.f32.mxu1 %v8528_v31  ;;  %7984 = vmatpush3.bf16.msra.mxu0 %v7983_v57  ;;  %8549 = vpow2.f32 %v2590_v21  ;;  %v1887_v35 = vsub.f32 %v15993_v11, %v12037_v47  ;;  %v15994_v19 = vld [vmem:[#allocation79_spill] sm:$0xff]  ;;  %v8019_v54 = vpack.c.bf16 %v2813_v58, %v12644_v3  ;;  %v2783_v57 = vld [vmem:[%s15109_s3 + $0x468] sm:$0xff]  ;;  %v2801_v48 = vld [vmem:[%s15109_s3 + $0x4f8] sm:$0xff] }
 0x26a   :  { %v1889_v62 = vsub.f32 %v15994_v19, %v12037_v47  ;;  %v8532_v24 = vpop.eup %8531  ;;  %8016 = vmatpush3.bf16.msra.mxu1 %v8015_v42  ;;  %7986 = vmatprep.subr.bf16.mxu0 %v7985_v9  ;;  %v7989_v25 = vpack.c.bf16 %v2799_v44, %v2798_v40  ;;  %v2782_v45 = vld [vmem:[%s15109_s3 + $0x460] sm:$0xff]  ;;  %8551 = vpow2.f32 %v12417_v51  ;;  %v12694_v41 = vmul.f32 1.442695, %v1981_v61  ;;  %v2815_v9 = vld [vmem:[%s15109_s3 + $0x568] sm:$0xff]  ;;  %v15995_v3 = vld [vmem:[#allocation74_spill] sm:$0xff] }
 0x26b   :  { %v12691_v21 = vld [vmem:[%s15109_s3 + $0x560] sm:$0xff]  ;;  %v8534_v43 = vpop.eup %8533  ;;  %3454 = vmatmul.mubr.f32.gmra.mrb[26].mxu0 %v8530_v16  ;;  %8018 = vmatprep.subr.bf16.mxu1 %v8017_v46  ;;  %v8021_v42 = vpack.c.bf16 %v2831_v39, %v2830_v29  ;;  %8553 = vpow2.f32 %v12443_v18  ;;  %v12706_v51 = vmul.f32 1.442695, %v1978_v49  ;;  %v1886_v23 = vsub.f32 %v15995_v3, %v12037_v47  ;;  %v2832_v2 = vld [vmem:[%s15109_s3 + $0x5f0] sm:$0xff]  ;;  %v2833_v46 = vld [vmem:[%s15109_s3 + $0x5f8] sm:$0xff] }
 0x26c   :  { %v8536_v61 = vpop.eup %8535  ;;  %3559 = vmatmul.mubr.f32.gmra.mrb[26].mxu1 %v8532_v24  ;;  %3458 = vmatprep.mubr.f32.mxu0 %v8534_v43  ;;  %8555 = vpow2.f32 %v12579_v50  ;;  %v12717_v58 = vmul.f32 1.442695, %v1980_v4  ;;  %v15996_v18 = vld [vmem:[#allocation78_spill] sm:$0xff]  ;;  %v15997_v44 = vld [vmem:[#allocation24_spill] sm:$0xff]  ;;  %v7991_v31 = vpack.c.bf16 %v2783_v57, %v2782_v45  ;;  %v12723_v29 = vmul.f32 1.442695, %v1887_v35 }
 0x26d   :  { %v1888_v40 = vsub.f32 %v15996_v18, %v12037_v47  ;;  %v1919_v13 = vsub.f32 %v15997_v44, %v12119_v34  ;;  %v8538_v49 = vpop.eup %8537  ;;  %3563 = vmatprep.mubr.f32.mxu1 %v8536_v61  ;;  %7988 = vmatpush3.bf16.msra.mxu0 %v7987_v27  ;;  %v12725_v39 = vmul.f32 1.442695, %v1889_v62  ;;  %v15998_v63 = vld [vmem:[#allocation108_spill] sm:$0xff]  ;;  %v8023_v4 = vpack.c.bf16 %v2815_v9, %v12691_v21  ;;  %v2784_v19 = vld [vmem:[%s15109_s3 + $0x470] sm:$0xff]  ;;  %v2785_v27 = vld [vmem:[%s15109_s3 + $0x478] sm:$0xff] }
 0x26e   :  { %v1921_v16 = vsub.f32 %v15998_v63, %v12119_v34  ;;  %v8540_v50 = vpop.eup %8539  ;;  %8020 = vmatpush3.bf16.msra.mxu1 %v8019_v54  ;;  %7990 = vmatprep.subr.bf16.mxu0 %v7989_v25  ;;  %v7993_v11 = vpack.c.bf16 %v2801_v48, %v2800_v55  ;;  %v12739_v35 = vld [vmem:[%s15109_s3 + $0x570] sm:$0xff]  ;;  %8557 = vpow2.f32 %v12612_v12  ;;  %v15999_v62 = vld [vmem:[#allocation104_spill] sm:$0xff]  ;;  %v8025_v25 = vpack.c.bf16 %v2833_v46, %v2832_v2  ;;  %v2817_v45 = vld [vmem:[%s15109_s3 + $0x578] sm:$0xff] }
 0x26f   :  { %v1918_v24 = vsub.f32 %v15999_v62, %v12119_v34  ;;  %v8542_v54 = vpop.eup %8541  ;;  %3459 = vmatmul.mubr.f32.gmra.mrb[28].mxu0 %v8538_v49  ;;  %8022 = vmatprep.subr.bf16.mxu1 %v8021_v42  ;;  %v2850_v57 = vld [vmem:[%s15109_s3 + $0x680] sm:$0xff]  ;;  %v2851_v21 = vld [vmem:[%s15109_s3 + $0x688] sm:$0xff]  ;;  %8559 = vpow2.f32 %v12625_v20  ;;  %v12756_v9 = vmul.f32 1.442695, %v1886_v23  ;;  %v16001_v20 = vld [vmem:[#allocation162_spill] sm:$0xff]  ;;  %v7995_v46 = vpack.c.bf16 %v2785_v27, %v2784_v19 }
 0x270   :  { %v16000_v12 = vld [vmem:[#allocation160_spill] sm:$0xff]  ;;  %v8544_v42 = vpop.eup %8543  ;;  %3564 = vmatmul.mubr.f32.gmra.mrb[28].mxu1 %v8540_v50  ;;  %3463 = vmatprep.mubr.f32.mxu0 %v8542_v54  ;;  %v2882_v55 = vld [vmem:[%s15109_s3 + $0x780] sm:$0xff]  ;;  %8561 = vpow2.f32 %v12632_v60  ;;  %v2013_v3 = vsub.f32 %v16001_v20, %v12299_v52  ;;  %v12767_v61 = vmul.f32 1.442695, %v1888_v40  ;;  %v12769_v23 = vmul.f32 1.442695, %v1919_v13 }
 0x271   :  { %v2011_v43 = vsub.f32 %v16000_v12, %v12299_v52  ;;  %v2883_v48 = vld [vmem:[%s15109_s3 + $0x788] sm:$0xff]  ;;  %v12771_v2 = vpop.eup %8545  ;;  %3568 = vmatprep.mubr.f32.mxu1 %v8544_v42  ;;  %7992 = vmatpush3.bf16.msra.mxu0 %v7991_v31  ;;  %v16002_v18 = vld [vmem:[#allocation155_spill] sm:$0xff]  ;;  %v16003_v49 = vld [vmem:[#allocation161_spill] sm:$0xff]  ;;  %v12777_v50 = vmul.f32 1.442695, %v1921_v16  ;;  %v8027_v40 = vpack.c.bf16 %v2817_v45, %v12739_v35  ;;  %v8029_v13 = vpack.c.bf16 %v2851_v21, %v2850_v57 }
 0x272   :  { %v2010_v44 = vsub.f32 %v16002_v18, %v12299_v52  ;;  %v2012_v63 = vsub.f32 %v16003_v49, %v12299_v52  ;;  %v8548_v60 = vpop.eup %8547  ;;  %8024 = vmatpush3.bf16.msra.mxu1 %v8023_v4  ;;  %7994 = vmatprep.subr.bf16.mxu0 %v7993_v11  ;;  %v12780_v62 = vmul.f32 1.442695, %v1918_v24  ;;  %v16004_v54 = vld [vmem:[#allocation107_spill] sm:$0xff]  ;;  %v8061_v27 = vpack.c.bf16 %v2883_v48, %v2882_v55  ;;  %v2835_v4 = vld [vmem:[%s15109_s3 + $0x608] sm:$0xff]  ;;  %v2852_v45 = vld [vmem:[%s15109_s3 + $0x690] sm:$0xff] }
 0x273   :  { %v1920_v31 = vsub.f32 %v16004_v54, %v12119_v34  ;;  %v8550_v19 = vpop.eup %8549  ;;  %3464 = vmatmul.mubr.f32.gmra.mrb[30].mxu0 %v8548_v60  ;;  %8026 = vmatprep.subr.bf16.mxu1 %v8025_v25  ;;  %v2834_v16 = vld [vmem:[%s15109_s3 + $0x600] sm:$0xff]  ;;  %8563 = vpow2.f32 %v12661_v28  ;;  %v2404_v35 = vmul.f32 1.442695, %v2011_v43  ;;  %v2867_v25 = vld [vmem:[%s15109_s3 + $0x708] sm:$0xff]  ;;  %v2853_v57 = vld [vmem:[%s15109_s3 + $0x698] sm:$0xff] }
 0x274   :  { %v2866_v11 = vld [vmem:[%s15109_s3 + $0x700] sm:$0xff]  ;;  %v8552_v24 = vpop.eup %8551  ;;  %3569 = vmatmul.mubr.f32.gmra.mrb[30].mxu1 %v8550_v19  ;;  %3638 = vmatprep.mubr.f32.mxu0 %v12566_v38  ;;  %8565 = vpow2.f32 %v12671_v33  ;;  %v2408_v28 = vmul.f32 1.442695, %v2013_v3  ;;  %v16005_v21 = vld [vmem:[#allocation44_spill] sm:$0xff]  ;;  %v2884_v38 = vld [vmem:[%s15109_s3 + $0x790] sm:$0xff]  ;;  %v8031_v20 = vpack.c.bf16 %v2835_v4, %v2834_v16  ;;  %v8033_v49 = vpack.c.bf16 %v2853_v57, %v2852_v45 }
 0x275   :  { %v1951_v12 = vsub.f32 %v16005_v21, %v12086_v14  ;;  %v8554_v43 = vpop.eup %8553  ;;  %7996 = vmatpush3.bf16.msra.mxu0 %v7995_v46  ;;  %3743 = vmatprep.mubr.f32.mxu1 %v12581_v7  ;;  %v2885_v42 = vld [vmem:[%s15109_s3 + $0x798] sm:$0xff]  ;;  %8567 = vpow2.f32 %v12673_v53  ;;  %v2402_v55 = vmul.f32 1.442695, %v2010_v44  ;;  %v12815_v33 = vmul.f32 1.442695, %v2012_v63  ;;  %v16006_v7 = vld [vmem:[#allocation188_spill] sm:$0xff] }
 0x276   :  { %v8556_v48 = vpop.eup %8555  ;;  %8028 = vmatpush3.bf16.msra.mxu1 %v8027_v40  ;;  %8030 = vmatprep.subr.bf16.mxu0 %v8029_v13  ;;  %8569 = vpow2.f32 %v12694_v41  ;;  %v2043_v3 = vsub.f32 %v16006_v7, %v12309_v36  ;;  %v12820_v46 = vmul.f32 1.442695, %v1920_v31  ;;  %v8063_v18 = vpack.c.bf16 %v2867_v25, %v2866_v11  ;;  %v2836_v53 = vld [vmem:[%s15109_s3 + $0x610] sm:$0xff]  ;;  %v2837_v44 = vld [vmem:[%s15109_s3 + $0x618] sm:$0xff]  ;;  %v2854_v31 = vld [vmem:[%s15109_s3 + $0x6a0] sm:$0xff] }
 0x277   :  { %8062 = vmatprep.subr.bf16.mxu1 %v8061_v27  ;;  %v12831_v41 = vld [vmem:[%s15109_s3 + $0x710] sm:$0xff]  ;;  %8571 = vpow2.f32 %v12706_v51  ;;  %v16007_v63 = vld [vmem:[#allocation190_spill] sm:$0xff]  ;;  %v8065_v13 = vpack.c.bf16 %v2885_v42, %v2884_v38  ;;  %v2855_v19 = vld [vmem:[%s15109_s3 + $0x6a8] sm:$0xff]  ;;  %v12849_v16 = vmul.f32 1.442695, %v1951_v12 }
 0x278   :  { %v2045_v60 = vsub.f32 %v16007_v63, %v12309_v36  ;;  %v8558_v40 = vpop.eup %8557  ;;  %3639 = vmatmul.mubr.f32.vlgmr.msra.gmra.mrb[32].mxu0 %v12586_v26  ;;  %v2869_v54 = vld [vmem:[%s15109_s3 + $0x718] sm:$0xff]  ;;  %8573 = vpow2.f32 %v12717_v58  ;;  %v16008_v51 = vld [vmem:[#allocation184_spill] sm:$0xff]  ;;  %v2886_v4 = vld [vmem:[%s15109_s3 + $0x7a0] sm:$0xff]  ;;  %v2468_v42 = vmul.f32 1.442695, %v2043_v3 }
 0x279   :  { %v2042_v27 = vsub.f32 %v16008_v51, %v12309_v36  ;;  %v8560_v26 = vpop.eup %8559  ;;  %3744 = vmatmul.mubr.f32.vlgmr.msra.gmra.mrb[32].mxu1 %v12771_v2  ;;  %3643 = vmatprep.mubr.f32.mxu0 %v8552_v24  ;;  %v2887_v11 = vld [vmem:[%s15109_s3 + $0x7a8] sm:$0xff]  ;;  %8575 = vpow2.f32 %v2404_v35  ;;  %v16009_v58 = vld [vmem:[#allocation189_spill] sm:$0xff]  ;;  %v16010_v45 = vld [vmem:[#allocation47_spill] sm:$0xff]  ;;  %v8035_v24 = vpack.c.bf16 %v2837_v44, %v2836_v53 }
 0x27a   :  { %v2044_v25 = vsub.f32 %v16009_v58, %v12309_v36  ;;  %v1953_v57 = vsub.f32 %v16010_v45, %v12086_v14  ;;  %v16011_v21 = vld [vmem:[#allocation43_spill] sm:$0xff]  ;;  %v8562_v2 = vpop.eup %8561  ;;  %3748 = vmatprep.mubr.f32.mxu1 %v8554_v43  ;;  %8032 = vmatpush3.bf16.msra.mxu0 %v8031_v20  ;;  %v12872_v35 = vld [vmem:[%s15109_s3 + $0x628] sm:$0xff]  ;;  %8577 = vpow2.f32 %v2408_v28  ;;  %v8067_v43 = vpack.c.bf16 %v2869_v54, %v12831_v41  ;;  %v2857_v41 = vld [vmem:[%s15109_s3 + $0x6b8] sm:$0xff] }
 0x27b   :  { %v1950_v12 = vsub.f32 %v16011_v21, %v12086_v14  ;;  %v12867_v38 = vld [vmem:[%s15109_s3 + $0x620] sm:$0xff]  ;;  %8064 = vmatpush3.bf16.msra.mxu1 %v8063_v18  ;;  %8034 = vmatprep.subr.bf16.mxu0 %v8033_v49  ;;  %v8037_v20 = vpack.c.bf16 %v2855_v19, %v2854_v31  ;;  %v12885_v44 = vld [vmem:[%s15109_s3 + $0x728] sm:$0xff]  ;;  %v2472_v28 = vmul.f32 1.442695, %v2045_v60  ;;  %v8069_v18 = vpack.c.bf16 %v2887_v11, %v2886_v4  ;;  %v2856_v49 = vld [vmem:[%s15109_s3 + $0x6b0] sm:$0xff] }
 0x27c   :  { %v16012_v7 = vld [vmem:[#allocation207_spill] sm:$0xff]  ;;  %3644 = vmatmul.mubr.f32.gmra.mrb[34].mxu0 %v8556_v48  ;;  %8066 = vmatprep.subr.bf16.mxu1 %v8065_v13  ;;  %8579 = vpow2.f32 %v2402_v55  ;;  %v2466_v54 = vmul.f32 1.442695, %v2042_v27  ;;  %v16014_v31 = vld [vmem:[#allocation206_spill] sm:$0xff]  ;;  %v8039_v48 = vpack.c.bf16 %v12872_v35, %v12867_v38  ;;  %v2888_v13 = vld [vmem:[%s15109_s3 + $0x7b0] sm:$0xff]  ;;  %v2107_v38 = vsub.f32 %v11838_v22, %v12337_v8 }
 0x27d   :  { %v2075_v63 = vsub.f32 %v16012_v7, %v12319_v15  ;;  %v12880_v53 = vld [vmem:[%s15109_s3 + $0x720] sm:$0xff]  ;;  %v2074_v19 = vsub.f32 %v16014_v31, %v12319_v15  ;;  %v8564_v60 = vpop.eup %8563  ;;  %3749 = vmatmul.mubr.f32.gmra.mrb[34].mxu1 %v8558_v40  ;;  %3648 = vmatprep.mubr.f32.mxu0 %v8560_v26  ;;  %v2889_v4 = vld [vmem:[%s15109_s3 + $0x7b8] sm:$0xff]  ;;  %8581 = vpow2.f32 %v12815_v33  ;;  %v2470_v55 = vmul.f32 1.442695, %v2044_v25  ;;  %v16015_v27 = vld [vmem:[#allocation208_spill] sm:$0xff] }
 0x27e   :  { %v16013_v3 = vld [vmem:[#allocation11_spill] sm:$0xff]  ;;  %v2076_v11 = vsub.f32 %v16015_v27, %v12319_v15  ;;  %v8566_v58 = vpop.eup %8565  ;;  %3753 = vmatprep.mubr.f32.mxu1 %v8562_v2  ;;  %8036 = vmatpush3.bf16.msra.mxu0 %v8035_v24  ;;  %v8071_v40 = vpack.c.bf16 %v12885_v44, %v12880_v53  ;;  %8583 = vpow2.f32 %v2468_v42  ;;  %v8041_v7 = vpack.c.bf16 %v2857_v41, %v2856_v49  ;;  %v2840_v33 = vld [vmem:[%s15109_s3 + $0x630] sm:$0xff]  ;;  %v2841_v25 = vld [vmem:[%s15109_s3 + $0x638] sm:$0xff] }
 0x27f   :  { %v2077_v51 = vsub.f32 %v16013_v3, %v12319_v15  ;;  %v2532_v26 = vmul.f32 1.442695, %v2075_v63  ;;  %v8568_v35 = vpop.eup %8567  ;;  %8068 = vmatpush3.bf16.msra.mxu1 %v8067_v43  ;;  %8038 = vmatprep.subr.bf16.mxu0 %v8037_v20  ;;  %v12921_v2 = vld [vmem:[%s15109_s3 + $0x730] sm:$0xff]  ;;  %8585 = vpow2.f32 %v2472_v28  ;;  %v2109_v22 = vsub.f32 %v11885_v32, %v12337_v8  ;;  %v2873_v43 = vld [vmem:[%s15109_s3 + $0x738] sm:$0xff]  ;;  %v2858_v20 = vld [vmem:[%s15109_s3 + $0x6c0] sm:$0xff] }
 0x280   :  { %v8570_v42 = vpop.eup %8569  ;;  %3649 = vmatmul.mubr.f32.gmra.mrb[36].mxu0 %v8564_v60  ;;  %8070 = vmatprep.subr.bf16.mxu1 %v8069_v18  ;;  %v8073_v63 = vpack.c.bf16 %v2889_v4, %v2888_v13  ;;  %v2859_v53 = vld [vmem:[%s15109_s3 + $0x6c8] sm:$0xff]  ;;  %8587 = vpow2.f32 %v2466_v54  ;;  %v2530_v44 = vmul.f32 1.442695, %v2074_v19  ;;  %v16016_v32 = vld [vmem:[#allocation45_spill] sm:$0xff]  ;;  %v2534_v49 = vmul.f32 1.442695, %v2076_v11 }
 0x281   :  { %v2536_v24 = vmul.f32 1.442695, %v2077_v51  ;;  %v1952_v28 = vsub.f32 %v16016_v32, %v12086_v14  ;;  %v8572_v3 = vpop.eup %8571  ;;  %3754 = vmatmul.mubr.f32.gmra.mrb[36].mxu1 %v8566_v58  ;;  %3653 = vmatprep.mubr.f32.mxu0 %v8568_v35  ;;  %v2890_v51 = vld [vmem:[%s15109_s3 + $0x7c0] sm:$0xff]  ;;  %v2891_v18 = vld [vmem:[%s15109_s3 + $0x7c8] sm:$0xff]  ;;  %8589 = vpow2.f32 %v2470_v55  ;;  %v2106_v41 = vsub.f32 %v11797_v59, %v12337_v8  ;;  %v2860_v35 = vld [vmem:[%s15109_s3 + $0x6d0] sm:$0xff] }
 0x282   :  { %v16017_v54 = vld [vmem:[#allocation135_spill] sm:$0xff]  ;;  %v8574_v19 = vpop.eup %8573  ;;  %3758 = vmatprep.mubr.f32.mxu1 %v8570_v42  ;;  %8040 = vmatpush3.bf16.msra.mxu0 %v8039_v48  ;;  %v8043_v60 = vpack.c.bf16 %v2841_v25, %v2840_v33  ;;  %8591 = vpow2.f32 %v2532_v26  ;;  %v2596_v13 = vmul.f32 1.442695, %v2107_v38  ;;  %v2108_v4 = vsub.f32 %v11841_v5, %v12337_v8  ;;  %v2843_v48 = vld [vmem:[%s15109_s3 + $0x648] sm:$0xff]  ;;  %v16018_v33 = vld [vmem:[#allocation138_spill] sm:$0xff] }
 0x283   :  { %v1983_v31 = vsub.f32 %v16017_v54, %v12253_v30  ;;  %v8576_v27 = vpop.eup %8575  ;;  %8072 = vmatpush3.bf16.msra.mxu1 %v8071_v40  ;;  %8042 = vmatprep.subr.bf16.mxu0 %v8041_v7  ;;  %v8075_v55 = vpack.c.bf16 %v2873_v43, %v12921_v2  ;;  %v8045_v11 = vpack.c.bf16 %v2859_v53, %v2858_v20  ;;  %v2842_v59 = vld [vmem:[%s15109_s3 + $0x640] sm:$0xff]  ;;  %8593 = vpow2.f32 %v2536_v24  ;;  %v2875_v38 = vld [vmem:[%s15109_s3 + $0x748] sm:$0xff]  ;;  %v2861_v7 = vld [vmem:[%s15109_s3 + $0x6d8] sm:$0xff] }
 0x284   :  { %v12958_v58 = vld [vmem:[%s15109_s3 + $0x740] sm:$0xff]  ;;  %v2600_v5 = vmul.f32 1.442695, %v2109_v22  ;;  %v8578_v40 = vpop.eup %8577  ;;  %3654 = vmatmul.mubr.f32.gmra.mrb[38].mxu0 %v8572_v3  ;;  %8074 = vmatprep.subr.bf16.mxu1 %v8073_v63  ;;  %v8077_v26 = vpack.c.bf16 %v2891_v18, %v2890_v51  ;;  %8595 = vpow2.f32 %v2530_v44  ;;  %v1985_v25 = vsub.f32 %v16018_v33, %v12253_v30  ;;  %v16019_v2 = vld [vmem:[#allocation134_spill] sm:$0xff]  ;;  %v2892_v22 = vld [vmem:[%s15109_s3 + $0x7d0] sm:$0xff] }
 0x285   :  { %v1982_v24 = vsub.f32 %v16019_v2, %v12253_v30  ;;  %3759 = vmatmul.mubr.f32.gmra.mrb[38].mxu1 %v8574_v19  ;;  %3658 = vmatprep.mubr.f32.mxu0 %v8576_v27  ;;  %v2893_v42 = vld [vmem:[%s15109_s3 + $0x7d8] sm:$0xff]  ;;  %8597 = vpow2.f32 %v2534_v49  ;;  %v2594_v63 = vmul.f32 1.442695, %v2106_v41  ;;  %v12982_v43 = vmul.f32 1.442695, %v1953_v57  ;;  %v16020_v20 = vld [vmem:[#allocation137_spill] sm:$0xff] }
 0x286   :  { %v1984_v53 = vsub.f32 %v16020_v20, %v12253_v30  ;;  %v8580_v44 = vpop.eup %8579  ;;  %3763 = vmatprep.mubr.f32.mxu1 %v8578_v40  ;;  %8044 = vmatpush3.bf16.msra.mxu0 %v8043_v60  ;;  %v8047_v32 = vpack.c.bf16 %v2843_v48, %v2842_v59  ;;  %8599 = vpow2.f32 %v2596_v13  ;;  %v2598_v3 = vmul.f32 1.442695, %v2108_v4  ;;  %v2844_v49 = vld [vmem:[%s15109_s3 + $0x650] sm:$0xff]  ;;  %v2845_v41 = vld [vmem:[%s15109_s3 + $0x658] sm:$0xff]  ;;  %v2862_v13 = vld [vmem:[%s15109_s3 + $0x6e0] sm:$0xff] }
 0x287   :  { %v12989_v51 = vmul.f32 1.442695, %v1950_v12  ;;  %v8582_v18 = vpop.eup %8581  ;;  %8076 = vmatpush3.bf16.msra.mxu1 %v8075_v55  ;;  %8046 = vmatprep.subr.bf16.mxu0 %v8045_v11  ;;  %v8079_v45 = vpack.c.bf16 %v2875_v38, %v12958_v58  ;;  %v8049_v57 = vpack.c.bf16 %v2861_v7, %v2860_v35  ;;  %v13001_v21 = vld [vmem:[%s15109_s3 + $0x750] sm:$0xff]  ;;  %8601 = vpow2.f32 %v2600_v5  ;;  %v2877_v60 = vld [vmem:[%s15109_s3 + $0x758] sm:$0xff]  ;;  %v2863_v4 = vld [vmem:[%s15109_s3 + $0x6e8] sm:$0xff] }
 0x288   :  { %v13003_v12 = vmul.f32 1.442695, %v1952_v28  ;;  %v8584_v54 = vpop.eup %8583  ;;  %3659 = vmatmul.mubr.f32.gmra.mrb[40].mxu0 %v8580_v44  ;;  %8078 = vmatprep.subr.bf16.mxu1 %v8077_v26  ;;  %v8081_v19 = vpack.c.bf16 %v2893_v42, %v2892_v22  ;;  %8603 = vpow2.f32 %v12723_v29  ;;  %v13015_v28 = vmul.f32 1.442695, %v1983_v31  ;;  %v16021_v27 = vld [vmem:[#allocation165_spill] sm:$0xff]  ;;  %v2894_v59 = vld [vmem:[%s15109_s3 + $0x7e0] sm:$0xff] }
 0x289   :  { %v2015_v55 = vsub.f32 %v16021_v27, %v12299_v52  ;;  %v8586_v11 = vpop.eup %8585  ;;  %3764 = vmatmul.mubr.f32.gmra.mrb[40].mxu1 %v8582_v18  ;;  %3663 = vmatprep.mubr.f32.mxu0 %v8584_v54  ;;  %v2895_v48 = vld [vmem:[%s15109_s3 + $0x7e8] sm:$0xff]  ;;  %8605 = vpow2.f32 %v2594_v63  ;;  %v13025_v58 = vmul.f32 1.442695, %v1985_v25  ;;  %v16022_v29 = vld [vmem:[#allocation9_spill] sm:$0xff]  ;;  %v16023_v5 = vld [vmem:[#allocation26_spill] sm:$0xff]  ;;  %v8051_v38 = vpack.c.bf16 %v2845_v41, %v2844_v49 }
 0x28a   :  { %v2017_v31 = vsub.f32 %v16022_v29, %v12299_v52  ;;  %v2014_v40 = vsub.f32 %v16023_v5, %v12299_v52  ;;  %v8588_v26 = vpop.eup %8587  ;;  %3768 = vmatprep.mubr.f32.mxu1 %v8586_v11  ;;  %8048 = vmatpush3.bf16.msra.mxu0 %v8047_v32  ;;  %8607 = vpow2.f32 %v2598_v3  ;;  %v13031_v35 = vmul.f32 1.442695, %v1982_v24  ;;  %v16024_v7 = vld [vmem:[#allocation19_spill] sm:$0xff]  ;;  %v2847_v63 = vld [vmem:[%s15109_s3 + $0x668] sm:$0xff]  ;;  %v2864_v18 = vld [vmem:[%s15109_s3 + $0x6f0] sm:$0xff]  ;;  %v6817_v5 = vpop.f32.mrb[0].mxu1 }
 0x28b   :  { %v2016_v33 = vsub.f32 %v16024_v7, %v12299_v52  ;;  %v8590_v2 = vpop.eup %8589  ;;  %8080 = vmatpush3.bf16.msra.mxu1 %v8079_v45  ;;  %8050 = vmatprep.subr.bf16.mxu0 %v8049_v57  ;;  %v8083_v25 = vpack.c.bf16 %v2877_v60, %v13001_v21  ;;  %v8053_v22 = vpack.c.bf16 %v2863_v4, %v2862_v13  ;;  %v13039_v42 = vld [vmem:[%s15109_s3 + $0x660] sm:$0xff]  ;;  %8609 = vpow2.f32 %v12725_v39  ;;  %v2879_v3 = vld [vmem:[%s15109_s3 + $0x768] sm:$0xff]  ;;  %v2865_v45 = vld [vmem:[%s15109_s3 + $0x6f8] sm:$0xff] }
 0x28c   :  { %v13047_v24 = vld [vmem:[%s15109_s3 + $0x760] sm:$0xff]  ;;  %v13050_v20 = vmul.f32 1.442695, %v1984_v53  ;;  %v8592_v44 = vpop.eup %8591  ;;  %3664 = vmatmul.mubr.f32.gmra.mrb[42].mxu0 %v8588_v26  ;;  %8082 = vmatprep.subr.bf16.mxu1 %v8081_v19  ;;  %v8085_v32 = vpack.c.bf16 %v2895_v48, %v2894_v59  ;;  %v13061_v57 = vmul.f32 1.442695, %v2015_v55  ;;  %v2896_v53 = vld [vmem:[%s15109_s3 + $0x7f0] sm:$0xff]  ;;  %8611 = vpow2.f32 %v12756_v9 }
 0x28d   :  { %v8594_v39 = vpop.eup %8593  ;;  %3769 = vmatmul.mubr.f32.gmra.mrb[42].mxu1 %v8590_v2  ;;  %3668 = vmatprep.mubr.f32.mxu0 %v8592_v44  ;;  %v2897_v49 = vld [vmem:[%s15109_s3 + $0x7f8] sm:$0xff]  ;;  %v13070_v41 = vmul.f32 1.442695, %v2017_v31  ;;  %v13072_v21 = vmul.f32 1.442695, %v2014_v40  ;;  %v8055_v19 = vpack.c.bf16 %v2847_v63, %v13039_v42  ;;  %8613 = vpow2.f32 %v12767_v61  ;;  %v2848_v11 = vld [vmem:[%s15109_s3 + $0x670] sm:$0xff] }
 0x28e   :  { %v8596_v54 = vpop.eup %8595  ;;  %3773 = vmatprep.mubr.f32.mxu1 %v8594_v39  ;;  %8052 = vmatpush3.bf16.msra.mxu0 %v8051_v38  ;;  %v13076_v60 = vmul.f32 1.442695, %v2016_v33  ;;  %v16025_v13 = vld [vmem:[#allocation18_spill] sm:$0xff]  ;;  %v8087_v9 = vpack.c.bf16 %v2879_v3, %v13047_v24  ;;  %v8057_v55 = vpack.c.bf16 %v2865_v45, %v2864_v18  ;;  %v13090_v61 = vld [vmem:[%s15109_s3 + $0x770] sm:$0xff]  ;;  %8615 = vpow2.f32 %v12769_v23  ;;  %v6761_v31 = vpop.f32.mrb[0].mxu0  ;;  %v2914_v7 = vld [vmem:[%s15109_s3 + $0x880] sm:$0xff] }
 0x28f   :  { %v2047_v4 = vsub.f32 %v16025_v13, %v12309_v36  ;;  %v8598_v27 = vpop.eup %8597  ;;  %8084 = vmatpush3.bf16.msra.mxu1 %v8083_v25  ;;  %8054 = vmatprep.subr.bf16.mxu0 %v8053_v22  ;;  %v2849_v59 = vld [vmem:[%s15109_s3 + $0x678] sm:$0xff]  ;;  %v8089_v26 = vpack.c.bf16 %v2897_v49, %v2896_v53  ;;  %v2915_v23 = vld [vmem:[%s15109_s3 + $0x888] sm:$0xff]  ;;  %8617 = vpow2.f32 %v12777_v50  ;;  %v16027_v33 = vld [vmem:[#allocation27_spill] sm:$0xff]  ;;  %v6762_v42 = vpop.f32.mrb[1].mxu0 }
 0x290   :  { %v16026_v48 = vld [vmem:[#allocation82_spill] sm:$0xff]  ;;  %v8600_v40 = vpop.eup %8599  ;;  %3669 = vmatmul.mubr.f32.gmra.mrb[44].mxu0 %v8596_v54  ;;  %8086 = vmatprep.subr.bf16.mxu1 %v8085_v32  ;;  %v2049_v2 = vsub.f32 %v16027_v33, %v12309_v36  ;;  %v16028_v25 = vld [vmem:[#allocation85_spill] sm:$0xff]  ;;  %v6818_v63 = vpop.f32.mrb[1].mxu1  ;;  %v2946_v44 = vld [vmem:[%s15109_s3 + $0x980] sm:$0xff]  ;;  %8619 = vpow2.f32 %v12780_v62  ;;  %v6763_v18 = vadd.f32 %v6762_v42, %v6761_v31  ;;  %v8059_v53 = vpack.c.bf16 %v2849_v59, %v2848_v11 }
 0x291   :  { %v1891_v29 = vsub.f32 %v16026_v48, %v12037_v47  ;;  %v2881_v38 = vld [vmem:[%s15109_s3 + $0x778] sm:$0xff]  ;;  %v1893_v22 = vsub.f32 %v16028_v25, %v12037_v47  ;;  %v8602_v24 = vpop.eup %8601  ;;  %3774 = vmatmul.mubr.f32.gmra.mrb[44].mxu1 %v8598_v27  ;;  %3673 = vmatprep.mubr.f32.mxu0 %v8600_v40  ;;  %v2947_v32 = vld [vmem:[%s15109_s3 + $0x988] sm:$0xff]  ;;  %v16029_v50 = vld [vmem:[#allocation17_spill] sm:$0xff]  ;;  %v6819_v45 = vadd.f32 %v6818_v63, %v6817_v5  ;;  %8621 = vpow2.f32 %v12820_v46 }
 0x292   :  { %v2046_v3 = vsub.f32 %v16029_v50, %v12309_v36  ;;  %v8604_v39 = vpop.eup %8603  ;;  %3778 = vmatprep.mubr.f32.mxu1 %v8602_v24  ;;  %8056 = vmatpush3.bf16.msra.mxu0 %v8055_v19  ;;  %v13119_v49 = vmul.f32 1.442695, %v2047_v4  ;;  %v16030_v54 = vld [vmem:[#allocation6_spill] sm:$0xff]  ;;  %v8091_v62 = vpack.c.bf16 %v2881_v38, %v13090_v61  ;;  %v8093_v48 = vpack.c.bf16 %v2915_v23, %v2914_v7  ;;  %v2898_v46 = vld [vmem:[%s15109_s3 + $0x800] sm:$0xff]  ;;  %v2899_v4 = vld [vmem:[%s15109_s3 + $0x808] sm:$0xff] }
 0x293   :  { %v2048_v13 = vsub.f32 %v16030_v54, %v12309_v36  ;;  %v8606_v27 = vpop.eup %8605  ;;  %8088 = vmatpush3.bf16.msra.mxu1 %v8087_v9  ;;  %8058 = vmatprep.subr.bf16.mxu0 %v8057_v55  ;;  %8623 = vpow2.f32 %v12849_v16  ;;  %v13125_v31 = vadd.f32 %v6819_v45, %v6763_v18  ;;  %v8125_v19 = vpack.c.bf16 %v2947_v32, %v2946_v44  ;;  %v13136_v9 = vld [vmem:[%s15109_s3 + $0x900] sm:$0xff]  ;;  %v16031_v55 = vld [vmem:[#allocation81_spill] sm:$0xff]  ;;  %v2931_v61 = vld [vmem:[%s15109_s3 + $0x908] sm:$0xff] }
 0x294   :  { %v8608_v5 = vpop.eup %8607  ;;  %3674 = vmatmul.mubr.f32.gmra.mrb[46].mxu0 %v8606_v27  ;;  %8090 = vmatprep.subr.bf16.mxu1 %v8089_v26  ;;  %8625 = vpow2.f32 %v12982_v43  ;;  %v13139_v16 = vmul.f32 1.442695, %v2049_v2  ;;  %v1890_v11 = vsub.f32 %v16031_v55, %v12037_v47  ;;  %v2916_v40 = vld [vmem:[%s15109_s3 + $0x890] sm:$0xff]  ;;  %v2917_v43 = vld [vmem:[%s15109_s3 + $0x898] sm:$0xff]  ;;  %v13153_v26 = vmul.f32 1.442695, %v2046_v3 }
 0x295   :  { %v8610_v59 = vpop.eup %8609  ;;  %3779 = vmatmul.mubr.f32.gmra.mrb[46].mxu1 %v8608_v5  ;;  %3848 = vmatprep.mubr.f32.mxu0 %v8604_v39  ;;  %8627 = vpow2.f32 %v12989_v51  ;;  %v16032_v38 = vld [vmem:[#allocation83_spill] sm:$0xff]  ;;  %v2948_v23 = vld [vmem:[%s15109_s3 + $0x990] sm:$0xff]  ;;  %v2949_v33 = vld [vmem:[%s15109_s3 + $0x998] sm:$0xff]  ;;  %v13164_v2 = vmul.f32 1.442695, %v1891_v29  ;;  %v8095_v24 = vpack.c.bf16 %v2899_v4, %v2898_v46  ;;  %v8097_v29 = vpack.c.bf16 %v2917_v43, %v2916_v40 }
 0x296   :  { %v1892_v7 = vsub.f32 %v16032_v38, %v12037_v47  ;;  %8060 = vmatpush3.bf16.msra.mxu0 %v8059_v53  ;;  %3953 = vmatprep.mubr.f32.mxu1 %v8610_v59  ;;  %8629 = vpow2.f32 %v13003_v12  ;;  %v13166_v51 = vmul.f32 1.442695, %v1893_v22  ;;  %v16033_v25 = vld [vmem:[#allocation23_spill] sm:$0xff]  ;;  %v8612_v63 = vpop.eup %8611  ;;  %v13171_v44 = vmul.f32 1.442695, %v2048_v13  ;;  %v16034_v32 = vld [vmem:[#allocation113_spill] sm:$0xff] }
 0x297   :  { %v1923_v42 = vsub.f32 %v16033_v25, %v12119_v34  ;;  %8092 = vmatpush3.bf16.msra.mxu1 %v8091_v62  ;;  %8094 = vmatprep.subr.bf16.mxu0 %v8093_v48  ;;  %8631 = vpow2.f32 %v13015_v28  ;;  %v1925_v50 = vsub.f32 %v16034_v32, %v12119_v34  ;;  %v8614_v3 = vpop.eup %8613  ;;  %v8127_v12 = vpack.c.bf16 %v2931_v61, %v13136_v9  ;;  %v13179_v22 = vld [vmem:[%s15109_s3 + $0x810] sm:$0xff]  ;;  %v2901_v18 = vld [vmem:[%s15109_s3 + $0x818] sm:$0xff]  ;;  %v2918_v13 = vld [vmem:[%s15109_s3 + $0x8a0] sm:$0xff] }
 0x298   :  { %8126 = vmatprep.subr.bf16.mxu1 %v8125_v19  ;;  %v13187_v28 = vld [vmem:[%s15109_s3 + $0x910] sm:$0xff]  ;;  %8633 = vpow2.f32 %v13025_v58  ;;  %v13190_v45 = vmul.f32 1.442695, %v1890_v11  ;;  %v8616_v39 = vpop.eup %8615  ;;  %v8129_v53 = vpack.c.bf16 %v2949_v33, %v2948_v23  ;;  %v2933_v54 = vld [vmem:[%s15109_s3 + $0x918] sm:$0xff]  ;;  %v2919_v27 = vld [vmem:[%s15109_s3 + $0x8a8] sm:$0xff]  ;;  %v8099_v40 = vpack.c.bf16 %v2901_v18, %v13179_v22 }
 0x299   :  { %3849 = vmatmul.mubr.f32.vlgmr.msra.gmra.mrb[48].mxu0 %v8612_v63  ;;  %8635 = vpow2.f32 %v13031_v35  ;;  %v13202_v58 = vmul.f32 1.442695, %v1892_v7  ;;  %v16035_v62 = vld [vmem:[#allocation21_spill] sm:$0xff]  ;;  %v8618_v5 = vpop.eup %8617  ;;  %v13209_v19 = vld [vmem:[%s15109_s3 + $0x9a0] sm:$0xff]  ;;  %v13214_v46 = vld [vmem:[%s15109_s3 + $0x9a8] sm:$0xff]  ;;  %v8101_v63 = vpack.c.bf16 %v2919_v27, %v2918_v13 }
 0x29a   :  { %v1922_v48 = vsub.f32 %v16035_v62, %v12119_v34  ;;  %3954 = vmatmul.mubr.f32.vlgmr.msra.gmra.mrb[48].mxu1 %v8614_v3  ;;  %3853 = vmatprep.mubr.f32.mxu0 %v8616_v39  ;;  %v13219_v35 = vld [vmem:[%s15109_s3 + $0x820] sm:$0xff]  ;;  %8637 = vpow2.f32 %v13050_v20  ;;  %v13222_v4 = vmul.f32 1.442695, %v1923_v42  ;;  %v16036_v9 = vld [vmem:[#allocation112_spill] sm:$0xff]  ;;  %v16037_v11 = vld [vmem:[#allocation49_spill] sm:$0xff]  ;;  %v8620_v61 = vpop.eup %8619  ;;  %v8131_v42 = vpack.c.bf16 %v2933_v54, %v13187_v28 }
 0x29b   :  { %v1924_v55 = vsub.f32 %v16036_v9, %v12119_v34  ;;  %v1955_v59 = vsub.f32 %v16037_v11, %v12086_v14  ;;  %3958 = vmatprep.mubr.f32.mxu1 %v8618_v5  ;;  %8096 = vmatpush3.bf16.msra.mxu0 %v8095_v24  ;;  %v13232_v43 = vld [vmem:[%s15109_s3 + $0x828] sm:$0xff]  ;;  %v13237_v20 = vld [vmem:[%s15109_s3 + $0x920] sm:$0xff]  ;;  %8639 = vpow2.f32 %v13061_v57  ;;  %v16038_v7 = vld [vmem:[#allocation13_spill] sm:$0xff]  ;;  %v13247_v33 = vmul.f32 1.442695, %v1925_v50  ;;  %v8622_v25 = vpop.eup %8621 }
 0x29c   :  { %v13242_v38 = vld [vmem:[%s15109_s3 + $0x928] sm:$0xff]  ;;  %v2079_v23 = vsub.f32 %v16038_v7, %v12319_v15  ;;  %8128 = vmatpush3.bf16.msra.mxu1 %v8127_v12  ;;  %8098 = vmatprep.subr.bf16.mxu0 %v8097_v29  ;;  %v13253_v24 = vld [vmem:[%s15109_s3 + $0x8b0] sm:$0xff]  ;;  %v13258_v57 = vld [vmem:[%s15109_s3 + $0x8b8] sm:$0xff]  ;;  %8641 = vpow2.f32 %v13070_v41  ;;  %v8133_v12 = vpack.c.bf16 %v13214_v46, %v13209_v19  ;;  %v13278_v28 = vmul.f32 1.442695, %v1922_v48 }
 0x29d   :  { %v16039_v32 = vld [vmem:[#allocation15_spill] sm:$0xff]  ;;  %v8624_v3 = vpop.eup %8623  ;;  %3854 = vmatmul.mubr.f32.gmra.mrb[50].mxu0 %v8620_v61  ;;  %8130 = vmatprep.subr.bf16.mxu1 %v8129_v53  ;;  %v13268_v29 = vld [vmem:[%s15109_s3 + $0x9b0] sm:$0xff]  ;;  %v13273_v22 = vld [vmem:[%s15109_s3 + $0x9b8] sm:$0xff]  ;;  %8643 = vpow2.f32 %v13072_v21  ;;  %v8103_v53 = vpack.c.bf16 %v13232_v43, %v13219_v35  ;;  %v8135_v54 = vpack.c.bf16 %v13242_v38, %v13237_v20  ;;  %v8105_v5 = vpack.c.bf16 %v13258_v57, %v13253_v24  ;;  %v6764_v35 = vpop.f32.mrb[2].mxu0 }
 0x29e   :  { %v2081_v50 = vsub.f32 %v16039_v32, %v12319_v15  ;;  %v16040_v41 = vld [vmem:[#allocation12_spill] sm:$0xff]  ;;  %v8626_v39 = vpop.eup %8625  ;;  %3959 = vmatmul.mubr.f32.gmra.mrb[50].mxu1 %v8622_v25  ;;  %3858 = vmatprep.mubr.f32.mxu0 %v8624_v3  ;;  %v13287_v13 = vld [vmem:[%s15109_s3 + $0x830] sm:$0xff]  ;;  %v13292_v21 = vld [vmem:[%s15109_s3 + $0x838] sm:$0xff]  ;;  %8645 = vpow2.f32 %v13076_v60  ;;  %v2540_v19 = vmul.f32 1.442695, %v2079_v23  ;;  %v2111_v46 = vsub.f32 %v11927_v1, %v12337_v8  ;;  %v6820_v20 = vpop.f32.mrb[2].mxu1 }
 0x29f   :  { %v2078_v18 = vsub.f32 %v16040_v41, %v12319_v15  ;;  %v16041_v27 = vld [vmem:[#allocation14_spill] sm:$0xff]  ;;  %v8628_v48 = vpop.eup %8627  ;;  %3963 = vmatprep.mubr.f32.mxu1 %v8626_v39  ;;  %8100 = vmatpush3.bf16.msra.mxu0 %v8099_v40  ;;  %8647 = vpow2.f32 %v13119_v49  ;;  %v8137_v60 = vpack.c.bf16 %v13273_v22, %v13268_v29  ;;  %v13307_v40 = vld [vmem:[%s15109_s3 + $0x930] sm:$0xff]  ;;  %v2113_v43 = vsub.f32 %v11948_v6, %v12337_v8  ;;  %v6765_v38 = vpop.f32.mrb[3].mxu0  ;;  %v13322_v25 = vld [vmem:[%s15109_s3 + $0x8c0] sm:$0xff] }
 0x2a0   :  { %v2080_v62 = vsub.f32 %v16041_v27, %v12319_v15  ;;  %v8630_v61 = vpop.eup %8629  ;;  %8132 = vmatpush3.bf16.msra.mxu1 %v8131_v42  ;;  %8102 = vmatprep.subr.bf16.mxu0 %v8101_v63  ;;  %v13312_v49 = vld [vmem:[%s15109_s3 + $0x938] sm:$0xff]  ;;  %8649 = vpow2.f32 %v13139_v16  ;;  %v2544_v1 = vmul.f32 1.442695, %v2081_v50  ;;  %v8107_v23 = vpack.c.bf16 %v13292_v21, %v13287_v13  ;;  %v13327_v16 = vld [vmem:[%s15109_s3 + $0x8c8] sm:$0xff]  ;;  %v6821_v63 = vpop.f32.mrb[3].mxu1  ;;  %v13333_v57 = vld [vmem:[%s15109_s3 + $0x9c0] sm:$0xff] }
 0x2a1   :  { %v8632_v7 = vpop.eup %8631  ;;  %3859 = vmatmul.mubr.f32.gmra.mrb[52].mxu0 %v8628_v48  ;;  %8134 = vmatprep.subr.bf16.mxu1 %v8133_v12  ;;  %8651 = vpow2.f32 %v13153_v26  ;;  %v2538_v6 = vmul.f32 1.442695, %v2078_v18  ;;  %v6766_v42 = vadd.f32 %v6765_v38, %v6764_v35  ;;  %v13338_v32 = vld [vmem:[%s15109_s3 + $0x9c8] sm:$0xff]  ;;  %v2110_v26 = vsub.f32 %v11888_v56, %v12337_v8  ;;  %v13348_v22 = vld [vmem:[%s15109_s3 + $0x840] sm:$0xff]  ;;  %v6767_v18 = vpop.f32.mrb[4].mxu0  ;;  %v16045_v11 = vld [vmem:[#allocation141_spill] sm:$0xff] }
 0x2a2   :  { %v8634_v24 = vpop.eup %8633  ;;  %3964 = vmatmul.mubr.f32.gmra.mrb[52].mxu1 %v8630_v61  ;;  %3863 = vmatprep.mubr.f32.mxu0 %v8632_v7  ;;  %8653 = vpow2.f32 %v13171_v44  ;;  %v2542_v50 = vmul.f32 1.442695, %v2080_v62  ;;  %v6822_v3 = vadd.f32 %v6821_v63, %v6820_v20  ;;  %v8139_v29 = vpack.c.bf16 %v13312_v49, %v13307_v40  ;;  %v13362_v13 = vld [vmem:[%s15109_s3 + $0x940] sm:$0xff]  ;;  %v6823_v27 = vpop.f32.mrb[4].mxu1  ;;  %v2956_v49 = vld [vmem:[%s15109_s3 + $0x9d0] sm:$0xff]  ;;  %v16042_v20 = vld [vmem:[#allocation52_spill] sm:$0xff] }
 0x2a3   :  { %v8636_v12 = vpop.eup %8635  ;;  %3968 = vmatprep.mubr.f32.mxu1 %v8634_v24  ;;  %8104 = vmatpush3.bf16.msra.mxu0 %v8103_v53  ;;  %8655 = vpow2.f32 %v2540_v19  ;;  %v2604_v41 = vmul.f32 1.442695, %v2111_v46  ;;  %v2112_v44 = vsub.f32 %v11938_v17, %v12337_v8  ;;  %v8109_v56 = vpack.c.bf16 %v13327_v16, %v13322_v25  ;;  %v13357_v53 = vld [vmem:[%s15109_s3 + $0x848] sm:$0xff]  ;;  %v2924_v19 = vld [vmem:[%s15109_s3 + $0x8d0] sm:$0xff]  ;;  %v2925_v46 = vld [vmem:[%s15109_s3 + $0x8d8] sm:$0xff] }
 0x2a4   :  { %v8638_v39 = vpop.eup %8637  ;;  %8136 = vmatpush3.bf16.msra.mxu1 %v8135_v54  ;;  %8106 = vmatprep.subr.bf16.mxu0 %v8105_v5  ;;  %8657 = vpow2.f32 %v2544_v1  ;;  %v2608_v21 = vmul.f32 1.442695, %v2113_v43  ;;  %v13364_v17 = vadd.f32 %v6822_v3, %v6766_v42  ;;  %v6768_v54 = vpop.f32.mrb[5].mxu0  ;;  %v8141_v48 = vpack.c.bf16 %v13338_v32, %v13333_v57  ;;  %v2939_v5 = vld [vmem:[%s15109_s3 + $0x948] sm:$0xff]  ;;  %v2957_v1 = vld [vmem:[%s15109_s3 + $0x9d8] sm:$0xff]  ;;  %v2908_v57 = vld [vmem:[%s15109_s3 + $0x850] sm:$0xff] }
 0x2a5   :  { %v8640_v62 = vpop.eup %8639  ;;  %3864 = vmatmul.mubr.f32.gmra.mrb[54].mxu0 %v8636_v12  ;;  %8138 = vmatprep.subr.bf16.mxu1 %v8137_v60  ;;  %8659 = vpow2.f32 %v2538_v6  ;;  %v13380_v35 = vmul.f32 1.442695, %v1924_v55  ;;  %v6769_v61 = vadd.f32 %v6768_v54, %v6767_v18  ;;  %v6824_v60 = vpop.f32.mrb[5].mxu1  ;;  %v2602_v43 = vmul.f32 1.442695, %v2110_v26  ;;  %v16043_v16 = vld [vmem:[#allocation48_spill] sm:$0xff] }
 0x2a6   :  { %v8642_v40 = vpop.eup %8641  ;;  %3969 = vmatmul.mubr.f32.gmra.mrb[54].mxu1 %v8638_v39  ;;  %3868 = vmatprep.mubr.f32.mxu0 %v8640_v62  ;;  %8661 = vpow2.f32 %v2542_v50  ;;  %v1957_v9 = vsub.f32 %v16042_v20, %v12086_v14  ;;  %v6825_v55 = vadd.f32 %v6824_v60, %v6823_v27  ;;  %v8111_v7 = vpack.c.bf16 %v13357_v53, %v13348_v22  ;;  %v13404_v32 = vld [vmem:[%s15109_s3 + $0x950] sm:$0xff]  ;;  %v2941_v12 = vld [vmem:[%s15109_s3 + $0x958] sm:$0xff]  ;;  %v2927_v22 = vld [vmem:[%s15109_s3 + $0x8e8] sm:$0xff] }
 0x2a7   :  { %v8644_v38 = vpop.eup %8643  ;;  %3973 = vmatprep.mubr.f32.mxu1 %v8642_v40  ;;  %8108 = vmatpush3.bf16.msra.mxu0 %v8107_v23  ;;  %8663 = vpow2.f32 %v2604_v41  ;;  %v2606_v25 = vmul.f32 1.442695, %v2112_v44  ;;  %v1954_v6 = vsub.f32 %v16043_v16, %v12086_v14  ;;  %v8143_v63 = vpack.c.bf16 %v2939_v5, %v13362_v13  ;;  %v2909_v23 = vld [vmem:[%s15109_s3 + $0x858] sm:$0xff]  ;;  %v2959_v53 = vld [vmem:[%s15109_s3 + $0x9e8] sm:$0xff]  ;;  %v2910_v60 = vld [vmem:[%s15109_s3 + $0x860] sm:$0xff] }
 0x2a8   :  { %v8646_v42 = vpop.eup %8645  ;;  %8140 = vmatpush3.bf16.msra.mxu1 %v8139_v29  ;;  %8110 = vmatprep.subr.bf16.mxu0 %v8109_v56  ;;  %v8113_v24 = vpack.c.bf16 %v2925_v46, %v2924_v19  ;;  %8665 = vpow2.f32 %v2608_v21  ;;  %v13406_v50 = vadd.f32 %v6825_v55, %v6769_v61  ;;  %v8145_v3 = vpack.c.bf16 %v2957_v1, %v2956_v49  ;;  %v2926_v29 = vld [vmem:[%s15109_s3 + $0x8e0] sm:$0xff]  ;;  %v16044_v44 = vld [vmem:[#allocation50_spill] sm:$0xff]  ;;  %v16046_v13 = vld [vmem:[#allocation144_spill] sm:$0xff] }
 0x2a9   :  { %v8648_v26 = vpop.eup %8647  ;;  %3869 = vmatmul.mubr.f32.gmra.mrb[56].mxu0 %v8644_v38  ;;  %8142 = vmatprep.subr.bf16.mxu1 %v8141_v48  ;;  %8667 = vpow2.f32 %v13164_v2  ;;  %v13421_v41 = vmul.f32 1.442695, %v1955_v59  ;;  %v1956_v18 = vsub.f32 %v16044_v44, %v12086_v14  ;;  %v2958_v56 = vld [vmem:[%s15109_s3 + $0x9e0] sm:$0xff]  ;;  %v13431_v2 = vmul.f32 1.442695, %v1957_v9  ;;  %v16047_v48 = vld [vmem:[#allocation140_spill] sm:$0xff] }
 0x2aa   :  { %v8650_v39 = vpop.eup %8649  ;;  %3974 = vmatmul.mubr.f32.gmra.mrb[56].mxu1 %v8646_v42  ;;  %3873 = vmatprep.mubr.f32.mxu0 %v8648_v26  ;;  %8669 = vpow2.f32 %v2602_v43  ;;  %v1987_v59 = vsub.f32 %v16045_v11, %v12253_v30  ;;  %v1989_v21 = vsub.f32 %v16046_v13, %v12253_v30  ;;  %v8115_v54 = vpack.c.bf16 %v2909_v23, %v2908_v57  ;;  %v2911_v40 = vld [vmem:[%s15109_s3 + $0x868] sm:$0xff]  ;;  %v13451_v49 = vld [vmem:[%s15109_s3 + $0x960] sm:$0xff]  ;;  %v16048_v1 = vld [vmem:[#allocation142_spill] sm:$0xff] }
 0x2ab   :  { %v8652_v27 = vpop.eup %8651  ;;  %3978 = vmatprep.mubr.f32.mxu1 %v8650_v39  ;;  %8112 = vmatpush3.bf16.msra.mxu0 %v8111_v7  ;;  %8671 = vpow2.f32 %v2606_v25  ;;  %v13437_v62 = vmul.f32 1.442695, %v1954_v6  ;;  %v1986_v5 = vsub.f32 %v16047_v48, %v12253_v30  ;;  %v8147_v46 = vpack.c.bf16 %v2941_v12, %v13404_v32  ;;  %v2943_v55 = vld [vmem:[%s15109_s3 + $0x968] sm:$0xff]  ;;  %v2928_v38 = vld [vmem:[%s15109_s3 + $0x8f0] sm:$0xff]  ;;  %v2929_v7 = vld [vmem:[%s15109_s3 + $0x8f8] sm:$0xff] }
 0x2ac   :  { %v8654_v19 = vpop.eup %8653  ;;  %8144 = vmatpush3.bf16.msra.mxu1 %v8143_v63  ;;  %8114 = vmatprep.subr.bf16.mxu0 %v8113_v24  ;;  %v8117_v61 = vpack.c.bf16 %v2927_v22, %v2926_v29  ;;  %8673 = vpow2.f32 %v13166_v51  ;;  %v1988_v43 = vsub.f32 %v16048_v1, %v12253_v30  ;;  %v8149_v9 = vpack.c.bf16 %v2959_v53, %v2958_v56  ;;  %v16049_v25 = vld [vmem:[#allocation169_spill] sm:$0xff]  ;;  %v2961_v63 = vld [vmem:[%s15109_s3 + $0x9f8] sm:$0xff]  ;;  %v16050_v57 = vld [vmem:[#allocation171_spill] sm:$0xff] }
 0x2ad   :  { %v8656_v20 = vpop.eup %8655  ;;  %3874 = vmatmul.mubr.f32.gmra.mrb[58].mxu0 %v8652_v27  ;;  %8146 = vmatprep.subr.bf16.mxu1 %v8145_v3  ;;  %v13465_v51 = vmul.f32 1.442695, %v1956_v18  ;;  %v2019_v16 = vsub.f32 %v16049_v25, %v12299_v52  ;;  %v2960_v42 = vld [vmem:[%s15109_s3 + $0x9f0] sm:$0xff]  ;;  %8675 = vpow2.f32 %v13190_v45  ;;  %v13476_v24 = vmul.f32 1.442695, %v1987_v59  ;;  %v16051_v32 = vld [vmem:[#allocation167_spill] sm:$0xff] }
 0x2ae   :  { %v8658_v6 = vpop.eup %8657  ;;  %3979 = vmatmul.mubr.f32.gmra.mrb[58].mxu1 %v8654_v19  ;;  %3878 = vmatprep.mubr.f32.mxu0 %v8656_v20  ;;  %v2021_v23 = vsub.f32 %v16050_v57, %v12299_v52  ;;  %v2018_v26 = vsub.f32 %v16051_v32, %v12299_v52  ;;  %v8119_v12 = vpack.c.bf16 %v2911_v40, %v2910_v60  ;;  %8677 = vpow2.f32 %v13202_v58  ;;  %v2912_v39 = vld [vmem:[%s15109_s3 + $0x870] sm:$0xff]  ;;  %v2913_v56 = vld [vmem:[%s15109_s3 + $0x878] sm:$0xff]  ;;  %v2979_v27 = vld [vmem:[%s15109_s3 + $0xa88] sm:$0xff] }
 0x2af   :  { %v8660_v3 = vpop.eup %8659  ;;  %3983 = vmatprep.mubr.f32.mxu1 %v8658_v6  ;;  %8116 = vmatpush3.bf16.msra.mxu0 %v8115_v54  ;;  %v13483_v29 = vmul.f32 1.442695, %v1989_v21  ;;  %v13485_v22 = vmul.f32 1.442695, %v1986_v5  ;;  %v8151_v45 = vpack.c.bf16 %v2943_v55, %v13451_v49  ;;  %v8121_v18 = vpack.c.bf16 %v2929_v7, %v2928_v38  ;;  %v2944_v58 = vld [vmem:[%s15109_s3 + $0x970] sm:$0xff]  ;;  %v2945_v13 = vld [vmem:[%s15109_s3 + $0x978] sm:$0xff] }
 0x2b0   :  { %v8662_v44 = vpop.eup %8661  ;;  %8148 = vmatpush3.bf16.msra.mxu1 %v8147_v46  ;;  %8118 = vmatprep.subr.bf16.mxu0 %v8117_v61  ;;  %8679 = vpow2.f32 %v13222_v4  ;;  %v13498_v53 = vmul.f32 1.442695, %v1988_v43  ;;  %v8153_v59 = vpack.c.bf16 %v2961_v63, %v2960_v42  ;;  %v2978_v21 = vld [vmem:[%s15109_s3 + $0xa80] sm:$0xff]  ;;  %v13510_v4 = vmul.f32 1.442695, %v2019_v16  ;;  %v16052_v54 = vld [vmem:[#allocation170_spill] sm:$0xff] }
 0x2b1   :  { %v8664_v11 = vpop.eup %8663  ;;  %3879 = vmatmul.mubr.f32.gmra.mrb[60].mxu0 %v8660_v3  ;;  %8150 = vmatprep.subr.bf16.mxu1 %v8149_v9  ;;  %8681 = vpow2.f32 %v13247_v33  ;;  %v2020_v48 = vsub.f32 %v16052_v54, %v12299_v52  ;;  %v3010_v19 = vld [vmem:[%s15109_s3 + $0xb80] sm:$0xff]  ;;  %v3011_v46 = vld [vmem:[%s15109_s3 + $0xb88] sm:$0xff]  ;;  %v13521_v61 = vmul.f32 1.442695, %v2021_v23  ;;  %v13523_v33 = vmul.f32 1.442695, %v2018_v26 }
 0x2b2   :  { %v8666_v5 = vpop.eup %8665  ;;  %3984 = vmatmul.mubr.f32.gmra.mrb[60].mxu1 %v8662_v44  ;;  %3883 = vmatprep.mubr.f32.mxu0 %v8664_v11  ;;  %8683 = vpow2.f32 %v13278_v28  ;;  %v16053_v60 = vld [vmem:[#allocation191_spill] sm:$0xff]  ;;  %v8123_v1 = vpack.c.bf16 %v2913_v56, %v2912_v39  ;;  %v16054_v43 = vld [vmem:[#allocation192_spill] sm:$0xff]  ;;  %v8155_v38 = vpack.c.bf16 %v2945_v13, %v2944_v58  ;;  %v8157_v7 = vpack.c.bf16 %v2979_v27, %v2978_v21  ;;  %v2980_v26 = vld [vmem:[%s15109_s3 + $0xa90] sm:$0xff] }
 0x2b3   :  { %v2051_v40 = vsub.f32 %v16053_v60, %v12309_v36  ;;  %v8668_v49 = vpop.eup %8667  ;;  %3988 = vmatprep.mubr.f32.mxu1 %v8666_v5  ;;  %8120 = vmatpush3.bf16.msra.mxu0 %v8119_v12  ;;  %8685 = vpow2.f32 %v13380_v35  ;;  %v2053_v20 = vsub.f32 %v16054_v43, %v12309_v36  ;;  %v16055_v9 = vld [vmem:[#allocation7_spill] sm:$0xff]  ;;  %v16056_v25 = vld [vmem:[#allocation8_spill] sm:$0xff]  ;;  %v8189_v35 = vpack.c.bf16 %v3011_v46, %v3010_v19  ;;  %v2981_v3 = vld [vmem:[%s15109_s3 + $0xa98] sm:$0xff]  ;;  %v6770_v5 = vpop.f32.mrb[6].mxu0 }
 0x2b4   :  { %v2050_v55 = vsub.f32 %v16055_v9, %v12309_v36  ;;  %v8670_v28 = vpop.eup %8669  ;;  %8152 = vmatpush3.bf16.msra.mxu1 %v8151_v45  ;;  %8122 = vmatprep.subr.bf16.mxu0 %v8121_v18  ;;  %8687 = vpow2.f32 %v13421_v41  ;;  %v2052_v16 = vsub.f32 %v16056_v25, %v12309_v36  ;;  %v2962_v42 = vld [vmem:[%s15109_s3 + $0xa00] sm:$0xff]  ;;  %v2963_v63 = vld [vmem:[%s15109_s3 + $0xa08] sm:$0xff]  ;;  %v13547_v41 = vmul.f32 1.442695, %v2020_v48  ;;  %v3012_v12 = vld [vmem:[%s15109_s3 + $0xb90] sm:$0xff]  ;;  %v6826_v43 = vpop.f32.mrb[6].mxu1 }
 0x2b5   :  { %v8672_v6 = vpop.eup %8671  ;;  %3884 = vmatmul.mubr.f32.gmra.mrb[62].mxu0 %v8670_v28  ;;  %8154 = vmatprep.subr.bf16.mxu1 %v8153_v59  ;;  %v13544_v57 = vld [vmem:[%s15109_s3 + $0xb00] sm:$0xff]  ;;  %8689 = vpow2.f32 %v13431_v2  ;;  %v2995_v32 = vld [vmem:[%s15109_s3 + $0xb08] sm:$0xff]  ;;  %v13559_v2 = vmul.f32 1.442695, %v2051_v40  ;;  %v3013_v44 = vld [vmem:[%s15109_s3 + $0xb98] sm:$0xff]  ;;  %v8159_v58 = vpack.c.bf16 %v2963_v63, %v2962_v42  ;;  %v2085_v59 = vsub.f32 %v11560_v37, %v12319_v15 }
 0x2b6   :  { %v8674_v23 = vpop.eup %8673  ;;  %3989 = vmatmul.mubr.f32.gmra.mrb[62].mxu1 %v8672_v6  ;;  %4058 = vmatprep.mubr.f32.mxu0 %v8668_v49  ;;  %8691 = vpow2.f32 %v13437_v62  ;;  %v13568_v45 = vmul.f32 1.442695, %v2053_v20  ;;  %v13570_v18 = vmul.f32 1.442695, %v2050_v55  ;;  %v16057_v62 = vld [vmem:[#allocation5_spill] sm:$0xff]  ;;  %v8161_v21 = vpack.c.bf16 %v2981_v3, %v2980_v26  ;;  %v2965_v54 = vld [vmem:[%s15109_s3 + $0xa18] sm:$0xff] }
 0x2b7   :  { %8124 = vmatpush3.bf16.msra.mxu0 %v8123_v1  ;;  %4163 = vmatprep.mubr.f32.mxu1 %v8674_v23  ;;  %8693 = vpow2.f32 %v13465_v51  ;;  %v2083_v39 = vsub.f32 %v16057_v62, %v12319_v15  ;;  %v8676_v56 = vpop.eup %8675  ;;  %v13575_v11 = vmul.f32 1.442695, %v2052_v16  ;;  %v8191_v51 = vpack.c.bf16 %v2995_v32, %v13544_v57  ;;  %v13583_v27 = vld [vmem:[%s15109_s3 + $0xa10] sm:$0xff]  ;;  %v16058_v37 = vld [vmem:[#allocation16_spill] sm:$0xff]  ;;  %v2997_v60 = vld [vmem:[%s15109_s3 + $0xb18] sm:$0xff]  ;;  %v6771_v20 = vpop.f32.mrb[7].mxu0 }
 0x2b8   :  { %8156 = vmatpush3.bf16.msra.mxu1 %v8155_v38  ;;  %8158 = vmatprep.subr.bf16.mxu0 %v8157_v7  ;;  %8695 = vpow2.f32 %v13476_v24  ;;  %v8678_v13 = vpop.eup %8677  ;;  %v13591_v24 = vld [vmem:[%s15109_s3 + $0xb10] sm:$0xff]  ;;  %v2082_v48 = vsub.f32 %v16058_v37, %v12319_v15  ;;  %v8193_v46 = vpack.c.bf16 %v3013_v44, %v3012_v12  ;;  %v2982_v40 = vld [vmem:[%s15109_s3 + $0xaa0] sm:$0xff]  ;;  %v2983_v49 = vld [vmem:[%s15109_s3 + $0xaa8] sm:$0xff]  ;;  %v6827_v7 = vpop.f32.mrb[7].mxu1  ;;  %v8163_v16 = vpack.c.bf16 %v2965_v54, %v13583_v27 }
 0x2b9   :  { %8190 = vmatprep.subr.bf16.mxu1 %v8189_v35  ;;  %8697 = vpow2.f32 %v13483_v29  ;;  %v16059_v29 = vld [vmem:[#allocation209_spill] sm:$0xff]  ;;  %v3014_v55 = vld [vmem:[%s15109_s3 + $0xba0] sm:$0xff]  ;;  %v3015_v28 = vld [vmem:[%s15109_s3 + $0xba8] sm:$0xff]  ;;  %v13615_v38 = vmul.f32 1.442695, %v2083_v39  ;;  %v6828_v35 = vadd.f32 %v6827_v7, %v6826_v43  ;;  %v8195_v63 = vpack.c.bf16 %v2997_v60, %v13591_v24 }
 0x2ba   :  { %v8680_v19 = vpop.eup %8679  ;;  %4059 = vmatmul.mubr.f32.vlgmr.msra.gmra.mrb[64].mxu0 %v8676_v56  ;;  %8699 = vpow2.f32 %v13485_v22  ;;  %v2084_v1 = vsub.f32 %v16059_v29, %v12319_v15  ;;  %v6772_v22 = vadd.f32 %v6771_v20, %v6770_v5  ;;  %v13619_v6 = vmul.f32 1.442695, %v2085_v59  ;;  %v2966_v57 = vld [vmem:[%s15109_s3 + $0xa20] sm:$0xff]  ;;  %v2967_v23 = vld [vmem:[%s15109_s3 + $0xa28] sm:$0xff]  ;;  %v2984_v44 = vld [vmem:[%s15109_s3 + $0xab0] sm:$0xff] }
 0x2bb   :  { %v8682_v9 = vpop.eup %8681  ;;  %4164 = vmatmul.mubr.f32.vlgmr.msra.gmra.mrb[64].mxu1 %v8678_v13  ;;  %4063 = vmatprep.mubr.f32.mxu0 %v8680_v19  ;;  %8701 = vpow2.f32 %v13498_v53  ;;  %v8165_v53 = vpack.c.bf16 %v2983_v49, %v2982_v40  ;;  %v13634_v32 = vmul.f32 1.442695, %v2082_v48  ;;  %v8197_v3 = vpack.c.bf16 %v3015_v28, %v3014_v55  ;;  %v2999_v12 = vld [vmem:[%s15109_s3 + $0xb28] sm:$0xff]  ;;  %v2985_v62 = vld [vmem:[%s15109_s3 + $0xab8] sm:$0xff]  ;;  %v16060_v13 = vld [vmem:[#allocation87_spill] sm:$0xff] }
 0x2bc   :  { %v8684_v25 = vpop.eup %8683  ;;  %4168 = vmatprep.mubr.f32.mxu1 %v8682_v9  ;;  %8160 = vmatpush3.bf16.msra.mxu0 %v8159_v58  ;;  %8703 = vpow2.f32 %v13510_v4  ;;  %v13631_v4 = vld [vmem:[%s15109_s3 + $0xb20] sm:$0xff]  ;;  %v13648_v39 = vadd.f32 %v6828_v35, %v6772_v22  ;;  %v3016_v58 = vld [vmem:[%s15109_s3 + $0xbb0] sm:$0xff]  ;;  %v3017_v59 = vld [vmem:[%s15109_s3 + $0xbb8] sm:$0xff]  ;;  %v8167_v37 = vpack.c.bf16 %v2967_v23, %v2966_v57  ;;  %v2115_v48 = vsub.f32 %v11966_v10, %v12337_v8 }
 0x2bd   :  { %v8686_v42 = vpop.eup %8685  ;;  %8192 = vmatpush3.bf16.msra.mxu1 %v8191_v51  ;;  %8162 = vmatprep.subr.bf16.mxu0 %v8161_v21  ;;  %8705 = vpow2.f32 %v13521_v61  ;;  %v13646_v61 = vmul.f32 1.442695, %v2084_v1  ;;  %v16061_v51 = vld [vmem:[#allocation90_spill] sm:$0xff]  ;;  %v8169_v60 = vpack.c.bf16 %v2985_v62, %v2984_v44  ;;  %v2968_v40 = vld [vmem:[%s15109_s3 + $0xa30] sm:$0xff]  ;;  %v2117_v49 = vsub.f32 %v11984_v0, %v12337_v8  ;;  %v2986_v20 = vld [vmem:[%s15109_s3 + $0xac0] sm:$0xff] }
 0x2be   :  { %v8688_v26 = vpop.eup %8687  ;;  %4064 = vmatmul.mubr.f32.gmra.mrb[66].mxu0 %v8684_v25  ;;  %8194 = vmatprep.subr.bf16.mxu1 %v8193_v46  ;;  %8707 = vpow2.f32 %v13523_v33  ;;  %v1895_v33 = vsub.f32 %v16060_v13, %v12037_v47  ;;  %v1897_v21 = vsub.f32 %v16061_v51, %v12037_v47  ;;  %v16062_v27 = vld [vmem:[#allocation86_spill] sm:$0xff]  ;;  %v8199_v46 = vpack.c.bf16 %v2999_v12, %v13631_v4  ;;  %v13678_v10 = vld [vmem:[%s15109_s3 + $0xb30] sm:$0xff]  ;;  %v2987_v9 = vld [vmem:[%s15109_s3 + $0xac8] sm:$0xff] }
 0x2bf   :  { %v8690_v56 = vpop.eup %8689  ;;  %4169 = vmatmul.mubr.f32.gmra.mrb[66].mxu1 %v8686_v42  ;;  %4068 = vmatprep.mubr.f32.mxu0 %v8688_v26  ;;  %8709 = vpow2.f32 %v13547_v41  ;;  %v1894_v54 = vsub.f32 %v16062_v27, %v12037_v47  ;;  %v16063_v41 = vld [vmem:[#allocation89_spill] sm:$0xff]  ;;  %v8201_v1 = vpack.c.bf16 %v3017_v59, %v3016_v58  ;;  %v3001_v43 = vld [vmem:[%s15109_s3 + $0xb38] sm:$0xff]  ;;  %v16065_v55 = vld [vmem:[#allocation116_spill] sm:$0xff]  ;;  %v2612_v57 = vmul.f32 1.442695, %v2115_v48 }
 0x2c0   :  { %v8692_v24 = vpop.eup %8691  ;;  %4173 = vmatprep.mubr.f32.mxu1 %v8690_v56  ;;  %8164 = vmatpush3.bf16.msra.mxu0 %v8163_v16  ;;  %8711 = vpow2.f32 %v13559_v2  ;;  %v1896_v5 = vsub.f32 %v16063_v41, %v12037_v47  ;;  %v2969_v2 = vld [vmem:[%s15109_s3 + $0xa38] sm:$0xff]  ;;  %v1927_v28 = vsub.f32 %v16065_v55, %v12119_v34  ;;  %v13700_v7 = vld [vmem:[%s15109_s3 + $0xbc0] sm:$0xff]  ;;  %v3019_v25 = vld [vmem:[%s15109_s3 + $0xbc8] sm:$0xff]  ;;  %v13708_v35 = vmul.f32 1.442695, %v1895_v33 }
 0x2c1   :  { %v8694_v19 = vpop.eup %8693  ;;  %8196 = vmatpush3.bf16.msra.mxu1 %v8195_v63  ;;  %8166 = vmatprep.subr.bf16.mxu0 %v8165_v53  ;;  %8713 = vpow2.f32 %v13568_v45  ;;  %v16064_v0 = vld [vmem:[#allocation222_spill] sm:$0xff]  ;;  %v13710_v42 = vmul.f32 1.442695, %v1897_v21  ;;  %v8171_v53 = vpack.c.bf16 %v2969_v2, %v2968_v40  ;;  %v13713_v23 = vmul.f32 1.442695, %v1894_v54  ;;  %v13724_v12 = vld [vmem:[%s15109_s3 + $0xa48] sm:$0xff] }
 0x2c2   :  { %v8696_v29 = vpop.eup %8695  ;;  %4069 = vmatmul.mubr.f32.gmra.mrb[68].mxu0 %v8692_v24  ;;  %8198 = vmatprep.subr.bf16.mxu1 %v8197_v3  ;;  %8715 = vpow2.f32 %v13570_v18  ;;  %v2114_v45 = vsub.f32 %v16064_v0, %v12337_v8  ;;  %v16066_v18 = vld [vmem:[#allocation223_spill] sm:$0xff]  ;;  %v8173_v26 = vpack.c.bf16 %v2987_v9, %v2986_v20  ;;  %v2616_v44 = vmul.f32 1.442695, %v2117_v49  ;;  %v3003_v58 = vld [vmem:[%s15109_s3 + $0xb48] sm:$0xff]  ;;  %v2988_v59 = vld [vmem:[%s15109_s3 + $0xad0] sm:$0xff] }
 0x2c3   :  { %v8698_v22 = vpop.eup %8697  ;;  %4174 = vmatmul.mubr.f32.gmra.mrb[68].mxu1 %v8694_v19  ;;  %4073 = vmatprep.mubr.f32.mxu0 %v8696_v29  ;;  %8717 = vpow2.f32 %v13575_v11  ;;  %v2116_v16 = vsub.f32 %v16066_v18, %v12337_v8  ;;  %v8203_v11 = vpack.c.bf16 %v3001_v43, %v13678_v10  ;;  %v13719_v3 = vld [vmem:[%s15109_s3 + $0xa40] sm:$0xff]  ;;  %v8205_v56 = vpack.c.bf16 %v3019_v25, %v13700_v7  ;;  %v2989_v13 = vld [vmem:[%s15109_s3 + $0xad8] sm:$0xff]  ;;  %v13748_v27 = vld [vmem:[%s15109_s3 + $0xbd0] sm:$0xff] }
 0x2c4   :  { %v8700_v63 = vpop.eup %8699  ;;  %4178 = vmatprep.mubr.f32.mxu1 %v8698_v22  ;;  %8168 = vmatpush3.bf16.msra.mxu0 %v8167_v37  ;;  %8719 = vpow2.f32 %v13615_v38  ;;  %v13729_v38 = vld [vmem:[%s15109_s3 + $0xb40] sm:$0xff]  ;;  %v16067_v33 = vld [vmem:[#allocation118_spill] sm:$0xff]  ;;  %v13759_v24 = vmul.f32 1.442695, %v1896_v5  ;;  %v13778_v41 = vld [vmem:[%s15109_s3 + $0xb50] sm:$0xff]  ;;  %v8177_v10 = vpack.c.bf16 %v2989_v13, %v2988_v59 }
 0x2c5   :  { %v8702_v4 = vpop.eup %8701  ;;  %8200 = vmatpush3.bf16.msra.mxu1 %v8199_v46  ;;  %8170 = vmatprep.subr.bf16.mxu0 %v8169_v60  ;;  %8721 = vpow2.f32 %v13619_v6  ;;  %v2610_v6 = vmul.f32 1.442695, %v2114_v45  ;;  %v1929_v51 = vsub.f32 %v16067_v33, %v12119_v34  ;;  %v13753_v54 = vld [vmem:[%s15109_s3 + $0xbd8] sm:$0xff]  ;;  %v8175_v46 = vpack.c.bf16 %v13724_v12, %v13719_v3  ;;  %v13768_v60 = vld [vmem:[%s15109_s3 + $0xa50] sm:$0xff]  ;;  %v13791_v29 = vld [vmem:[%s15109_s3 + $0xae0] sm:$0xff] }
 0x2c6   :  { %v8704_v62 = vpop.eup %8703  ;;  %4074 = vmatmul.mubr.f32.gmra.mrb[70].mxu0 %v8700_v63  ;;  %8202 = vmatprep.subr.bf16.mxu1 %v8201_v1  ;;  %8723 = vpow2.f32 %v13634_v32  ;;  %v2614_v32 = vmul.f32 1.442695, %v2116_v16  ;;  %v16068_v37 = vld [vmem:[#allocation114_spill] sm:$0xff]  ;;  %v13780_v5 = vmul.f32 1.442695, %v1927_v28  ;;  %v8207_v2 = vpack.c.bf16 %v3003_v58, %v13729_v38  ;;  %v13796_v1 = vld [vmem:[%s15109_s3 + $0xae8] sm:$0xff] }
 0x2c7   :  { %v8706_v21 = vpop.eup %8705  ;;  %4179 = vmatmul.mubr.f32.gmra.mrb[70].mxu1 %v8702_v4  ;;  %4078 = vmatprep.mubr.f32.mxu0 %v8704_v62  ;;  %8725 = vpow2.f32 %v13646_v61  ;;  %v1926_v48 = vsub.f32 %v16068_v37, %v12119_v34  ;;  %v13773_v61 = vld [vmem:[%s15109_s3 + $0xa58] sm:$0xff]  ;;  %v16069_v43 = vld [vmem:[#allocation117_spill] sm:$0xff]  ;;  %v8209_v0 = vpack.c.bf16 %v13753_v54, %v13748_v27  ;;  %v13805_v45 = vld [vmem:[%s15109_s3 + $0xbe0] sm:$0xff]  ;;  %v13817_v22 = vmul.f32 1.442695, %v1929_v51 }
 0x2c8   :  { %v8708_v19 = vpop.eup %8707  ;;  %4183 = vmatprep.mubr.f32.mxu1 %v8706_v21  ;;  %8172 = vmatpush3.bf16.msra.mxu0 %v8171_v53  ;;  %8727 = vpow2.f32 %v2612_v57  ;;  %v13786_v49 = vld [vmem:[%s15109_s3 + $0xb58] sm:$0xff]  ;;  %v1928_v20 = vsub.f32 %v16069_v43, %v12119_v34  ;;  %v13810_v55 = vld [vmem:[%s15109_s3 + $0xbe8] sm:$0xff]  ;;  %v13815_v28 = vld [vmem:[%s15109_s3 + $0xa60] sm:$0xff]  ;;  %v8179_v38 = vpack.c.bf16 %v13773_v61, %v13768_v60  ;;  %v8181_v59 = vpack.c.bf16 %v13796_v1, %v13791_v29 }
 0x2c9   :  { %v8710_v40 = vpop.eup %8709  ;;  %8204 = vmatpush3.bf16.msra.mxu1 %v8203_v11  ;;  %8174 = vmatprep.subr.bf16.mxu0 %v8173_v26  ;;  %8729 = vpow2.f32 %v2616_v44  ;;  %v16070_v7 = vld [vmem:[#allocation54_spill] sm:$0xff]  ;;  %v13824_v16 = vld [vmem:[%s15109_s3 + $0xa68] sm:$0xff]  ;;  %v13829_v63 = vld [vmem:[%s15109_s3 + $0xb60] sm:$0xff]  ;;  %v13836_v57 = vmul.f32 1.442695, %v1926_v48  ;;  %v8211_v44 = vpack.c.bf16 %v13786_v49, %v13778_v41  ;;  %v8213_v54 = vpack.c.bf16 %v13810_v55, %v13805_v45 }
 0x2ca   :  { %v8712_v9 = vpop.eup %8711  ;;  %4079 = vmatmul.mubr.f32.gmra.mrb[72].mxu0 %v8708_v19  ;;  %8206 = vmatprep.subr.bf16.mxu1 %v8205_v56  ;;  %8731 = vpow2.f32 %v2610_v6  ;;  %v1959_v25 = vsub.f32 %v16070_v7, %v12086_v14  ;;  %v13834_v53 = vld [vmem:[%s15109_s3 + $0xb68] sm:$0xff]  ;;  %v16071_v4 = vld [vmem:[#allocation57_spill] sm:$0xff]  ;;  %v16073_v62 = vld [vmem:[#allocation55_spill] sm:$0xff]  ;;  %v2238_v33 = vmul.f32 1.442695, %v1928_v20  ;;  %v6829_v7 = vpop.f32.mrb[8].mxu1 }
 0x2cb   :  { %v8714_v18 = vpop.eup %8713  ;;  %4184 = vmatmul.mubr.f32.gmra.mrb[72].mxu1 %v8710_v40  ;;  %4083 = vmatprep.mubr.f32.mxu0 %v8712_v9  ;;  %8733 = vpow2.f32 %v2614_v32  ;;  %v1961_v11 = vsub.f32 %v16071_v4, %v12086_v14  ;;  %v16072_v26 = vld [vmem:[#allocation53_spill] sm:$0xff]  ;;  %v1960_v56 = vsub.f32 %v16073_v62, %v12086_v14  ;;  %v13859_v6 = vld [vmem:[%s15109_s3 + $0xaf8] sm:$0xff]  ;;  %v8183_v32 = vpack.c.bf16 %v13824_v16, %v13815_v28  ;;  %v16077_v28 = vld [vmem:[#allocation148_spill] sm:$0xff] }
 0x2cc   :  { %v1958_v3 = vsub.f32 %v16072_v26, %v12086_v14  ;;  %v8716_v12 = vpop.eup %8715  ;;  %4188 = vmatprep.mubr.f32.mxu1 %v8714_v18  ;;  %8176 = vmatpush3.bf16.msra.mxu0 %v8175_v46  ;;  %8735 = vpow2.f32 %v13708_v35  ;;  %v13854_v13 = vld [vmem:[%s15109_s3 + $0xaf0] sm:$0xff]  ;;  %v16074_v51 = vld [vmem:[#allocation146_spill] sm:$0xff]  ;;  %v8215_v37 = vpack.c.bf16 %v13834_v53, %v13829_v63  ;;  %v2300_v46 = vmul.f32 1.442695, %v1959_v25  ;;  %v3042_v63 = vld [vmem:[%s15109_s3 + $0xc80] sm:$0xff] }
 0x2cd   :  { %v8718_v58 = vpop.eup %8717  ;;  %8208 = vmatpush3.bf16.msra.mxu1 %v8207_v2  ;;  %8178 = vmatprep.subr.bf16.mxu0 %v8177_v10  ;;  %v13864_v35 = vld [vmem:[%s15109_s3 + $0xbf0] sm:$0xff]  ;;  %8737 = vpow2.f32 %v13710_v42  ;;  %v1991_v21 = vsub.f32 %v16074_v51, %v12253_v30  ;;  %v13878_v42 = vld [vmem:[%s15109_s3 + $0xbf8] sm:$0xff]  ;;  %v2304_v40 = vmul.f32 1.442695, %v1961_v11  ;;  %v8185_v1 = vpack.c.bf16 %v13859_v6, %v13854_v13  ;;  %v3043_v53 = vld [vmem:[%s15109_s3 + $0xc88] sm:$0xff]  ;;  %v6830_v11 = vpop.f32.mrb[9].mxu1 }
 0x2ce   :  { %v8720_v27 = vpop.eup %8719  ;;  %4084 = vmatmul.mubr.f32.gmra.mrb[74].mxu0 %v8716_v12  ;;  %8210 = vmatprep.subr.bf16.mxu1 %v8209_v0  ;;  %v13883_v48 = vld [vmem:[%s15109_s3 + $0xa70] sm:$0xff]  ;;  %v13888_v19 = vld [vmem:[%s15109_s3 + $0xa78] sm:$0xff]  ;;  %8739 = vpow2.f32 %v13713_v23  ;;  %v13901_v2 = vmul.f32 1.442695, %v1958_v3  ;;  %v13908_v43 = vmul.f32 1.442695, %v1960_v56  ;;  %v8217_v45 = vpack.c.bf16 %v13878_v42, %v13864_v35 }
 0x2cf   :  { %v8722_v60 = vpop.eup %8721  ;;  %4189 = vmatmul.mubr.f32.gmra.mrb[74].mxu1 %v8718_v58  ;;  %4088 = vmatprep.mubr.f32.mxu0 %v8720_v27  ;;  %v13893_v61 = vld [vmem:[%s15109_s3 + $0xb70] sm:$0xff]  ;;  %v13898_v41 = vld [vmem:[%s15109_s3 + $0xb78] sm:$0xff]  ;;  %8741 = vpow2.f32 %v13759_v24  ;;  %v6773_v23 = vpop.f32.mrb[8].mxu0  ;;  %v8187_v55 = vpack.c.bf16 %v13888_v19, %v13883_v48  ;;  %v1992_v24 = vsub.f32 %v16077_v28, %v12253_v30  ;;  %v3074_v3 = vld [vmem:[%s15109_s3 + $0xd80] sm:$0xff]  ;;  %v6831_v62 = vadd.f32 %v6830_v11, %v6829_v7 }
 0x2d0   :  { %v16075_v10 = vld [vmem:[#allocation149_spill] sm:$0xff]  ;;  %v8724_v29 = vpop.eup %8723  ;;  %4193 = vmatprep.mubr.f32.mxu1 %v8722_v60  ;;  %8180 = vmatpush3.bf16.msra.mxu0 %v8179_v38  ;;  %8743 = vpow2.f32 %v13780_v5  ;;  %v6774_v25 = vpop.f32.mrb[9].mxu0  ;;  %v8219_v16 = vpack.c.bf16 %v13898_v41, %v13893_v61  ;;  %v2364_v5 = vmul.f32 1.442695, %v1991_v21  ;;  %v3075_v12 = vld [vmem:[%s15109_s3 + $0xd88] sm:$0xff]  ;;  %v13940_v58 = vld [vmem:[%s15109_s3 + $0xc00] sm:$0xff]  ;;  %v8221_v27 = vpack.c.bf16 %v3043_v53, %v3042_v63 }
 0x2d1   :  { %v1993_v49 = vsub.f32 %v16075_v10, %v12253_v30  ;;  %v16076_v20 = vld [vmem:[#allocation145_spill] sm:$0xff]  ;;  %v8726_v0 = vpop.eup %8725  ;;  %8212 = vmatpush3.bf16.msra.mxu1 %v8211_v44  ;;  %8182 = vmatprep.subr.bf16.mxu0 %v8181_v59  ;;  %8745 = vpow2.f32 %v13817_v22  ;;  %v6775_v4 = vadd.f32 %v6774_v25, %v6773_v23  ;;  %v16078_v44 = vld [vmem:[#allocation174_spill] sm:$0xff]  ;;  %v13945_v59 = vld [vmem:[%s15109_s3 + $0xc08] sm:$0xff]  ;;  %v2366_v60 = vmul.f32 1.442695, %v1992_v24 }
 0x2d2   :  { %v1990_v9 = vsub.f32 %v16076_v20, %v12253_v30  ;;  %v8728_v18 = vpop.eup %8727  ;;  %4089 = vmatmul.mubr.f32.gmra.mrb[76].mxu0 %v8724_v29  ;;  %8214 = vmatprep.subr.bf16.mxu1 %v8213_v54  ;;  %8747 = vpow2.f32 %v13836_v57  ;;  %v2023_v22 = vsub.f32 %v16078_v44, %v12299_v52  ;;  %v16079_v13 = vld [vmem:[#allocation177_spill] sm:$0xff]  ;;  %v13954_v54 = vld [vmem:[%s15109_s3 + $0xd00] sm:$0xff]  ;;  %v3045_v29 = vld [vmem:[%s15109_s3 + $0xc98] sm:$0xff] }
 0x2d3   :  { %v8730_v26 = vpop.eup %8729  ;;  %4194 = vmatmul.mubr.f32.gmra.mrb[76].mxu1 %v8726_v0  ;;  %4093 = vmatprep.mubr.f32.mxu0 %v8728_v18  ;;  %v2368_v38 = vmul.f32 1.442695, %v1993_v49  ;;  %8749 = vpow2.f32 %v2238_v33  ;;  %v2025_v6 = vsub.f32 %v16079_v13, %v12299_v52  ;;  %v16080_v35 = vld [vmem:[#allocation173_spill] sm:$0xff]  ;;  %v13959_v33 = vld [vmem:[%s15109_s3 + $0xd08] sm:$0xff]  ;;  %v13963_v48 = vadd.f32 %v6831_v62, %v6775_v4  ;;  %v3077_v0 = vld [vmem:[%s15109_s3 + $0xd98] sm:$0xff] }
 0x2d4   :  { %v8732_v56 = vpop.eup %8731  ;;  %4198 = vmatprep.mubr.f32.mxu1 %v8730_v26  ;;  %8184 = vmatpush3.bf16.msra.mxu0 %v8183_v32  ;;  %v2362_v57 = vmul.f32 1.442695, %v1990_v9  ;;  %v2022_v51 = vsub.f32 %v16080_v35, %v12299_v52  ;;  %8751 = vpow2.f32 %v2300_v46  ;;  %v16081_v32 = vld [vmem:[#allocation175_spill] sm:$0xff]  ;;  %v16082_v61 = vld [vmem:[#allocation193_spill] sm:$0xff]  ;;  %v8223_v46 = vpack.c.bf16 %v13945_v59, %v13940_v58  ;;  %v16083_v20 = vld [vmem:[#allocation196_spill] sm:$0xff] }
 0x2d5   :  { %v8734_v21 = vpop.eup %8733  ;;  %8216 = vmatpush3.bf16.msra.mxu1 %v8215_v37  ;;  %8186 = vmatprep.subr.bf16.mxu0 %v8185_v1  ;;  %v2024_v42 = vsub.f32 %v16081_v32, %v12299_v52  ;;  %v8253_v37 = vpack.c.bf16 %v3075_v12, %v3074_v3  ;;  %8753 = vpow2.f32 %v2304_v40  ;;  %v2055_v41 = vsub.f32 %v16082_v61, %v12309_v36  ;;  %v3044_v49 = vld [vmem:[%s15109_s3 + $0xc90] sm:$0xff]  ;;  %v16084_v28 = vld [vmem:[#allocation10_spill] sm:$0xff]  ;;  %v3046_v62 = vld [vmem:[%s15109_s3 + $0xca0] sm:$0xff] }
 0x2d6   :  { %v8736_v19 = vpop.eup %8735  ;;  %4094 = vmatmul.mubr.f32.gmra.mrb[78].mxu0 %v8732_v56  ;;  %8218 = vmatprep.subr.bf16.mxu1 %v8217_v45  ;;  %v13978_v40 = vld [vmem:[%s15109_s3 + $0xd90] sm:$0xff]  ;;  %8755 = vpow2.f32 %v13901_v2  ;;  %v2428_v1 = vmul.f32 1.442695, %v2023_v22  ;;  %v2057_v9 = vsub.f32 %v16083_v20, %v12309_v36  ;;  %v8255_v23 = vpack.c.bf16 %v13959_v33, %v13954_v54  ;;  %v13996_v2 = vld [vmem:[%s15109_s3 + $0xc18] sm:$0xff]  ;;  %v3047_v56 = vld [vmem:[%s15109_s3 + $0xca8] sm:$0xff] }
 0x2d7   :  { %v8738_v10 = vpop.eup %8737  ;;  %4199 = vmatmul.mubr.f32.gmra.mrb[78].mxu1 %v8734_v21  ;;  %4268 = vmatprep.mubr.f32.mxu0 %v8736_v19  ;;  %v13991_v45 = vld [vmem:[%s15109_s3 + $0xc10] sm:$0xff]  ;;  %8757 = vpow2.f32 %v13908_v43  ;;  %v2054_v24 = vsub.f32 %v16084_v28, %v12309_v36  ;;  %v2426_v25 = vmul.f32 1.442695, %v2022_v51  ;;  %v2430_v18 = vmul.f32 1.442695, %v2024_v42  ;;  %v16085_v63 = vld [vmem:[#allocation194_spill] sm:$0xff] }
 0x2d8   :  { %8188 = vmatpush3.bf16.msra.mxu0 %v8187_v55  ;;  %4373 = vmatprep.mubr.f32.mxu1 %v8738_v10  ;;  %v2432_v55 = vmul.f32 1.442695, %v2025_v6  ;;  %v8740_v7 = vpop.eup %8739  ;;  %8759 = vpow2.f32 %v2364_v5  ;;  %v2056_v53 = vsub.f32 %v16085_v63, %v12309_v36  ;;  %v8225_v11 = vpack.c.bf16 %v3045_v29, %v3044_v49  ;;  %v14006_v43 = vld [vmem:[%s15109_s3 + $0xd10] sm:$0xff]  ;;  %v14011_v26 = vld [vmem:[%s15109_s3 + $0xd18] sm:$0xff]  ;;  %v16086_v5 = vld [vmem:[#allocation211_spill] sm:$0xff] }
 0x2d9   :  { %8220 = vmatpush3.bf16.msra.mxu1 %v8219_v16  ;;  %8222 = vmatprep.subr.bf16.mxu0 %v8221_v27  ;;  %v8742_v4 = vpop.eup %8741  ;;  %8761 = vpow2.f32 %v2368_v38  ;;  %v2492_v16 = vmul.f32 1.442695, %v2055_v41  ;;  %v2087_v3 = vsub.f32 %v16086_v5, %v12319_v15  ;;  %v8257_v44 = vpack.c.bf16 %v3077_v0, %v13978_v40  ;;  %v14027_v38 = vld [vmem:[%s15109_s3 + $0xda0] sm:$0xff]  ;;  %v3079_v13 = vld [vmem:[%s15109_s3 + $0xda8] sm:$0xff]  ;;  %v16087_v51 = vld [vmem:[#allocation213_spill] sm:$0xff] }
 0x2da   :  { %8254 = vmatprep.subr.bf16.mxu1 %v8253_v37  ;;  %v8744_v12 = vpop.eup %8743  ;;  %v8227_v22 = vpack.c.bf16 %v13996_v2, %v13991_v45  ;;  %8763 = vpow2.f32 %v2362_v57  ;;  %v2496_v58 = vmul.f32 1.442695, %v2057_v9  ;;  %v14035_v6 = vld [vmem:[%s15109_s3 + $0xc20] sm:$0xff]  ;;  %v14040_v35 = vld [vmem:[%s15109_s3 + $0xc28] sm:$0xff]  ;;  %v2490_v57 = vmul.f32 1.442695, %v2054_v24 }
 0x2db   :  { %4269 = vmatmul.mubr.f32.vlgmr.msra.gmra.mrb[80].mxu0 %v8740_v7  ;;  %v8746_v59 = vpop.eup %8745  ;;  %8765 = vpow2.f32 %v2366_v60  ;;  %v2089_v21 = vsub.f32 %v16087_v51, %v12319_v15  ;;  %v16088_v27 = vld [vmem:[#allocation210_spill] sm:$0xff]  ;;  %v8259_v32 = vpack.c.bf16 %v14011_v26, %v14006_v43  ;;  %v14051_v42 = vld [vmem:[%s15109_s3 + $0xd20] sm:$0xff]  ;;  %v14056_v19 = vld [vmem:[%s15109_s3 + $0xd28] sm:$0xff]  ;;  %v2494_v37 = vmul.f32 1.442695, %v2056_v53 }
 0x2dc   :  { %4374 = vmatmul.mubr.f32.vlgmr.msra.gmra.mrb[80].mxu1 %v8742_v4  ;;  %4273 = vmatprep.mubr.f32.mxu0 %v8744_v12  ;;  %v2086_v54 = vsub.f32 %v16088_v27, %v12319_v15  ;;  %v8748_v33 = vpop.eup %8747  ;;  %8767 = vpow2.f32 %v2428_v1  ;;  %v16089_v60 = vld [vmem:[#allocation212_spill] sm:$0xff]  ;;  %v8229_v10 = vpack.c.bf16 %v3047_v56, %v3046_v62  ;;  %v16090_v49 = vld [vmem:[#allocation225_spill] sm:$0xff]  ;;  %v8261_v20 = vpack.c.bf16 %v3079_v13, %v14027_v38  ;;  %v16091_v0 = vld [vmem:[#allocation227_spill] sm:$0xff] }
 0x2dd   :  { %4378 = vmatprep.mubr.f32.mxu1 %v8746_v59  ;;  %8224 = vmatpush3.bf16.msra.mxu0 %v8223_v46  ;;  %v2088_v61 = vsub.f32 %v16089_v60, %v12319_v15  ;;  %v8750_v41 = vpop.eup %8749  ;;  %8769 = vpow2.f32 %v2432_v55  ;;  %v2556_v46 = vmul.f32 1.442695, %v2087_v3  ;;  %v2119_v29 = vsub.f32 %v16090_v49, %v12337_v8  ;;  %v3048_v9 = vld [vmem:[%s15109_s3 + $0xcb0] sm:$0xff]  ;;  %v3081_v24 = vld [vmem:[%s15109_s3 + $0xdb8] sm:$0xff]  ;;  %v16092_v43 = vld [vmem:[#allocation224_spill] sm:$0xff] }
 0x2de   :  { %8256 = vmatpush3.bf16.msra.mxu1 %v8255_v23  ;;  %8226 = vmatprep.subr.bf16.mxu0 %v8225_v11  ;;  %v8752_v40 = vpop.eup %8751  ;;  %v8231_v1 = vpack.c.bf16 %v14040_v35, %v14035_v6  ;;  %v3049_v23 = vld [vmem:[%s15109_s3 + $0xcb8] sm:$0xff]  ;;  %8771 = vpow2.f32 %v2426_v25  ;;  %v2121_v45 = vsub.f32 %v16091_v0, %v12337_v8  ;;  %v8263_v55 = vpack.c.bf16 %v14056_v19, %v14051_v42  ;;  %v3080_v28 = vld [vmem:[%s15109_s3 + $0xdb0] sm:$0xff]  ;;  %v14112_v13 = vld [vmem:[%s15109_s3 + $0xcc0] sm:$0xff] }
 0x2df   :  { %4274 = vmatmul.mubr.f32.gmra.mrb[82].mxu0 %v8748_v33  ;;  %8258 = vmatprep.subr.bf16.mxu1 %v8257_v44  ;;  %v8754_v2 = vpop.eup %8753  ;;  %8773 = vpow2.f32 %v2430_v18  ;;  %v2560_v7 = vmul.f32 1.442695, %v2089_v21  ;;  %v2554_v25 = vmul.f32 1.442695, %v2086_v54  ;;  %v14084_v53 = vld [vmem:[%s15109_s3 + $0xc30] sm:$0xff]  ;;  %v14089_v4 = vld [vmem:[%s15109_s3 + $0xc38] sm:$0xff]  ;;  %v2118_v18 = vsub.f32 %v16092_v43, %v12337_v8 }
 0x2e0   :  { %4379 = vmatmul.mubr.f32.gmra.mrb[82].mxu1 %v8750_v41  ;;  %4278 = vmatprep.mubr.f32.mxu0 %v8752_v40  ;;  %v8756_v63 = vpop.eup %8755  ;;  %8775 = vpow2.f32 %v2492_v16  ;;  %v2558_v11 = vmul.f32 1.442695, %v2088_v61  ;;  %v16093_v26 = vld [vmem:[#allocation226_spill] sm:$0xff]  ;;  %v8233_v12 = vpack.c.bf16 %v3049_v23, %v3048_v9  ;;  %v14098_v44 = vld [vmem:[%s15109_s3 + $0xd30] sm:$0xff]  ;;  %v8265_v38 = vpack.c.bf16 %v3081_v24, %v3080_v28  ;;  %v16095_v6 = vld [vmem:[#allocation95_spill] sm:$0xff] }
 0x2e1   :  { %4383 = vmatprep.mubr.f32.mxu1 %v8754_v2  ;;  %8228 = vmatpush3.bf16.msra.mxu0 %v8227_v22  ;;  %v2120_v5 = vsub.f32 %v16093_v26, %v12337_v8  ;;  %v8758_v3 = vpop.eup %8757  ;;  %8777 = vpow2.f32 %v2496_v58  ;;  %v14100_v22 = vmul.f32 1.442695, %v2119_v29  ;;  %v16094_v16 = vld [vmem:[#allocation93_spill] sm:$0xff]  ;;  %v14107_v59 = vld [vmem:[%s15109_s3 + $0xd38] sm:$0xff]  ;;  %v3051_v58 = vld [vmem:[%s15109_s3 + $0xcc8] sm:$0xff]  ;;  %v1901_v35 = vsub.f32 %v16095_v6, %v12037_v47 }
 0x2e2   :  { %8260 = vmatpush3.bf16.msra.mxu1 %v8259_v32  ;;  %8230 = vmatprep.subr.bf16.mxu0 %v8229_v10  ;;  %v1899_v62 = vsub.f32 %v16094_v16, %v12037_v47  ;;  %v8760_v56 = vpop.eup %8759  ;;  %8779 = vpow2.f32 %v2490_v57  ;;  %v16096_v51 = vld [vmem:[#allocation91_spill] sm:$0xff]  ;;  %v8235_v54 = vpack.c.bf16 %v14089_v4, %v14084_v53  ;;  %v14131_v57 = vld [vmem:[%s15109_s3 + $0xdc8] sm:$0xff]  ;;  %v2624_v32 = vmul.f32 1.442695, %v2121_v45  ;;  %v16097_v42 = vld [vmem:[#allocation94_spill] sm:$0xff] }
 0x2e3   :  { %4279 = vmatmul.mubr.f32.gmra.mrb[84].mxu0 %v8756_v63  ;;  %8262 = vmatprep.subr.bf16.mxu1 %v8261_v20  ;;  %v1898_v21 = vsub.f32 %v16096_v51, %v12037_v47  ;;  %v8762_v27 = vpop.eup %8761  ;;  %v14126_v33 = vld [vmem:[%s15109_s3 + $0xdc0] sm:$0xff]  ;;  %8781 = vpow2.f32 %v2494_v37  ;;  %v1900_v19 = vsub.f32 %v16097_v42, %v12037_v47  ;;  %v2618_v41 = vmul.f32 1.442695, %v2118_v18  ;;  %v16098_v49 = vld [vmem:[#allocation121_spill] sm:$0xff]  ;;  %v14160_v9 = vld [vmem:[%s15109_s3 + $0xd48] sm:$0xff] }
 0x2e4   :  { %4384 = vmatmul.mubr.f32.gmra.mrb[84].mxu1 %v8758_v3  ;;  %4283 = vmatprep.mubr.f32.mxu0 %v8760_v56  ;;  %v8764_v60 = vpop.eup %8763  ;;  %v14138_v61 = vld [vmem:[%s15109_s3 + $0xc40] sm:$0xff]  ;;  %8783 = vpow2.f32 %v2556_v46  ;;  %v14140_v10 = vmul.f32 1.442695, %v2120_v5  ;;  %v1931_v29 = vsub.f32 %v16098_v49, %v12119_v34  ;;  %v8267_v40 = vpack.c.bf16 %v14107_v59, %v14098_v44  ;;  %v14169_v2 = vld [vmem:[%s15109_s3 + $0xcd0] sm:$0xff]  ;;  %v14188_v53 = vld [vmem:[%s15109_s3 + $0xdd8] sm:$0xff] }
 0x2e5   :  { %4388 = vmatprep.mubr.f32.mxu1 %v8762_v27  ;;  %8232 = vmatpush3.bf16.msra.mxu0 %v8231_v1  ;;  %v8766_v37 = vpop.eup %8765  ;;  %v8237_v20 = vpack.c.bf16 %v3051_v58, %v14112_v13  ;;  %v14150_v1 = vld [vmem:[%s15109_s3 + $0xc48] sm:$0xff]  ;;  %v14155_v46 = vld [vmem:[%s15109_s3 + $0xd40] sm:$0xff]  ;;  %8785 = vpow2.f32 %v2560_v7  ;;  %v14162_v23 = vmul.f32 1.442695, %v1899_v62  ;;  %v8269_v45 = vpack.c.bf16 %v14131_v57, %v14126_v33  ;;  %v14183_v63 = vld [vmem:[%s15109_s3 + $0xdd0] sm:$0xff] }
 0x2e6   :  { %8264 = vmatpush3.bf16.msra.mxu1 %v8263_v55  ;;  %8234 = vmatprep.subr.bf16.mxu0 %v8233_v12  ;;  %v8768_v0 = vpop.eup %8767  ;;  %v14174_v55 = vld [vmem:[%s15109_s3 + $0xcd8] sm:$0xff]  ;;  %8787 = vpow2.f32 %v2554_v25  ;;  %v14176_v28 = vmul.f32 1.442695, %v1901_v35  ;;  %v14178_v24 = vmul.f32 1.442695, %v1898_v21  ;;  %v16099_v25 = vld [vmem:[#allocation124_spill] sm:$0xff]  ;;  %v8239_v5 = vpack.c.bf16 %v14150_v1, %v14138_v61 }
 0x2e7   :  { %4284 = vmatmul.mubr.f32.gmra.mrb[86].mxu0 %v8764_v60  ;;  %8266 = vmatprep.subr.bf16.mxu1 %v8265_v38  ;;  %v8770_v7 = vpop.eup %8769  ;;  %8789 = vpow2.f32 %v2558_v11  ;;  %v14190_v4 = vmul.f32 1.442695, %v1900_v19  ;;  %v1933_v43 = vsub.f32 %v16099_v25, %v12119_v34  ;;  %v6776_v18 = vpop.f32.mrb[10].mxu0  ;;  %v8271_v3 = vpack.c.bf16 %v14160_v9, %v14155_v46  ;;  %v14201_v12 = vld [vmem:[%s15109_s3 + $0xc50] sm:$0xff]  ;;  %v14206_v11 = vld [vmem:[%s15109_s3 + $0xc58] sm:$0xff]  ;;  %v3054_v27 = vld [vmem:[%s15109_s3 + $0xce0] sm:$0xff] }
 0x2e8   :  { %4389 = vmatmul.mubr.f32.gmra.mrb[86].mxu1 %v8766_v37  ;;  %4288 = vmatprep.mubr.f32.mxu0 %v8768_v0  ;;  %v8772_v26 = vpop.eup %8771  ;;  %8791 = vpow2.f32 %v14100_v22  ;;  %v14209_v44 = vmul.f32 1.442695, %v1931_v29  ;;  %v6832_v16 = vpop.f32.mrb[10].mxu1  ;;  %v8241_v38 = vpack.c.bf16 %v14174_v55, %v14169_v2  ;;  %v14216_v59 = vld [vmem:[%s15109_s3 + $0xd50] sm:$0xff]  ;;  %v14221_v13 = vld [vmem:[%s15109_s3 + $0xd58] sm:$0xff]  ;;  %v16100_v22 = vld [vmem:[#allocation120_spill] sm:$0xff]  ;;  %v8273_v21 = vpack.c.bf16 %v14188_v53, %v14183_v63 }
 0x2e9   :  { %4393 = vmatprep.mubr.f32.mxu1 %v8770_v7  ;;  %8236 = vmatpush3.bf16.msra.mxu0 %v8235_v54  ;;  %v6777_v62 = vpop.f32.mrb[11].mxu0  ;;  %v8774_v56 = vpop.eup %8773  ;;  %8793 = vpow2.f32 %v2624_v32  ;;  %v1930_v58 = vsub.f32 %v16100_v22, %v12119_v34  ;;  %v3055_v54 = vld [vmem:[%s15109_s3 + $0xce8] sm:$0xff]  ;;  %v16101_v33 = vld [vmem:[#allocation122_spill] sm:$0xff]  ;;  %v8243_v19 = vpack.c.bf16 %v14206_v11, %v14201_v12  ;;  %v3086_v60 = vld [vmem:[%s15109_s3 + $0xde0] sm:$0xff] }
 0x2ea   :  { %8268 = vmatpush3.bf16.msra.mxu1 %v8267_v40  ;;  %8238 = vmatprep.subr.bf16.mxu0 %v8237_v20  ;;  %v6778_v6 = vadd.f32 %v6777_v62, %v6776_v18  ;;  %v6833_v35 = vpop.f32.mrb[11].mxu1  ;;  %v8776_v51 = vpop.eup %8775  ;;  %8795 = vpow2.f32 %v2618_v41  ;;  %v1932_v57 = vsub.f32 %v16101_v33, %v12119_v34  ;;  %v3087_v61 = vld [vmem:[%s15109_s3 + $0xde8] sm:$0xff]  ;;  %v2248_v41 = vmul.f32 1.442695, %v1933_v43  ;;  %v16102_v49 = vld [vmem:[#allocation59_spill] sm:$0xff]  ;;  %v3056_v18 = vld [vmem:[%s15109_s3 + $0xcf0] sm:$0xff] }
 0x2eb   :  { %4289 = vmatmul.mubr.f32.gmra.mrb[88].mxu0 %v8772_v26  ;;  %8270 = vmatprep.subr.bf16.mxu1 %v8269_v45  ;;  %v6834_v32 = vadd.f32 %v6833_v35, %v6832_v16  ;;  %v8778_v42 = vpop.eup %8777  ;;  %8797 = vpow2.f32 %v14140_v10  ;;  %v1963_v29 = vsub.f32 %v16102_v49, %v12086_v14  ;;  %v8275_v40 = vpack.c.bf16 %v14221_v13, %v14216_v59  ;;  %v14251_v20 = vld [vmem:[%s15109_s3 + $0xc60] sm:$0xff]  ;;  %v14256_v1 = vld [vmem:[%s15109_s3 + $0xc68] sm:$0xff]  ;;  %v16103_v10 = vld [vmem:[#allocation62_spill] sm:$0xff] }
 0x2ec   :  { %4394 = vmatmul.mubr.f32.gmra.mrb[88].mxu1 %v8774_v56  ;;  %4293 = vmatprep.mubr.f32.mxu0 %v8776_v51  ;;  %v8780_v37 = vpop.eup %8779  ;;  %8799 = vpow2.f32 %v14162_v23  ;;  %v1965_v46 = vsub.f32 %v16103_v10, %v12086_v14  ;;  %v8245_v45 = vpack.c.bf16 %v3055_v54, %v3054_v27  ;;  %v14266_v2 = vld [vmem:[%s15109_s3 + $0xd60] sm:$0xff]  ;;  %v14271_v55 = vld [vmem:[%s15109_s3 + $0xd68] sm:$0xff]  ;;  %v16104_v23 = vld [vmem:[#allocation58_spill] sm:$0xff]  ;;  %v8277_v43 = vpack.c.bf16 %v3087_v61, %v3086_v60 }
 0x2ed   :  { %4398 = vmatprep.mubr.f32.mxu1 %v8778_v42  ;;  %8240 = vmatpush3.bf16.msra.mxu0 %v8239_v5  ;;  %v14261_v9 = vadd.f32 %v6834_v32, %v6778_v6  ;;  %v8782_v0 = vpop.eup %8781  ;;  %8801 = vpow2.f32 %v14176_v28  ;;  %v1962_v7 = vsub.f32 %v16104_v23, %v12086_v14  ;;  %v16105_v63 = vld [vmem:[#allocation60_spill] sm:$0xff]  ;;  %v3057_v26 = vld [vmem:[%s15109_s3 + $0xcf8] sm:$0xff]  ;;  %v2242_v5 = vmul.f32 1.442695, %v1930_v58  ;;  %v3088_v62 = vld [vmem:[%s15109_s3 + $0xdf0] sm:$0xff] }
 0x2ee   :  { %8272 = vmatpush3.bf16.msra.mxu1 %v8271_v3  ;;  %8242 = vmatprep.subr.bf16.mxu0 %v8241_v38  ;;  %v1964_v53 = vsub.f32 %v16105_v63, %v12086_v14  ;;  %v8784_v25 = vpop.eup %8783  ;;  %v2246_v28 = vmul.f32 1.442695, %v1932_v57  ;;  %v16106_v3 = vld [vmem:[#allocation152_spill] sm:$0xff]  ;;  %v8247_v16 = vpack.c.bf16 %v14256_v1, %v14251_v20  ;;  %v3089_v56 = vld [vmem:[%s15109_s3 + $0xdf8] sm:$0xff]  ;;  %8803 = vpow2.f32 %v14178_v24  ;;  %v14302_v6 = vld [vmem:[%s15109_s3 + $0xc70] sm:$0xff] }
 0x2ef   :  { %4294 = vmatmul.mubr.f32.gmra.mrb[90].mxu0 %v8780_v37  ;;  %8274 = vmatprep.subr.bf16.mxu1 %v8273_v21  ;;  %v1995_v12 = vsub.f32 %v16106_v3, %v12253_v30  ;;  %v8786_v11 = vpop.eup %8785  ;;  %v2308_v38 = vmul.f32 1.442695, %v1963_v29  ;;  %v16107_v59 = vld [vmem:[#allocation154_spill] sm:$0xff]  ;;  %v8279_v58 = vpack.c.bf16 %v14271_v55, %v14266_v2  ;;  %8805 = vpow2.f32 %v14190_v4  ;;  %v14315_v33 = vld [vmem:[%s15109_s3 + $0xd70] sm:$0xff]  ;;  %v3106_v60 = vld [vmem:[%s15109_s3 + $0xe80] sm:$0xff] }
 0x2f0   :  { %4399 = vmatmul.mubr.f32.gmra.mrb[90].mxu1 %v8782_v0  ;;  %4298 = vmatprep.mubr.f32.mxu0 %v8784_v25  ;;  %v1997_v13 = vsub.f32 %v16107_v59, %v12253_v30  ;;  %v8788_v22 = vpop.eup %8787  ;;  %v14307_v35 = vld [vmem:[%s15109_s3 + $0xc78] sm:$0xff]  ;;  %v2312_v24 = vmul.f32 1.442695, %v1965_v46  ;;  %v8249_v54 = vpack.c.bf16 %v3057_v26, %v3056_v18  ;;  %8807 = vpow2.f32 %v14209_v44  ;;  %v3107_v61 = vld [vmem:[%s15109_s3 + $0xe88] sm:$0xff]  ;;  %v16109_v29 = vld [vmem:[#allocation153_spill] sm:$0xff] }
 0x2f1   :  { %4403 = vmatprep.mubr.f32.mxu1 %v8786_v11  ;;  %8244 = vmatpush3.bf16.msra.mxu0 %v8243_v19  ;;  %v16108_v51 = vld [vmem:[#allocation150_spill] sm:$0xff]  ;;  %v8790_v27 = vpop.eup %8789  ;;  %v2306_v4 = vmul.f32 1.442695, %v1962_v7  ;;  %v2310_v32 = vmul.f32 1.442695, %v1964_v53  ;;  %v8281_v19 = vpack.c.bf16 %v3089_v56, %v3088_v62  ;;  %8809 = vpow2.f32 %v2248_v41  ;;  %v3138_v20 = vld [vmem:[%s15109_s3 + $0xf80] sm:$0xff] }
 0x2f2   :  { %v1994_v21 = vsub.f32 %v16108_v51, %v12253_v30  ;;  %8276 = vmatpush3.bf16.msra.mxu1 %v8275_v40  ;;  %8246 = vmatprep.subr.bf16.mxu0 %v8245_v45  ;;  %v14320_v57 = vld [vmem:[%s15109_s3 + $0xd78] sm:$0xff]  ;;  %v8792_v42 = vpop.eup %8791  ;;  %v2372_v49 = vmul.f32 1.442695, %v1995_v12  ;;  %v1996_v37 = vsub.f32 %v16109_v29, %v12253_v30  ;;  %v8251_v40 = vpack.c.bf16 %v14307_v35, %v14302_v6  ;;  %v3139_v1 = vld [vmem:[%s15109_s3 + $0xf88] sm:$0xff]  ;;  %v16110_v10 = vld [vmem:[#allocation179_spill] sm:$0xff] }
 0x2f3   :  { %4299 = vmatmul.mubr.f32.gmra.mrb[92].mxu0 %v8788_v22  ;;  %8278 = vmatprep.subr.bf16.mxu1 %v8277_v43  ;;  %v8794_v44 = vpop.eup %8793  ;;  %8811 = vpow2.f32 %v2242_v5  ;;  %v2376_v41 = vmul.f32 1.442695, %v1997_v13  ;;  %v2027_v46 = vsub.f32 %v16110_v10, %v12299_v52  ;;  %v8283_v45 = vpack.c.bf16 %v14320_v57, %v14315_v33  ;;  %v16111_v55 = vld [vmem:[#allocation182_spill] sm:$0xff]  ;;  %v16113_v43 = vld [vmem:[#allocation181_spill] sm:$0xff]  ;;  %v3091_v3 = vld [vmem:[%s15109_s3 + $0xe08] sm:$0xff] }
 0x2f4   :  { %4404 = vmatmul.mubr.f32.gmra.mrb[92].mxu1 %v8790_v27  ;;  %4303 = vmatprep.mubr.f32.mxu0 %v8792_v42  ;;  %v8796_v0 = vpop.eup %8795  ;;  %8813 = vpow2.f32 %v2246_v28  ;;  %v2370_v2 = vmul.f32 1.442695, %v1994_v21  ;;  %v2029_v23 = vsub.f32 %v16111_v55, %v12299_v52  ;;  %v8285_v63 = vpack.c.bf16 %v3107_v61, %v3106_v60  ;;  %v16112_v53 = vld [vmem:[#allocation178_spill] sm:$0xff]  ;;  %v3090_v28 = vld [vmem:[%s15109_s3 + $0xe00] sm:$0xff]  ;;  %v3108_v59 = vld [vmem:[%s15109_s3 + $0xe90] sm:$0xff] }
 0x2f5   :  { %4408 = vmatprep.mubr.f32.mxu1 %v8794_v44  ;;  %8248 = vmatpush3.bf16.msra.mxu0 %v8247_v16  ;;  %v8798_v7 = vpop.eup %8797  ;;  %8815 = vpow2.f32 %v2308_v38  ;;  %v2026_v25 = vsub.f32 %v16112_v53, %v12299_v52  ;;  %v2028_v18 = vsub.f32 %v16113_v43, %v12299_v52  ;;  %v8317_v5 = vpack.c.bf16 %v3139_v1, %v3138_v20  ;;  %v14358_v12 = vld [vmem:[%s15109_s3 + $0xf00] sm:$0xff]  ;;  %v16114_v16 = vld [vmem:[#allocation198_spill] sm:$0xff]  ;;  %v3123_v38 = vld [vmem:[%s15109_s3 + $0xf08] sm:$0xff] }
 0x2f6   :  { %8280 = vmatpush3.bf16.msra.mxu1 %v8279_v58  ;;  %8250 = vmatprep.subr.bf16.mxu0 %v8249_v54  ;;  %v8800_v26 = vpop.eup %8799  ;;  %8817 = vpow2.f32 %v2312_v24  ;;  %v2374_v11 = vmul.f32 1.442695, %v1996_v37  ;;  %v2059_v62 = vsub.f32 %v16114_v16, %v12309_v36  ;;  %v3109_v13 = vld [vmem:[%s15109_s3 + $0xe98] sm:$0xff]  ;;  %v2436_v22 = vmul.f32 1.442695, %v2027_v46  ;;  %v16115_v58 = vld [vmem:[#allocation200_spill] sm:$0xff] }
 0x2f7   :  { %4304 = vmatmul.mubr.f32.gmra.mrb[94].mxu0 %v8796_v0  ;;  %8282 = vmatprep.subr.bf16.mxu1 %v8281_v19  ;;  %v8802_v56 = vpop.eup %8801  ;;  %8819 = vpow2.f32 %v2306_v4  ;;  %v2061_v6 = vsub.f32 %v16115_v58, %v12309_v36  ;;  %v3140_v35 = vld [vmem:[%s15109_s3 + $0xf90] sm:$0xff]  ;;  %v3141_v24 = vld [vmem:[%s15109_s3 + $0xf98] sm:$0xff]  ;;  %v2440_v51 = vmul.f32 1.442695, %v2029_v23  ;;  %v16117_v54 = vld [vmem:[#allocation199_spill] sm:$0xff]  ;;  %v8287_v4 = vpack.c.bf16 %v3091_v3, %v3090_v28 }
 0x2f8   :  { %4409 = vmatmul.mubr.f32.gmra.mrb[94].mxu1 %v8798_v7  ;;  %4478 = vmatprep.mubr.f32.mxu0 %v8800_v26  ;;  %8821 = vpow2.f32 %v2310_v32  ;;  %v16116_v21 = vld [vmem:[#allocation197_spill] sm:$0xff]  ;;  %v2060_v33 = vsub.f32 %v16117_v54, %v12309_v36  ;;  %v8804_v57 = vpop.eup %8803  ;;  %v2434_v42 = vmul.f32 1.442695, %v2026_v25  ;;  %v2438_v19 = vmul.f32 1.442695, %v2028_v18  ;;  %v3093_v37 = vld [vmem:[%s15109_s3 + $0xe18] sm:$0xff] }
 0x2f9   :  { %8252 = vmatpush3.bf16.msra.mxu0 %v8251_v40  ;;  %4583 = vmatprep.mubr.f32.mxu1 %v8802_v56  ;;  %v2058_v27 = vsub.f32 %v16116_v21, %v12309_v36  ;;  %8823 = vpow2.f32 %v2372_v49  ;;  %v8806_v60 = vpop.eup %8805  ;;  %v8319_v61 = vpack.c.bf16 %v3123_v38, %v14358_v12  ;;  %v8289_v29 = vpack.c.bf16 %v3109_v13, %v3108_v59  ;;  %v3092_v32 = vld [vmem:[%s15109_s3 + $0xe10] sm:$0xff]  ;;  %v3125_v1 = vld [vmem:[%s15109_s3 + $0xf18] sm:$0xff]  ;;  %v3110_v10 = vld [vmem:[%s15109_s3 + $0xea0] sm:$0xff] }
 0x2fa   :  { %8284 = vmatpush3.bf16.msra.mxu1 %v8283_v45  ;;  %8286 = vmatprep.subr.bf16.mxu0 %v8285_v63  ;;  %v14393_v44 = vld [vmem:[%s15109_s3 + $0xf10] sm:$0xff]  ;;  %8825 = vpow2.f32 %v2376_v41  ;;  %v2500_v49 = vmul.f32 1.442695, %v2059_v62  ;;  %v8808_v40 = vpop.eup %8807  ;;  %v8321_v20 = vpack.c.bf16 %v3141_v24, %v3140_v35  ;;  %v3111_v46 = vld [vmem:[%s15109_s3 + $0xea8] sm:$0xff]  ;;  %v2504_v0 = vmul.f32 1.442695, %v2061_v6 }
 0x2fb   :  { %8318 = vmatprep.subr.bf16.mxu1 %v8317_v5  ;;  %8827 = vpow2.f32 %v2370_v2  ;;  %v16118_v41 = vld [vmem:[#allocation215_spill] sm:$0xff]  ;;  %v8810_v55 = vpop.eup %8809  ;;  %v3143_v7 = vld [vmem:[%s15109_s3 + $0xfa8] sm:$0xff]  ;;  %v2498_v63 = vmul.f32 1.442695, %v2058_v27  ;;  %v16119_v53 = vld [vmem:[#allocation217_spill] sm:$0xff]  ;;  %v8291_v26 = vpack.c.bf16 %v3093_v37, %v3092_v32  ;;  %v8293_v16 = vpack.c.bf16 %v3111_v46, %v3110_v10 }
 0x2fc   :  { %4479 = vmatmul.mubr.f32.vlgmr.msra.gmra.mrb[96].mxu0 %v8804_v57  ;;  %v2091_v45 = vsub.f32 %v16118_v41, %v12319_v15  ;;  %v3142_v23 = vld [vmem:[%s15109_s3 + $0xfa0] sm:$0xff]  ;;  %8829 = vpow2.f32 %v2374_v11  ;;  %v2093_v2 = vsub.f32 %v16119_v53, %v12319_v15  ;;  %v16120_v25 = vld [vmem:[#allocation214_spill] sm:$0xff]  ;;  %v2502_v5 = vmul.f32 1.442695, %v2060_v33  ;;  %v16121_v28 = vld [vmem:[#allocation216_spill] sm:$0xff] }
 0x2fd   :  { %4584 = vmatmul.mubr.f32.vlgmr.msra.gmra.mrb[96].mxu1 %v8806_v60  ;;  %4483 = vmatprep.mubr.f32.mxu0 %v8808_v40  ;;  %v2090_v43 = vsub.f32 %v16120_v25, %v12319_v15  ;;  %v8812_v18 = vpop.eup %8811  ;;  %8831 = vpow2.f32 %v2436_v22  ;;  %v2092_v3 = vsub.f32 %v16121_v28, %v12319_v15  ;;  %v8323_v11 = vpack.c.bf16 %v3125_v1, %v14393_v44  ;;  %v14422_v62 = vld [vmem:[%s15109_s3 + $0xe20] sm:$0xff]  ;;  %v3095_v56 = vld [vmem:[%s15109_s3 + $0xe28] sm:$0xff]  ;;  %v16122_v59 = vld [vmem:[#allocation229_spill] sm:$0xff] }
 0x2fe   :  { %4588 = vmatprep.mubr.f32.mxu1 %v8810_v55  ;;  %8288 = vmatpush3.bf16.msra.mxu0 %v8287_v4  ;;  %v8814_v12 = vpop.eup %8813  ;;  %v14430_v38 = vld [vmem:[%s15109_s3 + $0xf20] sm:$0xff]  ;;  %8833 = vpow2.f32 %v2440_v51  ;;  %v2123_v13 = vsub.f32 %v16122_v59, %v12337_v8  ;;  %v8325_v58 = vpack.c.bf16 %v3143_v7, %v3142_v23  ;;  %v3127_v6 = vld [vmem:[%s15109_s3 + $0xf28] sm:$0xff]  ;;  %v3112_v35 = vld [vmem:[%s15109_s3 + $0xeb0] sm:$0xff]  ;;  %v2564_v51 = vmul.f32 1.442695, %v2091_v45 }
 0x2ff   :  { %8320 = vmatpush3.bf16.msra.mxu1 %v8319_v61  ;;  %8290 = vmatprep.subr.bf16.mxu0 %v8289_v29  ;;  %v8816_v22 = vpop.eup %8815  ;;  %v3113_v24 = vld [vmem:[%s15109_s3 + $0xeb8] sm:$0xff]  ;;  %8835 = vpow2.f32 %v2434_v42  ;;  %v14446_v27 = vld [vmem:[%s15109_s3 + $0xfb0] sm:$0xff]  ;;  %v2568_v33 = vmul.f32 1.442695, %v2093_v2  ;;  %v14451_v57 = vmul.f32 1.442695, %v2090_v43  ;;  %v8295_v42 = vpack.c.bf16 %v3095_v56, %v14422_v62 }
 0x300   :  { %4484 = vmatmul.mubr.f32.gmra.mrb[98].mxu0 %v8812_v18  ;;  %8322 = vmatprep.subr.bf16.mxu1 %v8321_v20  ;;  %v8818_v21 = vpop.eup %8817  ;;  %v3145_v54 = vld [vmem:[%s15109_s3 + $0xfb8] sm:$0xff]  ;;  %8837 = vpow2.f32 %v2438_v19  ;;  %v14454_v60 = vmul.f32 1.442695, %v2092_v3  ;;  %v16123_v61 = vld [vmem:[#allocation39_spill] sm:$0xff]  ;;  %v8327_v37 = vpack.c.bf16 %v3127_v6, %v14430_v38  ;;  %v8297_v19 = vpack.c.bf16 %v3113_v24, %v3112_v35  ;;  %v14462_v44 = vld [vmem:[%s15109_s3 + $0xe30] sm:$0xff] }
 0x301   :  { %4589 = vmatmul.mubr.f32.gmra.mrb[98].mxu1 %v8814_v12  ;;  %4488 = vmatprep.mubr.f32.mxu0 %v8816_v22  ;;  %v8820_v4 = vpop.eup %8819  ;;  %8839 = vpow2.f32 %v2500_v49  ;;  %v2125_v29 = vsub.f32 %v16123_v61, %v12337_v8  ;;  %v14467_v49 = vld [vmem:[%s15109_s3 + $0xe38] sm:$0xff]  ;;  %v14472_v40 = vld [vmem:[%s15109_s3 + $0xf30] sm:$0xff]  ;;  %v14474_v20 = vmul.f32 1.442695, %v2123_v13  ;;  %v8329_v46 = vpack.c.bf16 %v3145_v54, %v14446_v27  ;;  %v3114_v45 = vld [vmem:[%s15109_s3 + $0xec0] sm:$0xff] }
 0x302   :  { %4593 = vmatprep.mubr.f32.mxu1 %v8818_v21  ;;  %8292 = vmatpush3.bf16.msra.mxu0 %v8291_v26  ;;  %v8822_v32 = vpop.eup %8821  ;;  %8841 = vpow2.f32 %v2504_v0  ;;  %v6779_v1 = vpop.f32.mrb[12].mxu0  ;;  %v3129_v41 = vld [vmem:[%s15109_s3 + $0xf38] sm:$0xff]  ;;  %v3115_v0 = vld [vmem:[%s15109_s3 + $0xec8] sm:$0xff]  ;;  %v3146_v25 = vld [vmem:[%s15109_s3 + $0xfc0] sm:$0xff] }
 0x303   :  { %8324 = vmatpush3.bf16.msra.mxu1 %v8323_v11  ;;  %8294 = vmatprep.subr.bf16.mxu0 %v8293_v16  ;;  %v8824_v10 = vpop.eup %8823  ;;  %8843 = vpow2.f32 %v2498_v63  ;;  %v16124_v55 = vld [vmem:[#allocation228_spill] sm:$0xff]  ;;  %v6835_v7 = vpop.f32.mrb[12].mxu1  ;;  %v16125_v18 = vld [vmem:[#allocation230_spill] sm:$0xff]  ;;  %v8299_v16 = vpack.c.bf16 %v14467_v49, %v14462_v44  ;;  %v16127_v62 = vld [vmem:[#allocation101_spill] sm:$0xff]  ;;  %v8331_v59 = vpack.c.bf16 %v3129_v41, %v14472_v40  ;;  %v8301_v13 = vpack.c.bf16 %v3115_v0, %v3114_v45 }
 0x304   :  { %4489 = vmatmul.mubr.f32.gmra.mrb[100].mxu0 %v8820_v4  ;;  %8326 = vmatprep.subr.bf16.mxu1 %v8325_v58  ;;  %v2122_v23 = vsub.f32 %v16124_v55, %v12337_v8  ;;  %v6780_v53 = vpop.f32.mrb[13].mxu0  ;;  %v8826_v2 = vpop.eup %8825  ;;  %v3147_v43 = vld [vmem:[%s15109_s3 + $0xfc8] sm:$0xff]  ;;  %8845 = vpow2.f32 %v2502_v5  ;;  %v2124_v63 = vsub.f32 %v16125_v18, %v12337_v8  ;;  %v16126_v26 = vld [vmem:[#allocation98_spill] sm:$0xff]  ;;  %v1905_v56 = vsub.f32 %v16127_v62, %v12037_v47  ;;  %v3098_v22 = vld [vmem:[%s15109_s3 + $0xe40] sm:$0xff] }
 0x305   :  { %4594 = vmatmul.mubr.f32.gmra.mrb[100].mxu1 %v8822_v32  ;;  %4493 = vmatprep.mubr.f32.mxu0 %v8824_v10  ;;  %v1903_v28 = vsub.f32 %v16126_v26, %v12037_v47  ;;  %v6781_v3 = vadd.f32 %v6780_v53, %v6779_v1  ;;  %v6836_v12 = vpop.f32.mrb[13].mxu1  ;;  %v8828_v11 = vpop.eup %8827  ;;  %8847 = vpow2.f32 %v2564_v51  ;;  %v3099_v58 = vld [vmem:[%s15109_s3 + $0xe48] sm:$0xff]  ;;  %v14512_v6 = vld [vmem:[%s15109_s3 + $0xf40] sm:$0xff]  ;;  %v2632_v35 = vmul.f32 1.442695, %v2125_v29  ;;  %v3116_v27 = vld [vmem:[%s15109_s3 + $0xed0] sm:$0xff] }
 0x306   :  { %4598 = vmatprep.mubr.f32.mxu1 %v8826_v2  ;;  %8296 = vmatpush3.bf16.msra.mxu0 %v8295_v42  ;;  %v6837_v38 = vadd.f32 %v6836_v12, %v6835_v7  ;;  %v8830_v5 = vpop.eup %8829  ;;  %8849 = vpow2.f32 %v2568_v33  ;;  %v8333_v51 = vpack.c.bf16 %v3147_v43, %v3146_v25  ;;  %v3131_v21 = vld [vmem:[%s15109_s3 + $0xf48] sm:$0xff]  ;;  %v3117_v54 = vld [vmem:[%s15109_s3 + $0xed8] sm:$0xff]  ;;  %v2626_v33 = vmul.f32 1.442695, %v2122_v23  ;;  %v3148_v61 = vld [vmem:[%s15109_s3 + $0xfd0] sm:$0xff] }
 0x307   :  { %8328 = vmatpush3.bf16.msra.mxu1 %v8327_v37  ;;  %8298 = vmatprep.subr.bf16.mxu0 %v8297_v19  ;;  %v8832_v24 = vpop.eup %8831  ;;  %8851 = vpow2.f32 %v14451_v57  ;;  %v3149_v29 = vld [vmem:[%s15109_s3 + $0xfd8] sm:$0xff]  ;;  %v2630_v32 = vmul.f32 1.442695, %v2124_v63  ;;  %v2188_v37 = vmul.f32 1.442695, %v1903_v28  ;;  %v16128_v57 = vld [vmem:[#allocation97_spill] sm:$0xff]  ;;  %v8303_v49 = vpack.c.bf16 %v3099_v58, %v3098_v22 }
 0x308   :  { %4494 = vmatmul.mubr.f32.gmra.mrb[102].mxu0 %v8828_v11  ;;  %8330 = vmatprep.subr.bf16.mxu1 %v8329_v46  ;;  %v14524_v4 = vadd.f32 %v6837_v38, %v6781_v3  ;;  %v8834_v42 = vpop.eup %8833  ;;  %8853 = vpow2.f32 %v14454_v60  ;;  %v1902_v19 = vsub.f32 %v16128_v57, %v12037_v47  ;;  %v2192_v40 = vmul.f32 1.442695, %v1905_v56  ;;  %v16129_v1 = vld [vmem:[#allocation99_spill] sm:$0xff]  ;;  %v3100_v45 = vld [vmem:[%s15109_s3 + $0xe50] sm:$0xff]  ;;  %v3101_v0 = vld [vmem:[%s15109_s3 + $0xe58] sm:$0xff] }
 0x309   :  { %4599 = vmatmul.mubr.f32.gmra.mrb[102].mxu1 %v8830_v5  ;;  %4498 = vmatprep.mubr.f32.mxu0 %v8832_v24  ;;  %v8836_v44 = vpop.eup %8835  ;;  %8855 = vpow2.f32 %v14474_v20  ;;  %v1904_v10 = vsub.f32 %v16129_v1, %v12037_v47  ;;  %v8335_v60 = vpack.c.bf16 %v3131_v21, %v14512_v6  ;;  %v8305_v41 = vpack.c.bf16 %v3117_v54, %v3116_v27  ;;  %v14548_v20 = vld [vmem:[%s15109_s3 + $0xf50] sm:$0xff]  ;;  %v16130_v55 = vld [vmem:[#allocation126_spill] sm:$0xff]  ;;  %v3118_v25 = vld [vmem:[%s15109_s3 + $0xee0] sm:$0xff] }
 0x30a   :  { %4603 = vmatprep.mubr.f32.mxu1 %v8834_v42  ;;  %8300 = vmatpush3.bf16.msra.mxu0 %v8299_v16  ;;  %v8838_v46 = vpop.eup %8837  ;;  %8857 = vpow2.f32 %v2632_v35  ;;  %v1935_v23 = vsub.f32 %v16130_v55, %v12119_v34  ;;  %v8337_v53 = vpack.c.bf16 %v3149_v29, %v3148_v61  ;;  %v3133_v2 = vld [vmem:[%s15109_s3 + $0xf58] sm:$0xff]  ;;  %v3119_v43 = vld [vmem:[%s15109_s3 + $0xee8] sm:$0xff]  ;;  %v16131_v18 = vld [vmem:[#allocation129_spill] sm:$0xff]  ;;  %v2186_v12 = vmul.f32 1.442695, %v1902_v19 }
 0x30b   :  { %8332 = vmatpush3.bf16.msra.mxu1 %v8331_v59  ;;  %8302 = vmatprep.subr.bf16.mxu0 %v8301_v13  ;;  %v8840_v7 = vpop.eup %8839  ;;  %8859 = vpow2.f32 %v2626_v33  ;;  %v1937_v63 = vsub.f32 %v16131_v18, %v12119_v34  ;;  %v3150_v28 = vld [vmem:[%s15109_s3 + $0xfe0] sm:$0xff]  ;;  %v3151_v3 = vld [vmem:[%s15109_s3 + $0xfe8] sm:$0xff]  ;;  %v16132_v11 = vld [vmem:[#allocation125_spill] sm:$0xff]  ;;  %v8307_v5 = vpack.c.bf16 %v3101_v0, %v3100_v45  ;;  %v2190_v59 = vmul.f32 1.442695, %v1904_v10 }
 0x30c   :  { %4499 = vmatmul.mubr.f32.gmra.mrb[104].mxu0 %v8836_v44  ;;  %8334 = vmatprep.subr.bf16.mxu1 %v8333_v51  ;;  %v8842_v26 = vpop.eup %8841  ;;  %8861 = vpow2.f32 %v2630_v32  ;;  %v1934_v16 = vsub.f32 %v16132_v11, %v12119_v34  ;;  %v16133_v62 = vld [vmem:[#allocation128_spill] sm:$0xff]  ;;  %v8339_v6 = vpack.c.bf16 %v3133_v2, %v14548_v20  ;;  %v8309_v35 = vpack.c.bf16 %v3119_v43, %v3118_v25  ;;  %v3102_v24 = vld [vmem:[%s15109_s3 + $0xe60] sm:$0xff]  ;;  %v3120_v61 = vld [vmem:[%s15109_s3 + $0xef0] sm:$0xff] }
 0x30d   :  { %4604 = vmatmul.mubr.f32.gmra.mrb[104].mxu1 %v8838_v46  ;;  %4503 = vmatprep.mubr.f32.mxu0 %v8840_v7  ;;  %v1936_v56 = vsub.f32 %v16133_v62, %v12119_v34  ;;  %v8844_v38 = vpop.eup %8843  ;;  %8863 = vpow2.f32 %v2188_v37  ;;  %v16134_v13 = vld [vmem:[#allocation64_spill] sm:$0xff]  ;;  %v3134_v21 = vld [vmem:[%s15109_s3 + $0xf60] sm:$0xff]  ;;  %v2252_v27 = vmul.f32 1.442695, %v1935_v23  ;;  %v8341_v33 = vpack.c.bf16 %v3151_v3, %v3150_v28  ;;  %v3121_v29 = vld [vmem:[%s15109_s3 + $0xef8] sm:$0xff] }
 0x30e   :  { %4608 = vmatprep.mubr.f32.mxu1 %v8842_v26  ;;  %8304 = vmatpush3.bf16.msra.mxu0 %v8303_v49  ;;  %v1967_v22 = vsub.f32 %v16134_v13, %v12086_v14  ;;  %v8846_v58 = vpop.eup %8845  ;;  %v3103_v51 = vld [vmem:[%s15109_s3 + $0xe68] sm:$0xff]  ;;  %8865 = vpow2.f32 %v2192_v40  ;;  %v2256_v32 = vmul.f32 1.442695, %v1937_v63  ;;  %v16135_v37 = vld [vmem:[#allocation67_spill] sm:$0xff]  ;;  %v3152_v44 = vld [vmem:[%s15109_s3 + $0xff0] sm:$0xff]  ;;  %v8313_v7 = vpack.c.bf16 %v3121_v29, %v3120_v61 }
 0x30f   :  { %8336 = vmatpush3.bf16.msra.mxu1 %v8335_v60  ;;  %8306 = vmatprep.subr.bf16.mxu0 %v8305_v41  ;;  %v8848_v54 = vpop.eup %8847  ;;  %v3135_v42 = vld [vmem:[%s15109_s3 + $0xf68] sm:$0xff]  ;;  %v1969_v57 = vsub.f32 %v16135_v37, %v12086_v14  ;;  %v3153_v49 = vld [vmem:[%s15109_s3 + $0xff8] sm:$0xff]  ;;  %8867 = vpow2.f32 %v2186_v12  ;;  %v2250_v40 = vmul.f32 1.442695, %v1934_v16  ;;  %v2254_v1 = vmul.f32 1.442695, %v1936_v56 }
 0x310   :  { %4504 = vmatmul.mubr.f32.gmra.mrb[106].mxu0 %v8844_v38  ;;  %8338 = vmatprep.subr.bf16.mxu1 %v8337_v53  ;;  %v8850_v19 = vpop.eup %8849  ;;  %v16136_v10 = vld [vmem:[#allocation63_spill] sm:$0xff]  ;;  %v8311_v41 = vpack.c.bf16 %v3103_v51, %v3102_v24  ;;  %8869 = vpow2.f32 %v2190_v59  ;;  %v2316_v45 = vmul.f32 1.442695, %v1967_v22  ;;  %v16137_v0 = vld [vmem:[#allocation65_spill] sm:$0xff]  ;;  %v8343_v23 = vpack.c.bf16 %v3135_v42, %v3134_v21  ;;  %v3105_v2 = vld [vmem:[%s15109_s3 + $0xe78] sm:$0xff] }
 0x311   :  { %4609 = vmatmul.mubr.f32.gmra.mrb[106].mxu1 %v8846_v58  ;;  %4508 = vmatprep.mubr.f32.mxu0 %v8848_v54  ;;  %v1966_v46 = vsub.f32 %v16136_v10, %v12086_v14  ;;  %v8852_v60 = vpop.eup %8851  ;;  %v1968_v20 = vsub.f32 %v16137_v0, %v12086_v14  ;;  %v3104_v53 = vld [vmem:[%s15109_s3 + $0xe70] sm:$0xff]  ;;  %8871 = vpow2.f32 %v2252_v27  ;;  %v8345_v63 = vpack.c.bf16 %v3153_v49, %v3152_v44  ;;  %v3137_v28 = vld [vmem:[%s15109_s3 + $0xf78] sm:$0xff]  ;;  %v16139_v12 = vld [vmem:[#allocation159_spill] sm:$0xff] }
 0x312   :  { %4613 = vmatprep.mubr.f32.mxu1 %v8850_v19  ;;  %8308 = vmatpush3.bf16.msra.mxu0 %v8307_v5  ;;  %v8854_v55 = vpop.eup %8853  ;;  %v16138_v25 = vld [vmem:[#allocation157_spill] sm:$0xff]  ;;  %8873 = vpow2.f32 %v2256_v32  ;;  %v2320_v3 = vmul.f32 1.442695, %v1969_v57  ;;  %v2001_v11 = vsub.f32 %v16139_v12, %v12253_v30  ;;  %v16140_v56 = vld [vmem:[#allocation156_spill] sm:$0xff]  ;;  %v8315_v59 = vpack.c.bf16 %v3105_v2, %v3104_v53  ;;  %v16141_v22 = vld [vmem:[#allocation158_spill] sm:$0xff] }
 0x313   :  { %8340 = vmatpush3.bf16.msra.mxu1 %v8339_v6  ;;  %8310 = vmatprep.subr.bf16.mxu0 %v8309_v35  ;;  %v1999_v43 = vsub.f32 %v16138_v25, %v12253_v30  ;;  %v8856_v18 = vpop.eup %8855  ;;  %v3136_v26 = vld [vmem:[%s15109_s3 + $0xf70] sm:$0xff]  ;;  %8875 = vpow2.f32 %v2250_v40  ;;  %v2314_v62 = vmul.f32 1.442695, %v1966_v46  ;;  %v1998_v38 = vsub.f32 %v16140_v56, %v12253_v30  ;;  %v16144_v32 = vld [vmem:[#allocation183_spill] sm:$0xff]  ;;  %v16145_v19 = vld [vmem:[#allocation186_spill] sm:$0xff]  ;;  %s9055_s3 = smov 12  }
 0x314   :  { %4509 = vmatmul.mubr.f32.gmra.mrb[108].mxu0 %v8852_v60  ;;  %8342 = vmatprep.subr.bf16.mxu1 %v8341_v33  ;;  %v8858_v16 = vpop.eup %8857  ;;  %8877 = vpow2.f32 %v2254_v1  ;;  %v2318_v13 = vmul.f32 1.442695, %v1968_v20  ;;  %v2000_v58 = vsub.f32 %v16141_v22, %v12253_v30  ;;  %v8347_v35 = vpack.c.bf16 %v3137_v28, %v3136_v26  ;;  %v16142_v51 = vld [vmem:[#allocation185_spill] sm:$0xff]  ;;  %v16143_v33 = vld [vmem:[#allocation187_spill] sm:$0xff]  ;;  %v16149_v2 = vld [vmem:[#allocation204_spill] sm:$0xff] }
 0x315   :  { %4614 = vmatmul.mubr.f32.gmra.mrb[108].mxu1 %v8854_v55  ;;  %4513 = vmatprep.mubr.f32.mxu0 %v8856_v18  ;;  %v8860_v5 = vpop.eup %8859  ;;  %8879 = vpow2.f32 %v2316_v45  ;;  %v2380_v24 = vmul.f32 1.442695, %v1999_v43  ;;  %v2031_v21 = vsub.f32 %v16142_v51, %v12299_v52  ;;  %v2384_v54 = vmul.f32 1.442695, %v2001_v11  ;;  %v16146_v1 = vld [vmem:[#allocation203_spill] sm:$0xff]  ;;  %v16148_v55 = vld [vmem:[#allocation201_spill] sm:$0xff] }
 0x316   :  { %4618 = vmatprep.mubr.f32.mxu1 %v8858_v16  ;;  %8312 = vmatpush3.bf16.msra.mxu0 %v8311_v41  ;;  %v8862_v6 = vpop.eup %8861  ;;  %8881 = vpow2.f32 %v2320_v3  ;;  %v2033_v42 = vsub.f32 %v16143_v33, %v12299_v52  ;;  %v2378_v29 = vmul.f32 1.442695, %v1998_v38  ;;  %v2030_v37 = vsub.f32 %v16144_v32, %v12299_v52  ;;  %v16147_v41 = vld [vmem:[#allocation205_spill] sm:$0xff]  ;;  %v16152_v56 = vld [vmem:[#allocation218_spill] sm:$0xff] }
 0x317   :  { %8344 = vmatpush3.bf16.msra.mxu1 %v8343_v23  ;;  %8314 = vmatprep.subr.bf16.mxu0 %v8313_v7  ;;  %v8864_v27 = vpop.eup %8863  ;;  %8883 = vpow2.f32 %v2314_v62  ;;  %v2382_v57 = vmul.f32 1.442695, %v2000_v58  ;;  %v2032_v44 = vsub.f32 %v16145_v19, %v12299_v52  ;;  %v2444_v40 = vmul.f32 1.442695, %v2031_v21  ;;  %v16151_v12 = vld [vmem:[#allocation221_spill] sm:$0xff] }
 0x318   :  { %4514 = vmatmul.mubr.f32.gmra.mrb[110].mxu0 %v8860_v5  ;;  %8346 = vmatprep.subr.bf16.mxu1 %v8345_v63  ;;  %v8866_v61 = vpop.eup %8865  ;;  %8885 = vpow2.f32 %v2318_v13  ;;  %v2063_v10 = vsub.f32 %v16146_v1, %v12309_v36  ;;  %v2448_v60 = vmul.f32 1.442695, %v2033_v42  ;;  %v2065_v45 = vsub.f32 %v16147_v41, %v12309_v36  ;;  %v16150_v63 = vld [vmem:[#allocation219_spill] sm:$0xff]  ;;  %v16153_v13 = vld [vmem:[#allocation220_spill] sm:$0xff]  ;;  %v16157_v1 = vld [vmem:[#allocation42_spill] sm:$0xff] }
 0x319   :  { %4619 = vmatmul.mubr.f32.gmra.mrb[110].mxu1 %v8862_v6  ;;  %4688 = vmatprep.mubr.f32.mxu0 %v8864_v27  ;;  %v8868_v49 = vpop.eup %8867  ;;  %8887 = vpow2.f32 %v2380_v24  ;;  %v2442_v20 = vmul.f32 1.442695, %v2030_v37  ;;  %v2062_v23 = vsub.f32 %v16148_v55, %v12309_v36  ;;  %v2446_v53 = vmul.f32 1.442695, %v2032_v44  ;;  %v16155_v27 = vld [vmem:[#allocation231_spill] sm:$0xff]  ;;  %v16156_v37 = vld [vmem:[#allocation46_spill] sm:$0xff] }
 0x31a   :  { %8316 = vmatpush3.bf16.msra.mxu0 %v8315_v59  ;;  %4793 = vmatprep.mubr.f32.mxu1 %v8866_v61  ;;  %v8870_v46 = vpop.eup %8869  ;;  %8889 = vpow2.f32 %v2384_v54  ;;  %v2064_v25 = vsub.f32 %v16149_v2, %v12309_v36  ;;  %v2508_v18 = vmul.f32 1.442695, %v2063_v10  ;;  %v2095_v26 = vsub.f32 %v16150_v63, %v12319_v15 }
 0x31b   :  { %8348 = vmatpush3.bf16.msra.mxu1 %v8347_v35  ;;  %v8872_v0 = vpop.eup %8871  ;;  %8891 = vpow2.f32 %v2378_v29  ;;  %v2512_v3 = vmul.f32 1.442695, %v2065_v45  ;;  %v2097_v11 = vsub.f32 %v16151_v12, %v12319_v15  ;;  %v2506_v62 = vmul.f32 1.442695, %v2062_v23  ;;  %v16154_v35 = vld [vmem:[#allocation38_spill] sm:$0xff] }
 0x31c   :  { %v8874_v7 = vpop.eup %8873  ;;  %8893 = vpow2.f32 %v2382_v57  ;;  %v2094_v38 = vsub.f32 %v16152_v56, %v12319_v15  ;;  %v2510_v59 = vmul.f32 1.442695, %v2064_v25  ;;  %v2096_v22 = vsub.f32 %v16153_v13, %v12319_v15 }
 0x31d   :  { %4689 = vmatmul.mubr.f32.vlgmr.msra.gmra.mrb[112].mxu0 %v8868_v49  ;;  %v8876_v43 = vpop.eup %8875  ;;  %8895 = vpow2.f32 %v2444_v40  ;;  %v2572_v6 = vmul.f32 1.442695, %v2095_v26  ;;  %v2127_v24 = vsub.f32 %v16154_v35, %v12337_v8  ;;  %v2576_v21 = vmul.f32 1.442695, %v2097_v11 }
 0x31e   :  { %4794 = vmatmul.mubr.f32.vlgmr.msra.gmra.mrb[112].mxu1 %v8870_v46  ;;  %4693 = vmatprep.mubr.f32.mxu0 %v8872_v0  ;;  %v8878_v28 = vpop.eup %8877  ;;  %8897 = vpow2.f32 %v2448_v60  ;;  %v2129_v54 = vsub.f32 %v16155_v27, %v12337_v8  ;;  %v2570_v42 = vmul.f32 1.442695, %v2094_v38  ;;  %v2574_v32 = vmul.f32 1.442695, %v2096_v22 }
 0x31f   :  { %4798 = vmatprep.mubr.f32.mxu1 %v8874_v7  ;;  %v8880_v16 = vpop.eup %8879  ;;  %8899 = vpow2.f32 %v2442_v20  ;;  %v2126_v57 = vsub.f32 %v16156_v37, %v12337_v8  ;;  %v2636_v40 = vmul.f32 1.442695, %v2127_v24  ;;  %v2128_v10 = vsub.f32 %v16157_v1, %v12337_v8 }
 0x320   :  { %v8882_v5 = vpop.eup %8881  ;;  %8901 = vpow2.f32 %v2446_v53  ;;  %v2640_v45 = vmul.f32 1.442695, %v2129_v54 }
 0x321   :  { %4694 = vmatmul.mubr.f32.gmra.mrb[114].mxu0 %v8876_v43  ;;  %v8884_v58 = vpop.eup %8883  ;;  %8903 = vpow2.f32 %v2508_v18  ;;  %v2634_v7 = vmul.f32 1.442695, %v2126_v57  ;;  %v2638_v18 = vmul.f32 1.442695, %v2128_v10 }
 0x322   :  { %4799 = vmatmul.mubr.f32.gmra.mrb[114].mxu1 %v8878_v28  ;;  %4698 = vmatprep.mubr.f32.mxu0 %v8880_v16  ;;  %v8886_v51 = vpop.eup %8885  ;;  %8905 = vpow2.f32 %v2512_v3 }
 0x323   :  { %4803 = vmatprep.mubr.f32.mxu1 %v8882_v5  ;;  %v8888_v33 = vpop.eup %8887  ;;  %8907 = vpow2.f32 %v2506_v62 }
 0x324   :  { %v8890_v61 = vpop.eup %8889  ;;  %8909 = vpow2.f32 %v2510_v59 }
 0x325   :  { %4699 = vmatmul.mubr.f32.gmra.mrb[116].mxu0 %v8884_v58  ;;  %v8892_v19 = vpop.eup %8891  ;;  %8911 = vpow2.f32 %v2572_v6 }
 0x326   :  { %4804 = vmatmul.mubr.f32.gmra.mrb[116].mxu1 %v8886_v51  ;;  %4703 = vmatprep.mubr.f32.mxu0 %v8888_v33  ;;  %v6782_v29 = vpop.f32.mrb[14].mxu0  ;;  %v8894_v46 = vpop.eup %8893  ;;  %8913 = vpow2.f32 %v2576_v21 }
 0x327   :  { %4808 = vmatprep.mubr.f32.mxu1 %v8890_v61  ;;  %v6838_v44 = vpop.f32.mrb[14].mxu1  ;;  %v6783_v49 = vpop.f32.mrb[15].mxu0  ;;  %8915 = vpow2.f32 %v2570_v42 }
 0x328   :  { %v6784_v60 = vadd.f32 %v6783_v49, %v6782_v29  ;;  %v6839_v41 = vpop.f32.mrb[15].mxu1  ;;  %v8896_v0 = vpop.eup %8895  ;;  %8917 = vpow2.f32 %v2574_v32 }
 0x329   :  { %4704 = vmatmul.mubr.f32.gmra.mrb[118].mxu0 %v8892_v19  ;;  %v6840_v20 = vadd.f32 %v6839_v41, %v6838_v44  ;;  %v8898_v55 = vpop.eup %8897  ;;  %8919 = vpow2.f32 %v2636_v40 }
 0x32a   :  { %4809 = vmatmul.mubr.f32.gmra.mrb[118].mxu1 %v8894_v46  ;;  %4708 = vmatprep.mubr.f32.mxu0 %v8896_v0  ;;  %v6873_v23 = vpop.f32.mrb[16].mxu0  ;;  %v8900_v53 = vpop.eup %8899  ;;  %8921 = vpow2.f32 %v2640_v45 }
 0x32b   :  { %4813 = vmatprep.mubr.f32.mxu1 %v8898_v55  ;;  %v14658_v2 = vadd.f32 %v6840_v20, %v6784_v60  ;;  %v6929_v25 = vpop.f32.mrb[16].mxu1  ;;  %v6874_v43 = vpop.f32.mrb[17].mxu0  ;;  %8923 = vpow2.f32 %v2634_v7 }
 0x32c   :  { %v8902_v63 = vpop.eup %8901  ;;  %v6875_v26 = vadd.f32 %v6874_v43, %v6873_v23  ;;  %v6930_v28 = vpop.f32.mrb[17].mxu1  ;;  %8925 = vpow2.f32 %v2638_v18 }
 0x32d   :  { %v8904_v3 = vpop.eup %8903  ;;  %4709 = vmatmul.mubr.f32.gmra.mrb[120].mxu0 %v8900_v53  ;;  %v6931_v12 = vadd.f32 %v6930_v28, %v6929_v25 }
 0x32e   :  { %v8906_v11 = vpop.eup %8905  ;;  %4814 = vmatmul.mubr.f32.gmra.mrb[120].mxu1 %v8902_v63  ;;  %4713 = vmatprep.mubr.f32.mxu0 %v8904_v3  ;;  %v3431_v16 = vadd.f32 %v6875_v26, %v13125_v31  ;;  %v6876_v62 = vpop.f32.mrb[18].mxu0 }
 0x32f   :  { %v8908_v56 = vpop.eup %8907  ;;  %4818 = vmatprep.mubr.f32.mxu1 %v8906_v11  ;;  %v6932_v38 = vpop.f32.mrb[18].mxu1 }
 0x330   :  { %v6877_v5 = vpop.f32.mrb[19].mxu0  ;;  %v8910_v59 = vpop.eup %8909  ;;  %v14661_v13 = vadd.f32 %v6931_v12, %v3431_v16 }
 0x331   :  { %v6878_v22 = vadd.f32 %v6877_v5, %v6876_v62  ;;  %v6933_v58 = vpop.f32.mrb[19].mxu1  ;;  %v8912_v6 = vpop.eup %8911  ;;  %4714 = vmatmul.mubr.f32.gmra.mrb[122].mxu0 %v8908_v56 }
 0x332   :  { %v6934_v35 = vadd.f32 %v6933_v58, %v6932_v38  ;;  %v8914_v24 = vpop.eup %8913  ;;  %4819 = vmatmul.mubr.f32.gmra.mrb[122].mxu1 %v8910_v59  ;;  %4718 = vmatprep.mubr.f32.mxu0 %v8912_v6  ;;  %v6879_v51 = vpop.f32.mrb[20].mxu0 }
 0x333   :  { %v3436_v31 = vadd.f32 %v6878_v22, %v13364_v17  ;;  %v8916_v21 = vpop.eup %8915  ;;  %4823 = vmatprep.mubr.f32.mxu1 %v8914_v24  ;;  %v6935_v27 = vpop.f32.mrb[20].mxu1 }
 0x334   :  { %v6880_v54 = vpop.f32.mrb[21].mxu0  ;;  %v8918_v33 = vpop.eup %8917 }
 0x335   :  { %v14664_v42 = vadd.f32 %v6934_v35, %v3436_v31  ;;  %v6881_v61 = vadd.f32 %v6880_v54, %v6879_v51  ;;  %v6936_v29 = vpop.f32.mrb[21].mxu1  ;;  %v8920_v32 = vpop.eup %8919  ;;  %4719 = vmatmul.mubr.f32.gmra.mrb[124].mxu0 %v8916_v21 }
 0x336   :  { %v6937_v37 = vadd.f32 %v6936_v29, %v6935_v27  ;;  %v8922_v57 = vpop.eup %8921  ;;  %4824 = vmatmul.mubr.f32.gmra.mrb[124].mxu1 %v8918_v33  ;;  %4723 = vmatprep.mubr.f32.mxu0 %v8920_v32  ;;  %v6882_v44 = vpop.f32.mrb[22].mxu0 }
 0x337   :  { %v3441_v19 = vadd.f32 %v6881_v61, %v13406_v50  ;;  %4828 = vmatprep.mubr.f32.mxu1 %v8922_v57  ;;  %v6938_v17 = vpop.f32.mrb[22].mxu1  ;;  %v6883_v49 = vpop.f32.mrb[23].mxu0 }
 0x338   :  { %v8924_v40 = vpop.eup %8923  ;;  %v6884_v10 = vadd.f32 %v6883_v49, %v6882_v44  ;;  %v6939_v46 = vpop.f32.mrb[23].mxu1 }
 0x339   :  { %v14667_v1 = vadd.f32 %v6937_v37, %v3441_v19  ;;  %v8926_v60 = vpop.eup %8925  ;;  %4724 = vmatmul.mubr.f32.gmra.mrb[126].mxu0 %v8924_v40  ;;  %v6940_v41 = vadd.f32 %v6939_v46, %v6938_v17 }
 0x33a   :  { %4829 = vmatmul.mubr.f32.gmra.mrb[126].mxu1 %v8926_v60  ;;  %v3446_v45 = vadd.f32 %v6884_v10, %v13648_v39  ;;  %v6885_v0 = vpop.f32.mrb[24].mxu0 }
 0x33b   :  { %v6941_v20 = vpop.f32.mrb[24].mxu1  ;;  %v6886_v55 = vpop.f32.mrb[25].mxu0 }
 0x33c   :  { %v3551_v23 = vadd.f32 %v6940_v41, %v3446_v45  ;;  %v6887_v50 = vadd.f32 %v6886_v55, %v6885_v0  ;;  %v6942_v7 = vpop.f32.mrb[25].mxu1 }
 0x33d   :  { %v6943_v53 = vadd.f32 %v6942_v7, %v6941_v20 }
 0x33e   :  { %v3451_v25 = vadd.f32 %v6887_v50, %v13963_v48  ;;  %v6888_v43 = vpop.f32.mrb[26].mxu0 }
 0x33f   :  { %v6944_v18 = vpop.f32.mrb[26].mxu1  ;;  %v6889_v63 = vpop.f32.mrb[27].mxu0 }
 0x340   :  { %v3556_v26 = vadd.f32 %v6943_v53, %v3451_v25  ;;  %v6890_v28 = vadd.f32 %v6889_v63, %v6888_v43  ;;  %v6945_v3 = vpop.f32.mrb[27].mxu1 }
 0x341   :  { %v6946_v12 = vadd.f32 %v6945_v3, %v6944_v18 }
 0x342   :  { %v3456_v11 = vadd.f32 %v6890_v28, %v14261_v9  ;;  %v6891_v16 = vpop.f32.mrb[28].mxu0 }
 0x343   :  { %v6947_v39 = vpop.f32.mrb[28].mxu1  ;;  %v6892_v62 = vpop.f32.mrb[29].mxu0 }
 0x344   :  { %v3561_v56 = vadd.f32 %v6946_v12, %v3456_v11  ;;  %v6893_v38 = vadd.f32 %v6892_v62, %v6891_v16  ;;  %v6948_v5 = vpop.f32.mrb[29].mxu1 }
 0x345   :  { %v6949_v59 = vadd.f32 %v6948_v5, %v6947_v39 }
 0x346   :  { %v3461_v22 = vadd.f32 %v6893_v38, %v14524_v4  ;;  %v6894_v58 = vpop.f32.mrb[30].mxu0 }
 0x347   :  { %v6950_v48 = vpop.f32.mrb[30].mxu1  ;;  %v6895_v6 = vpop.f32.mrb[31].mxu0 }
 0x348   :  { %v3566_v35 = vadd.f32 %v6949_v59, %v3461_v22  ;;  %v6896_v24 = vadd.f32 %v6895_v6, %v6894_v58  ;;  %v6951_v31 = vpop.f32.mrb[31].mxu1 }
 0x349   :  { %v6952_v51 = vadd.f32 %v6951_v31, %v6950_v48 }
 0x34a   :  { %v3466_v21 = vadd.f32 %v6896_v24, %v14658_v2 }
 0x34b   :  { %v6985_v27 = vpop.f32.mrb[32].mxu0 }
 0x34c   :  { %v3571_v9 = vadd.f32 %v6952_v51, %v3466_v21  ;;  %v7041_v54 = vpop.f32.mrb[32].mxu1  ;;  %v6986_v33 = vpop.f32.mrb[33].mxu0 }
 0x34d   :  { %v6987_v61 = vadd.f32 %v6986_v33, %v6985_v27  ;;  %v7042_v29 = vpop.f32.mrb[33].mxu1 }
 0x34e   :  { %v7043_v32 = vadd.f32 %v7042_v29, %v7041_v54 }
 0x34f   :  { %v3641_v37 = vadd.f32 %v6987_v61, %v14661_v13  ;;  %v6988_v57 = vpop.f32.mrb[34].mxu0 }
 0x350   :  { %v7044_v4 = vpop.f32.mrb[34].mxu1  ;;  %v6989_v19 = vpop.f32.mrb[35].mxu0 }
 0x351   :  { %v3746_v44 = vadd.f32 %v7043_v32, %v3641_v37  ;;  %v6990_v17 = vadd.f32 %v6989_v19, %v6988_v57  ;;  %v7045_v49 = vpop.f32.mrb[35].mxu1 }
 0x352   :  { %v7046_v40 = vadd.f32 %v7045_v49, %v7044_v4 }
 0x353   :  { %v3646_v10 = vadd.f32 %v6990_v17, %v14664_v42  ;;  %v6991_v46 = vpop.f32.mrb[36].mxu0 }
 0x354   :  { %v7047_v2 = vpop.f32.mrb[36].mxu1  ;;  %v6992_v60 = vpop.f32.mrb[37].mxu0 }
 0x355   :  { %v3751_v41 = vadd.f32 %v7046_v40, %v3646_v10  ;;  %v6993_v45 = vadd.f32 %v6992_v60, %v6991_v46  ;;  %v7048_v0 = vpop.f32.mrb[37].mxu1 }
 0x356   :  { %v7049_v20 = vadd.f32 %v7048_v0, %v7047_v2 }
 0x357   :  { %v3651_v55 = vadd.f32 %v6993_v45, %v14667_v1  ;;  %v6994_v50 = vpop.f32.mrb[38].mxu0 }
 0x358   :  { %v7050_v13 = vpop.f32.mrb[38].mxu1  ;;  %v6995_v7 = vpop.f32.mrb[39].mxu0 }
 0x359   :  { %v3756_v53 = vadd.f32 %v7049_v20, %v3651_v55  ;;  %v6996_v25 = vadd.f32 %v6995_v7, %v6994_v50  ;;  %v7051_v43 = vpop.f32.mrb[39].mxu1 }
 0x35a   :  { %v7052_v18 = vadd.f32 %v7051_v43, %v7050_v13 }
 0x35b   :  { %v3656_v63 = vadd.f32 %v6996_v25, %v3551_v23  ;;  %v6997_v28 = vpop.f32.mrb[40].mxu0 }
 0x35c   :  { %v7053_v3 = vpop.f32.mrb[40].mxu1  ;;  %v6998_v42 = vpop.f32.mrb[41].mxu0 }
 0x35d   :  { %v14677_v12 = vadd.f32 %v7052_v18, %v3656_v63  ;;  %v6999_v11 = vadd.f32 %v6998_v42, %v6997_v28  ;;  %v7054_v16 = vpop.f32.mrb[41].mxu1 }
 0x35e   :  { %v7055_v39 = vadd.f32 %v7054_v16, %v7053_v3 }
 0x35f   :  { %v3661_v62 = vadd.f32 %v6999_v11, %v3556_v26  ;;  %v7000_v38 = vpop.f32.mrb[42].mxu0 }
 0x360   :  { %v7056_v5 = vpop.f32.mrb[42].mxu1  ;;  %v7001_v1 = vpop.f32.mrb[43].mxu0 }
 0x361   :  { %v14679_v59 = vadd.f32 %v7055_v39, %v3661_v62  ;;  %v7002_v22 = vadd.f32 %v7001_v1, %v7000_v38  ;;  %v7057_v58 = vpop.f32.mrb[43].mxu1  ;;  %v9048_v1 = vmov 3  }
 0x362   :  { %v7058_v48 = vadd.f32 %v7057_v58, %v7056_v5  ;;  %8413 = vset.pattern.permute.xlu1 %v9048_v1  ;;  %8414 = vset.pattern.permute.xlu0 %v9048_v1 }
 0x363   :  { %v3666_v6 = vadd.f32 %v7002_v22, %v3561_v56  ;;  %v7003_v24 = vpop.f32.mrb[44].mxu0 }
 0x364   :  { %v7059_v23 = vpop.f32.mrb[44].mxu1  ;;  %v7004_v31 = vpop.f32.mrb[45].mxu0 }
 0x365   :  { %v14681_v51 = vadd.f32 %v7058_v48, %v3666_v6  ;;  %v7005_v21 = vadd.f32 %v7004_v31, %v7003_v24  ;;  %v7060_v27 = vpop.f32.mrb[45].mxu1 }
 0x366   :  { %v7061_v54 = vadd.f32 %v7060_v27, %v7059_v23 }
 0x367   :  { %v3671_v33 = vadd.f32 %v7005_v21, %v3566_v35  ;;  %v7006_v61 = vpop.f32.mrb[46].mxu0 }
 0x368   :  { %v7062_v26 = vpop.f32.mrb[46].mxu1  ;;  %v7007_v29 = vpop.f32.mrb[47].mxu0 }
 0x369   :  { %v14683_v32 = vadd.f32 %v7061_v54, %v3671_v33  ;;  %v7008_v37 = vadd.f32 %v7007_v29, %v7006_v61  ;;  %v7063_v57 = vpop.f32.mrb[47].mxu1 }
 0x36a   :  { %v7064_v4 = vadd.f32 %v7063_v57, %v7062_v26 }
 0x36b   :  { %v3676_v19 = vadd.f32 %v7008_v37, %v3571_v9 }
 0x36c   :  { %v7097_v17 = vpop.f32.mrb[48].mxu0 }
 0x36d   :  { %v14685_v56 = vadd.f32 %v7064_v4, %v3676_v19  ;;  %v7153_v49 = vpop.f32.mrb[48].mxu1  ;;  %v7098_v40 = vpop.f32.mrb[49].mxu0 }
 0x36e   :  { %v7099_v10 = vadd.f32 %v7098_v40, %v7097_v17  ;;  %v7154_v46 = vpop.f32.mrb[49].mxu1 }
 0x36f   :  { %v7155_v2 = vadd.f32 %v7154_v46, %v7153_v49 }
 0x370   :  { %v3851_v60 = vadd.f32 %v7099_v10, %v3746_v44  ;;  %v7100_v45 = vpop.f32.mrb[50].mxu0 }
 0x371   :  { %v7156_v35 = vpop.f32.mrb[50].mxu1  ;;  %v7101_v0 = vpop.f32.mrb[51].mxu0 }
 0x372   :  { %v14687_v20 = vadd.f32 %v7155_v2, %v3851_v60  ;;  %v7102_v55 = vadd.f32 %v7101_v0, %v7100_v45  ;;  %v7157_v50 = vpop.f32.mrb[51].mxu1 }
 0x373   :  { %v7158_v13 = vadd.f32 %v7157_v50, %v7156_v35 }
 0x374   :  { %v3856_v7 = vadd.f32 %v7102_v55, %v3751_v41  ;;  %v7103_v25 = vpop.f32.mrb[52].mxu0 }
 0x375   :  { %v7159_v9 = vpop.f32.mrb[52].mxu1  ;;  %v7104_v43 = vpop.f32.mrb[53].mxu0 }
 0x376   :  { %v14689_v18 = vadd.f32 %v7158_v13, %v3856_v7  ;;  %v7105_v63 = vadd.f32 %v7104_v43, %v7103_v25  ;;  %v7160_v28 = vpop.f32.mrb[53].mxu1 }
 0x377   :  { %v7161_v3 = vadd.f32 %v7160_v28, %v7159_v9 }
 0x378   :  { %v3861_v42 = vadd.f32 %v7105_v63, %v3756_v53  ;;  %v7106_v11 = vpop.f32.mrb[54].mxu0 }
 0x379   :  { %v7162_v44 = vpop.f32.mrb[54].mxu1  ;;  %v7107_v16 = vpop.f32.mrb[55].mxu0 }
 0x37a   :  { %v14691_v39 = vadd.f32 %v7161_v3, %v3861_v42  ;;  %v7108_v62 = vadd.f32 %v7107_v16, %v7106_v11  ;;  %v7163_v38 = vpop.f32.mrb[55].mxu1 }
 0x37b   :  { %v7164_v5 = vadd.f32 %v7163_v38, %v7162_v44 }
 0x37c   :  { %v3866_v41 = vadd.f32 %v7108_v62, %v14677_v12  ;;  %v7109_v22 = vpop.f32.mrb[56].mxu0 }
 0x37d   :  { %v7165_v58 = vpop.f32.mrb[56].mxu1  ;;  %v7110_v48 = vpop.f32.mrb[57].mxu0 }
 0x37e   :  { %v3971_v6 = vadd.f32 %v7164_v5, %v3866_v41  ;;  %v7111_v24 = vadd.f32 %v7110_v48, %v7109_v22  ;;  %v7166_v23 = vpop.f32.mrb[57].mxu1 }
 0x37f   :  { %v7167_v53 = vadd.f32 %v7166_v23, %v7165_v58 }
 0x380   :  { %v3871_v31 = vadd.f32 %v7111_v24, %v14679_v59  ;;  %v7112_v21 = vpop.f32.mrb[58].mxu0 }
 0x381   :  { %v7168_v27 = vpop.f32.mrb[58].mxu1  ;;  %v7113_v54 = vpop.f32.mrb[59].mxu0 }
 0x382   :  { %v3976_v33 = vadd.f32 %v7167_v53, %v3871_v31  ;;  %v7114_v61 = vadd.f32 %v7113_v54, %v7112_v21  ;;  %v7169_v26 = vpop.f32.mrb[59].mxu1 }
 0x383   :  { %v7170_v29 = vadd.f32 %v7169_v26, %v7168_v27 }
 0x384   :  { %v3876_v37 = vadd.f32 %v7114_v61, %v14681_v51  ;;  %v7115_v57 = vpop.f32.mrb[60].mxu0 }
 0x385   :  { %v7171_v12 = vpop.f32.mrb[60].mxu1  ;;  %v7116_v4 = vpop.f32.mrb[61].mxu0 }
 0x386   :  { %v3981_v19 = vadd.f32 %v7170_v29, %v3876_v37  ;;  %v7117_v17 = vadd.f32 %v7116_v4, %v7115_v57  ;;  %v7172_v49 = vpop.f32.mrb[61].mxu1 }
 0x387   :  { %v7173_v40 = vadd.f32 %v7172_v49, %v7171_v12 }
 0x388   :  { %v3881_v10 = vadd.f32 %v7117_v17, %v14683_v32  ;;  %v7118_v46 = vpop.f32.mrb[62].mxu0 }
 0x389   :  { %v7174_v59 = vpop.f32.mrb[62].mxu1  ;;  %v7119_v2 = vpop.f32.mrb[63].mxu0 }
 0x38a   :  { %v3986_v60 = vadd.f32 %v7173_v40, %v3881_v10  ;;  %v7120_v45 = vadd.f32 %v7119_v2, %v7118_v46  ;;  %v7175_v35 = vpop.f32.mrb[63].mxu1 }
 0x38b   :  { %v7176_v0 = vadd.f32 %v7175_v35, %v7174_v59 }
 0x38c   :  { %v3886_v55 = vadd.f32 %v7120_v45, %v14685_v56 }
 0x38d   :  { %v7209_v50 = vpop.f32.mrb[64].mxu0 }
 0x38e   :  { %v3991_v51 = vadd.f32 %v7176_v0, %v3886_v55  ;;  %v7265_v13 = vpop.f32.mrb[64].mxu1  ;;  %v7210_v7 = vpop.f32.mrb[65].mxu0 }
 0x38f   :  { %v7211_v25 = vadd.f32 %v7210_v7, %v7209_v50  ;;  %v7266_v9 = vpop.f32.mrb[65].mxu1 }
 0x390   :  { %v7267_v43 = vadd.f32 %v7266_v9, %v7265_v13 }
 0x391   :  { %v4061_v63 = vadd.f32 %v7211_v25, %v14687_v20  ;;  %v7212_v28 = vpop.f32.mrb[66].mxu0 }
 0x392   :  { %v7268_v32 = vpop.f32.mrb[66].mxu1  ;;  %v7213_v3 = vpop.f32.mrb[67].mxu0 }
 0x393   :  { %v4166_v42 = vadd.f32 %v7267_v43, %v4061_v63  ;;  %v7214_v11 = vadd.f32 %v7213_v3, %v7212_v28  ;;  %v7269_v44 = vpop.f32.mrb[67].mxu1 }
 0x394   :  { %v7270_v16 = vadd.f32 %v7269_v44, %v7268_v32 }
 0x395   :  { %v4066_v62 = vadd.f32 %v7214_v11, %v14689_v18  ;;  %v7215_v38 = vpop.f32.mrb[68].mxu0 }
 0x396   :  { %v7271_v56 = vpop.f32.mrb[68].mxu1  ;;  %v7216_v5 = vpop.f32.mrb[69].mxu0 }
 0x397   :  { %v4171_v1 = vadd.f32 %v7270_v16, %v4066_v62  ;;  %v7217_v41 = vadd.f32 %v7216_v5, %v7215_v38  ;;  %v7272_v22 = vpop.f32.mrb[69].mxu1 }
 0x398   :  { %v7273_v58 = vadd.f32 %v7272_v22, %v7271_v56 }
 0x399   :  { %v4071_v48 = vadd.f32 %v7217_v41, %v14691_v39  ;;  %v7218_v24 = vpop.f32.mrb[70].mxu0 }
 0x39a   :  { %v7274_v20 = vpop.f32.mrb[70].mxu1  ;;  %v7219_v23 = vpop.f32.mrb[71].mxu0 }
 0x39b   :  { %v4176_v53 = vadd.f32 %v7273_v58, %v4071_v48  ;;  %v7220_v31 = vadd.f32 %v7219_v23, %v7218_v24  ;;  %v7275_v21 = vpop.f32.mrb[71].mxu1 }
 0x39c   :  { %v7276_v27 = vadd.f32 %v7275_v21, %v7274_v20 }
 0x39d   :  { %v4076_v54 = vadd.f32 %v7220_v31, %v3971_v6  ;;  %v7221_v61 = vpop.f32.mrb[72].mxu0 }
 0x39e   :  { %v7277_v26 = vpop.f32.mrb[72].mxu1  ;;  %v7222_v18 = vpop.f32.mrb[73].mxu0 }
 0x39f   :  { %v4181_v29 = vadd.f32 %v7276_v27, %v4076_v54  ;;  %v7223_v37 = vadd.f32 %v7222_v18, %v7221_v61  ;;  %v7278_v57 = vpop.f32.mrb[73].mxu1 }
 0x3a0   :  { %v7279_v12 = vadd.f32 %v7278_v57, %v7277_v26 }
 0x3a1   :  { %v4081_v4 = vadd.f32 %v7223_v37, %v3976_v33  ;;  %v7224_v17 = vpop.f32.mrb[74].mxu0 }
 0x3a2   :  { %v7280_v49 = vpop.f32.mrb[74].mxu1  ;;  %v7225_v40 = vpop.f32.mrb[75].mxu0 }
 0x3a3   :  { %v4186_v39 = vadd.f32 %v7279_v12, %v4081_v4  ;;  %v7226_v10 = vadd.f32 %v7225_v40, %v7224_v17  ;;  %v7281_v46 = vpop.f32.mrb[75].mxu1 }
 0x3a4   :  { %v7282_v59 = vadd.f32 %v7281_v46, %v7280_v49 }
 0x3a5   :  { %v4086_v2 = vadd.f32 %v7226_v10, %v3981_v19  ;;  %v7227_v45 = vpop.f32.mrb[76].mxu0 }
 0x3a6   :  { %v7283_v35 = vpop.f32.mrb[76].mxu1  ;;  %v7228_v0 = vpop.f32.mrb[77].mxu0 }
 0x3a7   :  { %v4191_v6 = vadd.f32 %v7282_v59, %v4086_v2  ;;  %v7229_v55 = vadd.f32 %v7228_v0, %v7227_v45  ;;  %v7284_v50 = vpop.f32.mrb[77].mxu1 }
 0x3a8   :  { %v7285_v13 = vadd.f32 %v7284_v50, %v7283_v35 }
 0x3a9   :  { %v4091_v7 = vadd.f32 %v7229_v55, %v3986_v60  ;;  %v7230_v25 = vpop.f32.mrb[78].mxu0 }
 0x3aa   :  { %v7286_v9 = vpop.f32.mrb[78].mxu1  ;;  %v7231_v43 = vpop.f32.mrb[79].mxu0 }
 0x3ab   :  { %v4196_v33 = vadd.f32 %v7285_v13, %v4091_v7  ;;  %v7232_v63 = vadd.f32 %v7231_v43, %v7230_v25  ;;  %v7287_v28 = vpop.f32.mrb[79].mxu1 }
 0x3ac   :  { %v7288_v32 = vadd.f32 %v7287_v28, %v7286_v9 }
 0x3ad   :  { %v4096_v3 = vadd.f32 %v7232_v63, %v3991_v51 }
 0x3ae   :  { %v7321_v11 = vpop.f32.mrb[80].mxu0 }
 0x3af   :  { %v4201_v44 = vadd.f32 %v7288_v32, %v4096_v3  ;;  %v7377_v16 = vpop.f32.mrb[80].mxu1  ;;  %v7322_v19 = vpop.f32.mrb[81].mxu0 }
 0x3b0   :  { %v7323_v62 = vadd.f32 %v7322_v19, %v7321_v11  ;;  %v7378_v38 = vpop.f32.mrb[81].mxu1 }
 0x3b1   :  { %v7379_v56 = vadd.f32 %v7378_v38, %v7377_v16 }
 0x3b2   :  { %v4271_v5 = vadd.f32 %v7323_v62, %v4166_v42  ;;  %v7324_v41 = vpop.f32.mrb[82].mxu0 }
 0x3b3   :  { %v7380_v22 = vpop.f32.mrb[82].mxu1  ;;  %v7325_v58 = vpop.f32.mrb[83].mxu0 }
 0x3b4   :  { %v4376_v60 = vadd.f32 %v7379_v56, %v4271_v5  ;;  %v7326_v48 = vadd.f32 %v7325_v58, %v7324_v41  ;;  %v7381_v24 = vpop.f32.mrb[83].mxu1 }
 0x3b5   :  { %v7382_v20 = vadd.f32 %v7381_v24, %v7380_v22 }
 0x3b6   :  { %v4276_v23 = vadd.f32 %v7326_v48, %v4171_v1  ;;  %v7327_v31 = vpop.f32.mrb[84].mxu0 }
 0x3b7   :  { %v7383_v21 = vpop.f32.mrb[84].mxu1  ;;  %v7328_v27 = vpop.f32.mrb[85].mxu0 }
 0x3b8   :  { %v4381_v51 = vadd.f32 %v7382_v20, %v4276_v23  ;;  %v7329_v54 = vadd.f32 %v7328_v27, %v7327_v31  ;;  %v7384_v61 = vpop.f32.mrb[85].mxu1 }
 0x3b9   :  { %v7385_v26 = vadd.f32 %v7384_v61, %v7383_v21 }
 0x3ba   :  { %v4281_v18 = vadd.f32 %v7329_v54, %v4176_v53  ;;  %v7330_v37 = vpop.f32.mrb[86].mxu0 }
 0x3bb   :  { %v7386_v57 = vpop.f32.mrb[86].mxu1  ;;  %v7331_v12 = vpop.f32.mrb[87].mxu0 }
 0x3bc   :  { %v4386_v42 = vadd.f32 %v7385_v26, %v4281_v18  ;;  %v7332_v4 = vadd.f32 %v7331_v12, %v7330_v37  ;;  %v7387_v17 = vpop.f32.mrb[87].mxu1 }
 0x3bd   :  { %v7388_v49 = vadd.f32 %v7387_v17, %v7386_v57 }
 0x3be   :  { %v4286_v40 = vadd.f32 %v7332_v4, %v4181_v29  ;;  %v7333_v10 = vpop.f32.mrb[88].mxu0 }
 0x3bf   :  { %v7389_v46 = vpop.f32.mrb[88].mxu1  ;;  %v7334_v59 = vpop.f32.mrb[89].mxu0 }
 0x3c0   :  { %v4391_v1 = vadd.f32 %v7388_v49, %v4286_v40  ;;  %v7335_v2 = vadd.f32 %v7334_v59, %v7333_v10  ;;  %v7390_v45 = vpop.f32.mrb[89].mxu1 }
 0x3c1   :  { %v7391_v35 = vadd.f32 %v7390_v45, %v7389_v46 }
 0x3c2   :  { %v4291_v0 = vadd.f32 %v7335_v2, %v4186_v39  ;;  %v7336_v55 = vpop.f32.mrb[90].mxu0 }
 0x3c3   :  { %v7392_v50 = vpop.f32.mrb[90].mxu1  ;;  %v7337_v13 = vpop.f32.mrb[91].mxu0 }
 0x3c4   :  { %v4396_v53 = vadd.f32 %v7391_v35, %v4291_v0  ;;  %v7338_v7 = vadd.f32 %v7337_v13, %v7336_v55  ;;  %v7393_v25 = vpop.f32.mrb[91].mxu1 }
 0x3c5   :  { %v7394_v9 = vadd.f32 %v7393_v25, %v7392_v50 }
 0x3c6   :  { %v4296_v43 = vadd.f32 %v7338_v7, %v4191_v6  ;;  %v7339_v63 = vpop.f32.mrb[92].mxu0 }
 0x3c7   :  { %v7395_v28 = vpop.f32.mrb[92].mxu1  ;;  %v7340_v32 = vpop.f32.mrb[93].mxu0 }
 0x3c8   :  { %v4401_v29 = vadd.f32 %v7394_v9, %v4296_v43  ;;  %v7341_v3 = vadd.f32 %v7340_v32, %v7339_v63  ;;  %v7396_v11 = vpop.f32.mrb[93].mxu1 }
 0x3c9   :  { %v7397_v16 = vadd.f32 %v7396_v11, %v7395_v28 }
 0x3ca   :  { %v4301_v19 = vadd.f32 %v7341_v3, %v4196_v33  ;;  %v7342_v62 = vpop.f32.mrb[94].mxu0 }
 0x3cb   :  { %v7398_v38 = vpop.f32.mrb[94].mxu1  ;;  %v7343_v56 = vpop.f32.mrb[95].mxu0 }
 0x3cc   :  { %v4406_v39 = vadd.f32 %v7397_v16, %v4301_v19  ;;  %v7344_v5 = vadd.f32 %v7343_v56, %v7342_v62  ;;  %v7399_v41 = vpop.f32.mrb[95].mxu1 }
 0x3cd   :  { %v7400_v22 = vadd.f32 %v7399_v41, %v7398_v38 }
 0x3ce   :  { %v4306_v58 = vadd.f32 %v7344_v5, %v4201_v44 }
 0x3cf   :  { %v7433_v48 = vpop.f32.mrb[96].mxu0 }
 0x3d0   :  { %v4411_v24 = vadd.f32 %v7400_v22, %v4306_v58  ;;  %v7489_v20 = vpop.f32.mrb[96].mxu1  ;;  %v7434_v6 = vpop.f32.mrb[97].mxu0 }
 0x3d1   :  { %v7435_v23 = vadd.f32 %v7434_v6, %v7433_v48  ;;  %v7490_v31 = vpop.f32.mrb[97].mxu1 }
 0x3d2   :  { %v7491_v21 = vadd.f32 %v7490_v31, %v7489_v20 }
 0x3d3   :  { %v4481_v27 = vadd.f32 %v7435_v23, %v4376_v60  ;;  %v7436_v54 = vpop.f32.mrb[98].mxu0 }
 0x3d4   :  { %v7492_v61 = vpop.f32.mrb[98].mxu1  ;;  %v7437_v26 = vpop.f32.mrb[99].mxu0 }
 0x3d5   :  { %v4586_v33 = vadd.f32 %v7491_v21, %v4481_v27  ;;  %v7438_v18 = vadd.f32 %v7437_v26, %v7436_v54  ;;  %v7493_v37 = vpop.f32.mrb[99].mxu1 }
 0x3d6   :  { %v7494_v57 = vadd.f32 %v7493_v37, %v7492_v61 }
 0x3d7   :  { %v4486_v12 = vadd.f32 %v7438_v18, %v4381_v51  ;;  %v7439_v4 = vpop.f32.mrb[100].mxu0 }
 0x3d8   :  { %v7495_v17 = vpop.f32.mrb[100].mxu1  ;;  %v7440_v49 = vpop.f32.mrb[101].mxu0 }
 0x3d9   :  { %v4591_v44 = vadd.f32 %v7494_v57, %v4486_v12  ;;  %v7441_v40 = vadd.f32 %v7440_v49, %v7439_v4  ;;  %v7496_v10 = vpop.f32.mrb[101].mxu1 }
 0x3da   :  { %v7497_v46 = vadd.f32 %v7496_v10, %v7495_v17 }
 0x3db   :  { %v4491_v59 = vadd.f32 %v7441_v40, %v4386_v42  ;;  %v7442_v2 = vpop.f32.mrb[102].mxu0 }
 0x3dc   :  { %v7498_v45 = vpop.f32.mrb[102].mxu1  ;;  %v7443_v35 = vpop.f32.mrb[103].mxu0 }
 0x3dd   :  { %v14701_v60 = vadd.f32 %v7497_v46, %v4491_v59  ;;  %v7444_v0 = vadd.f32 %v7443_v35, %v7442_v2  ;;  %v7499_v55 = vpop.f32.mrb[103].mxu1 }
 0x3de   :  { %v7500_v50 = vadd.f32 %v7499_v55, %v7498_v45 }
 0x3df   :  { %v4496_v13 = vadd.f32 %v7444_v0, %v4391_v1  ;;  %v7445_v7 = vpop.f32.mrb[104].mxu0 }
 0x3e0   :  { %v7501_v25 = vpop.f32.mrb[104].mxu1  ;;  %v7446_v51 = vpop.f32.mrb[105].mxu0 }
 0x3e1   :  { %v14703_v9 = vadd.f32 %v7500_v50, %v4496_v13  ;;  %v7447_v43 = vadd.f32 %v7446_v51, %v7445_v7  ;;  %v7502_v63 = vpop.f32.mrb[105].mxu1  ;;  %v9049_v50 = vmov 0.0  }
 0x3e2   :  { %v7503_v28 = vadd.f32 %v7502_v63, %v7501_v25  ;;  %7689 = vmatprep.subr.mxu0 %v9049_v50  ;;  %7694 = vmatprep.subr.mxu1 %v9049_v50 }
 0x3e3   :  { %v4501_v32 = vadd.f32 %v7447_v43, %v4396_v53  ;;  %v7448_v3 = vpop.f32.mrb[106].mxu0  ;;  %7691 = vmatprep.mubr.msk.f32.mxu0 %vm9050_vm0, %v9049_v50  ;;  %7696 = vmatprep.mubr.msk.f32.mxu1 %vm9050_vm0, %v9049_v50 }
 0x3e4   :  { %v7504_v42 = vpop.f32.mrb[106].mxu1  ;;  %v7449_v11 = vpop.f32.mrb[107].mxu0 }
 0x3e5   :  { %v14705_v16 = vadd.f32 %v7503_v28, %v4501_v32  ;;  %v7450_v19 = vadd.f32 %v7449_v11, %v7448_v3  ;;  %v7505_v62 = vpop.f32.mrb[107].mxu1 }
 0x3e6   :  { %v7506_v38 = vadd.f32 %v7505_v62, %v7504_v42 }
 0x3e7   :  { %v4506_v56 = vadd.f32 %v7450_v19, %v4401_v29  ;;  %v7451_v5 = vpop.f32.mrb[108].mxu0 }
 0x3e8   :  { %v7507_v1 = vpop.f32.mrb[108].mxu1  ;;  %v7452_v41 = vpop.f32.mrb[109].mxu0 }
 0x3e9   :  { %v14707_v22 = vadd.f32 %v7506_v38, %v4506_v56  ;;  %v7453_v58 = vadd.f32 %v7452_v41, %v7451_v5  ;;  %v7508_v48 = vpop.f32.mrb[109].mxu1 }
 0x3ea   :  { %v7509_v20 = vadd.f32 %v7508_v48, %v7507_v1 }
 0x3eb   :  { %v4511_v6 = vadd.f32 %v7453_v58, %v4406_v39  ;;  %v7454_v23 = vpop.f32.mrb[110].mxu0 }
 0x3ec   :  { %v7510_v53 = vpop.f32.mrb[110].mxu1  ;;  %v7455_v31 = vpop.f32.mrb[111].mxu0 }
 0x3ed   :  { %v14709_v21 = vadd.f32 %v7509_v20, %v4511_v6  ;;  %v7456_v27 = vadd.f32 %v7455_v31, %v7454_v23  ;;  %v7511_v54 = vpop.f32.mrb[111].mxu1 }
 0x3ee   :  { %v7512_v61 = vadd.f32 %v7511_v54, %v7510_v53 }
 0x3ef   :  { %v4516_v26 = vadd.f32 %v7456_v27, %v4411_v24 }
 0x3f0   :  { %v7545_v18 = vpop.f32.mrb[112].mxu0 }
 0x3f1   :  { %v14711_v29 = vadd.f32 %v7512_v61, %v4516_v26  ;;  %v7601_v37 = vpop.f32.mrb[112].mxu1  ;;  %v7546_v57 = vpop.f32.mrb[113].mxu0 }
 0x3f2   :  { %v7547_v12 = vadd.f32 %v7546_v57, %v7545_v18  ;;  %v7602_v4 = vpop.f32.mrb[113].mxu1 }
 0x3f3   :  { %v7603_v17 = vadd.f32 %v7602_v4, %v7601_v37 }
 0x3f4   :  { %v4691_v49 = vadd.f32 %v7547_v12, %v4586_v33  ;;  %v7548_v40 = vpop.f32.mrb[114].mxu0 }
 0x3f5   :  { %v7604_v39 = vpop.f32.mrb[114].mxu1  ;;  %v7549_v10 = vpop.f32.mrb[115].mxu0 }
 0x3f6   :  { %v14713_v46 = vadd.f32 %v7603_v17, %v4691_v49  ;;  %v7550_v59 = vadd.f32 %v7549_v10, %v7548_v40  ;;  %v7605_v2 = vpop.f32.mrb[115].mxu1 }
 0x3f7   :  { %v7606_v45 = vadd.f32 %v7605_v2, %v7604_v39  ;;  %v4890_v2 = vsub.f32 0.0, %v12037_v47 }
 0x3f8   :  { %v4696_v35 = vadd.f32 %v7550_v59, %v4591_v44  ;;  %v7551_v0 = vpop.f32.mrb[116].mxu0  ;;  %4836 = vperm.xlu1 %8413, %v14713_v46  }
 0x3f9   :  { %v7607_v24 = vpop.f32.mrb[116].mxu1  ;;  %v7552_v55 = vpop.f32.mrb[117].mxu0 }
 0x3fa   :  { %v14718_v33 = vadd.f32 %v7606_v45, %v4696_v35  ;;  %v7553_v13 = vadd.f32 %v7552_v55, %v7551_v0  ;;  %v7608_v7 = vpop.f32.mrb[117].mxu1  ;;  %v4898_v45 = vmul.f32 1.442695, %v4890_v2  ;;  %v4894_v35 = vsub.f32 0.0, %v12299_v52  ;;  %v5288_v2 = vld [vmem:[%s15111_s5] sm:$0xff] }
 0x3fb   :  { %v7609_v25 = vadd.f32 %v7608_v7, %v7607_v24 }
 0x3fc   :  { %v4701_v51 = vadd.f32 %v7553_v13, %v14701_v60  ;;  %v7554_v43 = vpop.f32.mrb[118].mxu0  ;;  %8927 = vpow2.f32 %v4898_v45  ;;  %v5289_v45 = vld [vmem:[%s15111_s5 + $0x8] sm:$0xff] }
 0x3fd   :  { %v7610_v63 = vpop.f32.mrb[118].mxu1  ;;  %v7555_v44 = vpop.f32.mrb[119].mxu0 }
 0x3fe   :  { %v14721_v28 = vadd.f32 %v7609_v25, %v4701_v51  ;;  %v7556_v32 = vadd.f32 %v7555_v44, %v7554_v43  ;;  %v7611_v3 = vpop.f32.mrb[119].mxu1 }
 0x3ff   :  { %v7612_v42 = vadd.f32 %v7611_v3, %v7610_v63 }
 0x400   :  { %v4706_v11 = vadd.f32 %v7556_v32, %v14703_v9  ;;  %v7557_v19 = vpop.f32.mrb[120].mxu0 }
 0x401   :  { %v7613_v62 = vpop.f32.mrb[120].mxu1  ;;  %v7558_v38 = vpop.f32.mrb[121].mxu0 }
 0x402   :  { %v14724_v56 = vadd.f32 %v7612_v42, %v4706_v11  ;;  %v7559_v5 = vadd.f32 %v7558_v38, %v7557_v19  ;;  %v7614_v1 = vpop.f32.mrb[121].mxu1 }
 0x403   :  { %v7615_v41 = vadd.f32 %v7614_v1, %v7613_v62 }
 0x404   :  { %v4711_v60 = vadd.f32 %v7559_v5, %v14705_v16  ;;  %v7560_v58 = vpop.f32.mrb[122].mxu0 }
 0x405   :  { %v7616_v48 = vpop.f32.mrb[122].mxu1  ;;  %v7561_v20 = vpop.f32.mrb[123].mxu0 }
 0x406   :  { %v4816_v6 = vadd.f32 %v7615_v41, %v4711_v60  ;;  %v7562_v23 = vadd.f32 %v7561_v20, %v7560_v58  ;;  %v7617_v53 = vpop.f32.mrb[123].mxu1  ;;  %v8928_v0 = vpop.eup %8927 }
 0x407   :  { %v7618_v31 = vadd.f32 %v7617_v53, %v7616_v48  ;;  %v4914_v24 = vadd.f32 1.0, %v8928_v0  ;;  %v14788_v0 = vpack.c.bf16 %v5289_v45, %v5288_v2 }
 0x408   :  { %v4716_v27 = vadd.f32 %v7562_v23, %v14707_v22  ;;  %v7563_v9 = vpop.f32.mrb[124].mxu0  ;;  %4856 = vperm.xlu0 %8414, %v4816_v6  }
 0x409   :  { %v7619_v54 = vpop.f32.mrb[124].mxu1  ;;  %v7564_v61 = vpop.f32.mrb[125].mxu0 }
 0x40a   :  { %v14732_v16 = vadd.f32 %v7618_v31, %v4716_v27  ;;  %v7565_v26 = vadd.f32 %v7564_v61, %v7563_v9  ;;  %v7620_v18 = vpop.f32.mrb[125].mxu1 }
 0x40b   :  { %v7621_v37 = vadd.f32 %v7620_v18, %v7619_v54 }
 0x40c   :  { %v4721_v57 = vadd.f32 %v7565_v26, %v14709_v21  ;;  %v7566_v12 = vpop.f32.mrb[126].mxu0  ;;  %v4906_v21 = vmul.f32 1.442695, %v4894_v35 }
 0x40d   :  { %v7622_v22 = vpop.f32.mrb[126].mxu1  ;;  %v7567_v4 = vpop.f32.mrb[127].mxu0 }
 0x40e   :  { %v14735_v17 = vadd.f32 %v7621_v37, %v4721_v57  ;;  %v7568_v49 = vadd.f32 %v7567_v4, %v7566_v12  ;;  %v7623_v40 = vpop.f32.mrb[127].mxu1 }
 0x40f   :  { %v7624_v39 = vadd.f32 %v7623_v40, %v7622_v22  ;;  %v4891_v40 = vsub.f32 0.0, %v12119_v34  ;;  %v5290_v34 = vld [vmem:[%s15111_s5 + $0x10] sm:$0xff] }
 0x410   :  { %v4726_v10 = vadd.f32 %v7568_v49, %v14711_v29  ;;  %v9052_v49 = vmov 0.0|0.0  }
 0x412   :  { %v14738_v59 = vadd.f32 %v7624_v39, %v4726_v10  ;;  %v4900_v10 = vmul.f32 1.442695, %v4891_v40 }
 0x477   :  { %v4837_v55 = vpop.permute.xlu1 %4836 }
 0x478   :  { %8929 = vrcp.f32 %v4837_v55 }
 0x479   :  { %8931 = vpow2.f32 %v4906_v21 }
 0x47a   :  { %8933 = vrcp.f32 %v4914_v24  ;;  %v5291_v24 = vld [vmem:[%s15111_s5 + $0x18] sm:$0xff] }
 0x47b   :  { %v14803_v55 = vpack.c.bf16 %v5291_v24, %v5290_v34  ;;  %v5286_v24 = vld [vmem:[%s15110_s4 + $0x10] sm:$0xff] }
 0x482   :  { %v8930_v13 = vpop.eup %8929 }
 0x483   :  { %v8932_v7 = vpop.eup %8931  ;;  %v4875_v29 = vmul.f32 %v8930_v13, %v14713_v46  ;;  %v9051_v46 = vmov 1.0  }
 0x484   :  { %v8934_v25 = vpop.eup %8933  ;;  %v4918_v52 = vadd.f32 1.0, %v8932_v7 }
 0x485   :  { %v4939_v47 = vsel %vm4938_vm1, %v4875_v29, %v8934_v25 }
 0x486   :  { %4948 = vst.msk [vmem:[%s15113_s7] sm:$0xff] %vm4947_vm2, %v4939_v47  ;;  %7690 = vmatpush3.xpose.msk.msra.mxu0 %vm4938_vm1, %v4939_v47  ;;  %v5102_v43 = vmul.f32 %v4939_v47, %v4939_v47 }
 0x487   :  { %v4857_v51 = vpop.permute.xlu0 %4856  ;;  %7699 = vmatprep.subr.mxu0 %v9049_v50 }
 0x488   :  { %8935 = vrcp.f32 %v4857_v51 }
 0x489   :  { %7692 = vmatmul.mubr.msk.f32.vlgmr.msra.gmra.mrb[128].mxu0 %vm4938_vm1, %v4939_v47  ;;  %8937 = vrcp.f32 %v4918_v52 }
 0x48a   :  { %7700 = vmatpush3.xpose.msk.msra.mxu0 %vm4938_vm1, %v5102_v43  ;;  %7701 = vmatprep.mubr.msk.f32.mxu0 %vm9050_vm0, %v9049_v50 }
 0x48b   :  { %7709 = vmatprep.subr.mxu0 %v9049_v50 }
 0x48d   :  { %7702 = vmatmul.mubr.msk.f32.vlgmr.msra.gmra.mrb[130].mxu0 %vm4938_vm1, %v9051_v46 }
 0x48e   :  { %7710 = vmatpush3.msra.mxu0 %v4939_v47  ;;  %7711 = vmatprep.mubr.msk.f32.mxu0 %vm9050_vm0, %v9049_v50 }
 0x48f   :  { %8349 = vmatprep.subr.bf16.mxu0 %v9052_v49 }
 0x492   :  { %v8936_v63 = vpop.eup %8935 }
 0x493   :  { %v4883_v44 = vmul.f32 %v8936_v63, %v4816_v6  ;;  %v8938_v32 = vpop.eup %8937 }
 0x495   :  { %v4943_v3 = vsel %vm4938_vm1, %v4883_v44, %v8938_v32  ;;  %v4895_v44 = vsub.f32 0.0, %v12309_v36 }
 0x496   :  { %4952 = vst.msk [vmem:[%s15113_s7 + $0x20] sm:$0xff] %vm4947_vm2, %v4943_v3  ;;  %7695 = vmatpush3.xpose.msk.msra.mxu1 %vm4938_vm1, %v4943_v3  ;;  %v5103_v42 = vmul.f32 %v4943_v3, %v4943_v3 }
 0x497   :  { %7704 = vmatprep.subr.mxu1 %v9049_v50 }
 0x499   :  { %7697 = vmatmul.mubr.msk.f32.vlgmr.msra.gmra.mrb[128].mxu1 %vm4938_vm1, %v4943_v3 }
 0x49a   :  { %7705 = vmatpush3.xpose.msk.msra.mxu1 %vm4938_vm1, %v5103_v42  ;;  %7706 = vmatprep.mubr.msk.f32.mxu1 %vm9050_vm0, %v9049_v50 }
 0x49b   :  { %7714 = vmatprep.subr.mxu1 %v9049_v50 }
 0x49d   :  { %7707 = vmatmul.mubr.msk.f32.vlgmr.msra.gmra.mrb[130].mxu1 %vm4938_vm1, %v9051_v46 }
 0x49e   :  { %7715 = vmatpush3.msra.mxu1 %v4943_v3  ;;  %7716 = vmatprep.mubr.msk.f32.mxu1 %vm9050_vm0, %v9049_v50 }
 0x49f   :  { %8355 = vmatprep.subr.bf16.mxu1 %v9052_v49 }
 0x55c   :  { %v5025_v11 = vpop.f32.mrb[128].mxu0 }
 0x55d   :  { %v7693_v19 = vpop.f32.mrb[129].mxu0  ;;  %v5253_v62 = vmul.f32 2.0, %v5025_v11 }
 0x560   :  { %v5176_v38 = vpop.f32.mrb[130].mxu0 }
 0x561   :  { %v5255_v5 = vsub.f32 %v5253_v62, %v5176_v38  ;;  %v7703_v1 = vpop.f32.mrb[131].mxu0 }
 0x563   :  { %v5257_v41 = vmul.f32 2.0, %v5255_v5 }
 0x565   :  { %v5260_v60 = vsel %vm5259_vm3, %v5257_v41, -inf }
 0x566   :  { %5261 = vmax.xlane.f32.xlu1 %v5260_v60 }
 0x56c   :  { %v5098_v58 = vpop.f32.mrb[128].mxu1 }
 0x56d   :  { %v7698_v48 = vpop.f32.mrb[129].mxu1  ;;  %v5254_v20 = vmul.f32 2.0, %v5098_v58 }
 0x570   :  { %v5249_v6 = vpop.f32.mrb[130].mxu1 }
 0x571   :  { %v5256_v23 = vsub.f32 %v5254_v20, %v5249_v6  ;;  %v7708_v53 = vpop.f32.mrb[131].mxu1 }
 0x573   :  { %v5258_v31 = vmul.f32 2.0, %v5256_v23 }
 0x575   :  { %v5263_v27 = vsel %vm5259_vm3, %v5258_v31, -inf }
 0x576   :  { %5264 = vmax.xlane.f32.xlu1 %v5263_v27 }
 0x5f3   :  { %v5262_v9 = vpop.xlane.xlu1 %5261 }
 0x5f4   :  { %v5266_v54 = vsub.f32 %v5257_v41, %v5262_v9 }
 0x5f6   :  { %v5268_v61 = vmul.f32 1.442695, %v5266_v54 }
 0x5f8   :  { %8939 = vpow2.f32 %v5268_v61 }
 0x602   :  { %v8940_v26 = vpop.eup %8939 }
 0x603   :  { %v5265_v18 = vpop.xlane.xlu1 %5264  ;;  %v5272_v37 = vsel %vm5259_vm3, %v8940_v26, 0.0 }
 0x604   :  { %v5267_v57 = vsub.f32 %v5258_v31, %v5265_v18  ;;  %5273 = vadd.xlane.f32.xlu0 %v5272_v37  ;;  %v5285_v18 = vld [vmem:[%s15110_s4 + $0x8] sm:$0xff] }
 0x606   :  { %v5270_v12 = vmul.f32 1.442695, %v5267_v57 }
 0x608   :  { %8941 = vpow2.f32 %v5270_v12 }
 0x612   :  { %v8942_v22 = vpop.eup %8941 }
 0x613   :  { %v5275_v4 = vsel %vm5259_vm3, %v8942_v22, 0.0 }
 0x614   :  { %5276 = vadd.xlane.f32.xlu1 %v5275_v4 }
 0x625   :  { %4841 = vperm.xlu1 %8413, %v14718_v33  }
 0x629   :  { %4861 = vperm.xlu1 %8413, %v14732_v16  }
 0x691   :  { %v5274_v39 = vpop.xlane.xlu0 %5273 }
 0x692   :  { %8943 = vrcp.f32 %v5274_v39 }
 0x693   :  { %8945 = vpow2.f32 %v4900_v10 }
 0x69c   :  { %v8944_v35 = vpop.eup %8943 }
 0x69d   :  { %v14790_v21 = vmul.f32 %v8944_v35, %v8940_v26  ;;  %v8946_v13 = vpop.eup %8945  ;;  %v5284_v26 = vld [vmem:[%s15110_s4] sm:$0xff] }
 0x69e   :  { %v4915_v29 = vadd.f32 1.0, %v8946_v13  ;;  %v14859_v10 = vpack.c.bf16 %v5285_v18, %v5284_v26  ;;  %v5287_v13 = vld [vmem:[%s15110_s4 + $0x18] sm:$0xff]  ;;  %s9057_s4 = smov 20  }
 0x69f   :  { %5282 = vst.msk [vmem:[#allocation2] sm:$0xff] %vm5259_vm3, %v14790_v21  ;;  %7712 = vmatmul.mubr.msk.f32.vlgmr.msra.gmra.mrb[132].mxu0 %vm5259_vm3, %v14790_v21 }
 0x6a0   :  { %8351 = vmatpush3.bf16.msra.mxu0 %v14788_v0  ;;  %7727 = vmatprep.mubr.msk.f32.mxu0 %vm9050_vm0, %v9049_v50 }
 0x6a1   :  { %v5277_v7 = vpop.xlane.xlu1 %5276  ;;  %8352 = vmatprep.subr.bf16.mxu0 %v9052_v49 }
 0x6a2   :  { %8947 = vrcp.f32 %v5277_v7 }
 0x6a4   :  { %8354 = vmatpush3.bf16.msra.mxu0 %v14803_v55 }
 0x6a5   :  { %v4842_v25 = vpop.permute.xlu1 %4841  ;;  %7741 = vmatprep.subr.mxu0 %v9049_v50 }
 0x6a6   :  { %8949 = vrcp.f32 %v4842_v25 }
 0x6a7   :  { %7728 = vmatmul.mubr.f32.vlgmr.msra.gmra.mrb[134].mxu0 %v9049_v50  ;;  %8951 = vrcp.f32 %v4915_v29  ;;  %v14877_v29 = vpack.c.bf16 %v5287_v13, %v5286_v24 }
 0x6a8   :  { %7743 = vmatprep.mubr.msk.f32.mxu0 %vm9050_vm0, %v9049_v50 }
 0x6a9   :  { %v4862_v32 = vpop.permute.xlu1 %4861 }
 0x6ac   :  { %v8948_v47 = vpop.eup %8947 }
 0x6ad   :  { %v14813_v52 = vmul.f32 %v8948_v47, %v8942_v22 }
 0x6af   :  { %5283 = vst.msk [vmem:[#allocation2 + $0x8] sm:$0xff] %vm5259_vm3, %v14813_v52  ;;  %7717 = vmatmul.mubr.msk.f32.vlgmr.msra.gmra.mrb[132].mxu1 %vm5259_vm3, %v14813_v52 }
 0x6b0   :  { %v8950_v51 = vpop.eup %8949  ;;  %7738 = vmatprep.mubr.msk.f32.mxu1 %vm9050_vm0, %v9049_v50  ;;  %8357 = vmatpush3.bf16.msra.mxu1 %v14859_v10 }
 0x6b1   :  { %v4877_v43 = vmul.f32 %v8950_v51, %v14718_v33  ;;  %v8952_v46 = vpop.eup %8951  ;;  %v4908_v33 = vmul.f32 1.442695, %v4895_v44  ;;  %8358 = vmatprep.subr.bf16.mxu1 %v9052_v49 }
 0x6b3   :  { %v4940_v63 = vsel %vm4938_vm1, %v4877_v43, %v8952_v46  ;;  %8953 = vpow2.f32 %v4908_v33 }
 0x6b4   :  { %4949 = vst.msk [vmem:[%s15113_s7 + $0x8] sm:$0xff] %vm4947_vm2, %v4940_v63  ;;  %7742 = vmatpush3.msra.mxu0 %v4940_v63  ;;  %8955 = vrcp.f32 %v4862_v32  ;;  %8360 = vmatpush3.bf16.msra.mxu1 %v14877_v29 }
 0x6b5   :  { %7744 = vmatmul.mubr.msk.f32.vlgmr.msra.gmra.mrb[136].mxu0 %vm5259_vm3, %v14790_v21  ;;  %8361 = vmatprep.subr.bf16.mxu0 %v9052_v49 }
 0x6b6   :  { %8363 = vmatpush3.bf16.msra.mxu0 %v14788_v0  ;;  %7759 = vmatprep.mubr.msk.f32.mxu0 %vm9050_vm0, %v9049_v50 }
 0x6b7   :  { %8364 = vmatprep.subr.bf16.mxu0 %v9052_v49  ;;  %7746 = vmatprep.subr.mxu1 %v9049_v50 }
 0x6ba   :  { %8366 = vmatpush3.bf16.msra.mxu0 %v14803_v55 }
 0x6bb   :  { %7773 = vmatprep.subr.mxu0 %v9049_v50 }
 0x6bd   :  { %v8954_v36 = vpop.eup %8953 }
 0x6be   :  { %v4919_v3 = vadd.f32 1.0, %v8954_v36  ;;  %v8956_v42 = vpop.eup %8955 }
 0x6bf   :  { %v4885_v11 = vmul.f32 %v8956_v42, %v14732_v16 }
 0x6c0   :  { %8957 = vrcp.f32 %v4919_v3 }
 0x6ca   :  { %v8958_v19 = vpop.eup %8957 }
 0x6cb   :  { %v14839_v62 = vsel %vm4938_vm1, %v4885_v11, %v8958_v19 }
 0x6cc   :  { %4953 = vst.msk [vmem:[%s15113_s7 + $0x28] sm:$0xff] %vm4947_vm2, %v14839_v62 }
 0x772   :  { %v5362_v38 = vpop.f32.mrb[132].mxu0 }
 0x773   :  { %v7713_v5 = vpop.f32.mrb[133].mxu0  ;;  %v5445_v60 = vrot.slane %v5362_v38, 1  ;;  %v5450_v58 = vrot.slane %v5362_v38, 2  ;;  %v5456_v48 = vrot.slane %v5362_v38, 3  ;;  %v5462_v20 = vrot.slane %v5362_v38, 4 }
 0x774   :  { %v5468_v6 = vrot.slane %v5362_v38, 5  ;;  %v5474_v23 = vrot.slane %v5362_v38, 6  ;;  %v5480_v53 = vrot.slane %v5362_v38, 7 }
 0x77a   :  { %v14846_v1 = vpop.f32.mrb[134].mxu0 }
 0x77b   :  { %v7729_v41 = vpop.f32.mrb[135].mxu0 }
 0x782   :  { %v5435_v16 = vpop.f32.mrb[132].mxu1 }
 0x783   :  { %v7718_v31 = vpop.f32.mrb[133].mxu1  ;;  %v5446_v27 = vsel %vm5442_vm4, %v5435_v16, %v5445_v60  ;;  %v5451_v9 = vrot.slane %v5435_v16, 1  ;;  %v5457_v54 = vrot.slane %v5435_v16, 2  ;;  %v5463_v61 = vrot.slane %v5435_v16, 3 }
 0x784   :  { %5447 = vrot.lane.b32.xlu1 %v5446_v27, %s9053_s17  ;;  %v5469_v37 = vrot.slane %v5435_v16, 4  ;;  %v5475_v57 = vrot.slane %v5435_v16, 5  ;;  %v5481_v12 = vrot.slane %v5435_v16, 6  ;;  %v5441_v22 = vrot.slane %v5435_v16, 7 }
 0x785   :  { %v5452_v4 = vsel %vm5442_vm4, %v5451_v9, %v5450_v58  ;;  %v5458_v40 = vsel %vm5442_vm4, %v5457_v54, %v5456_v48  ;;  %v5464_v39 = vsel %vm5442_vm4, %v5463_v61, %v5462_v20  ;;  %v4892_v58 = vsub.f32 0.0, %v12086_v14  ;;  %v14927_v61 = vld [vmem:[%s15112_s6] ss:$0 sm:$0xff] }
 0x786   :  { %5453 = vrot.lane.b32.xlu0 %v5452_v4, %s9054_s2  ;;  %v5470_v2 = vsel %vm5442_vm4, %v5469_v37, %v5468_v6  ;;  %v5476_v45 = vsel %vm5442_vm4, %v5475_v57, %v5474_v23  ;;  %v5482_v35 = vsel %vm5442_vm4, %v5481_v12, %v5480_v53  ;;  %v5443_v34 = vsel %vm5442_vm4, %v5441_v22, %v5362_v38 }
 0x787   :  { %v4902_v16 = vmul.f32 1.442695, %v4892_v58 }
 0x788   :  { %5459 = vrot.lane.b32.xlu1 %v5458_v40, %s9055_s3  ;;  %v14874_v7 = vpop.f32.mrb[136].mxu0 }
 0x789   :  { %v7745_v25 = vpop.f32.mrb[137].mxu0  ;;  %v5803_v12 = vrot.slane %v14874_v7, 2  ;;  %v5809_v22 = vrot.slane %v14874_v7, 3  ;;  %v5815_v40 = vrot.slane %v14874_v7, 4 }
 0x78a   :  { %4866 = vperm.xlu0 %8414, %v14735_v17  }
 0x78c   :  { %5465 = vrot.lane.b32.xlu1 %v5464_v39, %s9056_s0  ;;  %v5821_v39 = vrot.slane %v14874_v7, 5 }
 0x790   :  { %5471 = vrot.lane.b32.xlu1 %v5470_v2, %s9057_s4  ;;  %v5827_v2 = vrot.slane %v14874_v7, 6 }
 0x794   :  { %5477 = vrot.lane.b32.xlu1 %v5476_v45, %s9058_s22  ;;  %v5833_v45 = vrot.slane %v14874_v7, 7 }
 0x798   :  { %5483 = vrot.lane.b32.xlu1 %v5482_v35, %s9059_s23 }
 0x79c   :  { %4846 = vperm.xlu1 %8413, %v14721_v28  }
 0x7f6   :  { %v5448_v47 = vpop.permute.xlu1 %5447 }
 0x7f7   :  { %v5486_v46 = vsel %vm4947_vm2, %v5443_v34, %v5448_v47 }
 0x7f8   :  { %v5454_v63 = vpop.permute.xlu0 %5453 }
 0x7f9   :  { %v5487_v33 = vsel %vm5259_vm3, %v5486_v46, %v5454_v63 }
 0x7fa   :  { %v5460_v51 = vpop.permute.xlu1 %5459 }
 0x7fb   :  { %v5489_v32 = vsel %vm5488_vm5, %v5487_v33, %v5460_v51 }
 0x7fe   :  { %v5466_v43 = vpop.permute.xlu1 %5465 }
 0x7ff   :  { %v5491_v3 = vsel %vm5490_vm6, %v5489_v32, %v5466_v43 }
 0x802   :  { %v5472_v44 = vpop.permute.xlu1 %5471 }
 0x803   :  { %v5493_v42 = vsel %vm5492_vm7, %v5491_v3, %v5472_v44 }
 0x806   :  { %v5478_v36 = vpop.permute.xlu1 %5477 }
 0x807   :  { %v5495_v11 = vsel %vm5494_vm8, %v5493_v42, %v5478_v36 }
 0x809   :  { %v4867_v60 = vpop.permute.xlu0 %4866 }
 0x80a   :  { %v5484_v19 = vpop.permute.xlu1 %5483 }
 0x80b   :  { %v5497_v38 = vsel %vm5496_vm9, %v5495_v11, %v5484_v19 }
 0x80c   :  { %7739 = vmatmul.mubr.msk.f32.vlgmr.msra.gmra.mrb[134].mxu1 %vm5498_vm10, %v5497_v38 }
 0x80d   :  { %7747 = vmatpush3.msra.mxu1 %v14839_v62  ;;  %7748 = vmatprep.mubr.msk.f32.mxu1 %vm9050_vm0, %v9049_v50  ;;  %v4896_v62 = vsub.f32 0.0, %v12319_v15 }
 0x80e   :  { %8367 = vmatprep.subr.bf16.mxu1 %v9052_v49 }
 0x80f   :  { %v4910_v5 = vmul.f32 1.442695, %v4896_v62 }
 0x810   :  { %7749 = vmatmul.mubr.msk.f32.vlgmr.msra.gmra.mrb[136].mxu1 %vm5259_vm3, %v14813_v52 }
 0x811   :  { %8369 = vmatpush3.bf16.msra.mxu1 %v14859_v10  ;;  %7770 = vmatprep.mubr.msk.f32.mxu1 %vm9050_vm0, %v9049_v50  ;;  %8959 = vpow2.f32 %v4910_v5 }
 0x812   :  { %8370 = vmatprep.subr.bf16.mxu1 %v9052_v49  ;;  %8961 = vrcp.f32 %v4867_v60 }
 0x815   :  { %8372 = vmatpush3.bf16.msra.mxu1 %v14877_v29 }
 0x816   :  { %7778 = vmatprep.subr.mxu1 %v9049_v50 }
 0x81b   :  { %v8960_v41 = vpop.eup %8959  ;;  %v4847_v6 = vpop.permute.xlu1 %4846 }
 0x81c   :  { %v4920_v48 = vadd.f32 1.0, %v8960_v41  ;;  %v8962_v20 = vpop.eup %8961 }
 0x81d   :  { %v4887_v23 = vmul.f32 %v8962_v20, %v14735_v17 }
 0x81e   :  { %8963 = vrcp.f32 %v4920_v48 }
 0x81f   :  { %8965 = vpow2.f32 %v4902_v16 }
 0x820   :  { %8967 = vrcp.f32 %v4847_v6 }
 0x828   :  { %v8964_v53 = vpop.eup %8963 }
 0x829   :  { %v8966_v31 = vpop.eup %8965  ;;  %v14911_v27 = vsel %vm4938_vm1, %v4887_v23, %v8964_v53  ;;  %v4893_v53 = vsub.f32 0.0, %v12253_v30 }
 0x82a   :  { %4954 = vst.msk [vmem:[%s15113_s7 + $0x30] sm:$0xff] %vm4947_vm2, %v14911_v27  ;;  %v4916_v14 = vadd.f32 1.0, %v8966_v31  ;;  %v8968_v15 = vpop.eup %8967  ;;  %v4897_v31 = vsub.f32 0.0, %v12337_v8 }
 0x82b   :  { %v4879_v9 = vmul.f32 %v8968_v15, %v14721_v28  ;;  %v5798_v28 = vrot.slane %v14874_v7, 1 }
 0x82c   :  { %8969 = vrcp.f32 %v4916_v14  ;;  %v4912_v14 = vmul.f32 1.442695, %v4897_v31 }
 0x836   :  { %v8970_v54 = vpop.eup %8969 }
 0x837   :  { %v4941_v17 = vsel %vm4938_vm1, %v4879_v9, %v8970_v54 }
 0x838   :  { %4950 = vst.msk [vmem:[%s15113_s7 + $0x10] sm:$0xff] %vm4947_vm2, %v4941_v17 }
 0x8df   :  { %v5641_v26 = vpop.f32.mrb[134].mxu1 }
 0x8e0   :  { %v5642_v18 = vadd.f32 %v5641_v26, %v14846_v1  ;;  %v7740_v37 = vpop.f32.mrb[135].mxu1 }
 0x8e2   :  { %v5651_v57 = vadd.f32 %v14927_v61, %v5642_v18 }
 0x8e3   :  { %v5789_v4 = vpop.f32.mrb[136].mxu1 }
 0x8e4   :  { %8971 = vtanh.f32 %v5651_v57  ;;  %v7750_v1 = vpop.f32.mrb[137].mxu1  ;;  %v5799_v35 = vsel %vm5442_vm4, %v5789_v4, %v5798_v28  ;;  %v5804_v34 = vrot.slane %v5789_v4, 1  ;;  %v5810_v24 = vrot.slane %v5789_v4, 2 }
 0x8e5   :  { %5800 = vrot.lane.b32.xlu1 %v5799_v35, %s9053_s17  ;;  %v5816_v13 = vrot.slane %v5789_v4, 3  ;;  %v5822_v25 = vrot.slane %v5789_v4, 4  ;;  %v5828_v47 = vrot.slane %v5789_v4, 5  ;;  %v5834_v51 = vrot.slane %v5789_v4, 6 }
 0x8e6   :  { %v5805_v43 = vsel %vm5442_vm4, %v5804_v34, %v5803_v12  ;;  %v5811_v46 = vsel %vm5442_vm4, %v5810_v24, %v5809_v22  ;;  %v5795_v63 = vrot.slane %v5789_v4, 7 }
 0x8e7   :  { %5806 = vrot.lane.b32.xlu0 %v5805_v43, %s9054_s2  ;;  %v5817_v44 = vsel %vm5442_vm4, %v5816_v13, %v5815_v40  ;;  %v5823_v33 = vsel %vm5442_vm4, %v5822_v25, %v5821_v39  ;;  %v5829_v36 = vsel %vm5442_vm4, %v5828_v47, %v5827_v2  ;;  %v5835_v32 = vsel %vm5442_vm4, %v5834_v51, %v5833_v45 }
 0x8e8   :  { %v5796_v3 = vsel %vm5442_vm4, %v5795_v63, %v14874_v7 }
 0x8e9   :  { %5812 = vrot.lane.b32.xlu1 %v5811_v46, %s9055_s3 }
 0x8eb   :  { %5818 = vrot.lane.b32.xlu0 %v5817_v44, %s9056_s0 }
 0x8ed   :  { %5824 = vrot.lane.b32.xlu1 %v5823_v33, %s9057_s4 }
 0x8ee   :  { %v8972_v42 = vpop.eup %8971 }
 0x8ef   :  { %6677 = vst.msk [vmem:[%s15115_s9] sm:$0x3] %vm6676_vm11, %v8972_v42  ;;  %7760 = vmatmul.mubr.msk.f32.vlgmr.msra.gmra.mrb[138].mxu0 %vm5498_vm10, %v8972_v42  ;;  %5830 = vrot.lane.b32.xlu0 %v5829_v36, %s9058_s22 }
 0x8f0   :  { %7774 = vmatpush3.msra.mxu0 %v4941_v17  ;;  %7775 = vmatprep.mubr.msk.f32.mxu0 %vm9050_vm0, %v9049_v50 }
 0x8f1   :  { %5836 = vrot.lane.b32.xlu1 %v5835_v32, %s9059_s23  ;;  %8373 = vmatprep.subr.bf16.mxu0 %v9052_v49 }
 0x8f3   :  { %7776 = vmatmul.mubr.msk.f32.vlgmr.msra.gmra.mrb[140].mxu0 %vm5259_vm3, %v14790_v21  ;;  %4851 = vperm.xlu0 %8414, %v14724_v56  }
 0x8f4   :  { %8375 = vmatpush3.bf16.msra.mxu0 %v14788_v0  ;;  %7791 = vmatprep.mubr.msk.f32.mxu0 %vm9050_vm0, %v9049_v50 }
 0x8f5   :  { %4871 = vperm.xlu1 %8413, %v14738_v59   ;;  %8376 = vmatprep.subr.bf16.mxu0 %v9052_v49 }
 0x8f8   :  { %8378 = vmatpush3.bf16.msra.mxu0 %v14803_v55 }
 0x8f9   :  { %7805 = vmatprep.subr.mxu0 %v9049_v50 }
 0x957   :  { %v5801_v7 = vpop.permute.xlu1 %5800 }
 0x958   :  { %v5839_v11 = vsel %vm4947_vm2, %v5796_v3, %v5801_v7 }
 0x959   :  { %v5807_v19 = vpop.permute.xlu0 %5806 }
 0x95a   :  { %v5840_v38 = vsel %vm5259_vm3, %v5839_v11, %v5807_v19 }
 0x95b   :  { %v5813_v62 = vpop.permute.xlu1 %5812 }
 0x95c   :  { %v5841_v5 = vsel %vm5488_vm5, %v5840_v38, %v5813_v62 }
 0x95d   :  { %v5819_v41 = vpop.permute.xlu0 %5818 }
 0x95e   :  { %v5842_v60 = vsel %vm5490_vm6, %v5841_v5, %v5819_v41 }
 0x95f   :  { %v5825_v58 = vpop.permute.xlu1 %5824 }
 0x960   :  { %v5843_v48 = vsel %vm5492_vm7, %v5842_v60, %v5825_v58 }
 0x961   :  { %v5831_v16 = vpop.permute.xlu0 %5830 }
 0x962   :  { %v5844_v20 = vsel %vm5494_vm8, %v5843_v48, %v5831_v16 }
 0x963   :  { %v5837_v6 = vpop.permute.xlu1 %5836 }
 0x964   :  { %v5845_v23 = vsel %vm5496_vm9, %v5844_v20, %v5837_v6 }
 0x965   :  { %7771 = vmatmul.mubr.msk.f32.vlgmr.msra.gmra.mrb[138].mxu1 %vm5498_vm10, %v5845_v23 }
 0x966   :  { %7779 = vmatpush3.msra.mxu1 %v14911_v27  ;;  %7780 = vmatprep.mubr.msk.f32.mxu1 %vm9050_vm0, %v9049_v50  ;;  %v4904_v27 = vmul.f32 1.442695, %v4893_v53 }
 0x967   :  { %8379 = vmatprep.subr.bf16.mxu1 %v9052_v49 }
 0x968   :  { %8973 = vpow2.f32 %v4904_v27 }
 0x969   :  { %7781 = vmatmul.mubr.msk.f32.vlgmr.msra.gmra.mrb[140].mxu1 %vm5259_vm3, %v14813_v52  ;;  %8975 = vpow2.f32 %v4912_v14 }
 0x96a   :  { %8381 = vmatpush3.bf16.msra.mxu1 %v14859_v10  ;;  %7802 = vmatprep.mubr.msk.f32.mxu1 %vm9050_vm0, %v9049_v50 }
 0x96b   :  { %8382 = vmatprep.subr.bf16.mxu1 %v9052_v49 }
 0x96e   :  { %8384 = vmatpush3.bf16.msra.mxu1 %v14877_v29 }
 0x96f   :  { %7810 = vmatprep.subr.mxu1 %v9049_v50 }
 0x972   :  { %v8974_v15 = vpop.eup %8973  ;;  %v4852_v9 = vpop.permute.xlu0 %4851 }
 0x973   :  { %v8976_v54 = vpop.eup %8975  ;;  %8977 = vrcp.f32 %v4852_v9  ;;  %v4917_v26 = vadd.f32 1.0, %v8974_v15 }
 0x974   :  { %v4872_v17 = vpop.permute.xlu1 %4871  ;;  %v4921_v18 = vadd.f32 1.0, %v8976_v54 }
 0x975   :  { %8979 = vrcp.f32 %v4872_v17 }
 0x976   :  { %8981 = vrcp.f32 %v4917_v26 }
 0x977   :  { %8983 = vrcp.f32 %v4921_v18 }
 0x97d   :  { %v8978_v37 = vpop.eup %8977 }
 0x97e   :  { %v4881_v30 = vmul.f32 %v8978_v37, %v14724_v56 }
 0x97f   :  { %v8980_v57 = vpop.eup %8979 }
 0x980   :  { %v8982_v28 = vpop.eup %8981  ;;  %v4889_v12 = vmul.f32 %v8980_v57, %v14738_v59 }
 0x981   :  { %v4942_v8 = vsel %vm4938_vm1, %v4881_v30, %v8982_v28  ;;  %v8984_v22 = vpop.eup %8983 }
 0x982   :  { %4951 = vst.msk [vmem:[%s15113_s7 + $0x18] sm:$0xff] %vm4947_vm2, %v4942_v8  ;;  %v15002_v4 = vsel %vm4938_vm1, %v4889_v12, %v8984_v22 }
 0x983   :  { %4955 = vst.msk [vmem:[%s15113_s7 + $0x38] sm:$0xff] %vm4947_vm2, %v15002_v4 }
 0x9c2   :  { %v5915_v56 = vpop.f32.mrb[138].mxu0 }
 0x9c3   :  { %v7761_v40 = vpop.f32.mrb[139].mxu0 }
 0x9c6   :  { %v6060_v39 = vpop.f32.mrb[140].mxu0 }
 0x9c7   :  { %v7777_v2 = vpop.f32.mrb[141].mxu0  ;;  %v6139_v34 = vrot.slane %v6060_v39, 1  ;;  %v6144_v24 = vrot.slane %v6060_v39, 2  ;;  %v6150_v13 = vrot.slane %v6060_v39, 3  ;;  %v6156_v47 = vrot.slane %v6060_v39, 4 }
 0x9c8   :  { %v6162_v51 = vrot.slane %v6060_v39, 5  ;;  %v6168_v43 = vrot.slane %v6060_v39, 6  ;;  %v6174_v46 = vrot.slane %v6060_v39, 7 }
 0xa38   :  { %v5988_v59 = vpop.f32.mrb[138].mxu1 }
 0xa39   :  { %v5989_v45 = vadd.f32 %v5988_v59, %v5915_v56  ;;  %v7772_v1 = vpop.f32.mrb[139].mxu1 }
 0xa3b   :  { %v5992_v35 = vadd.f32 %v14927_v61, %v5989_v45 }
 0xa3c   :  { %v6130_v25 = vpop.f32.mrb[140].mxu1 }
 0xa3d   :  { %8985 = vtanh.f32 %v5992_v35  ;;  %v7782_v63 = vpop.f32.mrb[141].mxu1  ;;  %v6140_v44 = vsel %vm5442_vm4, %v6130_v25, %v6139_v34  ;;  %v6145_v33 = vrot.slane %v6130_v25, 1  ;;  %v6151_v36 = vrot.slane %v6130_v25, 2 }
 0xa3e   :  { %6141 = vrot.lane.b32.xlu0 %v6140_v44, %s9053_s17  ;;  %v6157_v32 = vrot.slane %v6130_v25, 3  ;;  %v6163_v3 = vrot.slane %v6130_v25, 4  ;;  %v6169_v42 = vrot.slane %v6130_v25, 5  ;;  %v6175_v7 = vrot.slane %v6130_v25, 6 }
 0xa3f   :  { %v6146_v11 = vsel %vm5442_vm4, %v6145_v33, %v6144_v24  ;;  %v6152_v19 = vsel %vm5442_vm4, %v6151_v36, %v6150_v13  ;;  %v6136_v38 = vrot.slane %v6130_v25, 7 }
 0xa40   :  { %6147 = vrot.lane.b32.xlu1 %v6146_v11, %s9054_s2  ;;  %v6158_v62 = vsel %vm5442_vm4, %v6157_v32, %v6156_v47  ;;  %v6164_v5 = vsel %vm5442_vm4, %v6163_v3, %v6162_v51  ;;  %v6170_v41 = vsel %vm5442_vm4, %v6169_v42, %v6168_v43  ;;  %v6176_v60 = vsel %vm5442_vm4, %v6175_v7, %v6174_v46 }
 0xa41   :  { %v6137_v58 = vsel %vm5442_vm4, %v6136_v38, %v6060_v39 }
 0xa42   :  { %6153 = vrot.lane.b32.xlu0 %v6152_v19, %s9055_s3 }
 0xa44   :  { %6159 = vrot.lane.b32.xlu1 %v6158_v62, %s9056_s0 }
 0xa46   :  { %6165 = vrot.lane.b32.xlu0 %v6164_v5, %s9057_s4 }
 0xa47   :  { %v8986_v48 = vpop.eup %8985 }
 0xa48   :  { %6678 = vst.msk [vmem:[%s15115_s9 + $0x2] sm:$0x3] %vm6676_vm11, %v8986_v48  ;;  %7792 = vmatmul.mubr.msk.f32.vlgmr.msra.gmra.mrb[142].mxu0 %vm5498_vm10, %v8986_v48  ;;  %6171 = vrot.lane.b32.xlu1 %v6170_v41, %s9058_s22 }
 0xa49   :  { %7806 = vmatpush3.msra.mxu0 %v4942_v8  ;;  %7807 = vmatprep.mubr.msk.f32.mxu0 %vm9050_vm0, %v9049_v50 }
 0xa4a   :  { %6177 = vrot.lane.b32.xlu0 %v6176_v60, %s9059_s23  ;;  %8385 = vmatprep.subr.bf16.mxu0 %v9052_v49 }
 0xa4c   :  { %7808 = vmatmul.mubr.msk.f32.vlgmr.msra.gmra.mrb[144].mxu0 %vm5259_vm3, %v14790_v21 }
 0xa4d   :  { %8387 = vmatpush3.bf16.msra.mxu0 %v14788_v0  ;;  %7823 = vmatprep.mubr.msk.f32.mxu0 %vm9050_vm0, %v9049_v50 }
 0xa4e   :  { %8388 = vmatprep.subr.bf16.mxu0 %v9052_v49 }
 0xa51   :  { %8390 = vmatpush3.bf16.msra.mxu0 %v14803_v55 }
 0xab0   :  { %v6142_v16 = vpop.permute.xlu0 %6141 }
 0xab1   :  { %v6180_v20 = vsel %vm4947_vm2, %v6137_v58, %v6142_v16 }
 0xab2   :  { %v6148_v6 = vpop.permute.xlu1 %6147 }
 0xab3   :  { %v6181_v23 = vsel %vm5259_vm3, %v6180_v20, %v6148_v6 }
 0xab4   :  { %v6154_v53 = vpop.permute.xlu0 %6153 }
 0xab5   :  { %v6182_v31 = vsel %vm5488_vm5, %v6181_v23, %v6154_v53 }
 0xab6   :  { %v6160_v27 = vpop.permute.xlu1 %6159 }
 0xab7   :  { %v6183_v21 = vsel %vm5490_vm6, %v6182_v31, %v6160_v27 }
 0xab8   :  { %v6166_v0 = vpop.permute.xlu0 %6165 }
 0xab9   :  { %v6184_v14 = vsel %vm5492_vm7, %v6183_v21, %v6166_v0 }
 0xaba   :  { %v6172_v15 = vpop.permute.xlu1 %6171 }
 0xabb   :  { %v6185_v9 = vsel %vm5494_vm8, %v6184_v14, %v6172_v15 }
 0xabc   :  { %v6178_v54 = vpop.permute.xlu0 %6177 }
 0xabd   :  { %v6186_v55 = vsel %vm5496_vm9, %v6185_v9, %v6178_v54 }
 0xabe   :  { %7803 = vmatmul.mubr.msk.f32.vlgmr.msra.gmra.mrb[142].mxu1 %vm5498_vm10, %v6186_v55 }
 0xabf   :  { %7811 = vmatpush3.msra.mxu1 %v15002_v4  ;;  %7812 = vmatprep.mubr.msk.f32.mxu1 %vm9050_vm0, %v9049_v50 }
 0xac0   :  { %8391 = vmatprep.subr.bf16.mxu1 %v9052_v49 }
 0xac2   :  { %7813 = vmatmul.mubr.msk.f32.vlgmr.msra.gmra.mrb[144].mxu1 %vm5259_vm3, %v14813_v52 }
 0xac3   :  { %8393 = vmatpush3.bf16.msra.mxu1 %v14859_v10  ;;  %7834 = vmatprep.mubr.msk.f32.mxu1 %vm9050_vm0, %v9049_v50 }
 0xac4   :  { %8394 = vmatprep.subr.bf16.mxu1 %v9052_v49 }
 0xac7   :  { %8396 = vmatpush3.bf16.msra.mxu1 %v14877_v29 }
 0xb1b   :  { %v6256_v17 = vpop.f32.mrb[142].mxu0 }
 0xb1c   :  { %v7793_v26 = vpop.f32.mrb[143].mxu0 }
 0xb1f   :  { %v6401_v18 = vpop.f32.mrb[144].mxu0 }
 0xb20   :  { %v7809_v37 = vpop.f32.mrb[145].mxu0  ;;  %v6480_v12 = vrot.slane %v6401_v18, 1  ;;  %v6485_v52 = vrot.slane %v6401_v18, 2  ;;  %v6491_v22 = vrot.slane %v6401_v18, 3  ;;  %v6497_v4 = vrot.slane %v6401_v18, 4 }
 0xb21   :  { %v6503_v56 = vrot.slane %v6401_v18, 5  ;;  %v6509_v50 = vrot.slane %v6401_v18, 6  ;;  %v6515_v40 = vrot.slane %v6401_v18, 7 }
 0xb91   :  { %v6329_v57 = vpop.f32.mrb[142].mxu1 }
 0xb92   :  { %v6330_v30 = vadd.f32 %v6329_v57, %v6256_v17  ;;  %v7804_v28 = vpop.f32.mrb[143].mxu1 }
 0xb94   :  { %v6333_v8 = vadd.f32 %v14927_v61, %v6330_v30 }
 0xb95   :  { %v6471_v10 = vpop.f32.mrb[144].mxu1 }
 0xb96   :  { %8987 = vtanh.f32 %v6333_v8  ;;  %v7814_v49 = vpop.f32.mrb[145].mxu1  ;;  %v6481_v29 = vsel %vm5442_vm4, %v6471_v10, %v6480_v12  ;;  %v6486_v39 = vrot.slane %v6471_v10, 1  ;;  %v6492_v2 = vrot.slane %v6471_v10, 2 }
 0xb97   :  { %6482 = vrot.lane.b32.xlu1 %v6481_v29, %s9053_s17  ;;  %v6498_v59 = vrot.slane %v6471_v10, 3  ;;  %v6504_v45 = vrot.slane %v6471_v10, 4  ;;  %v6510_v1 = vrot.slane %v6471_v10, 5  ;;  %v6516_v35 = vrot.slane %v6471_v10, 6  ;;  %s9023_s17 = scalar_lea.vmem %s6689_s1, 256 }
 0xb98   :  { %v6487_v34 = vsel %vm5442_vm4, %v6486_v39, %v6485_v52  ;;  %v6493_v24 = vsel %vm5442_vm4, %v6492_v2, %v6491_v22  ;;  %v6477_v13 = vrot.slane %v6471_v10, 7  ;;  %p9024_p0 = scmp.ne.s32.totalorder %s6689_s1, %s9023_s17  ;;  %p9029_p2 = scmp.lt.s32.totalorder %s9023_s17, %s9023_s17 }
 0xb99   :  { %6488 = vrot.lane.b32.xlu0 %v6487_v34, %s9054_s2  ;;  %v6499_v25 = vsel %vm5442_vm4, %v6498_v59, %v6497_v4  ;;  %v6505_v47 = vsel %vm5442_vm4, %v6504_v45, %v6503_v56  ;;  %v6511_v51 = vsel %vm5442_vm4, %v6510_v1, %v6509_v50  ;;  %v6517_v43 = vsel %vm5442_vm4, %v6516_v35, %v6515_v40 }
 0xb9a   :  { %v6478_v46 = vsel %vm5442_vm4, %v6477_v13, %v6401_v18  ;;  %p9030_p3 = por %p9029_p2, %p9028_p1 }
 0xb9b   :  { %6494 = vrot.lane.b32.xlu1 %v6493_v24, %s9055_s3 }
 0xb9c   :  { %p9031_p4 = pnand %p9030_p3, %p9024_p0 }
 0xb9d   :  { %6500 = vrot.lane.b32.xlu0 %v6499_v25, %s9056_s0 }
 0xb9f   :  { %6506 = vrot.lane.b32.xlu1 %v6505_v47, %s9057_s4 }
 0xba0   :  { %v8988_v63 = vpop.eup %8987 }
 0xba1   :  { %6679 = vst.msk [vmem:[%s15115_s9 + $0x4] sm:$0x3] %vm6676_vm11, %v8988_v63  ;;  %7824 = vmatmul.mubr.msk.f32.vlgmr.msra.gmra.mrb[146].mxu0 %vm5498_vm10, %v8988_v63  ;;  %6512 = vrot.lane.b32.xlu0 %v6511_v51, %s9058_s22 }
 0xba3   :  { %6518 = vrot.lane.b32.xlu1 %v6517_v43, %s9059_s23 }
 0xc09   :  { %v6483_v44 = vpop.permute.xlu1 %6482 }
 0xc0a   :  { %v6521_v33 = vsel %vm4947_vm2, %v6478_v46, %v6483_v44 }
 0xc0b   :  { %v6489_v36 = vpop.permute.xlu0 %6488 }
 0xc0c   :  { %v6522_v32 = vsel %vm5259_vm3, %v6521_v33, %v6489_v36 }
 0xc0d   :  { %v6495_v3 = vpop.permute.xlu1 %6494 }
 0xc0e   :  { %v6523_v42 = vsel %vm5488_vm5, %v6522_v32, %v6495_v3 }
 0xc0f   :  { %v6501_v7 = vpop.permute.xlu0 %6500 }
 0xc10   :  { %v6524_v11 = vsel %vm5490_vm6, %v6523_v42, %v6501_v7 }
 0xc11   :  { %v6507_v19 = vpop.permute.xlu1 %6506 }
 0xc12   :  { %v6525_v38 = vsel %vm5492_vm7, %v6524_v11, %v6507_v19 }
 0xc13   :  { %v6513_v62 = vpop.permute.xlu0 %6512 }
 0xc14   :  { %v6526_v5 = vsel %vm5494_vm8, %v6525_v38, %v6513_v62 }
 0xc15   :  { %v6519_v41 = vpop.permute.xlu1 %6518 }
 0xc16   :  { %v6527_v60 = vsel %vm5496_vm9, %v6526_v5, %v6519_v41 }
 0xc17   :  { %7835 = vmatmul.mubr.msk.f32.vlgmr.msra.gmra.mrb[146].mxu1 %vm5498_vm10, %v6527_v60 }
 0xc74   :  { %v6597_v58 = vpop.f32.mrb[146].mxu0 }
 0xc75   :  { %v7825_v48 = vpop.f32.mrb[147].mxu0 }
 0xc76   :  { %9034 = shalt.err (!%p9031_p4)
}
 0xc77   :  { %s9035_s20 = scalar_lea.hbm %s15114_s8, 256 }
 0xc78   :  { %p9036_p5 = scmp.ne.s32.totalorder %s15114_s8, %s9035_s20  ;;  %p9039_p6 = scmp.lt.u32.totalorder %s9035_s20, %s15114_s8 }
 0xc7a   :  { %p9041_p7 = pnand %p9039_p6, %p9036_p5 }
 0xc7c   :  { %9044 = shalt.err (!%p9041_p7)
}
 0xc7d   :  { %s9061_s22 = smov 128  }
 0xc7e   :  { %6694 = dma.vmem_to_hbm [thread:$0]  %s6689_s1, 256, %s15114_s8, [#allocation3], %s9061_s22, %s9061_s22, %s9054_s2  }
 0xcea   :  { %v6670_v16 = vpop.f32.mrb[146].mxu1 }
 0xceb   :  { %v6671_v20 = vadd.f32 %v6670_v16, %v6597_v58  ;;  %v7836_v6 = vpop.f32.mrb[147].mxu1 }
 0xced   :  { %v6674_v23 = vadd.f32 %v14927_v61, %v6671_v20 }
 0xcef   :  { %8989 = vtanh.f32 %v6674_v23 }
 0xcf9   :  { %v8990_v53 = vpop.eup %8989 }
 0xcfa   :  { %6680 = vst.msk [vmem:[%s15115_s9 + $0x6] sm:$0x3] %vm6676_vm11, %v8990_v53 }
 0xcfb   :  { %9045 = dma.done.wait [#allocation3], 256  }
 0xcfc   :  { %9046 = vsyncadd [#allocation3], 4294967040 }
 0xcfd   :  { %6704 = vsyncpa [#allocation3], 1 }

</bundles_post_ra>
